<compile_context>
chip_gen: v5e
topology: v5e:2x2
jax: 0.10.0
libtpu: 0.0.40
codegen_flags: <defaults>
</compile_context>

<pallas_src>
import jax
import jax.numpy as jnp
import numpy as np
from jax.experimental import pallas as pl
from jax.experimental.pallas import tpu as pltpu


_VMEM_LIMIT = 48 * 1024 * 1024   # fits v7x (64 MiB physical) with headroom


def _round_up(x, m):
    return ((x + m - 1) // m) * m


# ------------------------------ Pallas kernels ------------------------------
def _mm_bias_relu_kernel(a_ref, w_ref, b_ref, o_ref):
    # (tm, K) @ (K, N) on the MXU with f32 accumulation; bias + ReLU in f32.
    acc = jnp.dot(a_ref[...], w_ref[...], preferred_element_type=jnp.float32)
    acc = jnp.maximum(acc + b_ref[...], 0.0)
    o_ref[...] = acc.astype(o_ref.dtype)


def _fc_fused_kernel(x_ref, w1_ref, b1_ref, w2_ref, b2_ref, o_ref):
    # Fused f1 -> ReLU -> f2 (+bias); the hidden vector never leaves VMEM.
    h = jnp.dot(x_ref[...], w1_ref[...], preferred_element_type=jnp.float32)
    h = jnp.maximum(h + b1_ref[...], 0.0).astype(w2_ref.dtype)
    o = jnp.dot(h, w2_ref[...], preferred_element_type=jnp.float32)
    o_ref[...] = (o + b2_ref[...]).astype(o_ref.dtype)


def _pad_rows(a, mp):
    m = a.shape[0]
    return a if mp == m else jnp.pad(a, ((0, mp - m), (0, 0)))


def matmul_bias_relu(a, w, b, *, out_dtype, tm=256):
    """a: (M, K), w: (K, N), b: (1, N) -> relu(a @ w + b): (M, N).

    Grid over M tiles; w / b are VMEM-resident, A / O are pipelined.
    """
    M, K = a.shape
    K2, N = w.shape
    assert K == K2 and b.shape == (1, N)
    tm = min(tm, _round_up(M, 16))
    Mp = _round_up(M, tm)
    out = pl.pallas_call(
        _mm_bias_relu_kernel,
        out_shape=jax.ShapeDtypeStruct((Mp, N), out_dtype),
        grid=(Mp // tm,),
        in_specs=[
            pl.BlockSpec((tm, K), lambda i: (i, 0)),
            pl.BlockSpec((K, N), lambda i: (0, 0)),
            pl.BlockSpec((1, N), lambda i: (0, 0)),
        ],
        out_specs=pl.BlockSpec((tm, N), lambda i: (i, 0)),
        compiler_params=pltpu.CompilerParams(
            dimension_semantics=("parallel",),
            vmem_limit_bytes=_VMEM_LIMIT,
        ),
    )(_pad_rows(a, Mp), w, b)
    return out[:M] if Mp != M else out


def fc_head(flat, fw1, fb1, fw2, fb2, *, tm=256):
    """Fused Linear(3136,512) + ReLU + Linear(512,128pad). Returns (M, 128) f32."""
    M, K = flat.shape
    K1, H = fw1.shape
    H2, Np = fw2.shape
    assert K == K1 and H == H2
    tm = min(tm, _round_up(M, 16))
    Mp = _round_up(M, tm)
    out = pl.pallas_call(
        _fc_fused_kernel,
        out_shape=jax.ShapeDtypeStruct((Mp, Np), jnp.float32),
        grid=(Mp // tm,),
        in_specs=[
            pl.BlockSpec((tm, K), lambda i: (i, 0)),
            pl.BlockSpec((K, H), lambda i: (0, 0)),
            pl.BlockSpec((1, H), lambda i: (0, 0)),
            pl.BlockSpec((H, Np), lambda i: (0, 0)),
            pl.BlockSpec((1, Np), lambda i: (0, 0)),
        ],
        out_specs=pl.BlockSpec((tm, Np), lambda i: (i, 0)),
        compiler_params=pltpu.CompilerParams(
            dimension_semantics=("parallel",),
            vmem_limit_bytes=_VMEM_LIMIT,
        ),
    )(_pad_rows(flat, Mp), fw1, fb1, fw2, fb2)
    return out[:M] if Mp != M else out


# ----------------------------- conv via im2col ------------------------------
def conv2d_relu_nhwc(x, w_mat, b, kh, kw, stride):
    """x: (N, H, W, C) NHWC -> (N, OH, OW, OC).  w_mat: (KH*KW*C, OC), b: (1, OC).

    im2col = one concatenate of strided NHWC slices along the channel axis
    (K order (kh, kw, c) matches the weight reshape); GEMM+bias+ReLU in Pallas.
    """
    n, h, wd, c = x.shape
    oh = (h - kh) // stride + 1
    ow = (wd - kw) // stride + 1
    cols = jnp.concatenate(
        [x[:, i:i + stride * (oh - 1) + 1:stride,
             j:j + stride * (ow - 1) + 1:stride, :]
         for i in range(kh) for j in range(kw)],
        axis=-1,
    ).reshape(n * oh * ow, kh * kw * c)
    # TODO(synk): form patches inside the Pallas kernel from a VMEM-resident
    # input tile to avoid materializing the im2col matrix in HBM at all.
    out = matmul_bias_relu(cols, w_mat, b, out_dtype=x.dtype)
    return out.reshape(n, oh, ow, w_mat.shape[1])


# -------------------------------- parameters --------------------------------
def init_raw_params(n_actions, key):
    """Raw parameters in PyTorch layout (OIHW conv weights, (out,in) linears)."""
    ks = jax.random.split(key, 10)
    s = 0.05
    return {
        "w1": jax.random.normal(ks[0], (32, 1, 8, 8), jnp.float32) * s,
        "b1": jax.random.normal(ks[1], (32,), jnp.float32) * s,
        "w2": jax.random.normal(ks[2], (64, 32, 4, 4), jnp.float32) * s,
        "b2": jax.random.normal(ks[3], (64,), jnp.float32) * s,
        "w3": jax.random.normal(ks[4], (64, 64, 3, 3), jnp.float32) * s,
        "b3": jax.random.normal(ks[5], (64,), jnp.float32) * s,
        "fw1": jax.random.normal(ks[6], (512, 3136), jnp.float32) * s * 0.1,
        "fb1": jax.random.normal(ks[7], (512,), jnp.float32) * s,
        "fw2": jax.random.normal(ks[8], (n_actions, 512), jnp.float32) * s,
        "fb2": jax.random.normal(ks[9], (n_actions,), jnp.float32) * s,
    }


def prepare_params(raw, n_actions, dtype=jnp.bfloat16):
    """One-time weight prep: reshapes/transposes, /255 folding, dtype cast,
    NHWC column permutation of fw1, lane-padding of fw2/fb2 to 128."""
    def conv_w(w):                     # (OC, IC, KH, KW) -> (KH*KW*IC, OC)
        oc, ic, kh, kw = w.shape
        return w.transpose(2, 3, 1, 0).reshape(kh * kw * ic, oc).astype(dtype)

    # PyTorch flattens NCHW (f = c*49 + h*7 + w); our activations flatten NHWC
    # (g = h*448 + w*64 + c) -> permute fw1's input columns once.
    fw1 = raw["fw1"].reshape(512, 64, 7, 7).transpose(0, 2, 3, 1).reshape(512, 3136)

    n_pad = 128                        # lane-dense FC2 output (sliced later)
    fw2 = jnp.zeros((512, n_pad), jnp.float32).at[:, :n_actions].set(raw["fw2"].T)
    fb2 = jnp.zeros((1, n_pad), jnp.float32).at[:, :n_actions].set(raw["fb2"])

    return {
        "w1": conv_w(raw["w1"] / 255.0),           # fold x/255 into conv1
        "b1": raw["b1"].reshape(1, -1).astype(jnp.float32),
        "w2": conv_w(raw["w2"]),
        "b2": raw["b2"].reshape(1, -1).astype(jnp.float32),
        "w3": conv_w(raw["w3"]),
        "b3": raw["b3"].reshape(1, -1).astype(jnp.float32),
        "fw1": fw1.T.astype(dtype),                # (3136, 512)
        "fb1": raw["fb1"].reshape(1, -1).astype(jnp.float32),
        "fw2": fw2.astype(dtype),                  # (512, 128)
        "fb2": fb2,                                # (1, 128) f32
    }


# --------------------------------- forward ----------------------------------
def qnetwork_forward(x, params, n_actions):
    """x: (N, 1, 84, 84) NCHW, pixels in [0, 255] -> (1, N, n_actions) f32."""
    n = x.shape[0]
    cdt = params["w1"].dtype
    xh = jnp.transpose(x, (0, 2, 3, 1)).astype(cdt)   # NHWC (C=1: effectively free)
    h = conv2d_relu_nhwc(xh, params["w1"], params["b1"], 8, 8, 4)   # (N,20,20,32)
    h = conv2d_relu_nhwc(h, params["w2"], params["b2"], 4, 4, 2)    # (N, 9, 9,64)
    h = conv2d_relu_nhwc(h, params["w3"], params["b3"], 3, 3, 1)    # (N, 7, 7,64)
    flat = h.reshape(n, -1)    # NHWC flatten; fw1 columns were pre-permuted.
    # (The reference's extra ReLU after flatten is a no-op: conv3's ReLU is fused.)
    q = fc_head(flat, params["fw1"], params["fb1"], params["fw2"], params["fb2"])
    return q[None, :, :n_actions]        # .unsqueeze(0) + drop lane padding


# -------------------------- pure-XLA f32 reference --------------------------
def reference_forward(x, raw):
    hi = jax.lax.Precision.HIGHEST
    h = x / 255.0

    def conv(h, w, b, stride):
        out = jax.lax.conv_general_dilated(
            h, w, window_strides=(stride, stride), padding="VALID",
            dimension_numbers=("NCHW", "OIHW", "NCHW"), precision=hi)
        return jax.nn.relu(out + b.reshape(1, -1, 1, 1))

    h = conv(h, raw["w1"], raw["b1"], 4)
    h = conv(h, raw["w2"], raw["b2"], 2)
    h = conv(h, raw["w3"], raw["b3"], 1)
    flat = jax.nn.relu(h.reshape(h.shape[0], -1))
    h1 = jax.nn.relu(jnp.dot(flat, raw["fw1"].T, precision=hi) + raw["fb1"])
    return (jnp.dot(h1, raw["fw2"].T, precision=hi) + raw["fb2"])[None]


if __name__ == "__main__":
    n_actions = 6
    key = jax.random.PRNGKey(0)
    k_x, k_p = jax.random.split(key)
    raw = init_raw_params(n_actions, k_p)

    # batch=2, 1 channel, 84x84 (the conv stack requires 84x84 -> 3136 feats)
    x = jax.random.uniform(k_x, (2, 1, 84, 84), jnp.float32) * 255.0

    fwd = jax.jit(lambda xx, pp: qnetwork_forward(xx, pp, n_actions))

    # Correctness: run the Pallas pipeline in f32 against a pure-XLA reference.
    params_f32 = prepare_params(raw, n_actions, dtype=jnp.float32)
    out_f32 = jax.block_until_ready(fwd(x, params_f32))
    ref = jax.block_until_ready(reference_forward(x, raw))
    np.testing.assert_allclose(np.asarray(out_f32), np.asarray(ref),
                               rtol=2e-2, atol=5e-3)

    # Production path: bf16 operands with f32 MXU accumulation.
    params = prepare_params(raw, n_actions, dtype=jnp.bfloat16)
    out = jax.block_until_ready(fwd(x, params))
    assert out.shape == (1, 2, n_actions), out.shape
    assert out.dtype == jnp.float32
    assert bool(jnp.all(jnp.isfinite(out)))
    np.testing.assert_allclose(np.asarray(out), np.asarray(ref), atol=5e-2)

    print("KERNEL_OK")
</pallas_src>

<mosaic_0001>
module attributes {stable_mosaic.version = 11 : i64} {
  func.func @_mm_bias_relu_kernel(%arg0: i32, %arg1: memref<256x64xf32, #tpu.memory_space<vmem>>, %arg2: memref<64x32xf32, #tpu.memory_space<vmem>>, %arg3: memref<1x32xf32, #tpu.memory_space<vmem>>, %arg4: memref<256x32xf32, #tpu.memory_space<vmem>>) attributes {dimension_semantics = [#tpu.dimension_semantics<parallel>], iteration_bounds = array<i64: 4>, scalar_prefetch = 0 : i64, scratch_operands = 0 : i64, tpu.core_type = #tpu.core_type<tc>, window_params = [{transform_indices = @transform_0, window_bounds = array<i64: 256, 64>}, {pipeline_mode = #tpu.pipeline_mode<synchronous>, transform_indices = @transform_1, window_bounds = array<i64: 64, 32>}, {pipeline_mode = #tpu.pipeline_mode<synchronous>, transform_indices = @transform_2, window_bounds = array<i64: 1, 32>}, {transform_indices = @transform_3, window_bounds = array<i64: 256, 32>}]} {
    %c0 = arith.constant 0 : index
    %c0_0 = arith.constant 0 : index
    %0 = vector.load %arg1[%c0, %c0_0] : memref<256x64xf32, #tpu.memory_space<vmem>>, vector<256x64xf32>
    %c0_1 = arith.constant 0 : index
    %c0_2 = arith.constant 0 : index
    %1 = vector.load %arg2[%c0_1, %c0_2] : memref<64x32xf32, #tpu.memory_space<vmem>>, vector<64x32xf32>
    %cst = arith.constant dense<0.000000e+00> : vector<256x32xf32>
    %2 = tpu.matmul %0, %1, %cst {dimension_numbers = #tpu.dot_dimension_numbers<[1], [0], [0], [1], [0, 0, 1, 1], [], []>} : vector<256x64xf32>, vector<64x32xf32>, vector<256x32xf32> -> vector<256x32xf32>
    %c0_3 = arith.constant 0 : index
    %c0_4 = arith.constant 0 : index
    %3 = vector.load %arg3[%c0_3, %c0_4] : memref<1x32xf32, #tpu.memory_space<vmem>>, vector<1x32xf32>
    %4 = vector.broadcast %3 : vector<1x32xf32> to vector<256x32xf32>
    %5 = arith.addf %2, %4 : vector<256x32xf32>
    %cst_5 = arith.constant 0.000000e+00 : f32
    %6 = vector.broadcast %cst_5 : f32 to vector<256x32xf32>
    %7 = arith.maximumf %5, %6 : vector<256x32xf32>
    %c0_6 = arith.constant 0 : index
    %c0_7 = arith.constant 0 : index
    %8 = vector.load %arg4[%c0_6, %c0_7] : memref<256x32xf32, #tpu.memory_space<vmem>>, vector<256x32xf32>
    tpu.vector_store %arg4[%c0_6, %c0_7], %7 {strides = array<i32>} : memref<256x32xf32, #tpu.memory_space<vmem>>, vector<256x32xf32>,
    return
  }
  func.func @transform_0(%arg0: i32) -> (i32, i32) {
    %c0_i32 = arith.constant 0 : i32
    %c0_i32_0 = arith.constant 0 : i32
    return %arg0, %c0_i32 : i32, i32
  }
  func.func @transform_1(%arg0: i32) -> (i32, i32) {
    %c0_i32 = arith.constant 0 : i32
    %c0_i32_0 = arith.constant 0 : i32
    %c0_i32_1 = arith.constant 0 : i32
    return %c0_i32, %c0_i32_0 : i32, i32
  }
  func.func @transform_2(%arg0: i32) -> (i32, i32) {
    %c0_i32 = arith.constant 0 : i32
    %c0_i32_0 = arith.constant 0 : i32
    %c0_i32_1 = arith.constant 0 : i32
    return %c0_i32, %c0_i32_0 : i32, i32
  }
  func.func @transform_3(%arg0: i32) -> (i32, i32) {
    %c0_i32 = arith.constant 0 : i32
    %c0_i32_0 = arith.constant 0 : i32
    return %arg0, %c0_i32 : i32, i32
  }
}

module attributes {stable_mosaic.version = 11 : i64} {
  func.func @_mm_bias_relu_kernel(%arg0: i32, %arg1: memref<176x512xf32, #tpu.memory_space<vmem>>, %arg2: memref<512x64xf32, #tpu.memory_space<vmem>>, %arg3: memref<1x64xf32, #tpu.memory_space<vmem>>, %arg4: memref<176x64xf32, #tpu.memory_space<vmem>>) attributes {dimension_semantics = [#tpu.dimension_semantics<parallel>], iteration_bounds = array<i64: 1>, scalar_prefetch = 0 : i64, scratch_operands = 0 : i64, tpu.core_type = #tpu.core_type<tc>, window_params = [{transform_indices = @transform_0, window_bounds = array<i64: 176, 512>}, {pipeline_mode = #tpu.pipeline_mode<synchronous>, transform_indices = @transform_1, window_bounds = array<i64: 512, 64>}, {pipeline_mode = #tpu.pipeline_mode<synchronous>, transform_indices = @transform_2, window_bounds = array<i64: 1, 64>}, {transform_indices = @transform_3, window_bounds = array<i64: 176, 64>}]} {
    %c0 = arith.constant 0 : index
    %c0_0 = arith.constant 0 : index
    %0 = vector.load %arg1[%c0, %c0_0] : memref<176x512xf32, #tpu.memory_space<vmem>>, vector<176x512xf32>
    %c0_1 = arith.constant 0 : index
    %c0_2 = arith.constant 0 : index
    %1 = vector.load %arg2[%c0_1, %c0_2] : memref<512x64xf32, #tpu.memory_space<vmem>>, vector<512x64xf32>
    %cst = arith.constant dense<0.000000e+00> : vector<176x64xf32>
    %2 = tpu.matmul %0, %1, %cst {dimension_numbers = #tpu.dot_dimension_numbers<[1], [0], [0], [1], [0, 0, 1, 1], [], []>} : vector<176x512xf32>, vector<512x64xf32>, vector<176x64xf32> -> vector<176x64xf32>
    %c0_3 = arith.constant 0 : index
    %c0_4 = arith.constant 0 : index
    %3 = vector.load %arg3[%c0_3, %c0_4] : memref<1x64xf32, #tpu.memory_space<vmem>>, vector<1x64xf32>
    %4 = vector.broadcast %3 : vector<1x64xf32> to vector<176x64xf32>
    %5 = arith.addf %2, %4 : vector<176x64xf32>
    %cst_5 = arith.constant 0.000000e+00 : f32
    %6 = vector.broadcast %cst_5 : f32 to vector<176x64xf32>
    %7 = arith.maximumf %5, %6 : vector<176x64xf32>
    %c0_6 = arith.constant 0 : index
    %c0_7 = arith.constant 0 : index
    %8 = vector.load %arg4[%c0_6, %c0_7] : memref<176x64xf32, #tpu.memory_space<vmem>>, vector<176x64xf32>
    tpu.vector_store %arg4[%c0_6, %c0_7], %7 {strides = array<i32>} : memref<176x64xf32, #tpu.memory_space<vmem>>, vector<176x64xf32>,
    return
  }
  func.func @transform_0(%arg0: i32) -> (i32, i32) {
    %c0_i32 = arith.constant 0 : i32
    %c0_i32_0 = arith.constant 0 : i32
    return %arg0, %c0_i32 : i32, i32
  }
  func.func @transform_1(%arg0: i32) -> (i32, i32) {
    %c0_i32 = arith.constant 0 : i32
    %c0_i32_0 = arith.constant 0 : i32
    %c0_i32_1 = arith.constant 0 : i32
    return %c0_i32, %c0_i32_0 : i32, i32
  }
  func.func @transform_2(%arg0: i32) -> (i32, i32) {
    %c0_i32 = arith.constant 0 : i32
    %c0_i32_0 = arith.constant 0 : i32
    %c0_i32_1 = arith.constant 0 : i32
    return %c0_i32, %c0_i32_0 : i32, i32
  }
  func.func @transform_3(%arg0: i32) -> (i32, i32) {
    %c0_i32 = arith.constant 0 : i32
    %c0_i32_0 = arith.constant 0 : i32
    return %arg0, %c0_i32 : i32, i32
  }
}

module attributes {stable_mosaic.version = 11 : i64} {
  func.func @_mm_bias_relu_kernel(%arg0: i32, %arg1: memref<112x576xf32, #tpu.memory_space<vmem>>, %arg2: memref<576x64xf32, #tpu.memory_space<vmem>>, %arg3: memref<1x64xf32, #tpu.memory_space<vmem>>, %arg4: memref<112x64xf32, #tpu.memory_space<vmem>>) attributes {dimension_semantics = [#tpu.dimension_semantics<parallel>], iteration_bounds = array<i64: 1>, scalar_prefetch = 0 : i64, scratch_operands = 0 : i64, tpu.core_type = #tpu.core_type<tc>, window_params = [{transform_indices = @transform_0, window_bounds = array<i64: 112, 576>}, {pipeline_mode = #tpu.pipeline_mode<synchronous>, transform_indices = @transform_1, window_bounds = array<i64: 576, 64>}, {pipeline_mode = #tpu.pipeline_mode<synchronous>, transform_indices = @transform_2, window_bounds = array<i64: 1, 64>}, {transform_indices = @transform_3, window_bounds = array<i64: 112, 64>}]} {
    %c0 = arith.constant 0 : index
    %c0_0 = arith.constant 0 : index
    %0 = vector.load %arg1[%c0, %c0_0] : memref<112x576xf32, #tpu.memory_space<vmem>>, vector<112x576xf32>
    %c0_1 = arith.constant 0 : index
    %c0_2 = arith.constant 0 : index
    %1 = vector.load %arg2[%c0_1, %c0_2] : memref<576x64xf32, #tpu.memory_space<vmem>>, vector<576x64xf32>
    %cst = arith.constant dense<0.000000e+00> : vector<112x64xf32>
    %2 = tpu.matmul %0, %1, %cst {dimension_numbers = #tpu.dot_dimension_numbers<[1], [0], [0], [1], [0, 0, 1, 1], [], []>} : vector<112x576xf32>, vector<576x64xf32>, vector<112x64xf32> -> vector<112x64xf32>
    %c0_3 = arith.constant 0 : index
    %c0_4 = arith.constant 0 : index
    %3 = vector.load %arg3[%c0_3, %c0_4] : memref<1x64xf32, #tpu.memory_space<vmem>>, vector<1x64xf32>
    %4 = vector.broadcast %3 : vector<1x64xf32> to vector<112x64xf32>
    %5 = arith.addf %2, %4 : vector<112x64xf32>
    %cst_5 = arith.constant 0.000000e+00 : f32
    %6 = vector.broadcast %cst_5 : f32 to vector<112x64xf32>
    %7 = arith.maximumf %5, %6 : vector<112x64xf32>
    %c0_6 = arith.constant 0 : index
    %c0_7 = arith.constant 0 : index
    %8 = vector.load %arg4[%c0_6, %c0_7] : memref<112x64xf32, #tpu.memory_space<vmem>>, vector<112x64xf32>
    tpu.vector_store %arg4[%c0_6, %c0_7], %7 {strides = array<i32>} : memref<112x64xf32, #tpu.memory_space<vmem>>, vector<112x64xf32>,
    return
  }
  func.func @transform_0(%arg0: i32) -> (i32, i32) {
    %c0_i32 = arith.constant 0 : i32
    %c0_i32_0 = arith.constant 0 : i32
    return %arg0, %c0_i32 : i32, i32
  }
  func.func @transform_1(%arg0: i32) -> (i32, i32) {
    %c0_i32 = arith.constant 0 : i32
    %c0_i32_0 = arith.constant 0 : i32
    %c0_i32_1 = arith.constant 0 : i32
    return %c0_i32, %c0_i32_0 : i32, i32
  }
  func.func @transform_2(%arg0: i32) -> (i32, i32) {
    %c0_i32 = arith.constant 0 : i32
    %c0_i32_0 = arith.constant 0 : i32
    %c0_i32_1 = arith.constant 0 : i32
    return %c0_i32, %c0_i32_0 : i32, i32
  }
  func.func @transform_3(%arg0: i32) -> (i32, i32) {
    %c0_i32 = arith.constant 0 : i32
    %c0_i32_0 = arith.constant 0 : i32
    return %arg0, %c0_i32 : i32, i32
  }
}

module attributes {stable_mosaic.version = 11 : i64} {
  func.func @_fc_fused_kernel(%arg0: i32, %arg1: memref<16x3136xf32, #tpu.memory_space<vmem>>, %arg2: memref<3136x512xf32, #tpu.memory_space<vmem>>, %arg3: memref<1x512xf32, #tpu.memory_space<vmem>>, %arg4: memref<512x128xf32, #tpu.memory_space<vmem>>, %arg5: memref<1x128xf32, #tpu.memory_space<vmem>>, %arg6: memref<16x128xf32, #tpu.memory_space<vmem>>) attributes {dimension_semantics = [#tpu.dimension_semantics<parallel>], iteration_bounds = array<i64: 1>, scalar_prefetch = 0 : i64, scratch_operands = 0 : i64, tpu.core_type = #tpu.core_type<tc>, window_params = [{transform_indices = @transform_0, window_bounds = array<i64: 16, 3136>}, {pipeline_mode = #tpu.pipeline_mode<synchronous>, transform_indices = @transform_1, window_bounds = array<i64: 3136, 512>}, {pipeline_mode = #tpu.pipeline_mode<synchronous>, transform_indices = @transform_2, window_bounds = array<i64: 1, 512>}, {pipeline_mode = #tpu.pipeline_mode<synchronous>, transform_indices = @transform_3, window_bounds = array<i64: 512, 128>}, {pipeline_mode = #tpu.pipeline_mode<synchronous>, transform_indices = @transform_4, window_bounds = array<i64: 1, 128>}, {transform_indices = @transform_5, window_bounds = array<i64: 16, 128>}]} {
    %c0 = arith.constant 0 : index
    %c0_0 = arith.constant 0 : index
    %0 = vector.load %arg1[%c0, %c0_0] : memref<16x3136xf32, #tpu.memory_space<vmem>>, vector<16x3136xf32>
    %c0_1 = arith.constant 0 : index
    %c0_2 = arith.constant 0 : index
    %1 = vector.load %arg2[%c0_1, %c0_2] : memref<3136x512xf32, #tpu.memory_space<vmem>>, vector<3136x512xf32>
    %cst = arith.constant dense<0.000000e+00> : vector<16x512xf32>
    %2 = tpu.matmul %0, %1, %cst {dimension_numbers = #tpu.dot_dimension_numbers<[1], [0], [0], [1], [0, 0, 1, 1], [], []>} : vector<16x3136xf32>, vector<3136x512xf32>, vector<16x512xf32> -> vector<16x512xf32>
    %c0_3 = arith.constant 0 : index
    %c0_4 = arith.constant 0 : index
    %3 = vector.load %arg3[%c0_3, %c0_4] : memref<1x512xf32, #tpu.memory_space<vmem>>, vector<1x512xf32>
    %4 = vector.broadcast %3 : vector<1x512xf32> to vector<16x512xf32>
    %5 = arith.addf %2, %4 : vector<16x512xf32>
    %cst_5 = arith.constant 0.000000e+00 : f32
    %6 = vector.broadcast %cst_5 : f32 to vector<16x512xf32>
    %7 = arith.maximumf %5, %6 : vector<16x512xf32>
    %c0_6 = arith.constant 0 : index
    %c0_7 = arith.constant 0 : index
    %8 = vector.load %arg4[%c0_6, %c0_7] : memref<512x128xf32, #tpu.memory_space<vmem>>, vector<512x128xf32>
    %cst_8 = arith.constant dense<0.000000e+00> : vector<16x128xf32>
    %9 = tpu.matmul %7, %8, %cst_8 {dimension_numbers = #tpu.dot_dimension_numbers<[1], [0], [0], [1], [0, 0, 1, 1], [], []>} : vector<16x512xf32>, vector<512x128xf32>, vector<16x128xf32> -> vector<16x128xf32>
    %c0_9 = arith.constant 0 : index
    %c0_10 = arith.constant 0 : index
    %10 = vector.load %arg5[%c0_9, %c0_10] : memref<1x128xf32, #tpu.memory_space<vmem>>, vector<1x128xf32>
    %11 = vector.broadcast %10 : vector<1x128xf32> to vector<16x128xf32>
    %12 = arith.addf %9, %11 : vector<16x128xf32>
    %c0_11 = arith.constant 0 : index
    %c0_12 = arith.constant 0 : index
    %13 = vector.load %arg6[%c0_11, %c0_12] : memref<16x128xf32, #tpu.memory_space<vmem>>, vector<16x128xf32>
    tpu.vector_store %arg6[%c0_11, %c0_12], %12 {strides = array<i32>} : memref<16x128xf32, #tpu.memory_space<vmem>>, vector<16x128xf32>,
    return
  }
  func.func @transform_0(%arg0: i32) -> (i32, i32) {
    %c0_i32 = arith.constant 0 : i32
    %c0_i32_0 = arith.constant 0 : i32
    return %arg0, %c0_i32 : i32, i32
  }
  func.func @transform_1(%arg0: i32) -> (i32, i32) {
    %c0_i32 = arith.constant 0 : i32
    %c0_i32_0 = arith.constant 0 : i32
    %c0_i32_1 = arith.constant 0 : i32
    return %c0_i32, %c0_i32_0 : i32, i32
  }
  func.func @transform_2(%arg0: i32) -> (i32, i32) {
    %c0_i32 = arith.constant 0 : i32
    %c0_i32_0 = arith.constant 0 : i32
    %c0_i32_1 = arith.constant 0 : i32
    return %c0_i32, %c0_i32_0 : i32, i32
  }
  func.func @transform_3(%arg0: i32) -> (i32, i32) {
    %c0_i32 = arith.constant 0 : i32
    %c0_i32_0 = arith.constant 0 : i32
    %c0_i32_1 = arith.constant 0 : i32
    return %c0_i32, %c0_i32_0 : i32, i32
  }
  func.func @transform_4(%arg0: i32) -> (i32, i32) {
    %c0_i32 = arith.constant 0 : i32
    %c0_i32_0 = arith.constant 0 : i32
    %c0_i32_1 = arith.constant 0 : i32
    return %c0_i32, %c0_i32_0 : i32, i32
  }
  func.func @transform_5(%arg0: i32) -> (i32, i32) {
    %c0_i32 = arith.constant 0 : i32
    %c0_i32_0 = arith.constant 0 : i32
    return %arg0, %c0_i32 : i32, i32
  }
}

</mosaic_0001>

<bundles_post_ra>
// kernel: _lambda_.4
= control target key start
LH: loop header
LB: loop body
LE: loop exit
PB: predicated region body
PF: predicated region fallthrough
CT: control target
= control target key end

     0   :  { %s653_s12 = smov 0   ;;  %s870_s0 = inlined_call_operand.vmem [shape: f32[1024,64], index: 0, kind: input, shape index: {}]   ;;  %s871_s1 = inlined_call_operand.vmem [shape: f32[64,32], index: 1, kind: input, shape index: {}]   ;;  %s872_s2 = inlined_call_operand.vmem [shape: f32[1,32], index: 2, kind: input, shape index: {}]   ;;  %s873_s3 = inlined_call_operand.vmem [shape: f32[1024,32], index: 3, kind: output, shape index: {}]  }
   0x1 LB: > { %s549_s13 = sadd.s32 4294967295, %s631_s12   ;;  %p553_p0 = scmp.ge.s32.totalorder %s631_s12, 1  ;;  %s631_s12 = sphi %s653_s12, %s13_s12  }
   0x2   : > { %p138_p1 = scmp.lt.s32.totalorder %s631_s12, 5 }
   0x4   : > { %p139_p2 = pnand %p553_p0, %p138_p1 }
   0x5   : > { %s554_s18 = sshll.u32 (!%p139_p2), %s549_s13, 5 }
   0x6   : > { %142 = sbr.rel (%p139_p2) target bundleno = 221 (0xdd), region = 32  ;;  %p163_p3 = scmp.lt.s32.totalorder (!%p139_p2), %s554_s18, 127 }
   0xb   : > { %v213_v0 = vld [vmem:[%s871_s1 + $0x38] sm:$0xff]  ;;  %v212_v1 = vld [vmem:[%s871_s1 + $0x30] sm:$0xff]  ;;  %v211_v2 = vld [vmem:[%s871_s1 + $0x28] sm:$0xff]  ;;  %s875_s18 = smov (!%p163_p3, %s554_s18), 127  ;;  %vm218_vm0 = vcmask 523264   ;;  %vm460_vm1 = vcmask 261120  }
   0xc   : > { %593 = vmatpush.msra.mxu2 %v213_v0  ;;  %594 = vmatpush.msra.mxu3 %v213_v0  ;;  %v210_v3 = vld [vmem:[%s871_s1 + $0x20] sm:$0xff]  ;;  %v209_v4 = vld [vmem:[%s871_s1 + $0x18] sm:$0xff]  ;;  %s555_s25 = sshll.u32 %s875_s18, 3  ;;  %v208_v5 = vld [vmem:[%s871_s1 + $0x10] sm:$0xff] }
   0xd   : > { %323 = vmatpush.msra.mxu0 %v213_v0  ;;  %592 = vmatpush.msra.mxu1 %v213_v0  ;;  %v207_v6 = vld [vmem:[%s871_s1 + $0x8] sm:$0xff]  ;;  %s690_s5 = scalar_lea.vmem %s870_s0, %s555_s25  ;;  %v206_v7 = vld [vmem:[%s871_s1] sm:$0xff]  ;;  %s771_s13 = scalar_lea.vmem %s873_s3, %s555_s25 }
   0xe   : > { %596 = vmatpush.msra.mxu2 %v212_v1  ;;  %597 = vmatpush.msra.mxu3 %v212_v1  ;;  %v190_v8 = vld [vmem:[%s690_s5 + $0x80] sm:$0xff]  ;;  %v191_v12 = vld [vmem:[%s690_s5 + $0x88] sm:$0xff]  ;;  %v192_v16 = vld [vmem:[%s690_s5 + $0x90] sm:$0xff] }
   0xf   : > { %324 = vmatpush.msra.mxu0 %v212_v1  ;;  %595 = vmatpush.msra.mxu1 %v212_v1  ;;  %v198_v9 = vld [vmem:[%s690_s5 + $0xc0] sm:$0xff]  ;;  %v199_v13 = vld [vmem:[%s690_s5 + $0xc8] sm:$0xff]  ;;  %v200_v17 = vld [vmem:[%s690_s5 + $0xd0] sm:$0xff] }
  0x10   : > { %599 = vmatpush.msra.mxu2 %v211_v2  ;;  %600 = vmatpush.msra.mxu3 %v211_v2  ;;  %v174_v10 = vld [vmem:[%s690_s5] sm:$0xff]  ;;  %v175_v14 = vld [vmem:[%s690_s5 + $0x8] sm:$0xff]  ;;  %v176_v18 = vld [vmem:[%s690_s5 + $0x10] sm:$0xff] }
  0x11   : > { %325 = vmatpush.msra.mxu0 %v211_v2  ;;  %598 = vmatpush.msra.mxu1 %v211_v2  ;;  %v182_v11 = vld [vmem:[%s690_s5 + $0x40] sm:$0xff]  ;;  %v183_v15 = vld [vmem:[%s690_s5 + $0x48] sm:$0xff]  ;;  %v184_v19 = vld [vmem:[%s690_s5 + $0x50] sm:$0xff] }
  0x12   : > { %602 = vmatpush.msra.mxu2 %v210_v3  ;;  %603 = vmatpush.msra.mxu3 %v210_v3  ;;  %v193_v20 = vld [vmem:[%s690_s5 + $0x98] sm:$0xff]  ;;  %v194_v24 = vld [vmem:[%s690_s5 + $0xa0] sm:$0xff]  ;;  %v195_v28 = vld [vmem:[%s690_s5 + $0xa8] sm:$0xff] }
  0x13   : > { %326 = vmatpush.msra.mxu0 %v210_v3  ;;  %601 = vmatpush.msra.mxu1 %v210_v3  ;;  %v201_v21 = vld [vmem:[%s690_s5 + $0xd8] sm:$0xff]  ;;  %v202_v25 = vld [vmem:[%s690_s5 + $0xe0] sm:$0xff]  ;;  %v203_v29 = vld [vmem:[%s690_s5 + $0xe8] sm:$0xff] }
  0x14   : > { %605 = vmatpush.msra.mxu2 %v209_v4  ;;  %606 = vmatpush.msra.mxu3 %v209_v4  ;;  %v177_v22 = vld [vmem:[%s690_s5 + $0x18] sm:$0xff]  ;;  %v178_v26 = vld [vmem:[%s690_s5 + $0x20] sm:$0xff]  ;;  %v179_v30 = vld [vmem:[%s690_s5 + $0x28] sm:$0xff] }
  0x15   : > { %327 = vmatpush.msra.mxu0 %v209_v4  ;;  %604 = vmatpush.msra.mxu1 %v209_v4  ;;  %v185_v23 = vld [vmem:[%s690_s5 + $0x58] sm:$0xff]  ;;  %v186_v27 = vld [vmem:[%s690_s5 + $0x60] sm:$0xff]  ;;  %v187_v31 = vld [vmem:[%s690_s5 + $0x68] sm:$0xff] }
  0x16   : > { %608 = vmatpush.msra.mxu2 %v208_v5  ;;  %609 = vmatpush.msra.mxu3 %v208_v5  ;;  %v196_v32 = vld [vmem:[%s690_s5 + $0xb0] sm:$0xff]  ;;  %v197_v36 = vld [vmem:[%s690_s5 + $0xb8] sm:$0xff]  ;;  %v762_v40 = vld [vmem:[%s872_s2] ss:$0 sm:$0xff] }
  0x17   : > { %328 = vmatpush.msra.mxu0 %v208_v5  ;;  %607 = vmatpush.msra.mxu1 %v208_v5  ;;  %v204_v33 = vld [vmem:[%s690_s5 + $0xf0] sm:$0xff]  ;;  %v205_v37 = vld [vmem:[%s690_s5 + $0xf8] sm:$0xff] }
  0x18   : > { %611 = vmatpush.msra.mxu2 %v207_v6  ;;  %612 = vmatpush.msra.mxu3 %v207_v6  ;;  %v180_v34 = vld [vmem:[%s690_s5 + $0x30] sm:$0xff]  ;;  %v181_v38 = vld [vmem:[%s690_s5 + $0x38] sm:$0xff] }
  0x19   : > { %329 = vmatpush.msra.mxu0 %v207_v6  ;;  %610 = vmatpush.msra.mxu1 %v207_v6  ;;  %v188_v35 = vld [vmem:[%s690_s5 + $0x70] sm:$0xff]  ;;  %v189_v39 = vld [vmem:[%s690_s5 + $0x78] sm:$0xff] }
  0x1a   : > { %614 = vmatpush.msra.mxu2 %v206_v7  ;;  %615 = vmatpush.msra.mxu3 %v206_v7 }
  0x1b   : > { %574 = vmatmul.msk.f32.vlgmr.msra.gmra.mxu2 %vm218_vm0, %v190_v8  ;;  %582 = vmatmul.msk.f32.vlgmr.msra.gmra.mxu3 %vm218_vm0, %v198_v9 }
  0x1c   : > { %330 = vmatpush.msra.mxu0 %v206_v7  ;;  %613 = vmatpush.msra.mxu1 %v206_v7 }
  0x1d   : > { %558 = vmatmul.msk.f32.vlgmr.msra.gmra.mxu0 %vm218_vm0, %v174_v10  ;;  %566 = vmatmul.msk.f32.vlgmr.msra.gmra.mxu1 %vm218_vm0, %v182_v11 }
  0x23   : > { %575 = vmatmul.msk.f32.gmra.mxu2 %vm218_vm0, %v191_v12  ;;  %583 = vmatmul.msk.f32.gmra.mxu3 %vm218_vm0, %v199_v13 }
  0x25   : > { %559 = vmatmul.msk.f32.gmra.mxu0 %vm218_vm0, %v175_v14  ;;  %567 = vmatmul.msk.f32.gmra.mxu1 %vm218_vm0, %v183_v15 }
  0x2b   : > { %576 = vmatmul.msk.f32.gmra.mxu2 %vm218_vm0, %v192_v16  ;;  %584 = vmatmul.msk.f32.gmra.mxu3 %vm218_vm0, %v200_v17 }
  0x2d   : > { %560 = vmatmul.msk.f32.gmra.mxu0 %vm218_vm0, %v176_v18  ;;  %568 = vmatmul.msk.f32.gmra.mxu1 %vm218_vm0, %v184_v19 }
  0x33   : > { %577 = vmatmul.msk.f32.gmra.mxu2 %vm218_vm0, %v193_v20  ;;  %585 = vmatmul.msk.f32.gmra.mxu3 %vm218_vm0, %v201_v21 }
  0x35   : > { %561 = vmatmul.msk.f32.gmra.mxu0 %vm218_vm0, %v177_v22  ;;  %569 = vmatmul.msk.f32.gmra.mxu1 %vm218_vm0, %v185_v23 }
  0x3b   : > { %578 = vmatmul.msk.f32.gmra.mxu2 %vm218_vm0, %v194_v24  ;;  %586 = vmatmul.msk.f32.gmra.mxu3 %vm218_vm0, %v202_v25 }
  0x3d   : > { %562 = vmatmul.msk.f32.gmra.mxu0 %vm218_vm0, %v178_v26  ;;  %570 = vmatmul.msk.f32.gmra.mxu1 %vm218_vm0, %v186_v27 }
  0x43   : > { %579 = vmatmul.msk.f32.gmra.mxu2 %vm218_vm0, %v195_v28  ;;  %587 = vmatmul.msk.f32.gmra.mxu3 %vm218_vm0, %v203_v29 }
  0x45   : > { %563 = vmatmul.msk.f32.gmra.mxu0 %vm218_vm0, %v179_v30  ;;  %571 = vmatmul.msk.f32.gmra.mxu1 %vm218_vm0, %v187_v31 }
  0x4b   : > { %580 = vmatmul.msk.f32.gmra.mxu2 %vm218_vm0, %v196_v32  ;;  %588 = vmatmul.msk.f32.gmra.mxu3 %vm218_vm0, %v204_v33 }
  0x4d   : > { %564 = vmatmul.msk.f32.gmra.mxu0 %vm218_vm0, %v180_v34  ;;  %572 = vmatmul.msk.f32.gmra.mxu1 %vm218_vm0, %v188_v35 }
  0x53   : > { %581 = vmatmul.msk.f32.gmra.mxu2 %vm218_vm0, %v197_v36  ;;  %589 = vmatmul.msk.f32.gmra.mxu3 %vm218_vm0, %v205_v37 }
  0x55   : > { %565 = vmatmul.msk.f32.gmra.mxu0 %vm218_vm0, %v181_v38  ;;  %573 = vmatmul.msk.f32.gmra.mxu1 %vm218_vm0, %v189_v39 }
  0x9a   : > { %v332_v41 = vpop.f32.mrf.mxu0  ;;  %v356_v42 = vpop.f32.mrf.mxu1 }
  0x9b   : > { %v333_v43 = vadd.f32 %v762_v40, %v332_v41  ;;  %v357_v44 = vadd.f32 %v762_v40, %v356_v42 }
  0x9d   : > { %v428_v45 = vmax.f32 %v333_v43, 0.0  ;;  %v436_v46 = vmax.f32 %v357_v44, 0.0 }
  0x9e   : > { %v380_v47 = vpop.f32.mrf.mxu2  ;;  %v404_v48 = vpop.f32.mrf.mxu3 }
  0x9f   : > { %461 = vst.msk [vmem:[%s771_s13] sm:$0xff] %vm460_vm1, %v428_v45  ;;  %v381_v49 = vadd.f32 %v762_v40, %v380_v47  ;;  %v405_v50 = vadd.f32 %v762_v40, %v404_v48 }
  0xa0   : > { %469 = vst.msk [vmem:[%s771_s13 + $0x40] sm:$0xff] %vm460_vm1, %v436_v46 }
  0xa1   : > { %v444_v51 = vmax.f32 %v381_v49, 0.0  ;;  %v452_v52 = vmax.f32 %v405_v50, 0.0 }
  0xa2   : > { %v335_v53 = vpop.f32.mrf.mxu0  ;;  %v359_v54 = vpop.f32.mrf.mxu1 }
  0xa3   : > { %477 = vst.msk [vmem:[%s771_s13 + $0x80] sm:$0xff] %vm460_vm1, %v444_v51  ;;  %v336_v55 = vadd.f32 %v762_v40, %v335_v53  ;;  %v360_v56 = vadd.f32 %v762_v40, %v359_v54 }
  0xa4   : > { %485 = vst.msk [vmem:[%s771_s13 + $0xc0] sm:$0xff] %vm460_vm1, %v452_v52 }
  0xa5   : > { %v429_v57 = vmax.f32 %v336_v55, 0.0  ;;  %v437_v58 = vmax.f32 %v360_v56, 0.0 }
  0xa6   : > { %v383_v59 = vpop.f32.mrf.mxu2  ;;  %v407_v60 = vpop.f32.mrf.mxu3 }
  0xa7   : > { %462 = vst.msk [vmem:[%s771_s13 + $0x8] sm:$0xff] %vm460_vm1, %v429_v57  ;;  %v384_v61 = vadd.f32 %v762_v40, %v383_v59  ;;  %v408_v62 = vadd.f32 %v762_v40, %v407_v60 }
  0xa8   : > { %470 = vst.msk [vmem:[%s771_s13 + $0x48] sm:$0xff] %vm460_vm1, %v437_v58 }
  0xa9   : > { %v445_v63 = vmax.f32 %v384_v61, 0.0  ;;  %v453_v0 = vmax.f32 %v408_v62, 0.0 }
  0xaa   : > { %v338_v1 = vpop.f32.mrf.mxu0  ;;  %v362_v2 = vpop.f32.mrf.mxu1 }
  0xab   : > { %478 = vst.msk [vmem:[%s771_s13 + $0x88] sm:$0xff] %vm460_vm1, %v445_v63  ;;  %v339_v3 = vadd.f32 %v762_v40, %v338_v1  ;;  %v363_v4 = vadd.f32 %v762_v40, %v362_v2 }
  0xac   : > { %486 = vst.msk [vmem:[%s771_s13 + $0xc8] sm:$0xff] %vm460_vm1, %v453_v0 }
  0xad   : > { %v430_v5 = vmax.f32 %v339_v3, 0.0  ;;  %v438_v6 = vmax.f32 %v363_v4, 0.0 }
  0xae   : > { %v386_v7 = vpop.f32.mrf.mxu2  ;;  %v410_v8 = vpop.f32.mrf.mxu3 }
  0xaf   : > { %463 = vst.msk [vmem:[%s771_s13 + $0x10] sm:$0xff] %vm460_vm1, %v430_v5  ;;  %v387_v9 = vadd.f32 %v762_v40, %v386_v7  ;;  %v411_v10 = vadd.f32 %v762_v40, %v410_v8 }
  0xb0   : > { %471 = vst.msk [vmem:[%s771_s13 + $0x50] sm:$0xff] %vm460_vm1, %v438_v6 }
  0xb1   : > { %v446_v11 = vmax.f32 %v387_v9, 0.0  ;;  %v454_v12 = vmax.f32 %v411_v10, 0.0 }
  0xb2   : > { %v341_v13 = vpop.f32.mrf.mxu0  ;;  %v365_v14 = vpop.f32.mrf.mxu1 }
  0xb3   : > { %479 = vst.msk [vmem:[%s771_s13 + $0x90] sm:$0xff] %vm460_vm1, %v446_v11  ;;  %v342_v15 = vadd.f32 %v762_v40, %v341_v13  ;;  %v366_v16 = vadd.f32 %v762_v40, %v365_v14 }
  0xb4   : > { %487 = vst.msk [vmem:[%s771_s13 + $0xd0] sm:$0xff] %vm460_vm1, %v454_v12 }
  0xb5   : > { %v431_v17 = vmax.f32 %v342_v15, 0.0  ;;  %v439_v18 = vmax.f32 %v366_v16, 0.0 }
  0xb6   : > { %v389_v19 = vpop.f32.mrf.mxu2  ;;  %v413_v20 = vpop.f32.mrf.mxu3 }
  0xb7   : > { %464 = vst.msk [vmem:[%s771_s13 + $0x18] sm:$0xff] %vm460_vm1, %v431_v17  ;;  %v390_v21 = vadd.f32 %v762_v40, %v389_v19  ;;  %v414_v22 = vadd.f32 %v762_v40, %v413_v20 }
  0xb8   : > { %472 = vst.msk [vmem:[%s771_s13 + $0x58] sm:$0xff] %vm460_vm1, %v439_v18 }
  0xb9   : > { %v447_v23 = vmax.f32 %v390_v21, 0.0  ;;  %v455_v24 = vmax.f32 %v414_v22, 0.0 }
  0xba   : > { %v344_v25 = vpop.f32.mrf.mxu0  ;;  %v368_v26 = vpop.f32.mrf.mxu1 }
  0xbb   : > { %480 = vst.msk [vmem:[%s771_s13 + $0x98] sm:$0xff] %vm460_vm1, %v447_v23  ;;  %v345_v27 = vadd.f32 %v762_v40, %v344_v25  ;;  %v369_v28 = vadd.f32 %v762_v40, %v368_v26 }
  0xbc   : > { %488 = vst.msk [vmem:[%s771_s13 + $0xd8] sm:$0xff] %vm460_vm1, %v455_v24 }
  0xbd   : > { %v432_v29 = vmax.f32 %v345_v27, 0.0  ;;  %v440_v30 = vmax.f32 %v369_v28, 0.0 }
  0xbe   : > { %v392_v31 = vpop.f32.mrf.mxu2  ;;  %v416_v32 = vpop.f32.mrf.mxu3 }
  0xbf   : > { %465 = vst.msk [vmem:[%s771_s13 + $0x20] sm:$0xff] %vm460_vm1, %v432_v29  ;;  %v393_v33 = vadd.f32 %v762_v40, %v392_v31  ;;  %v417_v34 = vadd.f32 %v762_v40, %v416_v32 }
  0xc0   : > { %473 = vst.msk [vmem:[%s771_s13 + $0x60] sm:$0xff] %vm460_vm1, %v440_v30 }
  0xc1   : > { %v448_v35 = vmax.f32 %v393_v33, 0.0  ;;  %v456_v36 = vmax.f32 %v417_v34, 0.0 }
  0xc2   : > { %v347_v37 = vpop.f32.mrf.mxu0  ;;  %v371_v38 = vpop.f32.mrf.mxu1 }
  0xc3   : > { %481 = vst.msk [vmem:[%s771_s13 + $0xa0] sm:$0xff] %vm460_vm1, %v448_v35  ;;  %v348_v39 = vadd.f32 %v762_v40, %v347_v37  ;;  %v372_v41 = vadd.f32 %v762_v40, %v371_v38 }
  0xc4   : > { %489 = vst.msk [vmem:[%s771_s13 + $0xe0] sm:$0xff] %vm460_vm1, %v456_v36 }
  0xc5   : > { %v433_v42 = vmax.f32 %v348_v39, 0.0  ;;  %v441_v43 = vmax.f32 %v372_v41, 0.0 }
  0xc6   : > { %v395_v44 = vpop.f32.mrf.mxu2  ;;  %v419_v45 = vpop.f32.mrf.mxu3 }
  0xc7   : > { %466 = vst.msk [vmem:[%s771_s13 + $0x28] sm:$0xff] %vm460_vm1, %v433_v42  ;;  %v396_v46 = vadd.f32 %v762_v40, %v395_v44  ;;  %v420_v47 = vadd.f32 %v762_v40, %v419_v45 }
  0xc8   : > { %474 = vst.msk [vmem:[%s771_s13 + $0x68] sm:$0xff] %vm460_vm1, %v441_v43 }
  0xc9   : > { %v449_v48 = vmax.f32 %v396_v46, 0.0  ;;  %v457_v49 = vmax.f32 %v420_v47, 0.0 }
  0xca   : > { %v350_v50 = vpop.f32.mrf.mxu0  ;;  %v374_v51 = vpop.f32.mrf.mxu1 }
  0xcb   : > { %482 = vst.msk [vmem:[%s771_s13 + $0xa8] sm:$0xff] %vm460_vm1, %v449_v48  ;;  %v351_v52 = vadd.f32 %v762_v40, %v350_v50  ;;  %v375_v53 = vadd.f32 %v762_v40, %v374_v51 }
  0xcc   : > { %490 = vst.msk [vmem:[%s771_s13 + $0xe8] sm:$0xff] %vm460_vm1, %v457_v49 }
  0xcd   : > { %v434_v54 = vmax.f32 %v351_v52, 0.0  ;;  %v442_v55 = vmax.f32 %v375_v53, 0.0 }
  0xce   : > { %v398_v56 = vpop.f32.mrf.mxu2  ;;  %v422_v57 = vpop.f32.mrf.mxu3 }
  0xcf   : > { %467 = vst.msk [vmem:[%s771_s13 + $0x30] sm:$0xff] %vm460_vm1, %v434_v54  ;;  %v399_v58 = vadd.f32 %v762_v40, %v398_v56  ;;  %v423_v59 = vadd.f32 %v762_v40, %v422_v57 }
  0xd0   : > { %475 = vst.msk [vmem:[%s771_s13 + $0x70] sm:$0xff] %vm460_vm1, %v442_v55 }
  0xd1   : > { %v450_v60 = vmax.f32 %v399_v58, 0.0  ;;  %v458_v61 = vmax.f32 %v423_v59, 0.0 }
  0xd2   : > { %v353_v62 = vpop.f32.mrf.mxu0  ;;  %v377_v63 = vpop.f32.mrf.mxu1 }
  0xd3   : > { %483 = vst.msk [vmem:[%s771_s13 + $0xb0] sm:$0xff] %vm460_vm1, %v450_v60  ;;  %v354_v0 = vadd.f32 %v762_v40, %v353_v62  ;;  %v378_v1 = vadd.f32 %v762_v40, %v377_v63 }
  0xd4   : > { %491 = vst.msk [vmem:[%s771_s13 + $0xf0] sm:$0xff] %vm460_vm1, %v458_v61 }
  0xd5   : > { %v435_v2 = vmax.f32 %v354_v0, 0.0  ;;  %v443_v3 = vmax.f32 %v378_v1, 0.0 }
  0xd6   : > { %v401_v4 = vpop.f32.mrf.mxu2  ;;  %v425_v5 = vpop.f32.mrf.mxu3 }
  0xd7   : > { %468 = vst.msk [vmem:[%s771_s13 + $0x38] sm:$0xff] %vm460_vm1, %v435_v2  ;;  %v402_v6 = vadd.f32 %v762_v40, %v401_v4  ;;  %v426_v7 = vadd.f32 %v762_v40, %v425_v5 }
  0xd8   : > { %476 = vst.msk [vmem:[%s771_s13 + $0x78] sm:$0xff] %vm460_vm1, %v443_v3 }
  0xd9   : > { %v451_v8 = vmax.f32 %v402_v6, 0.0  ;;  %v459_v9 = vmax.f32 %v426_v7, 0.0 }
  0xdb   : > { %484 = vst.msk [vmem:[%s771_s13 + $0xb8] sm:$0xff] %vm460_vm1, %v451_v8 }
  0xdc   : > { %492 = vst.msk [vmem:[%s771_s13 + $0xf8] sm:$0xff] %vm460_vm1, %v459_v9 }
  0xdd PF: > { %s13_s12 = sadd.s32 1, %s631_s12  }
  0xde   : > { %p10_p4 = scmp.ge.s32.totalorder %s13_s12, 6  }
  0xe0   :  { %12 = sbr.rel (!%p10_p4) target bundleno = 1 (0x1), region = 62 }

// kernel: _lambda_.5
= control target key start
LH: loop header
LB: loop body
LE: loop exit
PB: predicated region body
PF: predicated region fallthrough
CT: control target
= control target key end

     0   :  { %vm524_vm0 = vcmask 523264   ;;  %s1143_s1 = inlined_call_operand.vmem [shape: f32[512,64], index: 1, kind: input, shape index: {}]   ;;  %s1144_s0 = inlined_call_operand.vmem [shape: f32[176,512], index: 0, kind: input, shape index: {}]   ;;  %s1145_s2 = inlined_call_operand.vmem [shape: f32[1,64], index: 2, kind: input, shape index: {}]   ;;  %s1146_s3 = inlined_call_operand.vmem [shape: f32[176,64], index: 3, kind: output, shape index: {}]  }
   0x1   :  { %v149_v0 = vld [vmem:[%s1143_s1 + $0x178] sm:$0xff]  ;;  %v148_v2 = vld [vmem:[%s1143_s1 + $0x170] sm:$0xff]  ;;  %v147_v6 = vld [vmem:[%s1143_s1 + $0x168] sm:$0xff] }
   0x2   :  { %v117_v1 = vld [vmem:[%s1143_s1 + $0x78] sm:$0xff]  ;;  %336 = vmatpush.msra.mxu2 %v149_v0  ;;  %v116_v4 = vld [vmem:[%s1143_s1 + $0x70] sm:$0xff]  ;;  %v115_v8 = vld [vmem:[%s1143_s1 + $0x68] sm:$0xff] }
   0x3   :  { %170 = vmatpush.msra.mxu0 %v117_v1  ;;  %v165_v3 = vld [vmem:[%s1143_s1 + $0x1f8] sm:$0xff]  ;;  %v164_v7 = vld [vmem:[%s1143_s1 + $0x1f0] sm:$0xff]  ;;  %v163_v10 = vld [vmem:[%s1143_s1 + $0x1e8] sm:$0xff] }
   0x4   :  { %v133_v5 = vld [vmem:[%s1143_s1 + $0xf8] sm:$0xff]  ;;  %419 = vmatpush.msra.mxu3 %v165_v3  ;;  %337 = vmatpush.msra.mxu2 %v148_v2  ;;  %v132_v9 = vld [vmem:[%s1143_s1 + $0xf0] sm:$0xff]  ;;  %v146_v11 = vld [vmem:[%s1143_s1 + $0x160] sm:$0xff] }
   0x5   :  { %253 = vmatpush.msra.mxu1 %v133_v5  ;;  %171 = vmatpush.msra.mxu0 %v116_v4  ;;  %v114_v12 = vld [vmem:[%s1143_s1 + $0x60] sm:$0xff]  ;;  %v131_v13 = vld [vmem:[%s1143_s1 + $0xe8] sm:$0xff]  ;;  %v145_v16 = vld [vmem:[%s1143_s1 + $0x158] sm:$0xff] }
   0x6   :  { %420 = vmatpush.msra.mxu3 %v164_v7  ;;  %338 = vmatpush.msra.mxu2 %v147_v6  ;;  %v162_v14 = vld [vmem:[%s1143_s1 + $0x1e0] sm:$0xff]  ;;  %v113_v17 = vld [vmem:[%s1143_s1 + $0x58] sm:$0xff]  ;;  %v144_v20 = vld [vmem:[%s1143_s1 + $0x150] sm:$0xff] }
   0x7   :  { %254 = vmatpush.msra.mxu1 %v132_v9  ;;  %172 = vmatpush.msra.mxu0 %v115_v8  ;;  %v130_v15 = vld [vmem:[%s1143_s1 + $0xe0] sm:$0xff]  ;;  %v161_v18 = vld [vmem:[%s1143_s1 + $0x1d8] sm:$0xff]  ;;  %v112_v21 = vld [vmem:[%s1143_s1 + $0x50] sm:$0xff] }
   0x8   :  { %421 = vmatpush.msra.mxu3 %v163_v10  ;;  %339 = vmatpush.msra.mxu2 %v146_v11  ;;  %v129_v19 = vld [vmem:[%s1143_s1 + $0xd8] sm:$0xff]  ;;  %v160_v22 = vld [vmem:[%s1143_s1 + $0x1d0] sm:$0xff]  ;;  %v143_v24 = vld [vmem:[%s1143_s1 + $0x148] sm:$0xff] }
   0x9   :  { %255 = vmatpush.msra.mxu1 %v131_v13  ;;  %173 = vmatpush.msra.mxu0 %v114_v12  ;;  %v128_v23 = vld [vmem:[%s1143_s1 + $0xd0] sm:$0xff]  ;;  %v111_v25 = vld [vmem:[%s1143_s1 + $0x48] sm:$0xff]  ;;  %v142_v28 = vld [vmem:[%s1143_s1 + $0x140] sm:$0xff] }
   0xa   :  { %422 = vmatpush.msra.mxu3 %v162_v14  ;;  %340 = vmatpush.msra.mxu2 %v145_v16  ;;  %v159_v26 = vld [vmem:[%s1143_s1 + $0x1c8] sm:$0xff]  ;;  %v110_v29 = vld [vmem:[%s1143_s1 + $0x40] sm:$0xff]  ;;  %v141_v32 = vld [vmem:[%s1143_s1 + $0x138] sm:$0xff] }
   0xb   :  { %256 = vmatpush.msra.mxu1 %v130_v15  ;;  %174 = vmatpush.msra.mxu0 %v113_v17  ;;  %v127_v27 = vld [vmem:[%s1143_s1 + $0xc8] sm:$0xff]  ;;  %v158_v30 = vld [vmem:[%s1143_s1 + $0x1c0] sm:$0xff]  ;;  %v109_v33 = vld [vmem:[%s1143_s1 + $0x38] sm:$0xff] }
   0xc   :  { %423 = vmatpush.msra.mxu3 %v161_v18  ;;  %341 = vmatpush.msra.mxu2 %v144_v20  ;;  %v126_v31 = vld [vmem:[%s1143_s1 + $0xc0] sm:$0xff]  ;;  %v157_v34 = vld [vmem:[%s1143_s1 + $0x1b8] sm:$0xff]  ;;  %v140_v36 = vld [vmem:[%s1143_s1 + $0x130] sm:$0xff] }
   0xd   :  { %257 = vmatpush.msra.mxu1 %v129_v19  ;;  %175 = vmatpush.msra.mxu0 %v112_v21  ;;  %v125_v35 = vld [vmem:[%s1143_s1 + $0xb8] sm:$0xff]  ;;  %v108_v37 = vld [vmem:[%s1143_s1 + $0x30] sm:$0xff]  ;;  %v139_v40 = vld [vmem:[%s1143_s1 + $0x128] sm:$0xff] }
   0xe   :  { %424 = vmatpush.msra.mxu3 %v160_v22  ;;  %342 = vmatpush.msra.mxu2 %v143_v24  ;;  %v156_v38 = vld [vmem:[%s1143_s1 + $0x1b0] sm:$0xff]  ;;  %v107_v41 = vld [vmem:[%s1143_s1 + $0x28] sm:$0xff]  ;;  %v138_v44 = vld [vmem:[%s1143_s1 + $0x120] sm:$0xff] }
   0xf   :  { %258 = vmatpush.msra.mxu1 %v128_v23  ;;  %176 = vmatpush.msra.mxu0 %v111_v25  ;;  %v124_v39 = vld [vmem:[%s1143_s1 + $0xb0] sm:$0xff]  ;;  %v155_v42 = vld [vmem:[%s1143_s1 + $0x1a8] sm:$0xff]  ;;  %v106_v45 = vld [vmem:[%s1143_s1 + $0x20] sm:$0xff] }
  0x10   :  { %425 = vmatpush.msra.mxu3 %v159_v26  ;;  %343 = vmatpush.msra.mxu2 %v142_v28  ;;  %v123_v43 = vld [vmem:[%s1143_s1 + $0xa8] sm:$0xff]  ;;  %v154_v46 = vld [vmem:[%s1143_s1 + $0x1a0] sm:$0xff]  ;;  %v137_v48 = vld [vmem:[%s1143_s1 + $0x118] sm:$0xff] }
  0x11   :  { %259 = vmatpush.msra.mxu1 %v127_v27  ;;  %177 = vmatpush.msra.mxu0 %v110_v29  ;;  %v122_v47 = vld [vmem:[%s1143_s1 + $0xa0] sm:$0xff]  ;;  %v105_v49 = vld [vmem:[%s1143_s1 + $0x18] sm:$0xff]  ;;  %v136_v52 = vld [vmem:[%s1143_s1 + $0x110] sm:$0xff] }
  0x12   :  { %426 = vmatpush.msra.mxu3 %v158_v30  ;;  %344 = vmatpush.msra.mxu2 %v141_v32  ;;  %v153_v50 = vld [vmem:[%s1143_s1 + $0x198] sm:$0xff]  ;;  %v104_v53 = vld [vmem:[%s1143_s1 + $0x10] sm:$0xff]  ;;  %v135_v56 = vld [vmem:[%s1143_s1 + $0x108] sm:$0xff] }
  0x13   :  { %260 = vmatpush.msra.mxu1 %v126_v31  ;;  %178 = vmatpush.msra.mxu0 %v109_v33  ;;  %v121_v51 = vld [vmem:[%s1143_s1 + $0x98] sm:$0xff]  ;;  %v152_v54 = vld [vmem:[%s1143_s1 + $0x190] sm:$0xff]  ;;  %v103_v57 = vld [vmem:[%s1143_s1 + $0x8] sm:$0xff] }
  0x14   :  { %427 = vmatpush.msra.mxu3 %v157_v34  ;;  %345 = vmatpush.msra.mxu2 %v140_v36  ;;  %v120_v55 = vld [vmem:[%s1143_s1 + $0x90] sm:$0xff]  ;;  %v151_v58 = vld [vmem:[%s1143_s1 + $0x188] sm:$0xff]  ;;  %v134_v60 = vld [vmem:[%s1143_s1 + $0x100] sm:$0xff] }
  0x15   :  { %261 = vmatpush.msra.mxu1 %v125_v35  ;;  %179 = vmatpush.msra.mxu0 %v108_v37  ;;  %v119_v59 = vld [vmem:[%s1143_s1 + $0x88] sm:$0xff]  ;;  %v102_v61 = vld [vmem:[%s1143_s1] sm:$0xff]  ;;  %v16_v62 = vld [vmem:[%s1144_s0 + $0x10] sm:$0xff] }
  0x16   :  { %428 = vmatpush.msra.mxu3 %v156_v38  ;;  %346 = vmatpush.msra.mxu2 %v139_v40  ;;  %v150_v63 = vld [vmem:[%s1143_s1 + $0x180] sm:$0xff]  ;;  %v17_v1 = vld [vmem:[%s1144_s0 + $0x18] sm:$0xff]  ;;  %v15_v3 = vld [vmem:[%s1144_s0 + $0x8] sm:$0xff] }
  0x17   :  { %262 = vmatpush.msra.mxu1 %v124_v39  ;;  %180 = vmatpush.msra.mxu0 %v107_v41  ;;  %v14_v0 = vld [vmem:[%s1144_s0] sm:$0xff]  ;;  %v20_v4 = vld [vmem:[%s1144_s0 + $0x30] sm:$0xff]  ;;  %v21_v6 = vld [vmem:[%s1144_s0 + $0x38] sm:$0xff] }
  0x18   :  { %429 = vmatpush.msra.mxu3 %v155_v42  ;;  %347 = vmatpush.msra.mxu2 %v138_v44  ;;  %v118_v2 = vld [vmem:[%s1143_s1 + $0x80] sm:$0xff]  ;;  %v19_v7 = vld [vmem:[%s1144_s0 + $0x28] sm:$0xff]  ;;  %v24_v8 = vld [vmem:[%s1144_s0 + $0x50] sm:$0xff] }
  0x19   :  { %263 = vmatpush.msra.mxu1 %v123_v43  ;;  %181 = vmatpush.msra.mxu0 %v106_v45  ;;  %v18_v5 = vld [vmem:[%s1144_s0 + $0x20] sm:$0xff]  ;;  %v25_v10 = vld [vmem:[%s1144_s0 + $0x58] sm:$0xff]  ;;  %v23_v11 = vld [vmem:[%s1144_s0 + $0x48] sm:$0xff] }
  0x1a   :  { %430 = vmatpush.msra.mxu3 %v154_v46  ;;  %348 = vmatpush.msra.mxu2 %v137_v48  ;;  %v22_v9 = vld [vmem:[%s1144_s0 + $0x40] sm:$0xff]  ;;  %v28_v12 = vld [vmem:[%s1144_s0 + $0x70] sm:$0xff]  ;;  %v29_v14 = vld [vmem:[%s1144_s0 + $0x78] sm:$0xff] }
  0x1b   :  { %264 = vmatpush.msra.mxu1 %v122_v47  ;;  %182 = vmatpush.msra.mxu0 %v105_v49  ;;  %v26_v13 = vld [vmem:[%s1144_s0 + $0x60] sm:$0xff]  ;;  %v27_v15 = vld [vmem:[%s1144_s0 + $0x68] sm:$0xff]  ;;  %v32_v16 = vld [vmem:[%s1144_s0 + $0x90] sm:$0xff] }
  0x1c   :  { %431 = vmatpush.msra.mxu3 %v153_v50  ;;  %349 = vmatpush.msra.mxu2 %v136_v52  ;;  %v30_v17 = vld [vmem:[%s1144_s0 + $0x80] sm:$0xff]  ;;  %v33_v18 = vld [vmem:[%s1144_s0 + $0x98] sm:$0xff]  ;;  %v31_v19 = vld [vmem:[%s1144_s0 + $0x88] sm:$0xff] }
  0x1d   :  { %265 = vmatpush.msra.mxu1 %v121_v51  ;;  %183 = vmatpush.msra.mxu0 %v104_v53  ;;  %v36_v20 = vld [vmem:[%s1144_s0 + $0xb0] sm:$0xff]  ;;  %v34_v21 = vld [vmem:[%s1144_s0 + $0xa0] sm:$0xff]  ;;  %v37_v22 = vld [vmem:[%s1144_s0 + $0xb8] sm:$0xff] }
  0x1e   :  { %432 = vmatpush.msra.mxu3 %v152_v54  ;;  %350 = vmatpush.msra.mxu2 %v135_v56  ;;  %v35_v23 = vld [vmem:[%s1144_s0 + $0xa8] sm:$0xff]  ;;  %v40_v24 = vld [vmem:[%s1144_s0 + $0xd0] sm:$0xff]  ;;  %v38_v25 = vld [vmem:[%s1144_s0 + $0xc0] sm:$0xff] }
  0x1f   :  { %266 = vmatpush.msra.mxu1 %v120_v55  ;;  %184 = vmatpush.msra.mxu0 %v103_v57  ;;  %v41_v26 = vld [vmem:[%s1144_s0 + $0xd8] sm:$0xff]  ;;  %v39_v27 = vld [vmem:[%s1144_s0 + $0xc8] sm:$0xff]  ;;  %v44_v28 = vld [vmem:[%s1144_s0 + $0xf0] sm:$0xff] }
  0x20   :  { %433 = vmatpush.msra.mxu3 %v151_v58  ;;  %351 = vmatpush.msra.mxu2 %v134_v60  ;;  %v42_v29 = vld [vmem:[%s1144_s0 + $0xe0] sm:$0xff]  ;;  %v45_v30 = vld [vmem:[%s1144_s0 + $0xf8] sm:$0xff]  ;;  %v43_v31 = vld [vmem:[%s1144_s0 + $0xe8] sm:$0xff] }
  0x21   :  { %267 = vmatpush.msra.mxu1 %v119_v59  ;;  %185 = vmatpush.msra.mxu0 %v102_v61  ;;  %v48_v32 = vld [vmem:[%s1144_s0 + $0x110] sm:$0xff]  ;;  %v46_v33 = vld [vmem:[%s1144_s0 + $0x100] sm:$0xff]  ;;  %v49_v34 = vld [vmem:[%s1144_s0 + $0x118] sm:$0xff] }
  0x22   :  { %352 = vmatmul.f32.vlgmr.msra.gmra.mxu2 %v16_v62  ;;  %434 = vmatpush.msra.mxu3 %v150_v63  ;;  %v47_v35 = vld [vmem:[%s1144_s0 + $0x108] sm:$0xff]  ;;  %v52_v36 = vld [vmem:[%s1144_s0 + $0x130] sm:$0xff]  ;;  %v50_v37 = vld [vmem:[%s1144_s0 + $0x120] sm:$0xff] }
  0x23   :  { %186 = vmatmul.f32.vlgmr.msra.gmra.mxu0 %v14_v0  ;;  %435 = vmatmul.f32.vlgmr.msra.gmra.mxu3 %v17_v1  ;;  %v53_v38 = vld [vmem:[%s1144_s0 + $0x138] sm:$0xff]  ;;  %v51_v39 = vld [vmem:[%s1144_s0 + $0x128] sm:$0xff]  ;;  %v56_v40 = vld [vmem:[%s1144_s0 + $0x150] sm:$0xff] }
  0x24   :  { %268 = vmatpush.msra.mxu1 %v118_v2  ;;  %v54_v41 = vld [vmem:[%s1144_s0 + $0x140] sm:$0xff]  ;;  %v57_v42 = vld [vmem:[%s1144_s0 + $0x158] sm:$0xff]  ;;  %v55_v43 = vld [vmem:[%s1144_s0 + $0x148] sm:$0xff] }
  0x25   :  { %269 = vmatmul.f32.vlgmr.msra.gmra.mxu1 %v15_v3  ;;  %v60_v44 = vld [vmem:[%s1144_s0 + $0x170] sm:$0xff]  ;;  %v58_v45 = vld [vmem:[%s1144_s0 + $0x160] sm:$0xff]  ;;  %v61_v46 = vld [vmem:[%s1144_s0 + $0x178] sm:$0xff] }
  0x26   :  { %v59_v47 = vld [vmem:[%s1144_s0 + $0x168] sm:$0xff]  ;;  %v64_v48 = vld [vmem:[%s1144_s0 + $0x190] sm:$0xff]  ;;  %v62_v49 = vld [vmem:[%s1144_s0 + $0x180] sm:$0xff] }
  0x27   :  { %v65_v50 = vld [vmem:[%s1144_s0 + $0x198] sm:$0xff]  ;;  %v63_v51 = vld [vmem:[%s1144_s0 + $0x188] sm:$0xff]  ;;  %v68_v52 = vld [vmem:[%s1144_s0 + $0x1b0] sm:$0xff] }
  0x28   :  { %v66_v53 = vld [vmem:[%s1144_s0 + $0x1a0] sm:$0xff]  ;;  %v69_v54 = vld [vmem:[%s1144_s0 + $0x1b8] sm:$0xff]  ;;  %v67_v55 = vld [vmem:[%s1144_s0 + $0x1a8] sm:$0xff] }
  0x29   :  { %v72_v56 = vld [vmem:[%s1144_s0 + $0x1d0] sm:$0xff]  ;;  %v70_v57 = vld [vmem:[%s1144_s0 + $0x1c0] sm:$0xff]  ;;  %v73_v58 = vld [vmem:[%s1144_s0 + $0x1d8] sm:$0xff] }
  0x2a   :  { %355 = vmatmul.f32.gmra.mxu2 %v20_v4  ;;  %v71_v59 = vld [vmem:[%s1144_s0 + $0x1c8] sm:$0xff]  ;;  %v76_v60 = vld [vmem:[%s1144_s0 + $0x1f0] sm:$0xff]  ;;  %v74_v61 = vld [vmem:[%s1144_s0 + $0x1e0] sm:$0xff] }
  0x2b   :  { %189 = vmatmul.f32.gmra.mxu0 %v18_v5  ;;  %438 = vmatmul.f32.gmra.mxu3 %v21_v6  ;;  %v77_v62 = vld [vmem:[%s1144_s0 + $0x1f8] sm:$0xff]  ;;  %v75_v63 = vld [vmem:[%s1144_s0 + $0x1e8] sm:$0xff]  ;;  %v959_v0 = vld [vmem:[%s1145_s2] ss:$0 sm:$0xff] }
  0x2c   :  { %v80_v1 = vld [vmem:[%s1144_s0 + $0x210] sm:$0xff]  ;;  %v78_v3 = vld [vmem:[%s1144_s0 + $0x200] sm:$0xff]  ;;  %v81_v4 = vld [vmem:[%s1144_s0 + $0x218] sm:$0xff] }
  0x2d   :  { %272 = vmatmul.f32.gmra.mxu1 %v19_v7  ;;  %v79_v7 = vld [vmem:[%s1144_s0 + $0x208] sm:$0xff] }
  0x32   :  { %358 = vmatmul.f32.gmra.mxu2 %v24_v8 }
  0x33   :  { %192 = vmatmul.f32.gmra.mxu0 %v22_v9  ;;  %441 = vmatmul.f32.gmra.mxu3 %v25_v10 }
  0x35   :  { %275 = vmatmul.f32.gmra.mxu1 %v23_v11 }
  0x3a   :  { %361 = vmatmul.f32.gmra.mxu2 %v28_v12  ;;  %v84_v12 = vld [vmem:[%s1144_s0 + $0x230] sm:$0xff] }
  0x3b   :  { %195 = vmatmul.f32.gmra.mxu0 %v26_v13  ;;  %444 = vmatmul.f32.gmra.mxu3 %v29_v14 }
  0x3d   :  { %278 = vmatmul.f32.gmra.mxu1 %v27_v15  ;;  %v82_v15 = vld [vmem:[%s1144_s0 + $0x220] sm:$0xff] }
  0x42   :  { %364 = vmatmul.f32.gmra.mxu2 %v32_v16  ;;  %v85_v16 = vld [vmem:[%s1144_s0 + $0x238] sm:$0xff] }
  0x43   :  { %198 = vmatmul.f32.gmra.mxu0 %v30_v17  ;;  %447 = vmatmul.f32.gmra.mxu3 %v33_v18 }
  0x45   :  { %281 = vmatmul.f32.gmra.mxu1 %v31_v19 }
  0x4a   :  { %367 = vmatmul.f32.gmra.mxu2 %v36_v20  ;;  %v83_v20 = vld [vmem:[%s1144_s0 + $0x228] sm:$0xff] }
  0x4b   :  { %201 = vmatmul.f32.gmra.mxu0 %v34_v21  ;;  %450 = vmatmul.f32.gmra.mxu3 %v37_v22 }
  0x4d   :  { %284 = vmatmul.f32.gmra.mxu1 %v35_v23 }
  0x52   :  { %370 = vmatmul.f32.gmra.mxu2 %v40_v24 }
  0x53   :  { %204 = vmatmul.f32.gmra.mxu0 %v38_v25  ;;  %453 = vmatmul.f32.gmra.mxu3 %v41_v26  ;;  %v88_v25 = vld [vmem:[%s1144_s0 + $0x250] sm:$0xff] }
  0x55   :  { %287 = vmatmul.f32.gmra.mxu1 %v39_v27 }
  0x5a   :  { %373 = vmatmul.f32.gmra.mxu2 %v44_v28  ;;  %v86_v28 = vld [vmem:[%s1144_s0 + $0x240] sm:$0xff] }
  0x5b   :  { %207 = vmatmul.f32.gmra.mxu0 %v42_v29  ;;  %456 = vmatmul.f32.gmra.mxu3 %v45_v30  ;;  %v89_v29 = vld [vmem:[%s1144_s0 + $0x258] sm:$0xff] }
  0x5d   :  { %290 = vmatmul.f32.gmra.mxu1 %v43_v31 }
  0x62   :  { %376 = vmatmul.f32.gmra.mxu2 %v48_v32 }
  0x63   :  { %210 = vmatmul.f32.gmra.mxu0 %v46_v33  ;;  %459 = vmatmul.f32.gmra.mxu3 %v49_v34  ;;  %v87_v33 = vld [vmem:[%s1144_s0 + $0x248] sm:$0xff] }
  0x65   :  { %293 = vmatmul.f32.gmra.mxu1 %v47_v35 }
  0x6a   :  { %379 = vmatmul.f32.gmra.mxu2 %v52_v36 }
  0x6b   :  { %213 = vmatmul.f32.gmra.mxu0 %v50_v37  ;;  %462 = vmatmul.f32.gmra.mxu3 %v53_v38  ;;  %v92_v38 = vld [vmem:[%s1144_s0 + $0x270] sm:$0xff] }
  0x6d   :  { %296 = vmatmul.f32.gmra.mxu1 %v51_v39 }
  0x72   :  { %382 = vmatmul.f32.gmra.mxu2 %v56_v40 }
  0x73   :  { %216 = vmatmul.f32.gmra.mxu0 %v54_v41  ;;  %465 = vmatmul.f32.gmra.mxu3 %v57_v42  ;;  %v90_v41 = vld [vmem:[%s1144_s0 + $0x260] sm:$0xff]  ;;  %v93_v42 = vld [vmem:[%s1144_s0 + $0x278] sm:$0xff] }
  0x75   :  { %299 = vmatmul.f32.gmra.mxu1 %v55_v43 }
  0x7a   :  { %385 = vmatmul.f32.gmra.mxu2 %v60_v44 }
  0x7b   :  { %219 = vmatmul.f32.gmra.mxu0 %v58_v45  ;;  %468 = vmatmul.f32.gmra.mxu3 %v61_v46  ;;  %v91_v46 = vld [vmem:[%s1144_s0 + $0x268] sm:$0xff] }
  0x7d   :  { %302 = vmatmul.f32.gmra.mxu1 %v59_v47 }
  0x82   :  { %388 = vmatmul.f32.gmra.mxu2 %v64_v48 }
  0x83   :  { %222 = vmatmul.f32.gmra.mxu0 %v62_v49  ;;  %471 = vmatmul.f32.gmra.mxu3 %v65_v50 }
  0x85   :  { %305 = vmatmul.f32.gmra.mxu1 %v63_v51  ;;  %v96_v51 = vld [vmem:[%s1144_s0 + $0x290] sm:$0xff] }
  0x8a   :  { %391 = vmatmul.f32.gmra.mxu2 %v68_v52 }
  0x8b   :  { %225 = vmatmul.f32.gmra.mxu0 %v66_v53  ;;  %474 = vmatmul.f32.gmra.mxu3 %v69_v54  ;;  %v94_v54 = vld [vmem:[%s1144_s0 + $0x280] sm:$0xff] }
  0x8d   :  { %308 = vmatmul.f32.gmra.mxu1 %v67_v55  ;;  %v97_v55 = vld [vmem:[%s1144_s0 + $0x298] sm:$0xff] }
  0x92   :  { %394 = vmatmul.f32.gmra.mxu2 %v72_v56 }
  0x93   :  { %228 = vmatmul.f32.gmra.mxu0 %v70_v57  ;;  %477 = vmatmul.f32.gmra.mxu3 %v73_v58 }
  0x95   :  { %311 = vmatmul.f32.gmra.mxu1 %v71_v59  ;;  %v95_v59 = vld [vmem:[%s1144_s0 + $0x288] sm:$0xff] }
  0x9a   :  { %397 = vmatmul.f32.gmra.mxu2 %v76_v60 }
  0x9b   :  { %231 = vmatmul.f32.gmra.mxu0 %v74_v61  ;;  %480 = vmatmul.f32.gmra.mxu3 %v77_v62 }
  0x9d   :  { %314 = vmatmul.f32.gmra.mxu1 %v75_v63 }
  0xa0   :  { %v187_v2 = vpop.f32.mrf.mxu0 }
  0xa1   :  { %v188_v5 = vadd.f32 %v959_v0, %v187_v2 }
  0xa2   :  { %400 = vmatmul.f32.gmra.mxu2 %v80_v1  ;;  %v270_v6 = vpop.f32.mrf.mxu1  ;;  %v100_v1 = vld [vmem:[%s1144_s0 + $0x2b0] sm:$0xff] }
  0xa3   :  { %v271_v8 = vadd.f32 %v270_v6, %v188_v5  ;;  %234 = vmatmul.f32.gmra.mxu0 %v78_v3  ;;  %483 = vmatmul.f32.gmra.mxu3 %v81_v4  ;;  %v98_v4 = vld [vmem:[%s1144_s0 + $0x2a0] sm:$0xff]  ;;  %v101_v5 = vld [vmem:[%s1144_s0 + $0x2b8] sm:$0xff] }
  0xa5   :  { %v353_v9 = vpop.f32.mrf.mxu2  ;;  %317 = vmatmul.f32.gmra.mxu1 %v79_v7 }
  0xa6   :  { %v354_v10 = vadd.f32 %v353_v9, %v271_v8  ;;  %v436_v11 = vpop.f32.mrf.mxu3  ;;  %v99_v9 = vld [vmem:[%s1144_s0 + $0x2a8] sm:$0xff] }
  0xa8   :  { %v437_v13 = vadd.f32 %v436_v11, %v354_v10  ;;  %v190_v14 = vpop.f32.mrf.mxu0 }
  0xa9   :  { %v191_v17 = vadd.f32 %v959_v0, %v190_v14 }
  0xaa   :  { %v502_v18 = vmax.f32 %v437_v13, 0.0  ;;  %403 = vmatmul.f32.gmra.mxu2 %v84_v12  ;;  %v273_v19 = vpop.f32.mrf.mxu1 }
  0xab   :  { %v274_v21 = vadd.f32 %v273_v19, %v191_v17  ;;  %237 = vmatmul.f32.gmra.mxu0 %v82_v15  ;;  %486 = vmatmul.f32.gmra.mxu3 %v85_v16 }
  0xac   :  { %525 = vst.msk [vmem:[%s1146_s3] sm:$0xff] %vm524_vm0, %v502_v18 }
  0xad   :  { %v356_v22 = vpop.f32.mrf.mxu2  ;;  %320 = vmatmul.f32.gmra.mxu1 %v83_v20 }
  0xae   :  { %v357_v23 = vadd.f32 %v356_v22, %v274_v21  ;;  %v439_v24 = vpop.f32.mrf.mxu3 }
  0xb0   :  { %v440_v26 = vadd.f32 %v439_v24, %v357_v23  ;;  %v193_v27 = vpop.f32.mrf.mxu0 }
  0xb1   :  { %v194_v30 = vadd.f32 %v959_v0, %v193_v27 }
  0xb2   :  { %v503_v31 = vmax.f32 %v440_v26, 0.0  ;;  %406 = vmatmul.f32.gmra.mxu2 %v88_v25  ;;  %v276_v32 = vpop.f32.mrf.mxu1 }
  0xb3   :  { %v277_v34 = vadd.f32 %v276_v32, %v194_v30  ;;  %240 = vmatmul.f32.gmra.mxu0 %v86_v28  ;;  %489 = vmatmul.f32.gmra.mxu3 %v89_v29 }
  0xb4   :  { %526 = vst.msk [vmem:[%s1146_s3 + $0x8] sm:$0xff] %vm524_vm0, %v503_v31 }
  0xb5   :  { %v359_v35 = vpop.f32.mrf.mxu2  ;;  %323 = vmatmul.f32.gmra.mxu1 %v87_v33 }
  0xb6   :  { %v360_v36 = vadd.f32 %v359_v35, %v277_v34  ;;  %v442_v37 = vpop.f32.mrf.mxu3 }
  0xb8   :  { %v443_v39 = vadd.f32 %v442_v37, %v360_v36  ;;  %v196_v40 = vpop.f32.mrf.mxu0 }
  0xb9   :  { %v197_v43 = vadd.f32 %v959_v0, %v196_v40 }
  0xba   :  { %v504_v44 = vmax.f32 %v443_v39, 0.0  ;;  %409 = vmatmul.f32.gmra.mxu2 %v92_v38  ;;  %v279_v45 = vpop.f32.mrf.mxu1 }
  0xbb   :  { %v280_v47 = vadd.f32 %v279_v45, %v197_v43  ;;  %243 = vmatmul.f32.gmra.mxu0 %v90_v41  ;;  %492 = vmatmul.f32.gmra.mxu3 %v93_v42 }
  0xbc   :  { %527 = vst.msk [vmem:[%s1146_s3 + $0x10] sm:$0xff] %vm524_vm0, %v504_v44 }
  0xbd   :  { %v362_v48 = vpop.f32.mrf.mxu2  ;;  %326 = vmatmul.f32.gmra.mxu1 %v91_v46 }
  0xbe   :  { %v363_v49 = vadd.f32 %v362_v48, %v280_v47  ;;  %v445_v50 = vpop.f32.mrf.mxu3 }
  0xc0   :  { %v446_v52 = vadd.f32 %v445_v50, %v363_v49  ;;  %v199_v53 = vpop.f32.mrf.mxu0 }
  0xc1   :  { %v200_v56 = vadd.f32 %v959_v0, %v199_v53 }
  0xc2   :  { %v505_v57 = vmax.f32 %v446_v52, 0.0  ;;  %412 = vmatmul.f32.gmra.mxu2 %v96_v51  ;;  %v282_v58 = vpop.f32.mrf.mxu1 }
  0xc3   :  { %v283_v60 = vadd.f32 %v282_v58, %v200_v56  ;;  %246 = vmatmul.f32.gmra.mxu0 %v94_v54  ;;  %495 = vmatmul.f32.gmra.mxu3 %v97_v55 }
  0xc4   :  { %528 = vst.msk [vmem:[%s1146_s3 + $0x18] sm:$0xff] %vm524_vm0, %v505_v57 }
  0xc5   :  { %v365_v61 = vpop.f32.mrf.mxu2  ;;  %329 = vmatmul.f32.gmra.mxu1 %v95_v59 }
  0xc6   :  { %v366_v62 = vadd.f32 %v365_v61, %v283_v60  ;;  %v448_v63 = vpop.f32.mrf.mxu3 }
  0xc8   :  { %v449_v2 = vadd.f32 %v448_v63, %v366_v62  ;;  %v202_v3 = vpop.f32.mrf.mxu0 }
  0xc9   :  { %v203_v6 = vadd.f32 %v959_v0, %v202_v3 }
  0xca   :  { %v506_v7 = vmax.f32 %v449_v2, 0.0  ;;  %415 = vmatmul.f32.gmra.mxu2 %v100_v1  ;;  %v285_v8 = vpop.f32.mrf.mxu1 }
  0xcb   :  { %v286_v10 = vadd.f32 %v285_v8, %v203_v6  ;;  %249 = vmatmul.f32.gmra.mxu0 %v98_v4  ;;  %498 = vmatmul.f32.gmra.mxu3 %v101_v5 }
  0xcc   :  { %529 = vst.msk [vmem:[%s1146_s3 + $0x20] sm:$0xff] %vm524_vm0, %v506_v7 }
  0xcd   :  { %v368_v11 = vpop.f32.mrf.mxu2  ;;  %332 = vmatmul.f32.gmra.mxu1 %v99_v9 }
  0xce   :  { %v369_v12 = vadd.f32 %v368_v11, %v286_v10  ;;  %v451_v13 = vpop.f32.mrf.mxu3 }
  0xd0   :  { %v452_v14 = vadd.f32 %v451_v13, %v369_v12  ;;  %v205_v15 = vpop.f32.mrf.mxu0 }
  0xd1   :  { %v206_v16 = vadd.f32 %v959_v0, %v205_v15 }
  0xd2   :  { %v507_v17 = vmax.f32 %v452_v14, 0.0  ;;  %v288_v18 = vpop.f32.mrf.mxu1 }
  0xd3   :  { %v289_v19 = vadd.f32 %v288_v18, %v206_v16 }
  0xd4   :  { %530 = vst.msk [vmem:[%s1146_s3 + $0x28] sm:$0xff] %vm524_vm0, %v507_v17 }
  0xd5   :  { %v371_v20 = vpop.f32.mrf.mxu2 }
  0xd6   :  { %v372_v21 = vadd.f32 %v371_v20, %v289_v19  ;;  %v454_v22 = vpop.f32.mrf.mxu3 }
  0xd8   :  { %v455_v23 = vadd.f32 %v454_v22, %v372_v21  ;;  %v208_v24 = vpop.f32.mrf.mxu0 }
  0xd9   :  { %v209_v25 = vadd.f32 %v959_v0, %v208_v24 }
  0xda   :  { %v508_v26 = vmax.f32 %v455_v23, 0.0  ;;  %v291_v27 = vpop.f32.mrf.mxu1 }
  0xdb   :  { %v292_v28 = vadd.f32 %v291_v27, %v209_v25 }
  0xdc   :  { %531 = vst.msk [vmem:[%s1146_s3 + $0x30] sm:$0xff] %vm524_vm0, %v508_v26 }
  0xdd   :  { %v374_v29 = vpop.f32.mrf.mxu2 }
  0xde   :  { %v375_v30 = vadd.f32 %v374_v29, %v292_v28  ;;  %v457_v31 = vpop.f32.mrf.mxu3 }
  0xe0   :  { %v458_v32 = vadd.f32 %v457_v31, %v375_v30  ;;  %v211_v33 = vpop.f32.mrf.mxu0 }
  0xe1   :  { %v212_v34 = vadd.f32 %v959_v0, %v211_v33 }
  0xe2   :  { %v509_v35 = vmax.f32 %v458_v32, 0.0  ;;  %v294_v36 = vpop.f32.mrf.mxu1 }
  0xe3   :  { %v295_v37 = vadd.f32 %v294_v36, %v212_v34 }
  0xe4   :  { %532 = vst.msk [vmem:[%s1146_s3 + $0x38] sm:$0xff] %vm524_vm0, %v509_v35 }
  0xe5   :  { %v377_v38 = vpop.f32.mrf.mxu2 }
  0xe6   :  { %v378_v39 = vadd.f32 %v377_v38, %v295_v37  ;;  %v460_v40 = vpop.f32.mrf.mxu3 }
  0xe8   :  { %v461_v41 = vadd.f32 %v460_v40, %v378_v39  ;;  %v214_v42 = vpop.f32.mrf.mxu0 }
  0xe9   :  { %v215_v43 = vadd.f32 %v959_v0, %v214_v42 }
  0xea   :  { %v510_v44 = vmax.f32 %v461_v41, 0.0  ;;  %v297_v45 = vpop.f32.mrf.mxu1 }
  0xeb   :  { %v298_v46 = vadd.f32 %v297_v45, %v215_v43 }
  0xec   :  { %533 = vst.msk [vmem:[%s1146_s3 + $0x40] sm:$0xff] %vm524_vm0, %v510_v44 }
  0xed   :  { %v380_v47 = vpop.f32.mrf.mxu2 }
  0xee   :  { %v381_v48 = vadd.f32 %v380_v47, %v298_v46  ;;  %v463_v49 = vpop.f32.mrf.mxu3 }
  0xf0   :  { %v464_v50 = vadd.f32 %v463_v49, %v381_v48  ;;  %v217_v51 = vpop.f32.mrf.mxu0 }
  0xf1   :  { %v218_v52 = vadd.f32 %v959_v0, %v217_v51 }
  0xf2   :  { %v511_v53 = vmax.f32 %v464_v50, 0.0  ;;  %v300_v54 = vpop.f32.mrf.mxu1 }
  0xf3   :  { %v301_v55 = vadd.f32 %v300_v54, %v218_v52 }
  0xf4   :  { %534 = vst.msk [vmem:[%s1146_s3 + $0x48] sm:$0xff] %vm524_vm0, %v511_v53 }
  0xf5   :  { %v383_v56 = vpop.f32.mrf.mxu2 }
  0xf6   :  { %v384_v57 = vadd.f32 %v383_v56, %v301_v55  ;;  %v466_v58 = vpop.f32.mrf.mxu3 }
  0xf8   :  { %v467_v59 = vadd.f32 %v466_v58, %v384_v57  ;;  %v220_v60 = vpop.f32.mrf.mxu0 }
  0xf9   :  { %v221_v61 = vadd.f32 %v959_v0, %v220_v60 }
  0xfa   :  { %v512_v62 = vmax.f32 %v467_v59, 0.0  ;;  %v303_v63 = vpop.f32.mrf.mxu1 }
  0xfb   :  { %v304_v1 = vadd.f32 %v303_v63, %v221_v61 }
  0xfc   :  { %535 = vst.msk [vmem:[%s1146_s3 + $0x50] sm:$0xff] %vm524_vm0, %v512_v62 }
  0xfd   :  { %v386_v2 = vpop.f32.mrf.mxu2 }
  0xfe   :  { %v387_v3 = vadd.f32 %v386_v2, %v304_v1  ;;  %v469_v4 = vpop.f32.mrf.mxu3 }
 0x100   :  { %v470_v5 = vadd.f32 %v469_v4, %v387_v3  ;;  %v223_v6 = vpop.f32.mrf.mxu0 }
 0x101   :  { %v224_v7 = vadd.f32 %v959_v0, %v223_v6 }
 0x102   :  { %v513_v8 = vmax.f32 %v470_v5, 0.0  ;;  %v306_v9 = vpop.f32.mrf.mxu1 }
 0x103   :  { %v307_v10 = vadd.f32 %v306_v9, %v224_v7 }
 0x104   :  { %536 = vst.msk [vmem:[%s1146_s3 + $0x58] sm:$0xff] %vm524_vm0, %v513_v8 }
 0x105   :  { %v389_v11 = vpop.f32.mrf.mxu2 }
 0x106   :  { %v390_v12 = vadd.f32 %v389_v11, %v307_v10  ;;  %v472_v13 = vpop.f32.mrf.mxu3 }
 0x108   :  { %v473_v14 = vadd.f32 %v472_v13, %v390_v12  ;;  %v226_v15 = vpop.f32.mrf.mxu0 }
 0x109   :  { %v227_v16 = vadd.f32 %v959_v0, %v226_v15 }
 0x10a   :  { %v514_v17 = vmax.f32 %v473_v14, 0.0  ;;  %v309_v18 = vpop.f32.mrf.mxu1 }
 0x10b   :  { %v310_v19 = vadd.f32 %v309_v18, %v227_v16 }
 0x10c   :  { %537 = vst.msk [vmem:[%s1146_s3 + $0x60] sm:$0xff] %vm524_vm0, %v514_v17 }
 0x10d   :  { %v392_v20 = vpop.f32.mrf.mxu2 }
 0x10e   :  { %v393_v21 = vadd.f32 %v392_v20, %v310_v19  ;;  %v475_v22 = vpop.f32.mrf.mxu3 }
 0x110   :  { %v476_v23 = vadd.f32 %v475_v22, %v393_v21  ;;  %v229_v24 = vpop.f32.mrf.mxu0 }
 0x111   :  { %v230_v25 = vadd.f32 %v959_v0, %v229_v24 }
 0x112   :  { %v515_v26 = vmax.f32 %v476_v23, 0.0  ;;  %v312_v27 = vpop.f32.mrf.mxu1 }
 0x113   :  { %v313_v28 = vadd.f32 %v312_v27, %v230_v25 }
 0x114   :  { %538 = vst.msk [vmem:[%s1146_s3 + $0x68] sm:$0xff] %vm524_vm0, %v515_v26 }
 0x115   :  { %v395_v29 = vpop.f32.mrf.mxu2 }
 0x116   :  { %v396_v30 = vadd.f32 %v395_v29, %v313_v28  ;;  %v478_v31 = vpop.f32.mrf.mxu3 }
 0x118   :  { %v479_v32 = vadd.f32 %v478_v31, %v396_v30  ;;  %v232_v33 = vpop.f32.mrf.mxu0 }
 0x119   :  { %v233_v34 = vadd.f32 %v959_v0, %v232_v33 }
 0x11a   :  { %v516_v35 = vmax.f32 %v479_v32, 0.0  ;;  %v315_v36 = vpop.f32.mrf.mxu1 }
 0x11b   :  { %v316_v37 = vadd.f32 %v315_v36, %v233_v34 }
 0x11c   :  { %539 = vst.msk [vmem:[%s1146_s3 + $0x70] sm:$0xff] %vm524_vm0, %v516_v35 }
 0x11d   :  { %v398_v38 = vpop.f32.mrf.mxu2 }
 0x11e   :  { %v399_v39 = vadd.f32 %v398_v38, %v316_v37  ;;  %v481_v40 = vpop.f32.mrf.mxu3 }
 0x120   :  { %v482_v41 = vadd.f32 %v481_v40, %v399_v39  ;;  %v235_v42 = vpop.f32.mrf.mxu0 }
 0x121   :  { %v236_v43 = vadd.f32 %v959_v0, %v235_v42 }
 0x122   :  { %v517_v44 = vmax.f32 %v482_v41, 0.0  ;;  %v318_v45 = vpop.f32.mrf.mxu1 }
 0x123   :  { %v319_v46 = vadd.f32 %v318_v45, %v236_v43 }
 0x124   :  { %540 = vst.msk [vmem:[%s1146_s3 + $0x78] sm:$0xff] %vm524_vm0, %v517_v44 }
 0x125   :  { %v401_v47 = vpop.f32.mrf.mxu2 }
 0x126   :  { %v402_v48 = vadd.f32 %v401_v47, %v319_v46  ;;  %v484_v49 = vpop.f32.mrf.mxu3 }
 0x128   :  { %v485_v50 = vadd.f32 %v484_v49, %v402_v48  ;;  %v238_v51 = vpop.f32.mrf.mxu0 }
 0x129   :  { %v239_v52 = vadd.f32 %v959_v0, %v238_v51 }
 0x12a   :  { %v518_v53 = vmax.f32 %v485_v50, 0.0  ;;  %v321_v54 = vpop.f32.mrf.mxu1 }
 0x12b   :  { %v322_v55 = vadd.f32 %v321_v54, %v239_v52 }
 0x12c   :  { %541 = vst.msk [vmem:[%s1146_s3 + $0x80] sm:$0xff] %vm524_vm0, %v518_v53 }
 0x12d   :  { %v404_v56 = vpop.f32.mrf.mxu2 }
 0x12e   :  { %v405_v57 = vadd.f32 %v404_v56, %v322_v55  ;;  %v487_v58 = vpop.f32.mrf.mxu3 }
 0x130   :  { %v488_v59 = vadd.f32 %v487_v58, %v405_v57  ;;  %v241_v60 = vpop.f32.mrf.mxu0 }
 0x131   :  { %v242_v61 = vadd.f32 %v959_v0, %v241_v60 }
 0x132   :  { %v519_v62 = vmax.f32 %v488_v59, 0.0  ;;  %v324_v63 = vpop.f32.mrf.mxu1 }
 0x133   :  { %v325_v1 = vadd.f32 %v324_v63, %v242_v61 }
 0x134   :  { %542 = vst.msk [vmem:[%s1146_s3 + $0x88] sm:$0xff] %vm524_vm0, %v519_v62 }
 0x135   :  { %v407_v2 = vpop.f32.mrf.mxu2 }
 0x136   :  { %v408_v3 = vadd.f32 %v407_v2, %v325_v1  ;;  %v490_v4 = vpop.f32.mrf.mxu3 }
 0x138   :  { %v491_v5 = vadd.f32 %v490_v4, %v408_v3  ;;  %v244_v6 = vpop.f32.mrf.mxu0 }
 0x139   :  { %v245_v7 = vadd.f32 %v959_v0, %v244_v6 }
 0x13a   :  { %v520_v8 = vmax.f32 %v491_v5, 0.0  ;;  %v327_v9 = vpop.f32.mrf.mxu1 }
 0x13b   :  { %v328_v10 = vadd.f32 %v327_v9, %v245_v7 }
 0x13c   :  { %543 = vst.msk [vmem:[%s1146_s3 + $0x90] sm:$0xff] %vm524_vm0, %v520_v8 }
 0x13d   :  { %v410_v11 = vpop.f32.mrf.mxu2 }
 0x13e   :  { %v411_v12 = vadd.f32 %v410_v11, %v328_v10  ;;  %v493_v13 = vpop.f32.mrf.mxu3 }
 0x140   :  { %v494_v14 = vadd.f32 %v493_v13, %v411_v12  ;;  %v247_v15 = vpop.f32.mrf.mxu0 }
 0x141   :  { %v248_v16 = vadd.f32 %v959_v0, %v247_v15 }
 0x142   :  { %v521_v17 = vmax.f32 %v494_v14, 0.0  ;;  %v330_v18 = vpop.f32.mrf.mxu1 }
 0x143   :  { %v331_v19 = vadd.f32 %v330_v18, %v248_v16 }
 0x144   :  { %544 = vst.msk [vmem:[%s1146_s3 + $0x98] sm:$0xff] %vm524_vm0, %v521_v17 }
 0x145   :  { %v413_v20 = vpop.f32.mrf.mxu2 }
 0x146   :  { %v414_v21 = vadd.f32 %v413_v20, %v331_v19  ;;  %v496_v22 = vpop.f32.mrf.mxu3 }
 0x148   :  { %v497_v23 = vadd.f32 %v496_v22, %v414_v21  ;;  %v250_v24 = vpop.f32.mrf.mxu0 }
 0x149   :  { %v251_v25 = vadd.f32 %v959_v0, %v250_v24 }
 0x14a   :  { %v522_v26 = vmax.f32 %v497_v23, 0.0  ;;  %v333_v27 = vpop.f32.mrf.mxu1 }
 0x14b   :  { %v334_v28 = vadd.f32 %v333_v27, %v251_v25 }
 0x14c   :  { %545 = vst.msk [vmem:[%s1146_s3 + $0xa0] sm:$0xff] %vm524_vm0, %v522_v26 }
 0x14d   :  { %v416_v29 = vpop.f32.mrf.mxu2 }
 0x14e   :  { %v417_v30 = vadd.f32 %v416_v29, %v334_v28  ;;  %v499_v31 = vpop.f32.mrf.mxu3 }
 0x150   :  { %v500_v32 = vadd.f32 %v499_v31, %v417_v30 }
 0x152   :  { %v523_v33 = vmax.f32 %v500_v32, 0.0 }
 0x154   :  { %546 = vst.msk [vmem:[%s1146_s3 + $0xa8] sm:$0xff] %vm524_vm0, %v523_v33 }

// kernel: _lambda_.6
= control target key start
LH: loop header
LB: loop body
LE: loop exit
PB: predicated region body
PF: predicated region fallthrough
CT: control target
= control target key end

     0   :  { %vm160_vm0 = vcmask 523264   ;;  %s1158_s1 = inlined_call_operand.vmem [shape: f32[576,64], index: 1, kind: input, shape index: {}]   ;;  %s1159_s0 = inlined_call_operand.vmem [shape: f32[112,576], index: 0, kind: input, shape index: {}]   ;;  %s1160_s2 = inlined_call_operand.vmem [shape: f32[1,64], index: 2, kind: input, shape index: {}]   ;;  %s1161_s3 = inlined_call_operand.vmem [shape: f32[112,64], index: 3, kind: output, shape index: {}]  }
   0x1   :  { %v99_v0 = vld [vmem:[%s1158_s1 + $0x78] sm:$0xff]  ;;  %v98_v1 = vld [vmem:[%s1158_s1 + $0x70] sm:$0xff]  ;;  %v97_v2 = vld [vmem:[%s1158_s1 + $0x68] sm:$0xff] }
   0x2   :  { %544 = vmatpush.msra.mxu1 %v99_v0  ;;  %545 = vmatpush.msra.mxu2 %v99_v0  ;;  %v96_v3 = vld [vmem:[%s1158_s1 + $0x60] sm:$0xff]  ;;  %v95_v4 = vld [vmem:[%s1158_s1 + $0x58] sm:$0xff]  ;;  %v94_v5 = vld [vmem:[%s1158_s1 + $0x50] sm:$0xff] }
   0x3   :  { %546 = vmatpush.msra.mxu3 %v99_v0  ;;  %203 = vmatpush.msra.mxu0 %v99_v0  ;;  %v93_v6 = vld [vmem:[%s1158_s1 + $0x48] sm:$0xff]  ;;  %v92_v7 = vld [vmem:[%s1158_s1 + $0x40] sm:$0xff]  ;;  %v91_v8 = vld [vmem:[%s1158_s1 + $0x38] sm:$0xff] }
   0x4   :  { %547 = vmatpush.msra.mxu1 %v98_v1  ;;  %548 = vmatpush.msra.mxu2 %v98_v1  ;;  %v90_v9 = vld [vmem:[%s1158_s1 + $0x30] sm:$0xff]  ;;  %v89_v10 = vld [vmem:[%s1158_s1 + $0x28] sm:$0xff]  ;;  %v88_v11 = vld [vmem:[%s1158_s1 + $0x20] sm:$0xff] }
   0x5   :  { %549 = vmatpush.msra.mxu3 %v98_v1  ;;  %204 = vmatpush.msra.mxu0 %v98_v1  ;;  %v87_v12 = vld [vmem:[%s1158_s1 + $0x18] sm:$0xff]  ;;  %v86_v13 = vld [vmem:[%s1158_s1 + $0x10] sm:$0xff]  ;;  %v85_v14 = vld [vmem:[%s1158_s1 + $0x8] sm:$0xff] }
   0x6   :  { %550 = vmatpush.msra.mxu1 %v97_v2  ;;  %551 = vmatpush.msra.mxu2 %v97_v2  ;;  %v84_v15 = vld [vmem:[%s1158_s1] sm:$0xff]  ;;  %v131_v18 = vld [vmem:[%s1158_s1 + $0x178] sm:$0xff]  ;;  %v130_v20 = vld [vmem:[%s1158_s1 + $0x170] sm:$0xff] }
   0x7   :  { %552 = vmatpush.msra.mxu3 %v97_v2  ;;  %205 = vmatpush.msra.mxu0 %v97_v2  ;;  %v34_v16 = vld [vmem:[%s1159_s0 + $0xa0] sm:$0xff]  ;;  %v115_v19 = vld [vmem:[%s1158_s1 + $0xf8] sm:$0xff]  ;;  %v114_v21 = vld [vmem:[%s1158_s1 + $0xf0] sm:$0xff] }
   0x8   :  { %553 = vmatpush.msra.mxu1 %v96_v3  ;;  %554 = vmatpush.msra.mxu2 %v96_v3  ;;  %v54_v17 = vld [vmem:[%s1159_s0 + $0x140] sm:$0xff]  ;;  %v147_v22 = vld [vmem:[%s1158_s1 + $0x1f8] sm:$0xff]  ;;  %v129_v24 = vld [vmem:[%s1158_s1 + $0x168] sm:$0xff] }
   0x9   :  { %555 = vmatpush.msra.mxu3 %v96_v3  ;;  %206 = vmatpush.msra.mxu0 %v96_v3  ;;  %v14_v23 = vld [vmem:[%s1159_s0] sm:$0xff]  ;;  %v113_v25 = vld [vmem:[%s1158_s1 + $0xe8] sm:$0xff]  ;;  %v146_v26 = vld [vmem:[%s1158_s1 + $0x1f0] sm:$0xff] }
   0xa   :  { %556 = vmatpush.msra.mxu1 %v95_v4  ;;  %557 = vmatpush.msra.mxu2 %v95_v4  ;;  %v155_v27 = vld [vmem:[%s1158_s1 + $0x238] sm:$0xff]  ;;  %v128_v28 = vld [vmem:[%s1158_s1 + $0x160] sm:$0xff]  ;;  %v145_v30 = vld [vmem:[%s1158_s1 + $0x1e8] sm:$0xff] }
   0xb   :  { %558 = vmatpush.msra.mxu3 %v95_v4  ;;  %207 = vmatpush.msra.mxu0 %v95_v4  ;;  %v112_v29 = vld [vmem:[%s1158_s1 + $0xe0] sm:$0xff]  ;;  %v39_v31 = vld [vmem:[%s1159_s0 + $0xc8] sm:$0xff]  ;;  %v111_v33 = vld [vmem:[%s1158_s1 + $0xd8] sm:$0xff] }
   0xc   :  { %559 = vmatpush.msra.mxu1 %v94_v5  ;;  %560 = vmatpush.msra.mxu2 %v94_v5  ;;  %v59_v32 = vld [vmem:[%s1159_s0 + $0x168] sm:$0xff]  ;;  %v127_v34 = vld [vmem:[%s1158_s1 + $0x158] sm:$0xff]  ;;  %v144_v35 = vld [vmem:[%s1158_s1 + $0x1e0] sm:$0xff] }
   0xd   :  { %561 = vmatpush.msra.mxu3 %v94_v5  ;;  %208 = vmatpush.msra.mxu0 %v94_v5  ;;  %v110_v36 = vld [vmem:[%s1158_s1 + $0xd0] sm:$0xff]  ;;  %v143_v39 = vld [vmem:[%s1158_s1 + $0x1d8] sm:$0xff]  ;;  %v109_v40 = vld [vmem:[%s1158_s1 + $0xc8] sm:$0xff] }
   0xe   :  { %562 = vmatpush.msra.mxu1 %v93_v6  ;;  %563 = vmatpush.msra.mxu2 %v93_v6  ;;  %v154_v37 = vld [vmem:[%s1158_s1 + $0x230] sm:$0xff]  ;;  %v19_v41 = vld [vmem:[%s1159_s0 + $0x28] sm:$0xff]  ;;  %v108_v44 = vld [vmem:[%s1158_s1 + $0xc0] sm:$0xff] }
   0xf   :  { %564 = vmatpush.msra.mxu3 %v93_v6  ;;  %209 = vmatpush.msra.mxu0 %v93_v6  ;;  %v126_v38 = vld [vmem:[%s1158_s1 + $0x150] sm:$0xff]  ;;  %v125_v42 = vld [vmem:[%s1158_s1 + $0x148] sm:$0xff]  ;;  %v74_v45 = vld [vmem:[%s1159_s0 + $0x1e0] sm:$0xff] }
  0x10   :  { %565 = vmatpush.msra.mxu1 %v92_v7  ;;  %566 = vmatpush.msra.mxu2 %v92_v7  ;;  %v142_v43 = vld [vmem:[%s1158_s1 + $0x1d0] sm:$0xff]  ;;  %v124_v46 = vld [vmem:[%s1158_s1 + $0x140] sm:$0xff]  ;;  %v141_v47 = vld [vmem:[%s1158_s1 + $0x1c8] sm:$0xff] }
  0x11   :  { %567 = vmatpush.msra.mxu3 %v92_v7  ;;  %210 = vmatpush.msra.mxu0 %v92_v7  ;;  %v44_v48 = vld [vmem:[%s1159_s0 + $0xf0] sm:$0xff]  ;;  %v123_v50 = vld [vmem:[%s1158_s1 + $0x138] sm:$0xff]  ;;  %v140_v52 = vld [vmem:[%s1158_s1 + $0x1c0] sm:$0xff] }
  0x12   :  { %568 = vmatpush.msra.mxu1 %v91_v8  ;;  %569 = vmatpush.msra.mxu2 %v91_v8  ;;  %v64_v49 = vld [vmem:[%s1159_s0 + $0x190] sm:$0xff]  ;;  %v107_v51 = vld [vmem:[%s1158_s1 + $0xb8] sm:$0xff]  ;;  %v153_v53 = vld [vmem:[%s1158_s1 + $0x228] sm:$0xff] }
  0x13   :  { %570 = vmatpush.msra.mxu3 %v91_v8  ;;  %211 = vmatpush.msra.mxu0 %v91_v8  ;;  %v122_v54 = vld [vmem:[%s1158_s1 + $0x130] sm:$0xff]  ;;  %v139_v56 = vld [vmem:[%s1158_s1 + $0x1b8] sm:$0xff]  ;;  %v152_v57 = vld [vmem:[%s1158_s1 + $0x220] sm:$0xff] }
  0x14   :  { %571 = vmatpush.msra.mxu1 %v90_v9  ;;  %572 = vmatpush.msra.mxu2 %v90_v9  ;;  %v106_v55 = vld [vmem:[%s1158_s1 + $0xb0] sm:$0xff]  ;;  %v121_v58 = vld [vmem:[%s1158_s1 + $0x128] sm:$0xff]  ;;  %v120_v62 = vld [vmem:[%s1158_s1 + $0x120] sm:$0xff] }
  0x15   :  { %573 = vmatpush.msra.mxu3 %v90_v9  ;;  %212 = vmatpush.msra.mxu0 %v90_v9  ;;  %v105_v59 = vld [vmem:[%s1158_s1 + $0xa8] sm:$0xff]  ;;  %v138_v60 = vld [vmem:[%s1158_s1 + $0x1b0] sm:$0xff]  ;;  %v104_v63 = vld [vmem:[%s1158_s1 + $0xa0] sm:$0xff] }
  0x16   :  { %574 = vmatpush.msra.mxu1 %v89_v10  ;;  %575 = vmatpush.msra.mxu2 %v89_v10  ;;  %v24_v61 = vld [vmem:[%s1159_s0 + $0x50] sm:$0xff]  ;;  %v137_v0 = vld [vmem:[%s1158_s1 + $0x1a8] sm:$0xff]  ;;  %v49_v1 = vld [vmem:[%s1159_s0 + $0x118] sm:$0xff] }
  0x17   :  { %576 = vmatpush.msra.mxu3 %v89_v10  ;;  %213 = vmatpush.msra.mxu0 %v89_v10  ;;  %v69_v2 = vld [vmem:[%s1159_s0 + $0x1b8] sm:$0xff]  ;;  %v136_v5 = vld [vmem:[%s1158_s1 + $0x1a0] sm:$0xff]  ;;  %v79_v6 = vld [vmem:[%s1159_s0 + $0x208] sm:$0xff] }
  0x18   :  { %577 = vmatpush.msra.mxu1 %v88_v11  ;;  %578 = vmatpush.msra.mxu2 %v88_v11  ;;  %v103_v3 = vld [vmem:[%s1158_s1 + $0x98] sm:$0xff]  ;;  %v118_v8 = vld [vmem:[%s1158_s1 + $0x110] sm:$0xff] }
  0x19   :  { %579 = vmatpush.msra.mxu3 %v88_v11  ;;  %214 = vmatpush.msra.mxu0 %v88_v11  ;;  %v119_v4 = vld [vmem:[%s1158_s1 + $0x118] sm:$0xff]  ;;  %v102_v9 = vld [vmem:[%s1158_s1 + $0x90] sm:$0xff] }
  0x1a   :  { %580 = vmatpush.msra.mxu1 %v87_v12  ;;  %581 = vmatpush.msra.mxu2 %v87_v12  ;;  %v151_v7 = vld [vmem:[%s1158_s1 + $0x218] sm:$0xff]  ;;  %v150_v11 = vld [vmem:[%s1158_s1 + $0x210] sm:$0xff] }
  0x1b   :  { %582 = vmatpush.msra.mxu3 %v87_v12  ;;  %215 = vmatpush.msra.mxu0 %v87_v12  ;;  %v135_v10 = vld [vmem:[%s1158_s1 + $0x198] sm:$0xff]  ;;  %v117_v12 = vld [vmem:[%s1158_s1 + $0x108] sm:$0xff] }
  0x1c   :  { %583 = vmatpush.msra.mxu1 %v86_v13  ;;  %584 = vmatpush.msra.mxu2 %v86_v13 }
  0x1d   :  { %585 = vmatpush.msra.mxu3 %v86_v13  ;;  %216 = vmatpush.msra.mxu0 %v86_v13  ;;  %v101_v13 = vld [vmem:[%s1158_s1 + $0x88] sm:$0xff] }
  0x1e   :  { %586 = vmatpush.msra.mxu1 %v85_v14  ;;  %587 = vmatpush.msra.mxu2 %v85_v14 }
  0x1f   :  { %588 = vmatpush.msra.mxu3 %v85_v14  ;;  %217 = vmatpush.msra.mxu0 %v85_v14  ;;  %v134_v14 = vld [vmem:[%s1158_s1 + $0x190] sm:$0xff] }
  0x20   :  { %589 = vmatpush.msra.mxu1 %v84_v15  ;;  %590 = vmatpush.msra.mxu2 %v84_v15 }
  0x21   :  { %231 = vmatmul.f32.vlgmr.msra.gmra.mxu1 %v34_v16  ;;  %243 = vmatmul.f32.vlgmr.msra.gmra.mxu2 %v54_v17  ;;  %v116_v16 = vld [vmem:[%s1158_s1 + $0x100] sm:$0xff] }
  0x22   :  { %321 = vmatpush.msrb.mxu2 %v131_v18  ;;  %262 = vmatpush.msrb.mxu1 %v115_v19  ;;  %v100_v17 = vld [vmem:[%s1158_s1 + $0x80] sm:$0xff]  ;;  %v133_v18 = vld [vmem:[%s1158_s1 + $0x188] sm:$0xff] }
  0x23   :  { %591 = vmatpush.msra.mxu3 %v84_v15  ;;  %218 = vmatpush.msra.mxu0 %v84_v15  ;;  %v29_v15 = vld [vmem:[%s1159_s0 + $0x78] sm:$0xff]  ;;  %v15_v19 = vld [vmem:[%s1159_s0 + $0x8] sm:$0xff] }
  0x24   :  { %322 = vmatpush.msrb.mxu2 %v130_v20  ;;  %263 = vmatpush.msrb.mxu1 %v114_v21  ;;  %v16_v20 = vld [vmem:[%s1159_s0 + $0x10] sm:$0xff]  ;;  %v149_v21 = vld [vmem:[%s1158_s1 + $0x208] sm:$0xff] }
  0x25   :  { %380 = vmatpush.msrb.mxu3 %v147_v22  ;;  %219 = vmatmul.f32.vlgmr.msra.gmra.mxu0 %v14_v23  ;;  %v132_v22 = vld [vmem:[%s1158_s1 + $0x180] sm:$0xff]  ;;  %v17_v23 = vld [vmem:[%s1159_s0 + $0x18] sm:$0xff] }
  0x26   :  { %323 = vmatpush.msrb.mxu2 %v129_v24  ;;  %264 = vmatpush.msrb.mxu1 %v113_v25  ;;  %v148_v24 = vld [vmem:[%s1158_s1 + $0x200] sm:$0xff] }
  0x27   :  { %381 = vmatpush.msrb.mxu3 %v146_v26  ;;  %447 = vmatpush.msrb.mxu0 %v155_v27  ;;  %v18_v25 = vld [vmem:[%s1159_s0 + $0x20] sm:$0xff]  ;;  %v20_v26 = vld [vmem:[%s1159_s0 + $0x30] sm:$0xff]  ;;  %v21_v27 = vld [vmem:[%s1159_s0 + $0x38] sm:$0xff] }
  0x28   :  { %324 = vmatpush.msrb.mxu2 %v128_v28  ;;  %265 = vmatpush.msrb.mxu1 %v112_v29  ;;  %v22_v28 = vld [vmem:[%s1159_s0 + $0x40] sm:$0xff]  ;;  %v23_v29 = vld [vmem:[%s1159_s0 + $0x48] sm:$0xff] }
  0x29   :  { %382 = vmatpush.msrb.mxu3 %v145_v30  ;;  %234 = vmatmul.f32.gmra.mxu1 %v39_v31  ;;  %v25_v30 = vld [vmem:[%s1159_s0 + $0x58] sm:$0xff]  ;;  %v26_v31 = vld [vmem:[%s1159_s0 + $0x60] sm:$0xff] }
  0x2a   :  { %246 = vmatmul.f32.gmra.mxu2 %v59_v32  ;;  %266 = vmatpush.msrb.mxu1 %v111_v33  ;;  %v27_v32 = vld [vmem:[%s1159_s0 + $0x68] sm:$0xff]  ;;  %v28_v33 = vld [vmem:[%s1159_s0 + $0x70] sm:$0xff] }
  0x2b   :  { %325 = vmatpush.msrb.mxu2 %v127_v34  ;;  %383 = vmatpush.msrb.mxu3 %v144_v35  ;;  %v30_v34 = vld [vmem:[%s1159_s0 + $0x80] sm:$0xff]  ;;  %v31_v35 = vld [vmem:[%s1159_s0 + $0x88] sm:$0xff] }
  0x2c   :  { %267 = vmatpush.msrb.mxu1 %v110_v36  ;;  %448 = vmatpush.msrb.mxu0 %v154_v37  ;;  %v32_v36 = vld [vmem:[%s1159_s0 + $0x90] sm:$0xff]  ;;  %v33_v37 = vld [vmem:[%s1159_s0 + $0x98] sm:$0xff] }
  0x2d   :  { %326 = vmatpush.msrb.mxu2 %v126_v38  ;;  %384 = vmatpush.msrb.mxu3 %v143_v39  ;;  %v35_v38 = vld [vmem:[%s1159_s0 + $0xa8] sm:$0xff]  ;;  %v36_v39 = vld [vmem:[%s1159_s0 + $0xb0] sm:$0xff] }
  0x2e   :  { %268 = vmatpush.msrb.mxu1 %v109_v40  ;;  %222 = vmatmul.f32.gmra.mxu0 %v19_v41  ;;  %v37_v40 = vld [vmem:[%s1159_s0 + $0xb8] sm:$0xff]  ;;  %v38_v41 = vld [vmem:[%s1159_s0 + $0xc0] sm:$0xff] }
  0x2f   :  { %327 = vmatpush.msrb.mxu2 %v125_v42  ;;  %385 = vmatpush.msrb.mxu3 %v142_v43  ;;  %v40_v42 = vld [vmem:[%s1159_s0 + $0xd0] sm:$0xff]  ;;  %v41_v43 = vld [vmem:[%s1159_s0 + $0xd8] sm:$0xff] }
  0x30   :  { %269 = vmatpush.msrb.mxu1 %v108_v44  ;;  %255 = vmatmul.f32.vlgmr.msra.gmra.mxu3 %v74_v45  ;;  %v42_v44 = vld [vmem:[%s1159_s0 + $0xe0] sm:$0xff]  ;;  %v43_v45 = vld [vmem:[%s1159_s0 + $0xe8] sm:$0xff] }
  0x31   :  { %328 = vmatpush.msrb.mxu2 %v124_v46  ;;  %386 = vmatpush.msrb.mxu3 %v141_v47  ;;  %v45_v46 = vld [vmem:[%s1159_s0 + $0xf8] sm:$0xff]  ;;  %v46_v47 = vld [vmem:[%s1159_s0 + $0x100] sm:$0xff] }
  0x32   :  { %237 = vmatmul.f32.gmra.mxu1 %v44_v48  ;;  %249 = vmatmul.f32.gmra.mxu2 %v64_v49  ;;  %v47_v48 = vld [vmem:[%s1159_s0 + $0x108] sm:$0xff]  ;;  %v48_v49 = vld [vmem:[%s1159_s0 + $0x110] sm:$0xff] }
  0x33   :  { %329 = vmatpush.msrb.mxu2 %v123_v50  ;;  %270 = vmatpush.msrb.mxu1 %v107_v51  ;;  %v50_v50 = vld [vmem:[%s1159_s0 + $0x120] sm:$0xff]  ;;  %v51_v51 = vld [vmem:[%s1159_s0 + $0x128] sm:$0xff] }
  0x34   :  { %387 = vmatpush.msrb.mxu3 %v140_v52  ;;  %449 = vmatpush.msrb.mxu0 %v153_v53  ;;  %v52_v52 = vld [vmem:[%s1159_s0 + $0x130] sm:$0xff]  ;;  %v53_v53 = vld [vmem:[%s1159_s0 + $0x138] sm:$0xff] }
  0x35   :  { %330 = vmatpush.msrb.mxu2 %v122_v54  ;;  %271 = vmatpush.msrb.mxu1 %v106_v55  ;;  %v55_v54 = vld [vmem:[%s1159_s0 + $0x148] sm:$0xff]  ;;  %v56_v55 = vld [vmem:[%s1159_s0 + $0x150] sm:$0xff] }
  0x36   :  { %388 = vmatpush.msrb.mxu3 %v139_v56  ;;  %450 = vmatpush.msrb.mxu0 %v152_v57  ;;  %v57_v56 = vld [vmem:[%s1159_s0 + $0x158] sm:$0xff]  ;;  %v58_v57 = vld [vmem:[%s1159_s0 + $0x160] sm:$0xff] }
  0x37   :  { %331 = vmatpush.msrb.mxu2 %v121_v58  ;;  %272 = vmatpush.msrb.mxu1 %v105_v59  ;;  %v60_v58 = vld [vmem:[%s1159_s0 + $0x170] sm:$0xff]  ;;  %v61_v59 = vld [vmem:[%s1159_s0 + $0x178] sm:$0xff] }
  0x38   :  { %389 = vmatpush.msrb.mxu3 %v138_v60  ;;  %225 = vmatmul.f32.gmra.mxu0 %v24_v61  ;;  %v62_v60 = vld [vmem:[%s1159_s0 + $0x180] sm:$0xff]  ;;  %v63_v61 = vld [vmem:[%s1159_s0 + $0x188] sm:$0xff] }
  0x39   :  { %332 = vmatpush.msrb.mxu2 %v120_v62  ;;  %273 = vmatpush.msrb.mxu1 %v104_v63  ;;  %v65_v62 = vld [vmem:[%s1159_s0 + $0x198] sm:$0xff]  ;;  %v66_v63 = vld [vmem:[%s1159_s0 + $0x1a0] sm:$0xff] }
  0x3a   :  { %390 = vmatpush.msrb.mxu3 %v137_v0  ;;  %240 = vmatmul.f32.gmra.mxu1 %v49_v1  ;;  %v67_v0 = vld [vmem:[%s1159_s0 + $0x1a8] sm:$0xff]  ;;  %v68_v1 = vld [vmem:[%s1159_s0 + $0x1b0] sm:$0xff] }
  0x3b   :  { %252 = vmatmul.f32.gmra.mxu2 %v69_v2  ;;  %274 = vmatpush.msrb.mxu1 %v103_v3  ;;  %v70_v2 = vld [vmem:[%s1159_s0 + $0x1c0] sm:$0xff]  ;;  %v71_v3 = vld [vmem:[%s1159_s0 + $0x1c8] sm:$0xff] }
  0x3c   :  { %333 = vmatpush.msrb.mxu2 %v119_v4  ;;  %391 = vmatpush.msrb.mxu3 %v136_v5  ;;  %v72_v4 = vld [vmem:[%s1159_s0 + $0x1d0] sm:$0xff] }
  0x3d   :  { %258 = vmatmul.f32.gmra.mxu3 %v79_v6  ;;  %451 = vmatpush.msrb.mxu0 %v151_v7  ;;  %v73_v6 = vld [vmem:[%s1159_s0 + $0x1d8] sm:$0xff]  ;;  %v75_v7 = vld [vmem:[%s1159_s0 + $0x1e8] sm:$0xff] }
  0x3e   :  { %334 = vmatpush.msrb.mxu2 %v118_v8  ;;  %275 = vmatpush.msrb.mxu1 %v102_v9  ;;  %v76_v8 = vld [vmem:[%s1159_s0 + $0x1f0] sm:$0xff] }
  0x3f   :  { %392 = vmatpush.msrb.mxu3 %v135_v10  ;;  %452 = vmatpush.msrb.mxu0 %v150_v11  ;;  %v1038_v10 = vld [vmem:[%s1160_s2] ss:$0 sm:$0xff]  ;;  %v77_v11 = vld [vmem:[%s1159_s0 + $0x1f8] sm:$0xff] }
  0x40   :  { %335 = vmatpush.msrb.mxu2 %v117_v12  ;;  %276 = vmatpush.msrb.mxu1 %v101_v13 }
  0x41   :  { %393 = vmatpush.msrb.mxu3 %v134_v14  ;;  %228 = vmatmul.f32.gmra.mxu0 %v29_v15  ;;  %v78_v15 = vld [vmem:[%s1159_s0 + $0x200] sm:$0xff] }
  0x42   :  { %336 = vmatpush.msrb.mxu2 %v116_v16  ;;  %277 = vmatpush.msrb.mxu1 %v100_v17  ;;  %v80_v16 = vld [vmem:[%s1159_s0 + $0x210] sm:$0xff]  ;;  %v81_v17 = vld [vmem:[%s1159_s0 + $0x218] sm:$0xff] }
  0x43   :  { %394 = vmatpush.msrb.mxu3 %v133_v18  ;;  %278 = vmatmul.f32.vlgmr.msrb.gmra.mxu1 %v15_v19  ;;  %v82_v18 = vld [vmem:[%s1159_s0 + $0x220] sm:$0xff] }
  0x44   :  { %337 = vmatmul.f32.vlgmr.msrb.gmra.mxu2 %v16_v20  ;;  %453 = vmatpush.msrb.mxu0 %v149_v21 }
  0x45   :  { %395 = vmatpush.msrb.mxu3 %v132_v22  ;;  %v83_v22 = vld [vmem:[%s1159_s0 + $0x228] sm:$0xff] }
  0x46   :  { %396 = vmatmul.f32.vlgmr.msrb.gmra.mxu3 %v17_v23  ;;  %454 = vmatpush.msrb.mxu0 %v148_v24 }
  0x49   :  { %530 = vmatmul.msk.f32.vlgmr.msrb.gmra.mxu0 %vm160_vm0, %v18_v25 }
  0x4b   :  { %281 = vmatmul.f32.gmra.mxu1 %v20_v26 }
  0x4c   :  { %340 = vmatmul.f32.gmra.mxu2 %v21_v27 }
  0x4e   :  { %399 = vmatmul.f32.gmra.mxu3 %v22_v28 }
  0x51   :  { %531 = vmatmul.msk.f32.gmra.mxu0 %vm160_vm0, %v23_v29 }
  0x53   :  { %284 = vmatmul.f32.gmra.mxu1 %v25_v30 }
  0x54   :  { %343 = vmatmul.f32.gmra.mxu2 %v26_v31 }
  0x56   :  { %402 = vmatmul.f32.gmra.mxu3 %v27_v32 }
  0x59   :  { %532 = vmatmul.msk.f32.gmra.mxu0 %vm160_vm0, %v28_v33 }
  0x5b   :  { %287 = vmatmul.f32.gmra.mxu1 %v30_v34 }
  0x5c   :  { %346 = vmatmul.f32.gmra.mxu2 %v31_v35 }
  0x5e   :  { %405 = vmatmul.f32.gmra.mxu3 %v32_v36 }
  0x61   :  { %533 = vmatmul.msk.f32.gmra.mxu0 %vm160_vm0, %v33_v37 }
  0x63   :  { %290 = vmatmul.f32.gmra.mxu1 %v35_v38 }
  0x64   :  { %349 = vmatmul.f32.gmra.mxu2 %v36_v39 }
  0x66   :  { %408 = vmatmul.f32.gmra.mxu3 %v37_v40 }
  0x69   :  { %534 = vmatmul.msk.f32.gmra.mxu0 %vm160_vm0, %v38_v41 }
  0x6b   :  { %293 = vmatmul.f32.gmra.mxu1 %v40_v42 }
  0x6c   :  { %352 = vmatmul.f32.gmra.mxu2 %v41_v43 }
  0x6e   :  { %411 = vmatmul.f32.gmra.mxu3 %v42_v44 }
  0x71   :  { %535 = vmatmul.msk.f32.gmra.mxu0 %vm160_vm0, %v43_v45 }
  0x73   :  { %296 = vmatmul.f32.gmra.mxu1 %v45_v46 }
  0x74   :  { %355 = vmatmul.f32.gmra.mxu2 %v46_v47 }
  0x76   :  { %414 = vmatmul.f32.gmra.mxu3 %v47_v48 }
  0x79   :  { %536 = vmatmul.msk.f32.gmra.mxu0 %vm160_vm0, %v48_v49 }
  0x7b   :  { %299 = vmatmul.f32.gmra.mxu1 %v50_v50 }
  0x7c   :  { %358 = vmatmul.f32.gmra.mxu2 %v51_v51 }
  0x7e   :  { %417 = vmatmul.f32.gmra.mxu3 %v52_v52 }
  0x81   :  { %537 = vmatmul.msk.f32.gmra.mxu0 %vm160_vm0, %v53_v53 }
  0x83   :  { %302 = vmatmul.f32.gmra.mxu1 %v55_v54 }
  0x84   :  { %361 = vmatmul.f32.gmra.mxu2 %v56_v55 }
  0x86   :  { %420 = vmatmul.f32.gmra.mxu3 %v57_v56 }
  0x89   :  { %538 = vmatmul.msk.f32.gmra.mxu0 %vm160_vm0, %v58_v57 }
  0x8b   :  { %305 = vmatmul.f32.gmra.mxu1 %v60_v58 }
  0x8c   :  { %364 = vmatmul.f32.gmra.mxu2 %v61_v59 }
  0x8e   :  { %423 = vmatmul.f32.gmra.mxu3 %v62_v60 }
  0x91   :  { %539 = vmatmul.msk.f32.gmra.mxu0 %vm160_vm0, %v63_v61 }
  0x93   :  { %308 = vmatmul.f32.gmra.mxu1 %v65_v62 }
  0x94   :  { %367 = vmatmul.f32.gmra.mxu2 %v66_v63 }
  0x96   :  { %426 = vmatmul.f32.gmra.mxu3 %v67_v0 }
  0x99   :  { %540 = vmatmul.msk.f32.gmra.mxu0 %vm160_vm0, %v68_v1 }
  0x9b   :  { %311 = vmatmul.f32.gmra.mxu1 %v70_v2 }
  0x9c   :  { %370 = vmatmul.f32.gmra.mxu2 %v71_v3 }
  0x9e   :  { %429 = vmatmul.f32.gmra.mxu3 %v72_v4  ;;  %v1023_v5 = vpop.f32.mrf.mxu1 }
  0xa1   :  { %541 = vmatmul.msk.f32.gmra.mxu0 %vm160_vm0, %v73_v6 }
  0xa2   :  { %v220_v9 = vpop.f32.mrf.mxu0 }
  0xa3   :  { %314 = vmatmul.f32.gmra.mxu1 %v75_v7  ;;  %v221_v36 = vadd.f32 %v1038_v10, %v220_v9 }
  0xa4   :  { %373 = vmatmul.f32.gmra.mxu2 %v76_v8  ;;  %v244_v12 = vpop.f32.mrf.mxu2 }
  0xa5   :  { %v1044_v13 = vadd.f32 %v1038_v10, %v244_v12  ;;  %v233_v12 = vadd.f32 %v1038_v10, %v1023_v5 }
  0xa6   :  { %432 = vmatmul.f32.gmra.mxu3 %v77_v11  ;;  %v1046_v14 = vpop.f32.mrf.mxu1 }
  0xa9   :  { %542 = vmatmul.msk.f32.gmra.mxu0 %vm160_vm0, %v78_v15 }
  0xab   :  { %317 = vmatmul.f32.gmra.mxu1 %v80_v16  ;;  %v223_v19 = vpop.f32.mrf.mxu0 }
  0xac   :  { %376 = vmatmul.f32.gmra.mxu2 %v81_v17  ;;  %v224_v44 = vadd.f32 %v1038_v10, %v223_v19 }
  0xad   :  { %v247_v20 = vpop.f32.mrf.mxu2 }
  0xae   :  { %435 = vmatmul.f32.gmra.mxu3 %v82_v18  ;;  %v1062_v21 = vadd.f32 %v1038_v10, %v247_v20 }
  0xaf   :  { %v1067_v23 = vpop.f32.mrf.mxu1 }
  0xb1   :  { %543 = vmatmul.msk.f32.gmra.mxu0 %vm160_vm0, %v83_v22 }
  0xb3   :  { %v256_v24 = vpop.f32.mrf.mxu3 }
  0xb4   :  { %v1071_v25 = vadd.f32 %v1038_v10, %v256_v24 }
  0xb5   :  { %v250_v26 = vpop.f32.mrf.mxu2  ;;  %v226_v27 = vpop.f32.mrf.mxu0 }
  0xb6   :  { %v1074_v28 = vadd.f32 %v1038_v10, %v250_v26  ;;  %v227_v54 = vadd.f32 %v1038_v10, %v226_v27  ;;  %v236_v27 = vadd.f32 %v1038_v10, %v1046_v14 }
  0xb7   :  { %v1076_v29 = vpop.f32.mrf.mxu1 }
  0xbe   :  { %v253_v30 = vpop.f32.mrf.mxu2  ;;  %v229_v31 = vpop.f32.mrf.mxu0 }
  0xbf   :  { %v1079_v32 = vadd.f32 %v1038_v10, %v253_v30  ;;  %v230_v0 = vadd.f32 %v1038_v10, %v229_v31 }
  0xc0   :  { %v259_v33 = vpop.f32.mrf.mxu3  ;;  %v279_v34 = vpop.f32.mrf.mxu1 }
  0xc1   :  { %v1082_v35 = vadd.f32 %v1038_v10, %v259_v33  ;;  %v280_v37 = vadd.f32 %v279_v34, %v221_v36 }
  0xc6   :  { %v456_v38 = vpop.f32.mrf.mxu0 }
  0xc7   :  { %v338_v39 = vpop.f32.mrf.mxu2 }
  0xc8   :  { %v339_v40 = vadd.f32 %v338_v39, %v280_v37  ;;  %v282_v41 = vpop.f32.mrf.mxu1 }
  0xc9   :  { %v397_v42 = vpop.f32.mrf.mxu3  ;;  %v283_v46 = vadd.f32 %v282_v41, %v224_v44 }
  0xca   :  { %v398_v43 = vadd.f32 %v397_v42, %v339_v40  ;;  %v239_v40 = vadd.f32 %v1038_v10, %v1067_v23 }
  0xcc   :  { %v457_v45 = vadd.f32 %v456_v38, %v398_v43 }
  0xce   :  { %v498_v47 = vmax.f32 %v457_v45, 0.0  ;;  %v459_v48 = vpop.f32.mrf.mxu0 }
  0xcf   :  { %v341_v49 = vpop.f32.mrf.mxu2 }
  0xd0   :  { %512 = vst.msk [vmem:[%s1161_s3] sm:$0xff] %vm160_vm0, %v498_v47  ;;  %v342_v50 = vadd.f32 %v341_v49, %v283_v46  ;;  %v285_v51 = vpop.f32.mrf.mxu1  ;;  %v242_v49 = vadd.f32 %v1038_v10, %v1076_v29 }
  0xd1   :  { %v400_v52 = vpop.f32.mrf.mxu3  ;;  %v286_v56 = vadd.f32 %v285_v51, %v227_v54 }
  0xd2   :  { %v401_v53 = vadd.f32 %v400_v52, %v342_v50 }
  0xd4   :  { %v460_v55 = vadd.f32 %v459_v48, %v401_v53 }
  0xd6   :  { %v499_v57 = vmax.f32 %v460_v55, 0.0  ;;  %v462_v58 = vpop.f32.mrf.mxu0 }
  0xd7   :  { %v344_v59 = vpop.f32.mrf.mxu2 }
  0xd8   :  { %513 = vst.msk [vmem:[%s1161_s3 + $0x8] sm:$0xff] %vm160_vm0, %v499_v57  ;;  %v345_v60 = vadd.f32 %v344_v59, %v286_v56  ;;  %v288_v61 = vpop.f32.mrf.mxu1 }
  0xd9   :  { %v403_v62 = vpop.f32.mrf.mxu3  ;;  %v289_v2 = vadd.f32 %v288_v61, %v230_v0 }
  0xda   :  { %v404_v63 = vadd.f32 %v403_v62, %v345_v60 }
  0xdc   :  { %v463_v1 = vadd.f32 %v462_v58, %v404_v63 }
  0xde   :  { %v500_v3 = vmax.f32 %v463_v1, 0.0  ;;  %v465_v4 = vpop.f32.mrf.mxu0 }
  0xdf   :  { %v347_v6 = vpop.f32.mrf.mxu2 }
  0xe0   :  { %514 = vst.msk [vmem:[%s1161_s3 + $0x10] sm:$0xff] %vm160_vm0, %v500_v3  ;;  %v348_v7 = vadd.f32 %v347_v6, %v289_v2  ;;  %v291_v8 = vpop.f32.mrf.mxu1 }
  0xe1   :  { %v406_v9 = vpop.f32.mrf.mxu3  ;;  %v292_v16 = vadd.f32 %v291_v8, %v233_v12 }
  0xe2   :  { %v407_v11 = vadd.f32 %v406_v9, %v348_v7 }
  0xe4   :  { %v466_v15 = vadd.f32 %v465_v4, %v407_v11 }
  0xe6   :  { %v501_v17 = vmax.f32 %v466_v15, 0.0  ;;  %v468_v18 = vpop.f32.mrf.mxu0 }
  0xe7   :  { %v350_v19 = vpop.f32.mrf.mxu2 }
  0xe8   :  { %515 = vst.msk [vmem:[%s1161_s3 + $0x18] sm:$0xff] %vm160_vm0, %v501_v17  ;;  %v351_v20 = vadd.f32 %v350_v19, %v292_v16  ;;  %v294_v22 = vpop.f32.mrf.mxu1 }
  0xe9   :  { %v409_v24 = vpop.f32.mrf.mxu3  ;;  %v295_v31 = vadd.f32 %v294_v22, %v236_v27 }
  0xea   :  { %v410_v26 = vadd.f32 %v409_v24, %v351_v20 }
  0xec   :  { %v469_v30 = vadd.f32 %v468_v18, %v410_v26 }
  0xee   :  { %v502_v5 = vmax.f32 %v469_v30, 0.0  ;;  %v471_v33 = vpop.f32.mrf.mxu0 }
  0xef   :  { %v353_v34 = vpop.f32.mrf.mxu2 }
  0xf0   :  { %516 = vst.msk [vmem:[%s1161_s3 + $0x20] sm:$0xff] %vm160_vm0, %v502_v5  ;;  %v354_v36 = vadd.f32 %v353_v34, %v295_v31  ;;  %v297_v37 = vpop.f32.mrf.mxu1 }
  0xf1   :  { %v412_v38 = vpop.f32.mrf.mxu3  ;;  %v298_v42 = vadd.f32 %v297_v37, %v239_v40 }
  0xf2   :  { %v413_v39 = vadd.f32 %v412_v38, %v354_v36 }
  0xf4   :  { %v472_v41 = vadd.f32 %v471_v33, %v413_v39 }
  0xf6   :  { %v503_v14 = vmax.f32 %v472_v41, 0.0  ;;  %v474_v43 = vpop.f32.mrf.mxu0 }
  0xf7   :  { %v356_v44 = vpop.f32.mrf.mxu2 }
  0xf8   :  { %517 = vst.msk [vmem:[%s1161_s3 + $0x28] sm:$0xff] %vm160_vm0, %v503_v14  ;;  %v357_v45 = vadd.f32 %v356_v44, %v298_v42  ;;  %v300_v46 = vpop.f32.mrf.mxu1 }
  0xf9   :  { %v415_v47 = vpop.f32.mrf.mxu3  ;;  %v301_v51 = vadd.f32 %v300_v46, %v242_v49 }
  0xfa   :  { %v416_v48 = vadd.f32 %v415_v47, %v357_v45 }
  0xfc   :  { %v475_v50 = vadd.f32 %v474_v43, %v416_v48 }
  0xfe   :  { %v504_v23 = vmax.f32 %v475_v50, 0.0  ;;  %v477_v52 = vpop.f32.mrf.mxu0 }
  0xff   :  { %v359_v53 = vpop.f32.mrf.mxu2 }
 0x100   :  { %518 = vst.msk [vmem:[%s1161_s3 + $0x30] sm:$0xff] %vm160_vm0, %v504_v23  ;;  %v360_v54 = vadd.f32 %v359_v53, %v301_v51  ;;  %v303_v55 = vpop.f32.mrf.mxu1 }
 0x101   :  { %v418_v56 = vpop.f32.mrf.mxu3  ;;  %v304_v59 = vadd.f32 %v303_v55, %v1044_v13 }
 0x102   :  { %v419_v57 = vadd.f32 %v418_v56, %v360_v54 }
 0x104   :  { %v478_v58 = vadd.f32 %v477_v52, %v419_v57 }
 0x106   :  { %v505_v60 = vmax.f32 %v478_v58, 0.0  ;;  %v480_v61 = vpop.f32.mrf.mxu0 }
 0x107   :  { %v362_v10 = vpop.f32.mrf.mxu2 }
 0x108   :  { %519 = vst.msk [vmem:[%s1161_s3 + $0x38] sm:$0xff] %vm160_vm0, %v505_v60  ;;  %v363_v29 = vadd.f32 %v362_v10, %v304_v59  ;;  %v306_v62 = vpop.f32.mrf.mxu1 }
 0x109   :  { %v421_v63 = vpop.f32.mrf.mxu3  ;;  %v307_v2 = vadd.f32 %v306_v62, %v1062_v21 }
 0x10a   :  { %v422_v0 = vadd.f32 %v421_v63, %v363_v29 }
 0x10c   :  { %v481_v1 = vadd.f32 %v480_v61, %v422_v0 }
 0x10e   :  { %v506_v3 = vmax.f32 %v481_v1, 0.0  ;;  %v483_v4 = vpop.f32.mrf.mxu0 }
 0x10f   :  { %v365_v6 = vpop.f32.mrf.mxu2 }
 0x110   :  { %520 = vst.msk [vmem:[%s1161_s3 + $0x40] sm:$0xff] %vm160_vm0, %v506_v3  ;;  %v366_v13 = vadd.f32 %v365_v6, %v307_v2  ;;  %v309_v7 = vpop.f32.mrf.mxu1 }
 0x111   :  { %v424_v8 = vpop.f32.mrf.mxu3  ;;  %v310_v12 = vadd.f32 %v309_v7, %v1074_v28 }
 0x112   :  { %v425_v9 = vadd.f32 %v424_v8, %v366_v13 }
 0x114   :  { %v484_v11 = vadd.f32 %v483_v4, %v425_v9 }
 0x116   :  { %v507_v15 = vmax.f32 %v484_v11, 0.0  ;;  %v486_v16 = vpop.f32.mrf.mxu0 }
 0x117   :  { %v368_v17 = vpop.f32.mrf.mxu2 }
 0x118   :  { %521 = vst.msk [vmem:[%s1161_s3 + $0x48] sm:$0xff] %vm160_vm0, %v507_v15  ;;  %v369_v21 = vadd.f32 %v368_v17, %v310_v12  ;;  %v312_v18 = vpop.f32.mrf.mxu1 }
 0x119   :  { %v427_v19 = vpop.f32.mrf.mxu3  ;;  %v313_v24 = vadd.f32 %v312_v18, %v1079_v32 }
 0x11a   :  { %v428_v20 = vadd.f32 %v427_v19, %v369_v21 }
 0x11c   :  { %v487_v22 = vadd.f32 %v486_v16, %v428_v20 }
 0x11e   :  { %v508_v26 = vmax.f32 %v487_v22, 0.0  ;;  %v489_v27 = vpop.f32.mrf.mxu0 }
 0x11f   :  { %v371_v30 = vpop.f32.mrf.mxu2 }
 0x120   :  { %522 = vst.msk [vmem:[%s1161_s3 + $0x50] sm:$0xff] %vm160_vm0, %v508_v26  ;;  %v372_v28 = vadd.f32 %v371_v30, %v313_v24  ;;  %v315_v31 = vpop.f32.mrf.mxu1 }
 0x121   :  { %v430_v5 = vpop.f32.mrf.mxu3  ;;  %v316_v36 = vadd.f32 %v315_v31, %v1071_v25 }
 0x122   :  { %v431_v33 = vadd.f32 %v430_v5, %v372_v28 }
 0x124   :  { %v490_v34 = vadd.f32 %v489_v27, %v431_v33 }
 0x126   :  { %v509_v37 = vmax.f32 %v490_v34, 0.0  ;;  %v492_v39 = vpop.f32.mrf.mxu0 }
 0x127   :  { %v374_v38 = vpop.f32.mrf.mxu2 }
 0x128   :  { %523 = vst.msk [vmem:[%s1161_s3 + $0x58] sm:$0xff] %vm160_vm0, %v509_v37  ;;  %v375_v32 = vadd.f32 %v374_v38, %v316_v36  ;;  %v318_v42 = vpop.f32.mrf.mxu1 }
 0x129   :  { %v433_v40 = vpop.f32.mrf.mxu3  ;;  %v319_v43 = vadd.f32 %v318_v42, %v1082_v35 }
 0x12a   :  { %v434_v41 = vadd.f32 %v433_v40, %v375_v32 }
 0x12c   :  { %v493_v14 = vadd.f32 %v492_v39, %v434_v41 }
 0x12e   :  { %v510_v44 = vmax.f32 %v493_v14, 0.0  ;;  %v495_v47 = vpop.f32.mrf.mxu0 }
 0x12f   :  { %v377_v45 = vpop.f32.mrf.mxu2 }
 0x130   :  { %524 = vst.msk [vmem:[%s1161_s3 + $0x60] sm:$0xff] %vm160_vm0, %v510_v44  ;;  %v378_v25 = vadd.f32 %v377_v45, %v319_v43 }
 0x131   :  { %v436_v46 = vpop.f32.mrf.mxu3 }
 0x132   :  { %v437_v48 = vadd.f32 %v436_v46, %v378_v25 }
 0x134   :  { %v496_v49 = vadd.f32 %v495_v47, %v437_v48 }
 0x136   :  { %v511_v50 = vmax.f32 %v496_v49, 0.0 }
 0x138   :  { %525 = vst.msk [vmem:[%s1161_s3 + $0x68] sm:$0xff] %vm160_vm0, %v511_v50 }

// kernel: _lambda_.7
= control target key start
LH: loop header
LB: loop body
LE: loop exit
PB: predicated region body
PF: predicated region fallthrough
CT: control target
= control target key end

     0   :  { %vm1648_vm0 = vcmask 523264   ;;  %s10278_s1 = inlined_call_operand.vmem [shape: f32[3136,512], index: 1, kind: input, shape index: {}]   ;;  %s10279_s0 = inlined_call_operand.vmem [shape: f32[16,3136], index: 0, kind: input, shape index: {}]   ;;  %s10280_s2 = inlined_call_operand.vmem [shape: f32[1,512], index: 2, kind: input, shape index: {}]   ;;  %s10281_s3 = inlined_call_operand.vmem [shape: f32[512,128], index: 3, kind: input, shape index: {}]   ;;  %s10282_s4 = inlined_call_operand.vmem [shape: f32[1,128], index: 4, kind: input, shape index: {}]   ;;  %s10283_s5 = inlined_call_operand.vmem [shape: f32[16,128], index: 5, kind: output, shape index: {}]  }
   0x1   :  { %v130_v0 = vld [vmem:[%s10278_s1 + $0x1e0] sm:$0xff] }
   0x2   :  { %v194_v1 = vld [vmem:[%s10278_s1 + $0x3e0] sm:$0xff]  ;;  %1655 = vmatpush.msra.mxu0 %v130_v0 }
   0x3   :  { %v258_v2 = vld [vmem:[%s10278_s1 + $0x5e0] sm:$0xff]  ;;  %1678 = vmatpush.msra.mxu1 %v194_v1 }
   0x4   :  { %v322_v3 = vld [vmem:[%s10278_s1 + $0x7e0] sm:$0xff]  ;;  %1701 = vmatpush.msra.mxu2 %v258_v2 }
   0x5   :  { %v126_v4 = vld [vmem:[%s10278_s1 + $0x1c0] sm:$0xff]  ;;  %1724 = vmatpush.msra.mxu3 %v322_v3 }
   0x6   :  { %v190_v5 = vld [vmem:[%s10278_s1 + $0x3c0] sm:$0xff]  ;;  %1656 = vmatpush.msra.mxu0 %v126_v4 }
   0x7   :  { %v254_v6 = vld [vmem:[%s10278_s1 + $0x5c0] sm:$0xff]  ;;  %1679 = vmatpush.msra.mxu1 %v190_v5 }
   0x8   :  { %v318_v7 = vld [vmem:[%s10278_s1 + $0x7c0] sm:$0xff]  ;;  %1702 = vmatpush.msra.mxu2 %v254_v6 }
   0x9   :  { %v122_v8 = vld [vmem:[%s10278_s1 + $0x1a0] sm:$0xff]  ;;  %1725 = vmatpush.msra.mxu3 %v318_v7 }
   0xa   :  { %v186_v9 = vld [vmem:[%s10278_s1 + $0x3a0] sm:$0xff]  ;;  %1657 = vmatpush.msra.mxu0 %v122_v8 }
   0xb   :  { %v250_v10 = vld [vmem:[%s10278_s1 + $0x5a0] sm:$0xff]  ;;  %1680 = vmatpush.msra.mxu1 %v186_v9 }
   0xc   :  { %v314_v11 = vld [vmem:[%s10278_s1 + $0x7a0] sm:$0xff]  ;;  %1703 = vmatpush.msra.mxu2 %v250_v10 }
   0xd   :  { %v118_v12 = vld [vmem:[%s10278_s1 + $0x180] sm:$0xff]  ;;  %1726 = vmatpush.msra.mxu3 %v314_v11 }
   0xe   :  { %v182_v13 = vld [vmem:[%s10278_s1 + $0x380] sm:$0xff]  ;;  %1658 = vmatpush.msra.mxu0 %v118_v12 }
   0xf   :  { %v246_v14 = vld [vmem:[%s10278_s1 + $0x580] sm:$0xff]  ;;  %1681 = vmatpush.msra.mxu1 %v182_v13 }
  0x10   :  { %v310_v15 = vld [vmem:[%s10278_s1 + $0x780] sm:$0xff]  ;;  %1704 = vmatpush.msra.mxu2 %v246_v14 }
  0x11   :  { %v114_v16 = vld [vmem:[%s10278_s1 + $0x160] sm:$0xff]  ;;  %1727 = vmatpush.msra.mxu3 %v310_v15 }
  0x12   :  { %v178_v17 = vld [vmem:[%s10278_s1 + $0x360] sm:$0xff]  ;;  %1659 = vmatpush.msra.mxu0 %v114_v16 }
  0x13   :  { %v242_v18 = vld [vmem:[%s10278_s1 + $0x560] sm:$0xff]  ;;  %1682 = vmatpush.msra.mxu1 %v178_v17 }
  0x14   :  { %v306_v19 = vld [vmem:[%s10278_s1 + $0x760] sm:$0xff]  ;;  %1705 = vmatpush.msra.mxu2 %v242_v18 }
  0x15   :  { %v110_v20 = vld [vmem:[%s10278_s1 + $0x140] sm:$0xff]  ;;  %1728 = vmatpush.msra.mxu3 %v306_v19 }
  0x16   :  { %v174_v21 = vld [vmem:[%s10278_s1 + $0x340] sm:$0xff]  ;;  %1660 = vmatpush.msra.mxu0 %v110_v20 }
  0x17   :  { %v238_v22 = vld [vmem:[%s10278_s1 + $0x540] sm:$0xff]  ;;  %1683 = vmatpush.msra.mxu1 %v174_v21 }
  0x18   :  { %v302_v23 = vld [vmem:[%s10278_s1 + $0x740] sm:$0xff]  ;;  %1706 = vmatpush.msra.mxu2 %v238_v22 }
  0x19   :  { %v106_v24 = vld [vmem:[%s10278_s1 + $0x120] sm:$0xff]  ;;  %1729 = vmatpush.msra.mxu3 %v302_v23 }
  0x1a   :  { %v170_v25 = vld [vmem:[%s10278_s1 + $0x320] sm:$0xff]  ;;  %1661 = vmatpush.msra.mxu0 %v106_v24 }
  0x1b   :  { %v234_v26 = vld [vmem:[%s10278_s1 + $0x520] sm:$0xff]  ;;  %1684 = vmatpush.msra.mxu1 %v170_v25 }
  0x1c   :  { %v298_v27 = vld [vmem:[%s10278_s1 + $0x720] sm:$0xff]  ;;  %1707 = vmatpush.msra.mxu2 %v234_v26 }
  0x1d   :  { %v102_v28 = vld [vmem:[%s10278_s1 + $0x100] sm:$0xff]  ;;  %1730 = vmatpush.msra.mxu3 %v298_v27 }
  0x1e   :  { %v166_v29 = vld [vmem:[%s10278_s1 + $0x300] sm:$0xff]  ;;  %1662 = vmatpush.msra.mxu0 %v102_v28 }
  0x1f   :  { %v230_v30 = vld [vmem:[%s10278_s1 + $0x500] sm:$0xff]  ;;  %1685 = vmatpush.msra.mxu1 %v166_v29 }
  0x20   :  { %v294_v31 = vld [vmem:[%s10278_s1 + $0x700] sm:$0xff]  ;;  %1708 = vmatpush.msra.mxu2 %v230_v30 }
  0x21   :  { %v98_v32 = vld [vmem:[%s10278_s1 + $0xe0] sm:$0xff]  ;;  %1731 = vmatpush.msra.mxu3 %v294_v31 }
  0x22   :  { %v162_v33 = vld [vmem:[%s10278_s1 + $0x2e0] sm:$0xff]  ;;  %1663 = vmatpush.msra.mxu0 %v98_v32 }
  0x23   :  { %v226_v34 = vld [vmem:[%s10278_s1 + $0x4e0] sm:$0xff]  ;;  %1686 = vmatpush.msra.mxu1 %v162_v33 }
  0x24   :  { %v290_v35 = vld [vmem:[%s10278_s1 + $0x6e0] sm:$0xff]  ;;  %1709 = vmatpush.msra.mxu2 %v226_v34 }
  0x25   :  { %v94_v36 = vld [vmem:[%s10278_s1 + $0xc0] sm:$0xff]  ;;  %1732 = vmatpush.msra.mxu3 %v290_v35 }
  0x26   :  { %v158_v37 = vld [vmem:[%s10278_s1 + $0x2c0] sm:$0xff]  ;;  %1664 = vmatpush.msra.mxu0 %v94_v36 }
  0x27   :  { %v222_v38 = vld [vmem:[%s10278_s1 + $0x4c0] sm:$0xff]  ;;  %1687 = vmatpush.msra.mxu1 %v158_v37 }
  0x28   :  { %v286_v39 = vld [vmem:[%s10278_s1 + $0x6c0] sm:$0xff]  ;;  %1710 = vmatpush.msra.mxu2 %v222_v38 }
  0x29   :  { %v90_v40 = vld [vmem:[%s10278_s1 + $0xa0] sm:$0xff]  ;;  %1733 = vmatpush.msra.mxu3 %v286_v39 }
  0x2a   :  { %v154_v41 = vld [vmem:[%s10278_s1 + $0x2a0] sm:$0xff]  ;;  %1665 = vmatpush.msra.mxu0 %v90_v40 }
  0x2b   :  { %v218_v42 = vld [vmem:[%s10278_s1 + $0x4a0] sm:$0xff]  ;;  %1688 = vmatpush.msra.mxu1 %v154_v41 }
  0x2c   :  { %v282_v43 = vld [vmem:[%s10278_s1 + $0x6a0] sm:$0xff]  ;;  %1711 = vmatpush.msra.mxu2 %v218_v42 }
  0x2d   :  { %v86_v44 = vld [vmem:[%s10278_s1 + $0x80] sm:$0xff]  ;;  %1734 = vmatpush.msra.mxu3 %v282_v43 }
  0x2e   :  { %v150_v45 = vld [vmem:[%s10278_s1 + $0x280] sm:$0xff]  ;;  %1666 = vmatpush.msra.mxu0 %v86_v44  ;;  %v22_v44 = vld [vmem:[%s10279_s0 + $0x10] sm:$0xff] }
  0x2f   :  { %v214_v46 = vld [vmem:[%s10278_s1 + $0x480] sm:$0xff]  ;;  %1689 = vmatpush.msra.mxu1 %v150_v45 }
  0x30   :  { %v278_v47 = vld [vmem:[%s10278_s1 + $0x680] sm:$0xff]  ;;  %1712 = vmatpush.msra.mxu2 %v214_v46 }
  0x31   :  { %v82_v48 = vld [vmem:[%s10278_s1 + $0x60] sm:$0xff]  ;;  %1735 = vmatpush.msra.mxu3 %v278_v47 }
  0x32   :  { %v146_v49 = vld [vmem:[%s10278_s1 + $0x260] sm:$0xff]  ;;  %1667 = vmatpush.msra.mxu0 %v82_v48 }
  0x33   :  { %v210_v50 = vld [vmem:[%s10278_s1 + $0x460] sm:$0xff]  ;;  %1690 = vmatpush.msra.mxu1 %v146_v49 }
  0x34   :  { %v274_v51 = vld [vmem:[%s10278_s1 + $0x660] sm:$0xff]  ;;  %1713 = vmatpush.msra.mxu2 %v210_v50  ;;  %v23_v50 = vld [vmem:[%s10279_s0 + $0x18] sm:$0xff] }
  0x35   :  { %v78_v52 = vld [vmem:[%s10278_s1 + $0x40] sm:$0xff]  ;;  %1736 = vmatpush.msra.mxu3 %v274_v51 }
  0x36   :  { %v142_v53 = vld [vmem:[%s10278_s1 + $0x240] sm:$0xff]  ;;  %1668 = vmatpush.msra.mxu0 %v78_v52 }
  0x37   :  { %v206_v54 = vld [vmem:[%s10278_s1 + $0x440] sm:$0xff]  ;;  %1691 = vmatpush.msra.mxu1 %v142_v53 }
  0x38   :  { %v270_v55 = vld [vmem:[%s10278_s1 + $0x640] sm:$0xff]  ;;  %1714 = vmatpush.msra.mxu2 %v206_v54 }
  0x39   :  { %v74_v56 = vld [vmem:[%s10278_s1 + $0x20] sm:$0xff]  ;;  %1737 = vmatpush.msra.mxu3 %v270_v55  ;;  %v21_v55 = vld [vmem:[%s10279_s0 + $0x8] sm:$0xff] }
  0x3a   :  { %v138_v57 = vld [vmem:[%s10278_s1 + $0x220] sm:$0xff]  ;;  %1669 = vmatpush.msra.mxu0 %v74_v56 }
  0x3b   :  { %v202_v58 = vld [vmem:[%s10278_s1 + $0x420] sm:$0xff]  ;;  %1692 = vmatpush.msra.mxu1 %v138_v57 }
  0x3c   :  { %v266_v59 = vld [vmem:[%s10278_s1 + $0x620] sm:$0xff]  ;;  %1715 = vmatpush.msra.mxu2 %v202_v58 }
  0x3d   :  { %v70_v60 = vld [vmem:[%s10278_s1] sm:$0xff]  ;;  %1738 = vmatpush.msra.mxu3 %v266_v59 }
  0x3e   :  { %v134_v61 = vld [vmem:[%s10278_s1 + $0x200] sm:$0xff]  ;;  %1670 = vmatpush.msra.mxu0 %v70_v60 }
  0x3f   :  { %v198_v62 = vld [vmem:[%s10278_s1 + $0x400] sm:$0xff]  ;;  %1693 = vmatpush.msra.mxu1 %v134_v61 }
  0x40   :  { %v262_v63 = vld [vmem:[%s10278_s1 + $0x600] sm:$0xff]  ;;  %1716 = vmatpush.msra.mxu2 %v198_v62  ;;  %1694 = vmatmul.f32.vlgmr.msra.gmra.mxu1 %v21_v55 }
  0x41   :  { %v386_v0 = vld [vmem:[%s10278_s1 + $0x9e0] sm:$0xff]  ;;  %1739 = vmatpush.msra.mxu3 %v262_v63  ;;  %1717 = vmatmul.f32.vlgmr.msra.gmra.mxu2 %v22_v44 }
  0x42   :  { %v450_v1 = vld [vmem:[%s10278_s1 + $0xbe0] sm:$0xff]  ;;  %1747 = vmatpush.msrb.mxu0 %v386_v0  ;;  %1740 = vmatmul.f32.vlgmr.msra.gmra.mxu3 %v23_v50  ;;  %v47_v0 = vld [vmem:[%s10279_s0 + $0xd8] sm:$0xff] }
  0x43   :  { %v514_v2 = vld [vmem:[%s10278_s1 + $0xde0] sm:$0xff]  ;;  %1770 = vmatpush.msrb.mxu1 %v450_v1 }
  0x44   :  { %v578_v3 = vld [vmem:[%s10278_s1 + $0xfe0] sm:$0xff]  ;;  %1793 = vmatpush.msrb.mxu2 %v514_v2 }
  0x45   :  { %v382_v4 = vld [vmem:[%s10278_s1 + $0x9c0] sm:$0xff]  ;;  %1816 = vmatpush.msrb.mxu3 %v578_v3 }
  0x46   :  { %v446_v5 = vld [vmem:[%s10278_s1 + $0xbc0] sm:$0xff]  ;;  %1748 = vmatpush.msrb.mxu0 %v382_v4 }
  0x47   :  { %v510_v6 = vld [vmem:[%s10278_s1 + $0xdc0] sm:$0xff]  ;;  %1771 = vmatpush.msrb.mxu1 %v446_v5 }
  0x48   :  { %v574_v7 = vld [vmem:[%s10278_s1 + $0xfc0] sm:$0xff]  ;;  %1794 = vmatpush.msrb.mxu2 %v510_v6 }
  0x49   :  { %v378_v8 = vld [vmem:[%s10278_s1 + $0x9a0] sm:$0xff]  ;;  %1817 = vmatpush.msrb.mxu3 %v574_v7  ;;  %1720 = vmatmul.f32.gmra.mxu2 %v47_v0 }
  0x4a   :  { %v442_v9 = vld [vmem:[%s10278_s1 + $0xba0] sm:$0xff]  ;;  %1749 = vmatpush.msrb.mxu0 %v378_v8 }
  0x4b   :  { %v506_v10 = vld [vmem:[%s10278_s1 + $0xda0] sm:$0xff]  ;;  %1772 = vmatpush.msrb.mxu1 %v442_v9  ;;  %v45_v9 = vld [vmem:[%s10279_s0 + $0xc8] sm:$0xff] }
  0x4c   :  { %v570_v11 = vld [vmem:[%s10278_s1 + $0xfa0] sm:$0xff]  ;;  %1795 = vmatpush.msrb.mxu2 %v506_v10 }
  0x4d   :  { %v374_v12 = vld [vmem:[%s10278_s1 + $0x980] sm:$0xff]  ;;  %1818 = vmatpush.msrb.mxu3 %v570_v11 }
  0x4e   :  { %v438_v13 = vld [vmem:[%s10278_s1 + $0xb80] sm:$0xff]  ;;  %1750 = vmatpush.msrb.mxu0 %v374_v12 }
  0x4f   :  { %v502_v14 = vld [vmem:[%s10278_s1 + $0xd80] sm:$0xff]  ;;  %1773 = vmatpush.msrb.mxu1 %v438_v13 }
  0x50   :  { %v566_v15 = vld [vmem:[%s10278_s1 + $0xf80] sm:$0xff]  ;;  %1796 = vmatpush.msrb.mxu2 %v502_v14 }
  0x51   :  { %v370_v16 = vld [vmem:[%s10278_s1 + $0x960] sm:$0xff]  ;;  %1819 = vmatpush.msrb.mxu3 %v566_v15  ;;  %v46_v15 = vld [vmem:[%s10279_s0 + $0xd0] sm:$0xff] }
  0x52   :  { %v434_v17 = vld [vmem:[%s10278_s1 + $0xb60] sm:$0xff]  ;;  %1751 = vmatpush.msrb.mxu0 %v370_v16  ;;  %1697 = vmatmul.f32.gmra.mxu1 %v46_v15 }
  0x53   :  { %v498_v18 = vld [vmem:[%s10278_s1 + $0xd60] sm:$0xff]  ;;  %1774 = vmatpush.msrb.mxu1 %v434_v17 }
  0x54   :  { %v562_v19 = vld [vmem:[%s10278_s1 + $0xf60] sm:$0xff]  ;;  %1797 = vmatpush.msrb.mxu2 %v498_v18 }
  0x55   :  { %v366_v20 = vld [vmem:[%s10278_s1 + $0x940] sm:$0xff]  ;;  %1820 = vmatpush.msrb.mxu3 %v562_v19 }
  0x56   :  { %v430_v21 = vld [vmem:[%s10278_s1 + $0xb40] sm:$0xff]  ;;  %1752 = vmatpush.msrb.mxu0 %v366_v20 }
  0x57   :  { %v494_v22 = vld [vmem:[%s10278_s1 + $0xd40] sm:$0xff]  ;;  %1775 = vmatpush.msrb.mxu1 %v430_v21 }
  0x58   :  { %v558_v23 = vld [vmem:[%s10278_s1 + $0xf40] sm:$0xff]  ;;  %1798 = vmatpush.msrb.mxu2 %v494_v22 }
  0x59   :  { %v362_v24 = vld [vmem:[%s10278_s1 + $0x920] sm:$0xff]  ;;  %1821 = vmatpush.msrb.mxu3 %v558_v23 }
  0x5a   :  { %v426_v25 = vld [vmem:[%s10278_s1 + $0xb20] sm:$0xff]  ;;  %1753 = vmatpush.msrb.mxu0 %v362_v24  ;;  %v26_v24 = vld [vmem:[%s10279_s0 + $0x30] sm:$0xff] }
  0x5b   :  { %v490_v26 = vld [vmem:[%s10278_s1 + $0xd20] sm:$0xff]  ;;  %1776 = vmatpush.msrb.mxu1 %v426_v25 }
  0x5c   :  { %v554_v27 = vld [vmem:[%s10278_s1 + $0xf20] sm:$0xff]  ;;  %1799 = vmatpush.msrb.mxu2 %v490_v26 }
  0x5d   :  { %v358_v28 = vld [vmem:[%s10278_s1 + $0x900] sm:$0xff]  ;;  %1822 = vmatpush.msrb.mxu3 %v554_v27 }
  0x5e   :  { %v422_v29 = vld [vmem:[%s10278_s1 + $0xb00] sm:$0xff]  ;;  %1754 = vmatpush.msrb.mxu0 %v358_v28 }
  0x5f   :  { %v486_v30 = vld [vmem:[%s10278_s1 + $0xd00] sm:$0xff]  ;;  %1777 = vmatpush.msrb.mxu1 %v422_v29 }
  0x60   :  { %v550_v31 = vld [vmem:[%s10278_s1 + $0xf00] sm:$0xff]  ;;  %1800 = vmatpush.msrb.mxu2 %v486_v30  ;;  %v27_v30 = vld [vmem:[%s10279_s0 + $0x38] sm:$0xff] }
  0x61   :  { %v354_v32 = vld [vmem:[%s10278_s1 + $0x8e0] sm:$0xff]  ;;  %1823 = vmatpush.msrb.mxu3 %v550_v31 }
  0x62   :  { %v418_v33 = vld [vmem:[%s10278_s1 + $0xae0] sm:$0xff]  ;;  %1755 = vmatpush.msrb.mxu0 %v354_v32 }
  0x63   :  { %v482_v34 = vld [vmem:[%s10278_s1 + $0xce0] sm:$0xff]  ;;  %1778 = vmatpush.msrb.mxu1 %v418_v33 }
  0x64   :  { %v546_v35 = vld [vmem:[%s10278_s1 + $0xee0] sm:$0xff]  ;;  %1801 = vmatpush.msrb.mxu2 %v482_v34 }
  0x65   :  { %v350_v36 = vld [vmem:[%s10278_s1 + $0x8c0] sm:$0xff]  ;;  %1824 = vmatpush.msrb.mxu3 %v546_v35  ;;  %v25_v35 = vld [vmem:[%s10279_s0 + $0x28] sm:$0xff] }
  0x66   :  { %v414_v37 = vld [vmem:[%s10278_s1 + $0xac0] sm:$0xff]  ;;  %1756 = vmatpush.msrb.mxu0 %v350_v36 }
  0x67   :  { %v478_v38 = vld [vmem:[%s10278_s1 + $0xcc0] sm:$0xff]  ;;  %1779 = vmatpush.msrb.mxu1 %v414_v37 }
  0x68   :  { %v542_v39 = vld [vmem:[%s10278_s1 + $0xec0] sm:$0xff]  ;;  %1802 = vmatpush.msrb.mxu2 %v478_v38 }
  0x69   :  { %v346_v40 = vld [vmem:[%s10278_s1 + $0x8a0] sm:$0xff]  ;;  %1825 = vmatpush.msrb.mxu3 %v542_v39 }
  0x6a   :  { %v410_v41 = vld [vmem:[%s10278_s1 + $0xaa0] sm:$0xff]  ;;  %1757 = vmatpush.msrb.mxu0 %v346_v40 }
  0x6b   :  { %v474_v42 = vld [vmem:[%s10278_s1 + $0xca0] sm:$0xff]  ;;  %1780 = vmatpush.msrb.mxu1 %v410_v41 }
  0x6c   :  { %v538_v43 = vld [vmem:[%s10278_s1 + $0xea0] sm:$0xff]  ;;  %1803 = vmatpush.msrb.mxu2 %v474_v42 }
  0x6d   :  { %v342_v45 = vld [vmem:[%s10278_s1 + $0x880] sm:$0xff]  ;;  %1826 = vmatpush.msrb.mxu3 %v538_v43 }
  0x6e   :  { %v406_v46 = vld [vmem:[%s10278_s1 + $0xa80] sm:$0xff]  ;;  %1758 = vmatpush.msrb.mxu0 %v342_v45 }
  0x6f   :  { %v470_v47 = vld [vmem:[%s10278_s1 + $0xc80] sm:$0xff]  ;;  %1781 = vmatpush.msrb.mxu1 %v406_v46 }
  0x70   :  { %v534_v48 = vld [vmem:[%s10278_s1 + $0xe80] sm:$0xff]  ;;  %1804 = vmatpush.msrb.mxu2 %v470_v47 }
  0x71   :  { %v20_v49 = vld [vmem:[%s10279_s0] sm:$0xff]  ;;  %1827 = vmatpush.msrb.mxu3 %v534_v48 }
  0x72   :  { %v338_v51 = vld [vmem:[%s10278_s1 + $0x860] sm:$0xff]  ;;  %1671 = vmatmul.f32.vlgmr.msra.gmra.mxu0 %v20_v49 }
  0x73   :  { %v402_v52 = vld [vmem:[%s10278_s1 + $0xa60] sm:$0xff]  ;;  %1759 = vmatpush.msrb.mxu0 %v338_v51 }
  0x74   :  { %v466_v53 = vld [vmem:[%s10278_s1 + $0xc60] sm:$0xff]  ;;  %1782 = vmatpush.msrb.mxu1 %v402_v52 }
  0x75   :  { %v530_v54 = vld [vmem:[%s10278_s1 + $0xe60] sm:$0xff]  ;;  %1805 = vmatpush.msrb.mxu2 %v466_v53 }
  0x76   :  { %v334_v56 = vld [vmem:[%s10278_s1 + $0x840] sm:$0xff]  ;;  %1828 = vmatpush.msrb.mxu3 %v530_v54 }
  0x77   :  { %v398_v57 = vld [vmem:[%s10278_s1 + $0xa40] sm:$0xff]  ;;  %1760 = vmatpush.msrb.mxu0 %v334_v56 }
  0x78   :  { %v462_v58 = vld [vmem:[%s10278_s1 + $0xc40] sm:$0xff]  ;;  %1783 = vmatpush.msrb.mxu1 %v398_v57 }
  0x79   :  { %v526_v59 = vld [vmem:[%s10278_s1 + $0xe40] sm:$0xff]  ;;  %1806 = vmatpush.msrb.mxu2 %v462_v58 }
  0x7a   :  { %v330_v60 = vld [vmem:[%s10278_s1 + $0x820] sm:$0xff]  ;;  %1829 = vmatpush.msrb.mxu3 %v526_v59  ;;  %1674 = vmatmul.f32.gmra.mxu0 %v45_v9 }
  0x7b   :  { %v394_v61 = vld [vmem:[%s10278_s1 + $0xa20] sm:$0xff]  ;;  %1761 = vmatpush.msrb.mxu0 %v330_v60  ;;  %v49_v60 = vld [vmem:[%s10279_s0 + $0xe8] sm:$0xff] }
  0x7c   :  { %v458_v62 = vld [vmem:[%s10278_s1 + $0xc20] sm:$0xff]  ;;  %1784 = vmatpush.msrb.mxu1 %v394_v61  ;;  %v51_v61 = vld [vmem:[%s10279_s0 + $0xf8] sm:$0xff] }
  0x7d   :  { %v522_v63 = vld [vmem:[%s10278_s1 + $0xe20] sm:$0xff]  ;;  %1807 = vmatpush.msrb.mxu2 %v458_v62 }
  0x7e   :  { %v326_v1 = vld [vmem:[%s10278_s1 + $0x800] sm:$0xff]  ;;  %1830 = vmatpush.msrb.mxu3 %v522_v63 }
  0x7f   :  { %v390_v2 = vld [vmem:[%s10278_s1 + $0xa00] sm:$0xff]  ;;  %1762 = vmatpush.msrb.mxu0 %v326_v1 }
  0x80   :  { %v454_v3 = vld [vmem:[%s10278_s1 + $0xc00] sm:$0xff]  ;;  %1785 = vmatpush.msrb.mxu1 %v390_v2  ;;  %v50_v2 = vld [vmem:[%s10279_s0 + $0xf0] sm:$0xff] }
  0x81   :  { %v518_v4 = vld [vmem:[%s10278_s1 + $0xe00] sm:$0xff]  ;;  %1808 = vmatpush.msrb.mxu2 %v454_v3  ;;  %1786 = vmatmul.f32.vlgmr.msrb.gmra.mxu1 %v25_v35 }
  0x82   :  { %v642_v5 = vld [vmem:[%s10278_s1 + $0x11e0] sm:$0xff]  ;;  %1831 = vmatpush.msrb.mxu3 %v518_v4  ;;  %1809 = vmatmul.f32.vlgmr.msrb.gmra.mxu2 %v26_v24 }
  0x83   :  { %v706_v6 = vld [vmem:[%s10278_s1 + $0x13e0] sm:$0xff]  ;;  %1839 = vmatpush.msra.mxu0 %v642_v5 }
  0x84   :  { %v770_v7 = vld [vmem:[%s10278_s1 + $0x15e0] sm:$0xff]  ;;  %1862 = vmatpush.msra.mxu1 %v706_v6 }
  0x85   :  { %v834_v8 = vld [vmem:[%s10278_s1 + $0x17e0] sm:$0xff]  ;;  %1885 = vmatpush.msra.mxu2 %v770_v7 }
  0x86   :  { %v48_v10 = vld [vmem:[%s10279_s0 + $0xe0] sm:$0xff]  ;;  %1908 = vmatpush.msra.mxu3 %v834_v8 }
  0x87   :  { %v638_v11 = vld [vmem:[%s10278_s1 + $0x11c0] sm:$0xff]  ;;  %1743 = vmatmul.f32.gmra.mxu3 %v48_v10 }
  0x88   :  { %v702_v12 = vld [vmem:[%s10278_s1 + $0x13c0] sm:$0xff]  ;;  %1840 = vmatpush.msra.mxu0 %v638_v11 }
  0x89   :  { %v766_v13 = vld [vmem:[%s10278_s1 + $0x15c0] sm:$0xff]  ;;  %1863 = vmatpush.msra.mxu1 %v702_v12 }
  0x8a   :  { %v830_v14 = vld [vmem:[%s10278_s1 + $0x17c0] sm:$0xff]  ;;  %1886 = vmatpush.msra.mxu2 %v766_v13  ;;  %1789 = vmatmul.f32.gmra.mxu1 %v50_v2 }
  0x8b   :  { %v634_v16 = vld [vmem:[%s10278_s1 + $0x11a0] sm:$0xff]  ;;  %1909 = vmatpush.msra.mxu3 %v830_v14  ;;  %1812 = vmatmul.f32.gmra.mxu2 %v51_v61 }
  0x8c   :  { %v698_v17 = vld [vmem:[%s10278_s1 + $0x13a0] sm:$0xff]  ;;  %1841 = vmatpush.msra.mxu0 %v634_v16 }
  0x8d   :  { %v762_v18 = vld [vmem:[%s10278_s1 + $0x15a0] sm:$0xff]  ;;  %1864 = vmatpush.msra.mxu1 %v698_v17  ;;  %v30_v17 = vld [vmem:[%s10279_s0 + $0x50] sm:$0xff] }
  0x8e   :  { %v826_v19 = vld [vmem:[%s10278_s1 + $0x17a0] sm:$0xff]  ;;  %1887 = vmatpush.msra.mxu2 %v762_v18 }
  0x8f   :  { %v630_v20 = vld [vmem:[%s10278_s1 + $0x1180] sm:$0xff]  ;;  %1910 = vmatpush.msra.mxu3 %v826_v19 }
  0x90   :  { %v694_v21 = vld [vmem:[%s10278_s1 + $0x1380] sm:$0xff]  ;;  %1842 = vmatpush.msra.mxu0 %v630_v20  ;;  %1832 = vmatmul.f32.vlgmr.msrb.gmra.mxu3 %v27_v30 }
  0x91   :  { %v758_v22 = vld [vmem:[%s10278_s1 + $0x1580] sm:$0xff]  ;;  %1865 = vmatpush.msra.mxu1 %v694_v21 }
  0x92   :  { %v822_v23 = vld [vmem:[%s10278_s1 + $0x1780] sm:$0xff]  ;;  %1888 = vmatpush.msra.mxu2 %v758_v22  ;;  %v29_v22 = vld [vmem:[%s10279_s0 + $0x48] sm:$0xff] }
  0x93   :  { %v626_v25 = vld [vmem:[%s10278_s1 + $0x1160] sm:$0xff]  ;;  %1911 = vmatpush.msra.mxu3 %v822_v23  ;;  %v31_v23 = vld [vmem:[%s10279_s0 + $0x58] sm:$0xff] }
  0x94   :  { %v690_v26 = vld [vmem:[%s10278_s1 + $0x1360] sm:$0xff]  ;;  %1843 = vmatpush.msra.mxu0 %v626_v25 }
  0x95   :  { %v754_v27 = vld [vmem:[%s10278_s1 + $0x1560] sm:$0xff]  ;;  %1866 = vmatpush.msra.mxu1 %v690_v26 }
  0x96   :  { %v818_v28 = vld [vmem:[%s10278_s1 + $0x1760] sm:$0xff]  ;;  %1889 = vmatpush.msra.mxu2 %v754_v27 }
  0x97   :  { %v24_v29 = vld [vmem:[%s10279_s0 + $0x20] sm:$0xff]  ;;  %1912 = vmatpush.msra.mxu3 %v818_v28 }
  0x98   :  { %v622_v31 = vld [vmem:[%s10278_s1 + $0x1140] sm:$0xff]  ;;  %1763 = vmatmul.f32.vlgmr.msrb.gmra.mxu0 %v24_v29 }
  0x99   :  { %v686_v32 = vld [vmem:[%s10278_s1 + $0x1340] sm:$0xff]  ;;  %1844 = vmatpush.msra.mxu0 %v622_v31 }
  0x9a   :  { %v750_v33 = vld [vmem:[%s10278_s1 + $0x1540] sm:$0xff]  ;;  %1867 = vmatpush.msra.mxu1 %v686_v32 }
  0x9b   :  { %v814_v34 = vld [vmem:[%s10278_s1 + $0x1740] sm:$0xff]  ;;  %1890 = vmatpush.msra.mxu2 %v750_v33 }
  0x9c   :  { %v618_v36 = vld [vmem:[%s10278_s1 + $0x1120] sm:$0xff]  ;;  %1913 = vmatpush.msra.mxu3 %v814_v34 }
  0x9d   :  { %v682_v37 = vld [vmem:[%s10278_s1 + $0x1320] sm:$0xff]  ;;  %1845 = vmatpush.msra.mxu0 %v618_v36  ;;  %v55_v36 = vld [vmem:[%s10279_s0 + $0x118] sm:$0xff] }
  0x9e   :  { %v746_v38 = vld [vmem:[%s10278_s1 + $0x1520] sm:$0xff]  ;;  %1868 = vmatpush.msra.mxu1 %v682_v37 }
  0x9f   :  { %v810_v39 = vld [vmem:[%s10278_s1 + $0x1720] sm:$0xff]  ;;  %1891 = vmatpush.msra.mxu2 %v746_v38 }
  0xa0   :  { %v614_v40 = vld [vmem:[%s10278_s1 + $0x1100] sm:$0xff]  ;;  %1914 = vmatpush.msra.mxu3 %v810_v39  ;;  %1766 = vmatmul.f32.gmra.mxu0 %v49_v60 }
  0xa1   :  { %v678_v41 = vld [vmem:[%s10278_s1 + $0x1300] sm:$0xff]  ;;  %1846 = vmatpush.msra.mxu0 %v614_v40 }
  0xa2   :  { %v742_v42 = vld [vmem:[%s10278_s1 + $0x1500] sm:$0xff]  ;;  %1869 = vmatpush.msra.mxu1 %v678_v41  ;;  %v53_v41 = vld [vmem:[%s10279_s0 + $0x108] sm:$0xff] }
  0xa3   :  { %v806_v43 = vld [vmem:[%s10278_s1 + $0x1700] sm:$0xff]  ;;  %1892 = vmatpush.msra.mxu2 %v742_v42 }
  0xa4   :  { %v610_v44 = vld [vmem:[%s10278_s1 + $0x10e0] sm:$0xff]  ;;  %1915 = vmatpush.msra.mxu3 %v806_v43 }
  0xa5   :  { %v674_v45 = vld [vmem:[%s10278_s1 + $0x12e0] sm:$0xff]  ;;  %1847 = vmatpush.msra.mxu0 %v610_v44 }
  0xa6   :  { %v738_v46 = vld [vmem:[%s10278_s1 + $0x14e0] sm:$0xff]  ;;  %1870 = vmatpush.msra.mxu1 %v674_v45 }
  0xa7   :  { %v802_v47 = vld [vmem:[%s10278_s1 + $0x16e0] sm:$0xff]  ;;  %1893 = vmatpush.msra.mxu2 %v738_v46 }
  0xa8   :  { %v606_v48 = vld [vmem:[%s10278_s1 + $0x10c0] sm:$0xff]  ;;  %1916 = vmatpush.msra.mxu3 %v802_v47  ;;  %v54_v47 = vld [vmem:[%s10279_s0 + $0x110] sm:$0xff] }
  0xa9   :  { %v670_v49 = vld [vmem:[%s10278_s1 + $0x12c0] sm:$0xff]  ;;  %1848 = vmatpush.msra.mxu0 %v606_v48 }
  0xaa   :  { %v734_v50 = vld [vmem:[%s10278_s1 + $0x14c0] sm:$0xff]  ;;  %1871 = vmatpush.msra.mxu1 %v670_v49 }
  0xab   :  { %v798_v51 = vld [vmem:[%s10278_s1 + $0x16c0] sm:$0xff]  ;;  %1894 = vmatpush.msra.mxu2 %v734_v50 }
  0xac   :  { %v602_v52 = vld [vmem:[%s10278_s1 + $0x10a0] sm:$0xff]  ;;  %1917 = vmatpush.msra.mxu3 %v798_v51 }
  0xad   :  { %v666_v53 = vld [vmem:[%s10278_s1 + $0x12a0] sm:$0xff]  ;;  %1849 = vmatpush.msra.mxu0 %v602_v52 }
  0xae   :  { %v730_v54 = vld [vmem:[%s10278_s1 + $0x14a0] sm:$0xff]  ;;  %1872 = vmatpush.msra.mxu1 %v666_v53 }
  0xaf   :  { %v794_v55 = vld [vmem:[%s10278_s1 + $0x16a0] sm:$0xff]  ;;  %1895 = vmatpush.msra.mxu2 %v730_v54 }
  0xb0   :  { %v598_v56 = vld [vmem:[%s10278_s1 + $0x1080] sm:$0xff]  ;;  %1918 = vmatpush.msra.mxu3 %v794_v55 }
  0xb1   :  { %v662_v57 = vld [vmem:[%s10278_s1 + $0x1280] sm:$0xff]  ;;  %1850 = vmatpush.msra.mxu0 %v598_v56 }
  0xb2   :  { %v726_v58 = vld [vmem:[%s10278_s1 + $0x1480] sm:$0xff]  ;;  %1873 = vmatpush.msra.mxu1 %v662_v57 }
  0xb3   :  { %v790_v59 = vld [vmem:[%s10278_s1 + $0x1680] sm:$0xff]  ;;  %1896 = vmatpush.msra.mxu2 %v726_v58 }
  0xb4   :  { %v594_v62 = vld [vmem:[%s10278_s1 + $0x1060] sm:$0xff]  ;;  %1919 = vmatpush.msra.mxu3 %v790_v59 }
  0xb5   :  { %v658_v63 = vld [vmem:[%s10278_s1 + $0x1260] sm:$0xff]  ;;  %1851 = vmatpush.msra.mxu0 %v594_v62 }
  0xb6   :  { %v722_v0 = vld [vmem:[%s10278_s1 + $0x1460] sm:$0xff]  ;;  %1874 = vmatpush.msra.mxu1 %v658_v63 }
  0xb7   :  { %v786_v1 = vld [vmem:[%s10278_s1 + $0x1660] sm:$0xff]  ;;  %1897 = vmatpush.msra.mxu2 %v722_v0 }
  0xb8   :  { %v52_v3 = vld [vmem:[%s10279_s0 + $0x100] sm:$0xff]  ;;  %1920 = vmatpush.msra.mxu3 %v786_v1 }
  0xb9   :  { %v590_v4 = vld [vmem:[%s10278_s1 + $0x1040] sm:$0xff]  ;;  %1835 = vmatmul.f32.gmra.mxu3 %v52_v3 }
  0xba   :  { %v654_v5 = vld [vmem:[%s10278_s1 + $0x1240] sm:$0xff]  ;;  %1852 = vmatpush.msra.mxu0 %v590_v4 }
  0xbb   :  { %v718_v6 = vld [vmem:[%s10278_s1 + $0x1440] sm:$0xff]  ;;  %1875 = vmatpush.msra.mxu1 %v654_v5 }
  0xbc   :  { %v782_v7 = vld [vmem:[%s10278_s1 + $0x1640] sm:$0xff]  ;;  %1898 = vmatpush.msra.mxu2 %v718_v6 }
  0xbd   :  { %v586_v8 = vld [vmem:[%s10278_s1 + $0x1020] sm:$0xff]  ;;  %1921 = vmatpush.msra.mxu3 %v782_v7 }
  0xbe   :  { %v650_v9 = vld [vmem:[%s10278_s1 + $0x1220] sm:$0xff]  ;;  %1853 = vmatpush.msra.mxu0 %v586_v8 }
  0xbf   :  { %v714_v10 = vld [vmem:[%s10278_s1 + $0x1420] sm:$0xff]  ;;  %1876 = vmatpush.msra.mxu1 %v650_v9 }
  0xc0   :  { %v778_v11 = vld [vmem:[%s10278_s1 + $0x1620] sm:$0xff]  ;;  %1899 = vmatpush.msra.mxu2 %v714_v10 }
  0xc1   :  { %v582_v12 = vld [vmem:[%s10278_s1 + $0x1000] sm:$0xff]  ;;  %1922 = vmatpush.msra.mxu3 %v778_v11 }
  0xc2   :  { %v646_v13 = vld [vmem:[%s10278_s1 + $0x1200] sm:$0xff]  ;;  %1854 = vmatpush.msra.mxu0 %v582_v12 }
  0xc3   :  { %v710_v14 = vld [vmem:[%s10278_s1 + $0x1400] sm:$0xff]  ;;  %1877 = vmatpush.msra.mxu1 %v646_v13 }
  0xc4   :  { %v774_v15 = vld [vmem:[%s10278_s1 + $0x1600] sm:$0xff]  ;;  %1900 = vmatpush.msra.mxu2 %v710_v14  ;;  %1878 = vmatmul.f32.vlgmr.msra.gmra.mxu1 %v29_v22 }
  0xc5   :  { %v28_v16 = vld [vmem:[%s10279_s0 + $0x40] sm:$0xff]  ;;  %1923 = vmatpush.msra.mxu3 %v774_v15  ;;  %1901 = vmatmul.f32.vlgmr.msra.gmra.mxu2 %v30_v17 }
  0xc6   :  { %v898_v18 = vld [vmem:[%s10278_s1 + $0x19e0] sm:$0xff]  ;;  %1855 = vmatmul.f32.vlgmr.msra.gmra.mxu0 %v28_v16  ;;  %1924 = vmatmul.f32.vlgmr.msra.gmra.mxu3 %v31_v23 }
  0xc7   :  { %v962_v19 = vld [vmem:[%s10278_s1 + $0x1be0] sm:$0xff]  ;;  %1931 = vmatpush.msrb.mxu0 %v898_v18 }
  0xc8   :  { %v1026_v20 = vld [vmem:[%s10278_s1 + $0x1de0] sm:$0xff]  ;;  %1954 = vmatpush.msrb.mxu1 %v962_v19 }
  0xc9   :  { %v1090_v21 = vld [vmem:[%s10278_s1 + $0x1fe0] sm:$0xff]  ;;  %1977 = vmatpush.msrb.mxu2 %v1026_v20 }
  0xca   :  { %v894_v24 = vld [vmem:[%s10278_s1 + $0x19c0] sm:$0xff]  ;;  %2000 = vmatpush.msrb.mxu3 %v1090_v21 }
  0xcb   :  { %v958_v25 = vld [vmem:[%s10278_s1 + $0x1bc0] sm:$0xff]  ;;  %1932 = vmatpush.msrb.mxu0 %v894_v24 }
  0xcc   :  { %v1022_v26 = vld [vmem:[%s10278_s1 + $0x1dc0] sm:$0xff]  ;;  %1955 = vmatpush.msrb.mxu1 %v958_v25  ;;  %v34_v25 = vld [vmem:[%s10279_s0 + $0x70] sm:$0xff] }
  0xcd   :  { %v1086_v27 = vld [vmem:[%s10278_s1 + $0x1fc0] sm:$0xff]  ;;  %1978 = vmatpush.msrb.mxu2 %v1022_v26  ;;  %1881 = vmatmul.f32.gmra.mxu1 %v54_v47 }
  0xce   :  { %v890_v28 = vld [vmem:[%s10278_s1 + $0x19a0] sm:$0xff]  ;;  %2001 = vmatpush.msrb.mxu3 %v1086_v27  ;;  %1904 = vmatmul.f32.gmra.mxu2 %v55_v36 }
  0xcf   :  { %v954_v29 = vld [vmem:[%s10278_s1 + $0x1ba0] sm:$0xff]  ;;  %1933 = vmatpush.msrb.mxu0 %v890_v28 }
  0xd0   :  { %v1018_v30 = vld [vmem:[%s10278_s1 + $0x1da0] sm:$0xff]  ;;  %1956 = vmatpush.msrb.mxu1 %v954_v29  ;;  %1858 = vmatmul.f32.gmra.mxu0 %v53_v41 }
  0xd1   :  { %v1082_v31 = vld [vmem:[%s10278_s1 + $0x1fa0] sm:$0xff]  ;;  %1979 = vmatpush.msrb.mxu2 %v1018_v30  ;;  %v33_v30 = vld [vmem:[%s10279_s0 + $0x68] sm:$0xff] }
  0xd2   :  { %v886_v32 = vld [vmem:[%s10278_s1 + $0x1980] sm:$0xff]  ;;  %2002 = vmatpush.msrb.mxu3 %v1082_v31  ;;  %v35_v31 = vld [vmem:[%s10279_s0 + $0x78] sm:$0xff] }
  0xd3   :  { %v950_v33 = vld [vmem:[%s10278_s1 + $0x1b80] sm:$0xff]  ;;  %1934 = vmatpush.msrb.mxu0 %v886_v32 }
  0xd4   :  { %v1014_v34 = vld [vmem:[%s10278_s1 + $0x1d80] sm:$0xff]  ;;  %1957 = vmatpush.msrb.mxu1 %v950_v33 }
  0xd5   :  { %v1078_v35 = vld [vmem:[%s10278_s1 + $0x1f80] sm:$0xff]  ;;  %1980 = vmatpush.msrb.mxu2 %v1014_v34 }
  0xd6   :  { %v882_v37 = vld [vmem:[%s10278_s1 + $0x1960] sm:$0xff]  ;;  %2003 = vmatpush.msrb.mxu3 %v1078_v35 }
  0xd7   :  { %v946_v38 = vld [vmem:[%s10278_s1 + $0x1b60] sm:$0xff]  ;;  %1935 = vmatpush.msrb.mxu0 %v882_v37 }
  0xd8   :  { %v1010_v39 = vld [vmem:[%s10278_s1 + $0x1d60] sm:$0xff]  ;;  %1958 = vmatpush.msrb.mxu1 %v946_v38 }
  0xd9   :  { %v1074_v40 = vld [vmem:[%s10278_s1 + $0x1f60] sm:$0xff]  ;;  %1981 = vmatpush.msrb.mxu2 %v1010_v39 }
  0xda   :  { %v56_v42 = vld [vmem:[%s10279_s0 + $0x120] sm:$0xff]  ;;  %2004 = vmatpush.msrb.mxu3 %v1074_v40 }
  0xdb   :  { %v878_v43 = vld [vmem:[%s10278_s1 + $0x1940] sm:$0xff]  ;;  %1927 = vmatmul.f32.gmra.mxu3 %v56_v42 }
  0xdc   :  { %v942_v44 = vld [vmem:[%s10278_s1 + $0x1b40] sm:$0xff]  ;;  %1936 = vmatpush.msrb.mxu0 %v878_v43 }
  0xdd   :  { %v1006_v45 = vld [vmem:[%s10278_s1 + $0x1d40] sm:$0xff]  ;;  %1959 = vmatpush.msrb.mxu1 %v942_v44  ;;  %v57_v44 = vld [vmem:[%s10279_s0 + $0x128] sm:$0xff] }
  0xde   :  { %v1070_v46 = vld [vmem:[%s10278_s1 + $0x1f40] sm:$0xff]  ;;  %1982 = vmatpush.msrb.mxu2 %v1006_v45  ;;  %v59_v45 = vld [vmem:[%s10279_s0 + $0x138] sm:$0xff] }
  0xdf   :  { %v874_v48 = vld [vmem:[%s10278_s1 + $0x1920] sm:$0xff]  ;;  %2005 = vmatpush.msrb.mxu3 %v1070_v46 }
  0xe0   :  { %v938_v49 = vld [vmem:[%s10278_s1 + $0x1b20] sm:$0xff]  ;;  %1937 = vmatpush.msrb.mxu0 %v874_v48 }
  0xe1   :  { %v1002_v50 = vld [vmem:[%s10278_s1 + $0x1d20] sm:$0xff]  ;;  %1960 = vmatpush.msrb.mxu1 %v938_v49 }
  0xe2   :  { %v1066_v51 = vld [vmem:[%s10278_s1 + $0x1f20] sm:$0xff]  ;;  %1983 = vmatpush.msrb.mxu2 %v1002_v50  ;;  %v58_v50 = vld [vmem:[%s10279_s0 + $0x130] sm:$0xff] }
  0xe3   :  { %v870_v52 = vld [vmem:[%s10278_s1 + $0x1900] sm:$0xff]  ;;  %2006 = vmatpush.msrb.mxu3 %v1066_v51 }
  0xe4   :  { %v934_v53 = vld [vmem:[%s10278_s1 + $0x1b00] sm:$0xff]  ;;  %1938 = vmatpush.msrb.mxu0 %v870_v52 }
  0xe5   :  { %v998_v54 = vld [vmem:[%s10278_s1 + $0x1d00] sm:$0xff]  ;;  %1961 = vmatpush.msrb.mxu1 %v934_v53 }
  0xe6   :  { %v1062_v55 = vld [vmem:[%s10278_s1 + $0x1f00] sm:$0xff]  ;;  %1984 = vmatpush.msrb.mxu2 %v998_v54 }
  0xe7   :  { %v866_v56 = vld [vmem:[%s10278_s1 + $0x18e0] sm:$0xff]  ;;  %2007 = vmatpush.msrb.mxu3 %v1062_v55 }
  0xe8   :  { %v930_v57 = vld [vmem:[%s10278_s1 + $0x1ae0] sm:$0xff]  ;;  %1939 = vmatpush.msrb.mxu0 %v866_v56 }
  0xe9   :  { %v994_v58 = vld [vmem:[%s10278_s1 + $0x1ce0] sm:$0xff]  ;;  %1962 = vmatpush.msrb.mxu1 %v930_v57 }
  0xea   :  { %v1058_v59 = vld [vmem:[%s10278_s1 + $0x1ee0] sm:$0xff]  ;;  %1985 = vmatpush.msrb.mxu2 %v994_v58 }
  0xeb   :  { %v862_v60 = vld [vmem:[%s10278_s1 + $0x18c0] sm:$0xff]  ;;  %2008 = vmatpush.msrb.mxu3 %v1058_v59 }
  0xec   :  { %v926_v61 = vld [vmem:[%s10278_s1 + $0x1ac0] sm:$0xff]  ;;  %1940 = vmatpush.msrb.mxu0 %v862_v60 }
  0xed   :  { %v990_v62 = vld [vmem:[%s10278_s1 + $0x1cc0] sm:$0xff]  ;;  %1963 = vmatpush.msrb.mxu1 %v926_v61 }
  0xee   :  { %v1054_v63 = vld [vmem:[%s10278_s1 + $0x1ec0] sm:$0xff]  ;;  %1986 = vmatpush.msrb.mxu2 %v990_v62 }
  0xef   :  { %v858_v0 = vld [vmem:[%s10278_s1 + $0x18a0] sm:$0xff]  ;;  %2009 = vmatpush.msrb.mxu3 %v1054_v63 }
  0xf0   :  { %v922_v1 = vld [vmem:[%s10278_s1 + $0x1aa0] sm:$0xff]  ;;  %1941 = vmatpush.msrb.mxu0 %v858_v0 }
  0xf1   :  { %v986_v2 = vld [vmem:[%s10278_s1 + $0x1ca0] sm:$0xff]  ;;  %1964 = vmatpush.msrb.mxu1 %v922_v1 }
  0xf2   :  { %v1050_v3 = vld [vmem:[%s10278_s1 + $0x1ea0] sm:$0xff]  ;;  %1987 = vmatpush.msrb.mxu2 %v986_v2 }
  0xf3   :  { %v854_v4 = vld [vmem:[%s10278_s1 + $0x1880] sm:$0xff]  ;;  %2010 = vmatpush.msrb.mxu3 %v1050_v3 }
  0xf4   :  { %v918_v5 = vld [vmem:[%s10278_s1 + $0x1a80] sm:$0xff]  ;;  %1942 = vmatpush.msrb.mxu0 %v854_v4 }
  0xf5   :  { %v982_v6 = vld [vmem:[%s10278_s1 + $0x1c80] sm:$0xff]  ;;  %1965 = vmatpush.msrb.mxu1 %v918_v5 }
  0xf6   :  { %v1046_v7 = vld [vmem:[%s10278_s1 + $0x1e80] sm:$0xff]  ;;  %1988 = vmatpush.msrb.mxu2 %v982_v6 }
  0xf7   :  { %v850_v8 = vld [vmem:[%s10278_s1 + $0x1860] sm:$0xff]  ;;  %2011 = vmatpush.msrb.mxu3 %v1046_v7 }
  0xf8   :  { %v914_v9 = vld [vmem:[%s10278_s1 + $0x1a60] sm:$0xff]  ;;  %1943 = vmatpush.msrb.mxu0 %v850_v8 }
  0xf9   :  { %v978_v10 = vld [vmem:[%s10278_s1 + $0x1c60] sm:$0xff]  ;;  %1966 = vmatpush.msrb.mxu1 %v914_v9 }
  0xfa   :  { %v1042_v11 = vld [vmem:[%s10278_s1 + $0x1e60] sm:$0xff]  ;;  %1989 = vmatpush.msrb.mxu2 %v978_v10 }
  0xfb   :  { %v846_v12 = vld [vmem:[%s10278_s1 + $0x1840] sm:$0xff]  ;;  %2012 = vmatpush.msrb.mxu3 %v1042_v11 }
  0xfc   :  { %v910_v13 = vld [vmem:[%s10278_s1 + $0x1a40] sm:$0xff]  ;;  %1944 = vmatpush.msrb.mxu0 %v846_v12 }
  0xfd   :  { %v974_v14 = vld [vmem:[%s10278_s1 + $0x1c40] sm:$0xff]  ;;  %1967 = vmatpush.msrb.mxu1 %v910_v13 }
  0xfe   :  { %v1038_v15 = vld [vmem:[%s10278_s1 + $0x1e40] sm:$0xff]  ;;  %1990 = vmatpush.msrb.mxu2 %v974_v14 }
  0xff   :  { %v842_v16 = vld [vmem:[%s10278_s1 + $0x1820] sm:$0xff]  ;;  %2013 = vmatpush.msrb.mxu3 %v1038_v15 }
 0x100   :  { %v906_v17 = vld [vmem:[%s10278_s1 + $0x1a20] sm:$0xff]  ;;  %1945 = vmatpush.msrb.mxu0 %v842_v16 }
 0x101   :  { %v970_v18 = vld [vmem:[%s10278_s1 + $0x1c20] sm:$0xff]  ;;  %1968 = vmatpush.msrb.mxu1 %v906_v17 }
 0x102   :  { %v1034_v19 = vld [vmem:[%s10278_s1 + $0x1e20] sm:$0xff]  ;;  %1991 = vmatpush.msrb.mxu2 %v970_v18 }
 0x103   :  { %v838_v20 = vld [vmem:[%s10278_s1 + $0x1800] sm:$0xff]  ;;  %2014 = vmatpush.msrb.mxu3 %v1034_v19 }
 0x104   :  { %v902_v21 = vld [vmem:[%s10278_s1 + $0x1a00] sm:$0xff]  ;;  %1946 = vmatpush.msrb.mxu0 %v838_v20 }
 0x105   :  { %v966_v22 = vld [vmem:[%s10278_s1 + $0x1c00] sm:$0xff]  ;;  %1969 = vmatpush.msrb.mxu1 %v902_v21 }
 0x106   :  { %v1030_v23 = vld [vmem:[%s10278_s1 + $0x1e00] sm:$0xff]  ;;  %1992 = vmatpush.msrb.mxu2 %v966_v22  ;;  %1970 = vmatmul.f32.vlgmr.msrb.gmra.mxu1 %v33_v30 }
 0x107   :  { %v32_v24 = vld [vmem:[%s10279_s0 + $0x60] sm:$0xff]  ;;  %2015 = vmatpush.msrb.mxu3 %v1030_v23  ;;  %1993 = vmatmul.f32.vlgmr.msrb.gmra.mxu2 %v34_v25 }
 0x108   :  { %v1154_v26 = vld [vmem:[%s10278_s1 + $0x21e0] sm:$0xff]  ;;  %1947 = vmatmul.f32.vlgmr.msrb.gmra.mxu0 %v32_v24  ;;  %2016 = vmatmul.f32.vlgmr.msrb.gmra.mxu3 %v35_v31 }
 0x109   :  { %v1218_v27 = vld [vmem:[%s10278_s1 + $0x23e0] sm:$0xff]  ;;  %2023 = vmatpush.msra.mxu0 %v1154_v26 }
 0x10a   :  { %v1282_v28 = vld [vmem:[%s10278_s1 + $0x25e0] sm:$0xff]  ;;  %2046 = vmatpush.msra.mxu1 %v1218_v27 }
 0x10b   :  { %v1346_v29 = vld [vmem:[%s10278_s1 + $0x27e0] sm:$0xff]  ;;  %2069 = vmatpush.msra.mxu2 %v1282_v28 }
 0x10c   :  { %v1150_v32 = vld [vmem:[%s10278_s1 + $0x21c0] sm:$0xff]  ;;  %2092 = vmatpush.msra.mxu3 %v1346_v29 }
 0x10d   :  { %v1214_v33 = vld [vmem:[%s10278_s1 + $0x23c0] sm:$0xff]  ;;  %2024 = vmatpush.msra.mxu0 %v1150_v32 }
 0x10e   :  { %v1278_v34 = vld [vmem:[%s10278_s1 + $0x25c0] sm:$0xff]  ;;  %2047 = vmatpush.msra.mxu1 %v1214_v33  ;;  %v38_v33 = vld [vmem:[%s10279_s0 + $0x90] sm:$0xff] }
 0x10f   :  { %v1342_v35 = vld [vmem:[%s10278_s1 + $0x27c0] sm:$0xff]  ;;  %2070 = vmatpush.msra.mxu2 %v1278_v34  ;;  %1973 = vmatmul.f32.gmra.mxu1 %v58_v50 }
 0x110   :  { %v1146_v36 = vld [vmem:[%s10278_s1 + $0x21a0] sm:$0xff]  ;;  %2093 = vmatpush.msra.mxu3 %v1342_v35  ;;  %1950 = vmatmul.f32.gmra.mxu0 %v57_v44 }
 0x111   :  { %v1210_v37 = vld [vmem:[%s10278_s1 + $0x23a0] sm:$0xff]  ;;  %2025 = vmatpush.msra.mxu0 %v1146_v36  ;;  %1996 = vmatmul.f32.gmra.mxu2 %v59_v45 }
 0x112   :  { %v1274_v38 = vld [vmem:[%s10278_s1 + $0x25a0] sm:$0xff]  ;;  %2048 = vmatpush.msra.mxu1 %v1210_v37 }
 0x113   :  { %v1338_v39 = vld [vmem:[%s10278_s1 + $0x27a0] sm:$0xff]  ;;  %2071 = vmatpush.msra.mxu2 %v1274_v38  ;;  %v37_v38 = vld [vmem:[%s10279_s0 + $0x88] sm:$0xff] }
 0x114   :  { %v1142_v40 = vld [vmem:[%s10278_s1 + $0x2180] sm:$0xff]  ;;  %2094 = vmatpush.msra.mxu3 %v1338_v39  ;;  %v39_v39 = vld [vmem:[%s10279_s0 + $0x98] sm:$0xff] }
 0x115   :  { %v1206_v41 = vld [vmem:[%s10278_s1 + $0x2380] sm:$0xff]  ;;  %2026 = vmatpush.msra.mxu0 %v1142_v40 }
 0x116   :  { %v1270_v42 = vld [vmem:[%s10278_s1 + $0x2580] sm:$0xff]  ;;  %2049 = vmatpush.msra.mxu1 %v1206_v41 }
 0x117   :  { %v1334_v43 = vld [vmem:[%s10278_s1 + $0x2780] sm:$0xff]  ;;  %2072 = vmatpush.msra.mxu2 %v1270_v42 }
 0x118   :  { %v1138_v46 = vld [vmem:[%s10278_s1 + $0x2160] sm:$0xff]  ;;  %2095 = vmatpush.msra.mxu3 %v1334_v43 }
 0x119   :  { %v1202_v47 = vld [vmem:[%s10278_s1 + $0x2360] sm:$0xff]  ;;  %2027 = vmatpush.msra.mxu0 %v1138_v46 }
 0x11a   :  { %v1266_v48 = vld [vmem:[%s10278_s1 + $0x2560] sm:$0xff]  ;;  %2050 = vmatpush.msra.mxu1 %v1202_v47 }
 0x11b   :  { %v1330_v49 = vld [vmem:[%s10278_s1 + $0x2760] sm:$0xff]  ;;  %2073 = vmatpush.msra.mxu2 %v1266_v48 }
 0x11c   :  { %v60_v51 = vld [vmem:[%s10279_s0 + $0x140] sm:$0xff]  ;;  %2096 = vmatpush.msra.mxu3 %v1330_v49 }
 0x11d   :  { %v1134_v52 = vld [vmem:[%s10278_s1 + $0x2140] sm:$0xff]  ;;  %2019 = vmatmul.f32.gmra.mxu3 %v60_v51 }
 0x11e   :  { %v1198_v53 = vld [vmem:[%s10278_s1 + $0x2340] sm:$0xff]  ;;  %2028 = vmatpush.msra.mxu0 %v1134_v52  ;;  %v61_v52 = vld [vmem:[%s10279_s0 + $0x148] sm:$0xff] }
 0x11f   :  { %v1262_v54 = vld [vmem:[%s10278_s1 + $0x2540] sm:$0xff]  ;;  %2051 = vmatpush.msra.mxu1 %v1198_v53  ;;  %v63_v53 = vld [vmem:[%s10279_s0 + $0x158] sm:$0xff] }
 0x120   :  { %v1326_v55 = vld [vmem:[%s10278_s1 + $0x2740] sm:$0xff]  ;;  %2074 = vmatpush.msra.mxu2 %v1262_v54 }
 0x121   :  { %v1130_v56 = vld [vmem:[%s10278_s1 + $0x2120] sm:$0xff]  ;;  %2097 = vmatpush.msra.mxu3 %v1326_v55 }
 0x122   :  { %v1194_v57 = vld [vmem:[%s10278_s1 + $0x2320] sm:$0xff]  ;;  %2029 = vmatpush.msra.mxu0 %v1130_v56 }
 0x123   :  { %v1258_v58 = vld [vmem:[%s10278_s1 + $0x2520] sm:$0xff]  ;;  %2052 = vmatpush.msra.mxu1 %v1194_v57 }
 0x124   :  { %v1322_v59 = vld [vmem:[%s10278_s1 + $0x2720] sm:$0xff]  ;;  %2075 = vmatpush.msra.mxu2 %v1258_v58  ;;  %v62_v58 = vld [vmem:[%s10279_s0 + $0x150] sm:$0xff] }
 0x125   :  { %v1126_v60 = vld [vmem:[%s10278_s1 + $0x2100] sm:$0xff]  ;;  %2098 = vmatpush.msra.mxu3 %v1322_v59 }
 0x126   :  { %v1190_v61 = vld [vmem:[%s10278_s1 + $0x2300] sm:$0xff]  ;;  %2030 = vmatpush.msra.mxu0 %v1126_v60 }
 0x127   :  { %v1254_v62 = vld [vmem:[%s10278_s1 + $0x2500] sm:$0xff]  ;;  %2053 = vmatpush.msra.mxu1 %v1190_v61 }
 0x128   :  { %v1318_v63 = vld [vmem:[%s10278_s1 + $0x2700] sm:$0xff]  ;;  %2076 = vmatpush.msra.mxu2 %v1254_v62 }
 0x129   :  { %v1122_v0 = vld [vmem:[%s10278_s1 + $0x20e0] sm:$0xff]  ;;  %2099 = vmatpush.msra.mxu3 %v1318_v63 }
 0x12a   :  { %v1186_v1 = vld [vmem:[%s10278_s1 + $0x22e0] sm:$0xff]  ;;  %2031 = vmatpush.msra.mxu0 %v1122_v0 }
 0x12b   :  { %v1250_v2 = vld [vmem:[%s10278_s1 + $0x24e0] sm:$0xff]  ;;  %2054 = vmatpush.msra.mxu1 %v1186_v1 }
 0x12c   :  { %v1314_v3 = vld [vmem:[%s10278_s1 + $0x26e0] sm:$0xff]  ;;  %2077 = vmatpush.msra.mxu2 %v1250_v2 }
 0x12d   :  { %v1118_v4 = vld [vmem:[%s10278_s1 + $0x20c0] sm:$0xff]  ;;  %2100 = vmatpush.msra.mxu3 %v1314_v3 }
 0x12e   :  { %v1182_v5 = vld [vmem:[%s10278_s1 + $0x22c0] sm:$0xff]  ;;  %2032 = vmatpush.msra.mxu0 %v1118_v4 }
 0x12f   :  { %v1246_v6 = vld [vmem:[%s10278_s1 + $0x24c0] sm:$0xff]  ;;  %2055 = vmatpush.msra.mxu1 %v1182_v5 }
 0x130   :  { %v1310_v7 = vld [vmem:[%s10278_s1 + $0x26c0] sm:$0xff]  ;;  %2078 = vmatpush.msra.mxu2 %v1246_v6 }
 0x131   :  { %v1114_v8 = vld [vmem:[%s10278_s1 + $0x20a0] sm:$0xff]  ;;  %2101 = vmatpush.msra.mxu3 %v1310_v7 }
 0x132   :  { %v1178_v9 = vld [vmem:[%s10278_s1 + $0x22a0] sm:$0xff]  ;;  %2033 = vmatpush.msra.mxu0 %v1114_v8 }
 0x133   :  { %v1242_v10 = vld [vmem:[%s10278_s1 + $0x24a0] sm:$0xff]  ;;  %2056 = vmatpush.msra.mxu1 %v1178_v9 }
 0x134   :  { %v1306_v11 = vld [vmem:[%s10278_s1 + $0x26a0] sm:$0xff]  ;;  %2079 = vmatpush.msra.mxu2 %v1242_v10 }
 0x135   :  { %v1110_v12 = vld [vmem:[%s10278_s1 + $0x2080] sm:$0xff]  ;;  %2102 = vmatpush.msra.mxu3 %v1306_v11 }
 0x136   :  { %v1174_v13 = vld [vmem:[%s10278_s1 + $0x2280] sm:$0xff]  ;;  %2034 = vmatpush.msra.mxu0 %v1110_v12 }
 0x137   :  { %v1238_v14 = vld [vmem:[%s10278_s1 + $0x2480] sm:$0xff]  ;;  %2057 = vmatpush.msra.mxu1 %v1174_v13 }
 0x138   :  { %v1302_v15 = vld [vmem:[%s10278_s1 + $0x2680] sm:$0xff]  ;;  %2080 = vmatpush.msra.mxu2 %v1238_v14 }
 0x139   :  { %v1106_v16 = vld [vmem:[%s10278_s1 + $0x2060] sm:$0xff]  ;;  %2103 = vmatpush.msra.mxu3 %v1302_v15 }
 0x13a   :  { %v1170_v17 = vld [vmem:[%s10278_s1 + $0x2260] sm:$0xff]  ;;  %2035 = vmatpush.msra.mxu0 %v1106_v16 }
 0x13b   :  { %v1234_v18 = vld [vmem:[%s10278_s1 + $0x2460] sm:$0xff]  ;;  %2058 = vmatpush.msra.mxu1 %v1170_v17 }
 0x13c   :  { %v1298_v19 = vld [vmem:[%s10278_s1 + $0x2660] sm:$0xff]  ;;  %2081 = vmatpush.msra.mxu2 %v1234_v18 }
 0x13d   :  { %v1102_v20 = vld [vmem:[%s10278_s1 + $0x2040] sm:$0xff]  ;;  %2104 = vmatpush.msra.mxu3 %v1298_v19 }
 0x13e   :  { %v1166_v21 = vld [vmem:[%s10278_s1 + $0x2240] sm:$0xff]  ;;  %2036 = vmatpush.msra.mxu0 %v1102_v20 }
 0x13f   :  { %v1230_v22 = vld [vmem:[%s10278_s1 + $0x2440] sm:$0xff]  ;;  %2059 = vmatpush.msra.mxu1 %v1166_v21 }
 0x140   :  { %v1294_v23 = vld [vmem:[%s10278_s1 + $0x2640] sm:$0xff]  ;;  %2082 = vmatpush.msra.mxu2 %v1230_v22 }
 0x141   :  { %v1098_v24 = vld [vmem:[%s10278_s1 + $0x2020] sm:$0xff]  ;;  %2105 = vmatpush.msra.mxu3 %v1294_v23 }
 0x142   :  { %v1162_v25 = vld [vmem:[%s10278_s1 + $0x2220] sm:$0xff]  ;;  %2037 = vmatpush.msra.mxu0 %v1098_v24 }
 0x143   :  { %v1226_v26 = vld [vmem:[%s10278_s1 + $0x2420] sm:$0xff]  ;;  %2060 = vmatpush.msra.mxu1 %v1162_v25 }
 0x144   :  { %v1290_v27 = vld [vmem:[%s10278_s1 + $0x2620] sm:$0xff]  ;;  %2083 = vmatpush.msra.mxu2 %v1226_v26 }
 0x145   :  { %v1094_v28 = vld [vmem:[%s10278_s1 + $0x2000] sm:$0xff]  ;;  %2106 = vmatpush.msra.mxu3 %v1290_v27 }
 0x146   :  { %v1158_v29 = vld [vmem:[%s10278_s1 + $0x2200] sm:$0xff]  ;;  %2038 = vmatpush.msra.mxu0 %v1094_v28 }
 0x147   :  { %v1222_v30 = vld [vmem:[%s10278_s1 + $0x2400] sm:$0xff]  ;;  %2061 = vmatpush.msra.mxu1 %v1158_v29 }
 0x148   :  { %v1286_v31 = vld [vmem:[%s10278_s1 + $0x2600] sm:$0xff]  ;;  %2084 = vmatpush.msra.mxu2 %v1222_v30  ;;  %2062 = vmatmul.f32.vlgmr.msra.gmra.mxu1 %v37_v38 }
 0x149   :  { %v36_v32 = vld [vmem:[%s10279_s0 + $0x80] sm:$0xff]  ;;  %2107 = vmatpush.msra.mxu3 %v1286_v31  ;;  %2085 = vmatmul.f32.vlgmr.msra.gmra.mxu2 %v38_v33 }
 0x14a   :  { %v1410_v34 = vld [vmem:[%s10278_s1 + $0x29e0] sm:$0xff]  ;;  %2039 = vmatmul.f32.vlgmr.msra.gmra.mxu0 %v36_v32  ;;  %2108 = vmatmul.f32.vlgmr.msra.gmra.mxu3 %v39_v39 }
 0x14b   :  { %v1474_v35 = vld [vmem:[%s10278_s1 + $0x2be0] sm:$0xff]  ;;  %2115 = vmatpush.msrb.mxu0 %v1410_v34 }
 0x14c   :  { %v1538_v36 = vld [vmem:[%s10278_s1 + $0x2de0] sm:$0xff]  ;;  %2138 = vmatpush.msrb.mxu1 %v1474_v35 }
 0x14d   :  { %v1602_v37 = vld [vmem:[%s10278_s1 + $0x2fe0] sm:$0xff]  ;;  %2161 = vmatpush.msrb.mxu2 %v1538_v36 }
 0x14e   :  { %v1406_v40 = vld [vmem:[%s10278_s1 + $0x29c0] sm:$0xff]  ;;  %2184 = vmatpush.msrb.mxu3 %v1602_v37 }
 0x14f   :  { %v1470_v41 = vld [vmem:[%s10278_s1 + $0x2bc0] sm:$0xff]  ;;  %2116 = vmatpush.msrb.mxu0 %v1406_v40 }
 0x150   :  { %v1534_v42 = vld [vmem:[%s10278_s1 + $0x2dc0] sm:$0xff]  ;;  %2139 = vmatpush.msrb.mxu1 %v1470_v41  ;;  %v42_v41 = vld [vmem:[%s10279_s0 + $0xb0] sm:$0xff] }
 0x151   :  { %v1598_v43 = vld [vmem:[%s10278_s1 + $0x2fc0] sm:$0xff]  ;;  %2162 = vmatpush.msrb.mxu2 %v1534_v42  ;;  %2065 = vmatmul.f32.gmra.mxu1 %v62_v58  ;;  %v183_v58 = vld [vmem:[%s10278_s1 + $0x388] sm:$0xff] }
 0x152   :  { %v1402_v44 = vld [vmem:[%s10278_s1 + $0x29a0] sm:$0xff]  ;;  %2185 = vmatpush.msrb.mxu3 %v1598_v43  ;;  %2042 = vmatmul.f32.gmra.mxu0 %v61_v52  ;;  %v131_v43 = vld [vmem:[%s10278_s1 + $0x1e8] sm:$0xff] }
 0x153   :  { %v1466_v45 = vld [vmem:[%s10278_s1 + $0x2ba0] sm:$0xff]  ;;  %2117 = vmatpush.msrb.mxu0 %v1402_v44  ;;  %2088 = vmatmul.f32.gmra.mxu2 %v63_v53  ;;  %v195_v44 = vld [vmem:[%s10278_s1 + $0x3e8] sm:$0xff] }
 0x154   :  { %v1530_v46 = vld [vmem:[%s10278_s1 + $0x2da0] sm:$0xff]  ;;  %2140 = vmatpush.msrb.mxu1 %v1466_v45  ;;  %v259_v45 = vld [vmem:[%s10278_s1 + $0x5e8] sm:$0xff] }
 0x155   :  { %v1594_v47 = vld [vmem:[%s10278_s1 + $0x2fa0] sm:$0xff]  ;;  %2163 = vmatpush.msrb.mxu2 %v1530_v46  ;;  %v41_v46 = vld [vmem:[%s10279_s0 + $0xa8] sm:$0xff] }
 0x156   :  { %v1398_v48 = vld [vmem:[%s10278_s1 + $0x2980] sm:$0xff]  ;;  %2186 = vmatpush.msrb.mxu3 %v1594_v47  ;;  %v43_v47 = vld [vmem:[%s10279_s0 + $0xb8] sm:$0xff]  ;;  %v123_v53 = vld [vmem:[%s10278_s1 + $0x1a8] sm:$0xff] }
 0x157   :  { %v1462_v49 = vld [vmem:[%s10278_s1 + $0x2b80] sm:$0xff]  ;;  %2118 = vmatpush.msrb.mxu0 %v1398_v48 }
 0x158   :  { %v1526_v50 = vld [vmem:[%s10278_s1 + $0x2d80] sm:$0xff]  ;;  %2141 = vmatpush.msrb.mxu1 %v1462_v49  ;;  %v127_v49 = vld [vmem:[%s10278_s1 + $0x1c8] sm:$0xff] }
 0x159   :  { %v1590_v51 = vld [vmem:[%s10278_s1 + $0x2f80] sm:$0xff]  ;;  %2164 = vmatpush.msrb.mxu2 %v1526_v50  ;;  %v191_v50 = vld [vmem:[%s10278_s1 + $0x3c8] sm:$0xff] }
 0x15a   :  { %v1394_v54 = vld [vmem:[%s10278_s1 + $0x2960] sm:$0xff]  ;;  %2187 = vmatpush.msrb.mxu3 %v1590_v51  ;;  %v255_v51 = vld [vmem:[%s10278_s1 + $0x5c8] sm:$0xff] }
 0x15b   :  { %v1458_v55 = vld [vmem:[%s10278_s1 + $0x2b60] sm:$0xff]  ;;  %2119 = vmatpush.msrb.mxu0 %v1394_v54  ;;  %v187_v54 = vld [vmem:[%s10278_s1 + $0x3a8] sm:$0xff] }
 0x15c   :  { %v1522_v56 = vld [vmem:[%s10278_s1 + $0x2d60] sm:$0xff]  ;;  %2142 = vmatpush.msrb.mxu1 %v1458_v55  ;;  %v251_v55 = vld [vmem:[%s10278_s1 + $0x5a8] sm:$0xff] }
 0x15d   :  { %v1586_v57 = vld [vmem:[%s10278_s1 + $0x2f60] sm:$0xff]  ;;  %2165 = vmatpush.msrb.mxu2 %v1522_v56 }
 0x15e   :  { %v64_v59 = vld [vmem:[%s10279_s0 + $0x160] sm:$0xff]  ;;  %2188 = vmatpush.msrb.mxu3 %v1586_v57  ;;  %v119_v57 = vld [vmem:[%s10278_s1 + $0x188] sm:$0xff] }
 0x15f   :  { %v1390_v60 = vld [vmem:[%s10278_s1 + $0x2940] sm:$0xff]  ;;  %2111 = vmatmul.f32.gmra.mxu3 %v64_v59  ;;  %v247_v59 = vld [vmem:[%s10278_s1 + $0x588] sm:$0xff] }
 0x160   :  { %v1454_v61 = vld [vmem:[%s10278_s1 + $0x2b40] sm:$0xff]  ;;  %2120 = vmatpush.msrb.mxu0 %v1390_v60  ;;  %v65_v60 = vld [vmem:[%s10279_s0 + $0x168] sm:$0xff] }
 0x161   :  { %v1518_v62 = vld [vmem:[%s10278_s1 + $0x2d40] sm:$0xff]  ;;  %2143 = vmatpush.msrb.mxu1 %v1454_v61  ;;  %v67_v61 = vld [vmem:[%s10279_s0 + $0x178] sm:$0xff] }
 0x162   :  { %v1582_v63 = vld [vmem:[%s10278_s1 + $0x2f40] sm:$0xff]  ;;  %2166 = vmatpush.msrb.mxu2 %v1518_v62 }
 0x163   :  { %v1386_v0 = vld [vmem:[%s10278_s1 + $0x2920] sm:$0xff]  ;;  %2189 = vmatpush.msrb.mxu3 %v1582_v63  ;;  %v115_v63 = vld [vmem:[%s10278_s1 + $0x168] sm:$0xff] }
 0x164   :  { %v1450_v1 = vld [vmem:[%s10278_s1 + $0x2b20] sm:$0xff]  ;;  %2121 = vmatpush.msrb.mxu0 %v1386_v0  ;;  %v179_v0 = vld [vmem:[%s10278_s1 + $0x368] sm:$0xff] }
 0x165   :  { %v1514_v2 = vld [vmem:[%s10278_s1 + $0x2d20] sm:$0xff]  ;;  %2144 = vmatpush.msrb.mxu1 %v1450_v1  ;;  %v243_v1 = vld [vmem:[%s10278_s1 + $0x568] sm:$0xff] }
 0x166   :  { %v1578_v3 = vld [vmem:[%s10278_s1 + $0x2f20] sm:$0xff]  ;;  %2167 = vmatpush.msrb.mxu2 %v1514_v2  ;;  %v66_v2 = vld [vmem:[%s10279_s0 + $0x170] sm:$0xff] }
 0x167   :  { %v1382_v4 = vld [vmem:[%s10278_s1 + $0x2900] sm:$0xff]  ;;  %2190 = vmatpush.msrb.mxu3 %v1578_v3 }
 0x168   :  { %v1446_v5 = vld [vmem:[%s10278_s1 + $0x2b00] sm:$0xff]  ;;  %2122 = vmatpush.msrb.mxu0 %v1382_v4 }
 0x169   :  { %v1510_v6 = vld [vmem:[%s10278_s1 + $0x2d00] sm:$0xff]  ;;  %2145 = vmatpush.msrb.mxu1 %v1446_v5  ;;  %v111_v5 = vld [vmem:[%s10278_s1 + $0x148] sm:$0xff] }
 0x16a   :  { %v1574_v7 = vld [vmem:[%s10278_s1 + $0x2f00] sm:$0xff]  ;;  %2168 = vmatpush.msrb.mxu2 %v1510_v6  ;;  %v175_v6 = vld [vmem:[%s10278_s1 + $0x348] sm:$0xff] }
 0x16b   :  { %v1378_v8 = vld [vmem:[%s10278_s1 + $0x28e0] sm:$0xff]  ;;  %2191 = vmatpush.msrb.mxu3 %v1574_v7  ;;  %v239_v7 = vld [vmem:[%s10278_s1 + $0x548] sm:$0xff] }
 0x16c   :  { %v1442_v9 = vld [vmem:[%s10278_s1 + $0x2ae0] sm:$0xff]  ;;  %2123 = vmatpush.msrb.mxu0 %v1378_v8 }
 0x16d   :  { %v1506_v10 = vld [vmem:[%s10278_s1 + $0x2ce0] sm:$0xff]  ;;  %2146 = vmatpush.msrb.mxu1 %v1442_v9  ;;  %v107_v9 = vld [vmem:[%s10278_s1 + $0x128] sm:$0xff] }
 0x16e   :  { %v1570_v11 = vld [vmem:[%s10278_s1 + $0x2ee0] sm:$0xff]  ;;  %2169 = vmatpush.msrb.mxu2 %v1506_v10  ;;  %v171_v10 = vld [vmem:[%s10278_s1 + $0x328] sm:$0xff] }
 0x16f   :  { %v1374_v12 = vld [vmem:[%s10278_s1 + $0x28c0] sm:$0xff]  ;;  %2192 = vmatpush.msrb.mxu3 %v1570_v11  ;;  %v235_v11 = vld [vmem:[%s10278_s1 + $0x528] sm:$0xff] }
 0x170   :  { %v1438_v13 = vld [vmem:[%s10278_s1 + $0x2ac0] sm:$0xff]  ;;  %2124 = vmatpush.msrb.mxu0 %v1374_v12 }
 0x171   :  { %v1502_v14 = vld [vmem:[%s10278_s1 + $0x2cc0] sm:$0xff]  ;;  %2147 = vmatpush.msrb.mxu1 %v1438_v13  ;;  %v103_v13 = vld [vmem:[%s10278_s1 + $0x108] sm:$0xff] }
 0x172   :  { %v1566_v15 = vld [vmem:[%s10278_s1 + $0x2ec0] sm:$0xff]  ;;  %2170 = vmatpush.msrb.mxu2 %v1502_v14  ;;  %v167_v14 = vld [vmem:[%s10278_s1 + $0x308] sm:$0xff] }
 0x173   :  { %v1370_v16 = vld [vmem:[%s10278_s1 + $0x28a0] sm:$0xff]  ;;  %2193 = vmatpush.msrb.mxu3 %v1566_v15  ;;  %v231_v15 = vld [vmem:[%s10278_s1 + $0x508] sm:$0xff] }
 0x174   :  { %v1434_v17 = vld [vmem:[%s10278_s1 + $0x2aa0] sm:$0xff]  ;;  %2125 = vmatpush.msrb.mxu0 %v1370_v16  ;;  %v323_v16 = vld [vmem:[%s10278_s1 + $0x7e8] sm:$0xff] }
 0x175   :  { %v1498_v18 = vld [vmem:[%s10278_s1 + $0x2ca0] sm:$0xff]  ;;  %2148 = vmatpush.msrb.mxu1 %v1434_v17  ;;  %v99_v17 = vld [vmem:[%s10278_s1 + $0xe8] sm:$0xff] }
 0x176   :  { %v1562_v19 = vld [vmem:[%s10278_s1 + $0x2ea0] sm:$0xff]  ;;  %2171 = vmatpush.msrb.mxu2 %v1498_v18 }
 0x177   :  { %v1366_v20 = vld [vmem:[%s10278_s1 + $0x2880] sm:$0xff]  ;;  %2194 = vmatpush.msrb.mxu3 %v1562_v19  ;;  %v163_v19 = vld [vmem:[%s10278_s1 + $0x2e8] sm:$0xff] }
 0x178   :  { %v1430_v21 = vld [vmem:[%s10278_s1 + $0x2a80] sm:$0xff]  ;;  %2126 = vmatpush.msrb.mxu0 %v1366_v20  ;;  %v227_v20 = vld [vmem:[%s10278_s1 + $0x4e8] sm:$0xff] }
 0x179   :  { %v1494_v22 = vld [vmem:[%s10278_s1 + $0x2c80] sm:$0xff]  ;;  %2149 = vmatpush.msrb.mxu1 %v1430_v21  ;;  %v319_v21 = vld [vmem:[%s10278_s1 + $0x7c8] sm:$0xff] }
 0x17a   :  { %v1558_v23 = vld [vmem:[%s10278_s1 + $0x2e80] sm:$0xff]  ;;  %2172 = vmatpush.msrb.mxu2 %v1494_v22  ;;  %v95_v22 = vld [vmem:[%s10278_s1 + $0xc8] sm:$0xff] }
 0x17b   :  { %v1362_v24 = vld [vmem:[%s10278_s1 + $0x2860] sm:$0xff]  ;;  %2195 = vmatpush.msrb.mxu3 %v1558_v23  ;;  %v159_v23 = vld [vmem:[%s10278_s1 + $0x2c8] sm:$0xff] }
 0x17c   :  { %v1426_v25 = vld [vmem:[%s10278_s1 + $0x2a60] sm:$0xff]  ;;  %2127 = vmatpush.msrb.mxu0 %v1362_v24  ;;  %v223_v24 = vld [vmem:[%s10278_s1 + $0x4c8] sm:$0xff] }
 0x17d   :  { %v1490_v26 = vld [vmem:[%s10278_s1 + $0x2c60] sm:$0xff]  ;;  %2150 = vmatpush.msrb.mxu1 %v1426_v25  ;;  %v315_v25 = vld [vmem:[%s10278_s1 + $0x7a8] sm:$0xff] }
 0x17e   :  { %v1554_v27 = vld [vmem:[%s10278_s1 + $0x2e60] sm:$0xff]  ;;  %2173 = vmatpush.msrb.mxu2 %v1490_v26  ;;  %v91_v26 = vld [vmem:[%s10278_s1 + $0xa8] sm:$0xff] }
 0x17f   :  { %v1358_v28 = vld [vmem:[%s10278_s1 + $0x2840] sm:$0xff]  ;;  %2196 = vmatpush.msrb.mxu3 %v1554_v27  ;;  %v155_v27 = vld [vmem:[%s10278_s1 + $0x2a8] sm:$0xff] }
 0x180   :  { %v1422_v29 = vld [vmem:[%s10278_s1 + $0x2a40] sm:$0xff]  ;;  %2128 = vmatpush.msrb.mxu0 %v1358_v28  ;;  %v219_v28 = vld [vmem:[%s10278_s1 + $0x4a8] sm:$0xff] }
 0x181   :  { %v1486_v30 = vld [vmem:[%s10278_s1 + $0x2c40] sm:$0xff]  ;;  %2151 = vmatpush.msrb.mxu1 %v1422_v29  ;;  %v311_v29 = vld [vmem:[%s10278_s1 + $0x788] sm:$0xff] }
 0x182   :  { %v1550_v31 = vld [vmem:[%s10278_s1 + $0x2e40] sm:$0xff]  ;;  %2174 = vmatpush.msrb.mxu2 %v1486_v30  ;;  %v87_v30 = vld [vmem:[%s10278_s1 + $0x88] sm:$0xff] }
 0x183   :  { %v1354_v32 = vld [vmem:[%s10278_s1 + $0x2820] sm:$0xff]  ;;  %2197 = vmatpush.msrb.mxu3 %v1550_v31  ;;  %v151_v31 = vld [vmem:[%s10278_s1 + $0x288] sm:$0xff] }
 0x184   :  { %v1418_v33 = vld [vmem:[%s10278_s1 + $0x2a20] sm:$0xff]  ;;  %2129 = vmatpush.msrb.mxu0 %v1354_v32  ;;  %v215_v32 = vld [vmem:[%s10278_s1 + $0x488] sm:$0xff] }
 0x185   :  { %v1482_v34 = vld [vmem:[%s10278_s1 + $0x2c20] sm:$0xff]  ;;  %2152 = vmatpush.msrb.mxu1 %v1418_v33  ;;  %v307_v33 = vld [vmem:[%s10278_s1 + $0x768] sm:$0xff] }
 0x186   :  { %v1546_v35 = vld [vmem:[%s10278_s1 + $0x2e20] sm:$0xff]  ;;  %2175 = vmatpush.msrb.mxu2 %v1482_v34  ;;  %v69_v34 = vld [vmem:[%s10279_s0 + $0x188] sm:$0xff] }
 0x187   :  { %v1350_v36 = vld [vmem:[%s10278_s1 + $0x2800] sm:$0xff]  ;;  %2198 = vmatpush.msrb.mxu3 %v1546_v35  ;;  %v83_v35 = vld [vmem:[%s10278_s1 + $0x68] sm:$0xff] }
 0x188   :  { %v1414_v37 = vld [vmem:[%s10278_s1 + $0x2a00] sm:$0xff]  ;;  %2130 = vmatpush.msrb.mxu0 %v1350_v36  ;;  %v147_v36 = vld [vmem:[%s10278_s1 + $0x268] sm:$0xff] }
 0x189   :  { %v1478_v38 = vld [vmem:[%s10278_s1 + $0x2c00] sm:$0xff]  ;;  %2153 = vmatpush.msrb.mxu1 %v1414_v37  ;;  %v211_v37 = vld [vmem:[%s10278_s1 + $0x468] sm:$0xff] }
 0x18a   :  { %v1542_v39 = vld [vmem:[%s10278_s1 + $0x2e00] sm:$0xff]  ;;  %2176 = vmatpush.msrb.mxu2 %v1478_v38  ;;  %2154 = vmatmul.f32.vlgmr.msrb.gmra.mxu1 %v41_v46  ;;  %v303_v38 = vld [vmem:[%s10278_s1 + $0x748] sm:$0xff] }
 0x18b   :  { %v40_v40 = vld [vmem:[%s10279_s0 + $0xa0] sm:$0xff]  ;;  %2199 = vmatpush.msrb.mxu3 %v1542_v39  ;;  %2177 = vmatmul.f32.vlgmr.msrb.gmra.mxu2 %v42_v41  ;;  %v79_v39 = vld [vmem:[%s10278_s1 + $0x48] sm:$0xff] }
 0x18c   :  { %v1634_v42 = vld [vmem:[%s10278_s1 + $0x30e0] sm:$0xff]  ;;  %2131 = vmatmul.f32.vlgmr.msrb.gmra.mxu0 %v40_v40  ;;  %2230 = vmatpush.msra.mxu1 %v131_v43  ;;  %v143_v40 = vld [vmem:[%s10278_s1 + $0x248] sm:$0xff] }
 0x18d   :  { %2215 = vmatpush.msra.mxu0 %v1634_v42  ;;  %v1630_v48 = vld [vmem:[%s10278_s1 + $0x30c0] sm:$0xff]  ;;  %2253 = vmatpush.msra.mxu2 %v195_v44  ;;  %v207_v41 = vld [vmem:[%s10278_s1 + $0x448] sm:$0xff] }
 0x18e   :  { %2276 = vmatpush.msra.mxu3 %v259_v45  ;;  %v1626_v52 = vld [vmem:[%s10278_s1 + $0x30a0] sm:$0xff]  ;;  %2231 = vmatpush.msra.mxu1 %v127_v49  ;;  %v299_v42 = vld [vmem:[%s10278_s1 + $0x728] sm:$0xff] }
 0x18f   :  { %2200 = vmatmul.f32.vlgmr.msrb.gmra.mxu3 %v43_v47  ;;  %2216 = vmatpush.msra.mxu0 %v1630_v48  ;;  %v1622_v56 = vld [vmem:[%s10278_s1 + $0x3080] sm:$0xff]  ;;  %v75_v43 = vld [vmem:[%s10278_s1 + $0x28] sm:$0xff] }
 0x190   :  { %2254 = vmatpush.msra.mxu2 %v191_v50  ;;  %2277 = vmatpush.msra.mxu3 %v255_v51  ;;  %v1618_v62 = vld [vmem:[%s10278_s1 + $0x3060] sm:$0xff]  ;;  %v139_v44 = vld [vmem:[%s10278_s1 + $0x228] sm:$0xff] }
 0x191   :  { %2217 = vmatpush.msra.mxu0 %v1626_v52  ;;  %2232 = vmatpush.msra.mxu1 %v123_v53  ;;  %v68_v3 = vld [vmem:[%s10279_s0 + $0x180] sm:$0xff]  ;;  %v203_v45 = vld [vmem:[%s10278_s1 + $0x428] sm:$0xff] }
 0x192   :  { %2255 = vmatpush.msra.mxu2 %v187_v54  ;;  %2278 = vmatpush.msra.mxu3 %v251_v55  ;;  %v1614_v4 = vld [vmem:[%s10278_s1 + $0x3040] sm:$0xff]  ;;  %v295_v46 = vld [vmem:[%s10278_s1 + $0x708] sm:$0xff] }
 0x193   :  { %2218 = vmatpush.msra.mxu0 %v1622_v56  ;;  %2233 = vmatpush.msra.mxu1 %v119_v57  ;;  %v1610_v8 = vld [vmem:[%s10278_s1 + $0x3020] sm:$0xff]  ;;  %v71_v47 = vld [vmem:[%s10278_s1 + $0x8] sm:$0xff] }
 0x194   :  { %2256 = vmatpush.msra.mxu2 %v183_v58  ;;  %2279 = vmatpush.msra.mxu3 %v247_v59  ;;  %v1606_v12 = vld [vmem:[%s10278_s1 + $0x3000] sm:$0xff]  ;;  %v135_v48 = vld [vmem:[%s10278_s1 + $0x208] sm:$0xff] }
 0x195   :  { %2134 = vmatmul.f32.gmra.mxu0 %v65_v60  ;;  %2180 = vmatmul.f32.gmra.mxu2 %v67_v61  ;;  %v44_v18 = vld [vmem:[%s10279_s0 + $0xc0] sm:$0xff]  ;;  %v199_v49 = vld [vmem:[%s10278_s1 + $0x408] sm:$0xff] }
 0x196   :  { %2219 = vmatpush.msra.mxu0 %v1618_v62  ;;  %2234 = vmatpush.msra.mxu1 %v115_v63  ;;  %v291_v50 = vld [vmem:[%s10278_s1 + $0x6e8] sm:$0xff] }
 0x197   :  { %2257 = vmatpush.msra.mxu2 %v179_v0  ;;  %2280 = vmatpush.msra.mxu3 %v243_v1  ;;  %v387_v51 = vld [vmem:[%s10278_s1 + $0x9e8] sm:$0xff] }
 0x198   :  { %2157 = vmatmul.f32.gmra.mxu1 %v66_v2  ;;  %2203 = vmatmul.f32.gmra.mxu3 %v68_v3  ;;  %v451_v52 = vld [vmem:[%s10278_s1 + $0xbe8] sm:$0xff] }
 0x199   :  { %2220 = vmatpush.msra.mxu0 %v1614_v4  ;;  %2235 = vmatpush.msra.mxu1 %v111_v5  ;;  %v515_v53 = vld [vmem:[%s10278_s1 + $0xde8] sm:$0xff] }
 0x19a   :  { %2258 = vmatpush.msra.mxu2 %v175_v6  ;;  %2281 = vmatpush.msra.mxu3 %v239_v7  ;;  %v287_v54 = vld [vmem:[%s10278_s1 + $0x6c8] sm:$0xff] }
 0x19b   :  { %2221 = vmatpush.msra.mxu0 %v1610_v8  ;;  %2236 = vmatpush.msra.mxu1 %v107_v9  ;;  %v383_v55 = vld [vmem:[%s10278_s1 + $0x9c8] sm:$0xff] }
 0x19c   :  { %2259 = vmatpush.msra.mxu2 %v171_v10  ;;  %2282 = vmatpush.msra.mxu3 %v235_v11  ;;  %v447_v56 = vld [vmem:[%s10278_s1 + $0xbc8] sm:$0xff] }
 0x19d   :  { %2222 = vmatpush.msra.mxu0 %v1606_v12  ;;  %2237 = vmatpush.msra.mxu1 %v103_v13  ;;  %v511_v57 = vld [vmem:[%s10278_s1 + $0xdc8] sm:$0xff] }
 0x19e   :  { %2260 = vmatpush.msra.mxu2 %v167_v14  ;;  %2283 = vmatpush.msra.mxu3 %v231_v15  ;;  %v283_v58 = vld [vmem:[%s10278_s1 + $0x6a8] sm:$0xff] }
 0x19f   :  { %2299 = vmatpush.msrb.mxu0 %v323_v16  ;;  %2238 = vmatpush.msra.mxu1 %v99_v17  ;;  %v379_v59 = vld [vmem:[%s10278_s1 + $0x9a8] sm:$0xff] }
 0x1a0   :  { %4129 = vmatmul.msk.f32.vlgmr.msra.gmra.mxu0 %vm1648_vm0, %v44_v18  ;;  %2261 = vmatpush.msra.mxu2 %v163_v19  ;;  %v443_v60 = vld [vmem:[%s10278_s1 + $0xba8] sm:$0xff] }
 0x1a1   :  { %2284 = vmatpush.msra.mxu3 %v227_v20  ;;  %2300 = vmatpush.msrb.mxu0 %v319_v21  ;;  %v507_v61 = vld [vmem:[%s10278_s1 + $0xda8] sm:$0xff] }
 0x1a2   :  { %2239 = vmatpush.msra.mxu1 %v95_v22  ;;  %2262 = vmatpush.msra.mxu2 %v159_v23  ;;  %v279_v62 = vld [vmem:[%s10278_s1 + $0x688] sm:$0xff] }
 0x1a3   :  { %2285 = vmatpush.msra.mxu3 %v223_v24  ;;  %2301 = vmatpush.msrb.mxu0 %v315_v25  ;;  %v375_v63 = vld [vmem:[%s10278_s1 + $0x988] sm:$0xff] }
 0x1a4   :  { %2240 = vmatpush.msra.mxu1 %v91_v26  ;;  %2263 = vmatpush.msra.mxu2 %v155_v27  ;;  %v439_v0 = vld [vmem:[%s10278_s1 + $0xb88] sm:$0xff] }
 0x1a5   :  { %2286 = vmatpush.msra.mxu3 %v219_v28  ;;  %2302 = vmatpush.msrb.mxu0 %v311_v29  ;;  %v503_v1 = vld [vmem:[%s10278_s1 + $0xd88] sm:$0xff] }
 0x1a6   :  { %2241 = vmatpush.msra.mxu1 %v87_v30  ;;  %2264 = vmatpush.msra.mxu2 %v151_v31  ;;  %v275_v2 = vld [vmem:[%s10278_s1 + $0x668] sm:$0xff] }
 0x1a7   :  { %2287 = vmatpush.msra.mxu3 %v215_v32  ;;  %2303 = vmatpush.msrb.mxu0 %v307_v33  ;;  %v371_v3 = vld [vmem:[%s10278_s1 + $0x968] sm:$0xff] }
 0x1a8   :  { %4130 = vmatmul.msk.f32.gmra.mxu0 %vm1648_vm0, %v69_v34  ;;  %2242 = vmatpush.msra.mxu1 %v83_v35  ;;  %v435_v4 = vld [vmem:[%s10278_s1 + $0xb68] sm:$0xff] }
 0x1a9   :  { %2265 = vmatpush.msra.mxu2 %v147_v36  ;;  %2288 = vmatpush.msra.mxu3 %v211_v37  ;;  %v499_v5 = vld [vmem:[%s10278_s1 + $0xd68] sm:$0xff] }
 0x1aa   :  { %2304 = vmatpush.msrb.mxu0 %v303_v38  ;;  %2243 = vmatpush.msra.mxu1 %v79_v39  ;;  %v271_v6 = vld [vmem:[%s10278_s1 + $0x648] sm:$0xff] }
 0x1ab   :  { %2266 = vmatpush.msra.mxu2 %v143_v40  ;;  %2289 = vmatpush.msra.mxu3 %v207_v41  ;;  %v367_v7 = vld [vmem:[%s10278_s1 + $0x948] sm:$0xff]  ;;  %v4139_v40 = vld [vmem:[%s10279_s0 + $0x10] sm:$0xff] }
 0x1ac   :  { %2305 = vmatpush.msrb.mxu0 %v299_v42  ;;  %2244 = vmatpush.msra.mxu1 %v75_v43  ;;  %v431_v8 = vld [vmem:[%s10278_s1 + $0xb48] sm:$0xff] }
 0x1ad   :  { %2267 = vmatpush.msra.mxu2 %v139_v44  ;;  %2290 = vmatpush.msra.mxu3 %v203_v45  ;;  %v495_v9 = vld [vmem:[%s10278_s1 + $0xd48] sm:$0xff]  ;;  %v4140_v45 = vld [vmem:[%s10279_s0] sm:$0xff] }
 0x1ae   :  { %2306 = vmatpush.msrb.mxu0 %v295_v46  ;;  %2245 = vmatpush.msra.mxu1 %v71_v47  ;;  %v267_v10 = vld [vmem:[%s10278_s1 + $0x628] sm:$0xff] }
 0x1af   :  { %2268 = vmatpush.msra.mxu2 %v135_v48  ;;  %2291 = vmatpush.msra.mxu3 %v199_v49  ;;  %v363_v11 = vld [vmem:[%s10278_s1 + $0x928] sm:$0xff] }
 0x1b0   :  { %2307 = vmatpush.msrb.mxu0 %v291_v50  ;;  %2322 = vmatpush.msrb.mxu1 %v387_v51  ;;  %v427_v12 = vld [vmem:[%s10278_s1 + $0xb28] sm:$0xff] }
 0x1b1   :  { %2345 = vmatpush.msrb.mxu2 %v451_v52  ;;  %2368 = vmatpush.msrb.mxu3 %v515_v53  ;;  %v491_v13 = vld [vmem:[%s10278_s1 + $0xd28] sm:$0xff] }
 0x1b2   :  { %2308 = vmatpush.msrb.mxu0 %v287_v54  ;;  %2323 = vmatpush.msrb.mxu1 %v383_v55  ;;  %v263_v14 = vld [vmem:[%s10278_s1 + $0x608] sm:$0xff]  ;;  %v4141_v55 = vld [vmem:[%s10279_s0 + $0xd0] sm:$0xff] }
 0x1b3   :  { %2346 = vmatpush.msrb.mxu2 %v447_v56  ;;  %2369 = vmatpush.msrb.mxu3 %v511_v57  ;;  %v359_v15 = vld [vmem:[%s10278_s1 + $0x908] sm:$0xff] }
 0x1b4   :  { %2309 = vmatpush.msrb.mxu0 %v283_v58  ;;  %2324 = vmatpush.msrb.mxu1 %v379_v59  ;;  %v423_v16 = vld [vmem:[%s10278_s1 + $0xb08] sm:$0xff] }
 0x1b5   :  { %2347 = vmatpush.msrb.mxu2 %v443_v60  ;;  %2370 = vmatpush.msrb.mxu3 %v507_v61  ;;  %v487_v17 = vld [vmem:[%s10278_s1 + $0xd08] sm:$0xff] }
 0x1b6   :  { %2310 = vmatpush.msrb.mxu0 %v279_v62  ;;  %2325 = vmatpush.msrb.mxu1 %v375_v63  ;;  %v579_v18 = vld [vmem:[%s10278_s1 + $0xfe8] sm:$0xff]  ;;  %v4142_v62 = vld [vmem:[%s10279_s0 + $0xd8] sm:$0xff] }
 0x1b7   :  { %2348 = vmatpush.msrb.mxu2 %v439_v0  ;;  %2371 = vmatpush.msrb.mxu3 %v503_v1  ;;  %v355_v19 = vld [vmem:[%s10278_s1 + $0x8e8] sm:$0xff]  ;;  %v4143_v63 = vld [vmem:[%s10279_s0 + $0x18] sm:$0xff] }
 0x1b8   :  { %2311 = vmatpush.msrb.mxu0 %v275_v2  ;;  %2326 = vmatpush.msrb.mxu1 %v371_v3  ;;  %v419_v20 = vld [vmem:[%s10278_s1 + $0xae8] sm:$0xff] }
 0x1b9   :  { %2349 = vmatpush.msrb.mxu2 %v435_v4  ;;  %2372 = vmatpush.msrb.mxu3 %v499_v5  ;;  %v483_v21 = vld [vmem:[%s10278_s1 + $0xce8] sm:$0xff] }
 0x1ba   :  { %2312 = vmatpush.msrb.mxu0 %v271_v6  ;;  %2327 = vmatpush.msrb.mxu1 %v367_v7  ;;  %v575_v22 = vld [vmem:[%s10278_s1 + $0xfc8] sm:$0xff] }
 0x1bb   :  { %2350 = vmatpush.msrb.mxu2 %v431_v8  ;;  %2373 = vmatpush.msrb.mxu3 %v495_v9  ;;  %v351_v23 = vld [vmem:[%s10278_s1 + $0x8c8] sm:$0xff] }
 0x1bc   :  { %2313 = vmatpush.msrb.mxu0 %v267_v10  ;;  %2328 = vmatpush.msrb.mxu1 %v363_v11  ;;  %v415_v24 = vld [vmem:[%s10278_s1 + $0xac8] sm:$0xff] }
 0x1bd   :  { %2351 = vmatpush.msrb.mxu2 %v427_v12  ;;  %2374 = vmatpush.msrb.mxu3 %v491_v13  ;;  %v479_v25 = vld [vmem:[%s10278_s1 + $0xcc8] sm:$0xff] }
 0x1be   :  { %2314 = vmatpush.msrb.mxu0 %v263_v14  ;;  %2329 = vmatpush.msrb.mxu1 %v359_v15  ;;  %v571_v26 = vld [vmem:[%s10278_s1 + $0xfa8] sm:$0xff] }
 0x1bf   :  { %2352 = vmatpush.msrb.mxu2 %v423_v16  ;;  %2375 = vmatpush.msrb.mxu3 %v487_v17  ;;  %v347_v27 = vld [vmem:[%s10278_s1 + $0x8a8] sm:$0xff] }
 0x1c0   :  { %2391 = vmatpush.msra.mxu0 %v579_v18  ;;  %2330 = vmatpush.msrb.mxu1 %v355_v19  ;;  %v411_v28 = vld [vmem:[%s10278_s1 + $0xaa8] sm:$0xff]  ;;  %v4146_v18 = vld [vmem:[%s10279_s0 + $0xe0] sm:$0xff]  ;;  %v4147_v19 = vld [vmem:[%s10279_s0 + $0x30] sm:$0xff] }
 0x1c1   :  { %2353 = vmatpush.msrb.mxu2 %v419_v20  ;;  %2376 = vmatpush.msrb.mxu3 %v483_v21  ;;  %v475_v29 = vld [vmem:[%s10278_s1 + $0xca8] sm:$0xff] }
 0x1c2   :  { %2392 = vmatpush.msra.mxu0 %v575_v22  ;;  %2331 = vmatpush.msrb.mxu1 %v351_v23  ;;  %v567_v30 = vld [vmem:[%s10278_s1 + $0xf88] sm:$0xff] }
 0x1c3   :  { %2354 = vmatpush.msrb.mxu2 %v415_v24  ;;  %2377 = vmatpush.msrb.mxu3 %v479_v25  ;;  %v343_v31 = vld [vmem:[%s10278_s1 + $0x888] sm:$0xff]  ;;  %v4148_v25 = vld [vmem:[%s10279_s0 + $0x20] sm:$0xff] }
 0x1c4   :  { %2393 = vmatpush.msra.mxu0 %v571_v26  ;;  %2332 = vmatpush.msrb.mxu1 %v347_v27  ;;  %v407_v32 = vld [vmem:[%s10278_s1 + $0xa88] sm:$0xff] }
 0x1c5   :  { %2355 = vmatpush.msrb.mxu2 %v411_v28  ;;  %2378 = vmatpush.msrb.mxu3 %v475_v29  ;;  %v471_v33 = vld [vmem:[%s10278_s1 + $0xc88] sm:$0xff] }
 0x1c6   :  { %v563_v34 = vld [vmem:[%s10278_s1 + $0xf68] sm:$0xff]  ;;  %2394 = vmatpush.msra.mxu0 %v567_v30  ;;  %2333 = vmatpush.msrb.mxu1 %v343_v31 }
 0x1c7   :  { %v4138_v35 = vld [vmem:[%s10279_s0 + $0x8] sm:$0xff]  ;;  %2356 = vmatpush.msrb.mxu2 %v407_v32  ;;  %2379 = vmatpush.msrb.mxu3 %v471_v33 }
 0x1c8   :  { %2269 = vmatmul.f32.vlgmr.msra.gmra.mxu2 %v4138_v35  ;;  %v339_v36 = vld [vmem:[%s10278_s1 + $0x868] sm:$0xff]  ;;  %2395 = vmatpush.msra.mxu0 %v563_v34 }
 0x1c9   :  { %v403_v37 = vld [vmem:[%s10278_s1 + $0xa68] sm:$0xff]  ;;  %2292 = vmatmul.f32.vlgmr.msra.gmra.mxu3 %v4139_v40  ;;  %2334 = vmatpush.msrb.mxu1 %v339_v36 }
 0x1ca   :  { %v467_v38 = vld [vmem:[%s10278_s1 + $0xc68] sm:$0xff]  ;;  %2357 = vmatpush.msrb.mxu2 %v403_v37  ;;  %2246 = vmatmul.f32.vlgmr.msra.gmra.mxu1 %v4140_v45  ;;  %v4149_v37 = vld [vmem:[%s10279_s0 + $0x38] sm:$0xff] }
 0x1cb   :  { %v559_v39 = vld [vmem:[%s10278_s1 + $0xf48] sm:$0xff]  ;;  %2380 = vmatpush.msrb.mxu3 %v467_v38  ;;  %2315 = vmatmul.f32.vlgmr.msrb.gmra.mxu0 %v4143_v63 }
 0x1cc   :  { %v335_v41 = vld [vmem:[%s10278_s1 + $0x848] sm:$0xff]  ;;  %2396 = vmatpush.msra.mxu0 %v559_v39 }
 0x1cd   :  { %v399_v42 = vld [vmem:[%s10278_s1 + $0xa48] sm:$0xff]  ;;  %2335 = vmatpush.msrb.mxu1 %v335_v41 }
 0x1ce   :  { %v463_v43 = vld [vmem:[%s10278_s1 + $0xc48] sm:$0xff]  ;;  %2358 = vmatpush.msrb.mxu2 %v399_v42 }
 0x1cf   :  { %v555_v44 = vld [vmem:[%s10278_s1 + $0xf28] sm:$0xff]  ;;  %2381 = vmatpush.msrb.mxu3 %v463_v43 }
 0x1d0   :  { %v331_v46 = vld [vmem:[%s10278_s1 + $0x828] sm:$0xff]  ;;  %2397 = vmatpush.msra.mxu0 %v555_v44  ;;  %2272 = vmatmul.f32.gmra.mxu2 %v4141_v55 }
 0x1d1   :  { %v395_v47 = vld [vmem:[%s10278_s1 + $0xa28] sm:$0xff]  ;;  %2336 = vmatpush.msrb.mxu1 %v331_v46  ;;  %2295 = vmatmul.f32.gmra.mxu3 %v4142_v62 }
 0x1d2   :  { %v459_v48 = vld [vmem:[%s10278_s1 + $0xc28] sm:$0xff]  ;;  %2359 = vmatpush.msrb.mxu2 %v395_v47 }
 0x1d3   :  { %v551_v49 = vld [vmem:[%s10278_s1 + $0xf08] sm:$0xff]  ;;  %2382 = vmatpush.msrb.mxu3 %v459_v48  ;;  %2318 = vmatmul.f32.gmra.mxu0 %v4146_v18 }
 0x1d4   :  { %v327_v50 = vld [vmem:[%s10278_s1 + $0x808] sm:$0xff]  ;;  %2398 = vmatpush.msra.mxu0 %v551_v49 }
 0x1d5   :  { %v391_v51 = vld [vmem:[%s10278_s1 + $0xa08] sm:$0xff]  ;;  %2337 = vmatpush.msrb.mxu1 %v327_v50 }
 0x1d6   :  { %v455_v52 = vld [vmem:[%s10278_s1 + $0xc08] sm:$0xff]  ;;  %2360 = vmatpush.msrb.mxu2 %v391_v51  ;;  %v4151_v51 = vld [vmem:[%s10279_s0 + $0xf0] sm:$0xff] }
 0x1d7   :  { %v547_v53 = vld [vmem:[%s10278_s1 + $0xee8] sm:$0xff]  ;;  %2383 = vmatpush.msrb.mxu3 %v455_v52 }
 0x1d8   :  { %v643_v54 = vld [vmem:[%s10278_s1 + $0x11e8] sm:$0xff]  ;;  %2399 = vmatpush.msra.mxu0 %v547_v53 }
 0x1d9   :  { %v707_v56 = vld [vmem:[%s10278_s1 + $0x13e8] sm:$0xff]  ;;  %2414 = vmatpush.msra.mxu1 %v643_v54  ;;  %2384 = vmatmul.f32.vlgmr.msrb.gmra.mxu3 %v4147_v19 }
 0x1da   :  { %v771_v57 = vld [vmem:[%s10278_s1 + $0x15e8] sm:$0xff]  ;;  %2437 = vmatpush.msra.mxu2 %v707_v56 }
 0x1db   :  { %v543_v58 = vld [vmem:[%s10278_s1 + $0xec8] sm:$0xff]  ;;  %2460 = vmatpush.msra.mxu3 %v771_v57  ;;  %v4152_v57 = vld [vmem:[%s10279_s0 + $0xf8] sm:$0xff] }
 0x1dc   :  { %v639_v59 = vld [vmem:[%s10278_s1 + $0x11c8] sm:$0xff]  ;;  %2400 = vmatpush.msra.mxu0 %v543_v58 }
 0x1dd   :  { %v703_v60 = vld [vmem:[%s10278_s1 + $0x13c8] sm:$0xff]  ;;  %2415 = vmatpush.msra.mxu1 %v639_v59 }
 0x1de   :  { %v767_v61 = vld [vmem:[%s10278_s1 + $0x15c8] sm:$0xff]  ;;  %2438 = vmatpush.msra.mxu2 %v703_v60 }
 0x1df   :  { %v539_v0 = vld [vmem:[%s10278_s1 + $0xea8] sm:$0xff]  ;;  %2461 = vmatpush.msra.mxu3 %v767_v61 }
 0x1e0   :  { %v635_v1 = vld [vmem:[%s10278_s1 + $0x11a8] sm:$0xff]  ;;  %2401 = vmatpush.msra.mxu0 %v539_v0 }
 0x1e1   :  { %v699_v2 = vld [vmem:[%s10278_s1 + $0x13a8] sm:$0xff]  ;;  %2416 = vmatpush.msra.mxu1 %v635_v1  ;;  %2387 = vmatmul.f32.gmra.mxu3 %v4152_v57 }
 0x1e2   :  { %v763_v3 = vld [vmem:[%s10278_s1 + $0x15a8] sm:$0xff]  ;;  %2439 = vmatpush.msra.mxu2 %v699_v2 }
 0x1e3   :  { %v535_v4 = vld [vmem:[%s10278_s1 + $0xe88] sm:$0xff]  ;;  %2462 = vmatpush.msra.mxu3 %v763_v3 }
 0x1e4   :  { %v4144_v5 = vld [vmem:[%s10279_s0 + $0xc8] sm:$0xff]  ;;  %2402 = vmatpush.msra.mxu0 %v535_v4  ;;  %v4153_v4 = vld [vmem:[%s10279_s0 + $0x40] sm:$0xff] }
 0x1e5   :  { %2249 = vmatmul.f32.gmra.mxu1 %v4144_v5  ;;  %v631_v6 = vld [vmem:[%s10278_s1 + $0x1188] sm:$0xff] }
 0x1e6   :  { %v695_v7 = vld [vmem:[%s10278_s1 + $0x1388] sm:$0xff]  ;;  %2417 = vmatpush.msra.mxu1 %v631_v6 }
 0x1e7   :  { %v759_v8 = vld [vmem:[%s10278_s1 + $0x1588] sm:$0xff]  ;;  %2440 = vmatpush.msra.mxu2 %v695_v7 }
 0x1e8   :  { %v531_v9 = vld [vmem:[%s10278_s1 + $0xe68] sm:$0xff]  ;;  %2463 = vmatpush.msra.mxu3 %v759_v8 }
 0x1e9   :  { %v627_v10 = vld [vmem:[%s10278_s1 + $0x1168] sm:$0xff]  ;;  %2403 = vmatpush.msra.mxu0 %v531_v9 }
 0x1ea   :  { %v691_v11 = vld [vmem:[%s10278_s1 + $0x1368] sm:$0xff]  ;;  %2418 = vmatpush.msra.mxu1 %v627_v10 }
 0x1eb   :  { %v755_v12 = vld [vmem:[%s10278_s1 + $0x1568] sm:$0xff]  ;;  %2441 = vmatpush.msra.mxu2 %v691_v11 }
 0x1ec   :  { %v4145_v13 = vld [vmem:[%s10279_s0 + $0x28] sm:$0xff]  ;;  %2464 = vmatpush.msra.mxu3 %v755_v12 }
 0x1ed   :  { %2361 = vmatmul.f32.vlgmr.msrb.gmra.mxu2 %v4145_v13  ;;  %v527_v14 = vld [vmem:[%s10278_s1 + $0xe48] sm:$0xff]  ;;  %2338 = vmatmul.f32.vlgmr.msrb.gmra.mxu1 %v4148_v25  ;;  %v4155_v13 = vld [vmem:[%s10279_s0 + $0x50] sm:$0xff] }
 0x1ee   :  { %v623_v15 = vld [vmem:[%s10278_s1 + $0x1148] sm:$0xff]  ;;  %2404 = vmatpush.msra.mxu0 %v527_v14  ;;  %v4157_v25 = vld [vmem:[%s10279_s0 + $0x110] sm:$0xff] }
 0x1ef   :  { %v687_v16 = vld [vmem:[%s10278_s1 + $0x1348] sm:$0xff]  ;;  %2419 = vmatpush.msra.mxu1 %v623_v15 }
 0x1f0   :  { %v751_v17 = vld [vmem:[%s10278_s1 + $0x1548] sm:$0xff]  ;;  %2442 = vmatpush.msra.mxu2 %v687_v16 }
 0x1f1   :  { %v523_v20 = vld [vmem:[%s10278_s1 + $0xe28] sm:$0xff]  ;;  %2465 = vmatpush.msra.mxu3 %v751_v17 }
 0x1f2   :  { %v619_v21 = vld [vmem:[%s10278_s1 + $0x1128] sm:$0xff]  ;;  %2405 = vmatpush.msra.mxu0 %v523_v20 }
 0x1f3   :  { %v683_v22 = vld [vmem:[%s10278_s1 + $0x1328] sm:$0xff]  ;;  %2420 = vmatpush.msra.mxu1 %v619_v21 }
 0x1f4   :  { %v747_v23 = vld [vmem:[%s10278_s1 + $0x1528] sm:$0xff]  ;;  %2443 = vmatpush.msra.mxu2 %v683_v22 }
 0x1f5   :  { %v519_v24 = vld [vmem:[%s10278_s1 + $0xe08] sm:$0xff]  ;;  %2466 = vmatpush.msra.mxu3 %v747_v23  ;;  %2364 = vmatmul.f32.gmra.mxu2 %v4151_v51 }
 0x1f6   :  { %v615_v26 = vld [vmem:[%s10278_s1 + $0x1108] sm:$0xff]  ;;  %2406 = vmatpush.msra.mxu0 %v519_v24  ;;  %v4156_v24 = vld [vmem:[%s10279_s0 + $0x100] sm:$0xff] }
 0x1f7   :  { %v679_v27 = vld [vmem:[%s10278_s1 + $0x1308] sm:$0xff]  ;;  %2421 = vmatpush.msra.mxu1 %v615_v26  ;;  %2407 = vmatmul.f32.vlgmr.msra.gmra.mxu0 %v4149_v37 }
 0x1f8   :  { %v743_v28 = vld [vmem:[%s10278_s1 + $0x1508] sm:$0xff]  ;;  %2444 = vmatpush.msra.mxu2 %v679_v27 }
 0x1f9   :  { %v835_v29 = vld [vmem:[%s10278_s1 + $0x17e8] sm:$0xff]  ;;  %2467 = vmatpush.msra.mxu3 %v743_v28 }
 0x1fa   :  { %v611_v30 = vld [vmem:[%s10278_s1 + $0x10e8] sm:$0xff]  ;;  %2483 = vmatpush.msrb.mxu0 %v835_v29 }
 0x1fb   :  { %v675_v31 = vld [vmem:[%s10278_s1 + $0x12e8] sm:$0xff]  ;;  %2422 = vmatpush.msra.mxu1 %v611_v30  ;;  %v4158_v30 = vld [vmem:[%s10279_s0 + $0x118] sm:$0xff] }
 0x1fc   :  { %v739_v32 = vld [vmem:[%s10278_s1 + $0x14e8] sm:$0xff]  ;;  %2445 = vmatpush.msra.mxu2 %v675_v31 }
 0x1fd   :  { %v831_v33 = vld [vmem:[%s10278_s1 + $0x17c8] sm:$0xff]  ;;  %2468 = vmatpush.msra.mxu3 %v739_v32 }
 0x1fe   :  { %v607_v34 = vld [vmem:[%s10278_s1 + $0x10c8] sm:$0xff]  ;;  %2484 = vmatpush.msrb.mxu0 %v831_v33 }
 0x1ff   :  { %v671_v35 = vld [vmem:[%s10278_s1 + $0x12c8] sm:$0xff]  ;;  %2423 = vmatpush.msra.mxu1 %v607_v34  ;;  %2410 = vmatmul.f32.gmra.mxu0 %v4156_v24 }
 0x200   :  { %v735_v36 = vld [vmem:[%s10278_s1 + $0x14c8] sm:$0xff]  ;;  %2446 = vmatpush.msra.mxu2 %v671_v35 }
 0x201   :  { %v827_v38 = vld [vmem:[%s10278_s1 + $0x17a8] sm:$0xff]  ;;  %2469 = vmatpush.msra.mxu3 %v735_v36 }
 0x202   :  { %v603_v39 = vld [vmem:[%s10278_s1 + $0x10a8] sm:$0xff]  ;;  %2485 = vmatpush.msrb.mxu0 %v827_v38 }
 0x203   :  { %v667_v40 = vld [vmem:[%s10278_s1 + $0x12a8] sm:$0xff]  ;;  %2424 = vmatpush.msra.mxu1 %v603_v39 }
 0x204   :  { %v731_v41 = vld [vmem:[%s10278_s1 + $0x14a8] sm:$0xff]  ;;  %2447 = vmatpush.msra.mxu2 %v667_v40 }
 0x205   :  { %v823_v42 = vld [vmem:[%s10278_s1 + $0x1788] sm:$0xff]  ;;  %2470 = vmatpush.msra.mxu3 %v731_v41 }
 0x206   :  { %v599_v43 = vld [vmem:[%s10278_s1 + $0x1088] sm:$0xff]  ;;  %2486 = vmatpush.msrb.mxu0 %v823_v42 }
 0x207   :  { %v663_v44 = vld [vmem:[%s10278_s1 + $0x1288] sm:$0xff]  ;;  %2425 = vmatpush.msra.mxu1 %v599_v43 }
 0x208   :  { %v727_v45 = vld [vmem:[%s10278_s1 + $0x1488] sm:$0xff]  ;;  %2448 = vmatpush.msra.mxu2 %v663_v44 }
 0x209   :  { %v819_v46 = vld [vmem:[%s10278_s1 + $0x1768] sm:$0xff]  ;;  %2471 = vmatpush.msra.mxu3 %v727_v45  ;;  %v4160_v45 = vld [vmem:[%s10279_s0 + $0x58] sm:$0xff] }
 0x20a   :  { %v595_v47 = vld [vmem:[%s10278_s1 + $0x1068] sm:$0xff]  ;;  %2487 = vmatpush.msrb.mxu0 %v819_v46 }
 0x20b   :  { %v659_v48 = vld [vmem:[%s10278_s1 + $0x1268] sm:$0xff]  ;;  %2426 = vmatpush.msra.mxu1 %v595_v47 }
 0x20c   :  { %v723_v49 = vld [vmem:[%s10278_s1 + $0x1468] sm:$0xff]  ;;  %2449 = vmatpush.msra.mxu2 %v659_v48 }
 0x20d   :  { %v4150_v50 = vld [vmem:[%s10279_s0 + $0xe8] sm:$0xff]  ;;  %2472 = vmatpush.msra.mxu3 %v723_v49 }
 0x20e   :  { %2341 = vmatmul.f32.gmra.mxu1 %v4150_v50  ;;  %v815_v52 = vld [vmem:[%s10278_s1 + $0x1748] sm:$0xff] }
 0x20f   :  { %v591_v53 = vld [vmem:[%s10278_s1 + $0x1048] sm:$0xff]  ;;  %2488 = vmatpush.msrb.mxu0 %v815_v52 }
 0x210   :  { %v655_v54 = vld [vmem:[%s10278_s1 + $0x1248] sm:$0xff]  ;;  %2427 = vmatpush.msra.mxu1 %v591_v53 }
 0x211   :  { %v719_v55 = vld [vmem:[%s10278_s1 + $0x1448] sm:$0xff]  ;;  %2450 = vmatpush.msra.mxu2 %v655_v54 }
 0x212   :  { %v811_v56 = vld [vmem:[%s10278_s1 + $0x1728] sm:$0xff]  ;;  %2473 = vmatpush.msra.mxu3 %v719_v55 }
 0x213   :  { %v587_v58 = vld [vmem:[%s10278_s1 + $0x1028] sm:$0xff]  ;;  %2489 = vmatpush.msrb.mxu0 %v811_v56 }
 0x214   :  { %v651_v59 = vld [vmem:[%s10278_s1 + $0x1228] sm:$0xff]  ;;  %2428 = vmatpush.msra.mxu1 %v587_v58 }
 0x215   :  { %v715_v60 = vld [vmem:[%s10278_s1 + $0x1428] sm:$0xff]  ;;  %2451 = vmatpush.msra.mxu2 %v651_v59 }
 0x216   :  { %v807_v61 = vld [vmem:[%s10278_s1 + $0x1708] sm:$0xff]  ;;  %2474 = vmatpush.msra.mxu3 %v715_v60 }
 0x217   :  { %v583_v62 = vld [vmem:[%s10278_s1 + $0x1008] sm:$0xff]  ;;  %2490 = vmatpush.msrb.mxu0 %v807_v61  ;;  %v4161_v61 = vld [vmem:[%s10279_s0 + $0x120] sm:$0xff] }
 0x218   :  { %v647_v63 = vld [vmem:[%s10278_s1 + $0x1208] sm:$0xff]  ;;  %2429 = vmatpush.msra.mxu1 %v583_v62 }
 0x219   :  { %v711_v0 = vld [vmem:[%s10278_s1 + $0x1408] sm:$0xff]  ;;  %2452 = vmatpush.msra.mxu2 %v647_v63  ;;  %2430 = vmatmul.f32.vlgmr.msra.gmra.mxu1 %v4153_v4 }
 0x21a   :  { %v803_v1 = vld [vmem:[%s10278_s1 + $0x16e8] sm:$0xff]  ;;  %2475 = vmatpush.msra.mxu3 %v711_v0 }
 0x21b   :  { %v899_v2 = vld [vmem:[%s10278_s1 + $0x19e8] sm:$0xff]  ;;  %2491 = vmatpush.msrb.mxu0 %v803_v1  ;;  %2476 = vmatmul.f32.vlgmr.msra.gmra.mxu3 %v4155_v13 }
 0x21c   :  { %v963_v3 = vld [vmem:[%s10278_s1 + $0x1be8] sm:$0xff]  ;;  %2506 = vmatpush.msrb.mxu1 %v899_v2 }
 0x21d   :  { %v1027_v5 = vld [vmem:[%s10278_s1 + $0x1de8] sm:$0xff]  ;;  %2529 = vmatpush.msrb.mxu2 %v963_v3 }
 0x21e   :  { %v799_v6 = vld [vmem:[%s10278_s1 + $0x16c8] sm:$0xff]  ;;  %2552 = vmatpush.msrb.mxu3 %v1027_v5 }
 0x21f   :  { %v4154_v7 = vld [vmem:[%s10279_s0 + $0x48] sm:$0xff]  ;;  %2492 = vmatpush.msrb.mxu0 %v799_v6 }
 0x220   :  { %2453 = vmatmul.f32.vlgmr.msra.gmra.mxu2 %v4154_v7  ;;  %v895_v8 = vld [vmem:[%s10278_s1 + $0x19c8] sm:$0xff] }
 0x221   :  { %v959_v9 = vld [vmem:[%s10278_s1 + $0x1bc8] sm:$0xff]  ;;  %2507 = vmatpush.msrb.mxu1 %v895_v8 }
 0x222   :  { %v1023_v10 = vld [vmem:[%s10278_s1 + $0x1dc8] sm:$0xff]  ;;  %2530 = vmatpush.msrb.mxu2 %v959_v9 }
 0x223   :  { %v795_v11 = vld [vmem:[%s10278_s1 + $0x16a8] sm:$0xff]  ;;  %2553 = vmatpush.msrb.mxu3 %v1023_v10 }
 0x224   :  { %v891_v12 = vld [vmem:[%s10278_s1 + $0x19a8] sm:$0xff]  ;;  %2493 = vmatpush.msrb.mxu0 %v795_v11  ;;  %2479 = vmatmul.f32.gmra.mxu3 %v4158_v30 }
 0x225   :  { %v955_v14 = vld [vmem:[%s10278_s1 + $0x1ba8] sm:$0xff]  ;;  %2508 = vmatpush.msrb.mxu1 %v891_v12 }
 0x226   :  { %v1019_v15 = vld [vmem:[%s10278_s1 + $0x1da8] sm:$0xff]  ;;  %2531 = vmatpush.msrb.mxu2 %v955_v14  ;;  %v4162_v14 = vld [vmem:[%s10279_s0 + $0x60] sm:$0xff] }
 0x227   :  { %v791_v16 = vld [vmem:[%s10278_s1 + $0x1688] sm:$0xff]  ;;  %2554 = vmatpush.msrb.mxu3 %v1019_v15 }
 0x228   :  { %v887_v17 = vld [vmem:[%s10278_s1 + $0x1988] sm:$0xff]  ;;  %2494 = vmatpush.msrb.mxu0 %v791_v16  ;;  %2456 = vmatmul.f32.gmra.mxu2 %v4157_v25 }
 0x229   :  { %v951_v18 = vld [vmem:[%s10278_s1 + $0x1b88] sm:$0xff]  ;;  %2509 = vmatpush.msrb.mxu1 %v887_v17 }
 0x22a   :  { %v1015_v19 = vld [vmem:[%s10278_s1 + $0x1d88] sm:$0xff]  ;;  %2532 = vmatpush.msrb.mxu2 %v951_v18 }
 0x22b   :  { %v787_v20 = vld [vmem:[%s10278_s1 + $0x1668] sm:$0xff]  ;;  %2555 = vmatpush.msrb.mxu3 %v1015_v19 }
 0x22c   :  { %v883_v21 = vld [vmem:[%s10278_s1 + $0x1968] sm:$0xff]  ;;  %2495 = vmatpush.msrb.mxu0 %v787_v20 }
 0x22d   :  { %v947_v22 = vld [vmem:[%s10278_s1 + $0x1b68] sm:$0xff]  ;;  %2510 = vmatpush.msrb.mxu1 %v883_v21  ;;  %v4164_v21 = vld [vmem:[%s10279_s0 + $0x70] sm:$0xff] }
 0x22e   :  { %v1011_v23 = vld [vmem:[%s10278_s1 + $0x1d68] sm:$0xff]  ;;  %2533 = vmatpush.msrb.mxu2 %v947_v22 }
 0x22f   :  { %v783_v26 = vld [vmem:[%s10278_s1 + $0x1648] sm:$0xff]  ;;  %2556 = vmatpush.msrb.mxu3 %v1011_v23 }
 0x230   :  { %v879_v27 = vld [vmem:[%s10278_s1 + $0x1948] sm:$0xff]  ;;  %2496 = vmatpush.msrb.mxu0 %v783_v26 }
 0x231   :  { %v943_v28 = vld [vmem:[%s10278_s1 + $0x1b48] sm:$0xff]  ;;  %2511 = vmatpush.msrb.mxu1 %v879_v27 }
 0x232   :  { %v1007_v29 = vld [vmem:[%s10278_s1 + $0x1d48] sm:$0xff]  ;;  %2534 = vmatpush.msrb.mxu2 %v943_v28 }
 0x233   :  { %v779_v31 = vld [vmem:[%s10278_s1 + $0x1628] sm:$0xff]  ;;  %2557 = vmatpush.msrb.mxu3 %v1007_v29 }
 0x234   :  { %v875_v32 = vld [vmem:[%s10278_s1 + $0x1928] sm:$0xff]  ;;  %2497 = vmatpush.msrb.mxu0 %v779_v31 }
 0x235   :  { %v939_v33 = vld [vmem:[%s10278_s1 + $0x1b28] sm:$0xff]  ;;  %2512 = vmatpush.msrb.mxu1 %v875_v32 }
 0x236   :  { %v1003_v34 = vld [vmem:[%s10278_s1 + $0x1d28] sm:$0xff]  ;;  %2535 = vmatpush.msrb.mxu2 %v939_v33 }
 0x237   :  { %v4159_v35 = vld [vmem:[%s10279_s0 + $0x108] sm:$0xff]  ;;  %2558 = vmatpush.msrb.mxu3 %v1003_v34 }
 0x238   :  { %2433 = vmatmul.f32.gmra.mxu1 %v4159_v35  ;;  %v775_v36 = vld [vmem:[%s10278_s1 + $0x1608] sm:$0xff]  ;;  %v4166_v35 = vld [vmem:[%s10279_s0 + $0x130] sm:$0xff] }
 0x239   :  { %v871_v37 = vld [vmem:[%s10278_s1 + $0x1908] sm:$0xff]  ;;  %2498 = vmatpush.msrb.mxu0 %v775_v36 }
 0x23a   :  { %v935_v38 = vld [vmem:[%s10278_s1 + $0x1b08] sm:$0xff]  ;;  %2513 = vmatpush.msrb.mxu1 %v871_v37  ;;  %2499 = vmatmul.f32.vlgmr.msrb.gmra.mxu0 %v4160_v45 }
 0x23b   :  { %v999_v39 = vld [vmem:[%s10278_s1 + $0x1d08] sm:$0xff]  ;;  %2536 = vmatpush.msrb.mxu2 %v935_v38 }
 0x23c   :  { %v867_v40 = vld [vmem:[%s10278_s1 + $0x18e8] sm:$0xff]  ;;  %2559 = vmatpush.msrb.mxu3 %v999_v39 }
 0x23d   :  { %v1091_v41 = vld [vmem:[%s10278_s1 + $0x1fe8] sm:$0xff]  ;;  %2514 = vmatpush.msrb.mxu1 %v867_v40 }
 0x23e   :  { %v931_v42 = vld [vmem:[%s10278_s1 + $0x1ae8] sm:$0xff]  ;;  %2575 = vmatpush.msra.mxu0 %v1091_v41  ;;  %v4167_v41 = vld [vmem:[%s10279_s0 + $0x138] sm:$0xff] }
 0x23f   :  { %v995_v43 = vld [vmem:[%s10278_s1 + $0x1ce8] sm:$0xff]  ;;  %2537 = vmatpush.msrb.mxu2 %v931_v42 }
 0x240   :  { %v863_v44 = vld [vmem:[%s10278_s1 + $0x18c8] sm:$0xff]  ;;  %2560 = vmatpush.msrb.mxu3 %v995_v43 }
 0x241   :  { %v1087_v46 = vld [vmem:[%s10278_s1 + $0x1fc8] sm:$0xff]  ;;  %2515 = vmatpush.msrb.mxu1 %v863_v44 }
 0x242   :  { %v927_v47 = vld [vmem:[%s10278_s1 + $0x1ac8] sm:$0xff]  ;;  %2576 = vmatpush.msra.mxu0 %v1087_v46 }
 0x243   :  { %v991_v48 = vld [vmem:[%s10278_s1 + $0x1cc8] sm:$0xff]  ;;  %2538 = vmatpush.msrb.mxu2 %v927_v47  ;;  %2502 = vmatmul.f32.gmra.mxu0 %v4161_v61 }
 0x244   :  { %v859_v49 = vld [vmem:[%s10278_s1 + $0x18a8] sm:$0xff]  ;;  %2561 = vmatpush.msrb.mxu3 %v991_v48 }
 0x245   :  { %v1083_v50 = vld [vmem:[%s10278_s1 + $0x1fa8] sm:$0xff]  ;;  %2516 = vmatpush.msrb.mxu1 %v859_v49 }
 0x246   :  { %v923_v51 = vld [vmem:[%s10278_s1 + $0x1aa8] sm:$0xff]  ;;  %2577 = vmatpush.msra.mxu0 %v1083_v50 }
 0x247   :  { %v987_v52 = vld [vmem:[%s10278_s1 + $0x1ca8] sm:$0xff]  ;;  %2539 = vmatpush.msrb.mxu2 %v923_v51 }
 0x248   :  { %v855_v53 = vld [vmem:[%s10278_s1 + $0x1888] sm:$0xff]  ;;  %2562 = vmatpush.msrb.mxu3 %v987_v52 }
 0x249   :  { %v1079_v54 = vld [vmem:[%s10278_s1 + $0x1f88] sm:$0xff]  ;;  %2517 = vmatpush.msrb.mxu1 %v855_v53  ;;  %v4168_v53 = vld [vmem:[%s10279_s0 + $0x78] sm:$0xff] }
 0x24a   :  { %v919_v55 = vld [vmem:[%s10278_s1 + $0x1a88] sm:$0xff]  ;;  %2578 = vmatpush.msra.mxu0 %v1079_v54 }
 0x24b   :  { %v983_v56 = vld [vmem:[%s10278_s1 + $0x1c88] sm:$0xff]  ;;  %2540 = vmatpush.msrb.mxu2 %v919_v55 }
 0x24c   :  { %v1075_v57 = vld [vmem:[%s10278_s1 + $0x1f68] sm:$0xff]  ;;  %2563 = vmatpush.msrb.mxu3 %v983_v56 }
 0x24d   :  { %v851_v58 = vld [vmem:[%s10278_s1 + $0x1868] sm:$0xff]  ;;  %2579 = vmatpush.msra.mxu0 %v1075_v57 }
 0x24e   :  { %v915_v59 = vld [vmem:[%s10278_s1 + $0x1a68] sm:$0xff]  ;;  %2518 = vmatpush.msrb.mxu1 %v851_v58 }
 0x24f   :  { %v979_v60 = vld [vmem:[%s10278_s1 + $0x1c68] sm:$0xff]  ;;  %2541 = vmatpush.msrb.mxu2 %v915_v59 }
 0x250   :  { %v1071_v62 = vld [vmem:[%s10278_s1 + $0x1f48] sm:$0xff]  ;;  %2564 = vmatpush.msrb.mxu3 %v979_v60 }
 0x251   :  { %v847_v63 = vld [vmem:[%s10278_s1 + $0x1848] sm:$0xff]  ;;  %2580 = vmatpush.msra.mxu0 %v1071_v62 }
 0x252   :  { %v911_v0 = vld [vmem:[%s10278_s1 + $0x1a48] sm:$0xff]  ;;  %2519 = vmatpush.msrb.mxu1 %v847_v63 }
 0x253   :  { %v975_v1 = vld [vmem:[%s10278_s1 + $0x1c48] sm:$0xff]  ;;  %2542 = vmatpush.msrb.mxu2 %v911_v0 }
 0x254   :  { %v1067_v2 = vld [vmem:[%s10278_s1 + $0x1f28] sm:$0xff]  ;;  %2565 = vmatpush.msrb.mxu3 %v975_v1 }
 0x255   :  { %v843_v3 = vld [vmem:[%s10278_s1 + $0x1828] sm:$0xff]  ;;  %2581 = vmatpush.msra.mxu0 %v1067_v2 }
 0x256   :  { %v907_v4 = vld [vmem:[%s10278_s1 + $0x1a28] sm:$0xff]  ;;  %2520 = vmatpush.msrb.mxu1 %v843_v3 }
 0x257   :  { %v971_v5 = vld [vmem:[%s10278_s1 + $0x1c28] sm:$0xff]  ;;  %2543 = vmatpush.msrb.mxu2 %v907_v4 }
 0x258   :  { %v1063_v6 = vld [vmem:[%s10278_s1 + $0x1f08] sm:$0xff]  ;;  %2566 = vmatpush.msrb.mxu3 %v971_v5  ;;  %v4169_v5 = vld [vmem:[%s10279_s0 + $0x140] sm:$0xff] }
 0x259   :  { %v839_v7 = vld [vmem:[%s10278_s1 + $0x1808] sm:$0xff]  ;;  %2582 = vmatpush.msra.mxu0 %v1063_v6 }
 0x25a   :  { %v903_v8 = vld [vmem:[%s10278_s1 + $0x1a08] sm:$0xff]  ;;  %2521 = vmatpush.msrb.mxu1 %v839_v7 }
 0x25b   :  { %v967_v9 = vld [vmem:[%s10278_s1 + $0x1c08] sm:$0xff]  ;;  %2544 = vmatpush.msrb.mxu2 %v903_v8  ;;  %2522 = vmatmul.f32.vlgmr.msrb.gmra.mxu1 %v4162_v14 }
 0x25c   :  { %v1059_v10 = vld [vmem:[%s10278_s1 + $0x1ee8] sm:$0xff]  ;;  %2567 = vmatpush.msrb.mxu3 %v967_v9 }
 0x25d   :  { %v1155_v11 = vld [vmem:[%s10278_s1 + $0x21e8] sm:$0xff]  ;;  %2583 = vmatpush.msra.mxu0 %v1059_v10  ;;  %2568 = vmatmul.f32.vlgmr.msrb.gmra.mxu3 %v4164_v21 }
 0x25e   :  { %v1219_v12 = vld [vmem:[%s10278_s1 + $0x23e8] sm:$0xff]  ;;  %2598 = vmatpush.msra.mxu1 %v1155_v11 }
 0x25f   :  { %v1283_v13 = vld [vmem:[%s10278_s1 + $0x25e8] sm:$0xff]  ;;  %2621 = vmatpush.msra.mxu2 %v1219_v12 }
 0x260   :  { %v4163_v15 = vld [vmem:[%s10279_s0 + $0x68] sm:$0xff]  ;;  %2644 = vmatpush.msra.mxu3 %v1283_v13 }
 0x261   :  { %2545 = vmatmul.f32.vlgmr.msrb.gmra.mxu2 %v4163_v15  ;;  %v1055_v16 = vld [vmem:[%s10278_s1 + $0x1ec8] sm:$0xff] }
 0x262   :  { %v1151_v17 = vld [vmem:[%s10278_s1 + $0x21c8] sm:$0xff]  ;;  %2584 = vmatpush.msra.mxu0 %v1055_v16 }
 0x263   :  { %v1215_v18 = vld [vmem:[%s10278_s1 + $0x23c8] sm:$0xff]  ;;  %2599 = vmatpush.msra.mxu1 %v1151_v17 }
 0x264   :  { %v1279_v19 = vld [vmem:[%s10278_s1 + $0x25c8] sm:$0xff]  ;;  %2622 = vmatpush.msra.mxu2 %v1215_v18 }
 0x265   :  { %v1051_v20 = vld [vmem:[%s10278_s1 + $0x1ea8] sm:$0xff]  ;;  %2645 = vmatpush.msra.mxu3 %v1279_v19 }
 0x266   :  { %v1147_v22 = vld [vmem:[%s10278_s1 + $0x21a8] sm:$0xff]  ;;  %2585 = vmatpush.msra.mxu0 %v1051_v20  ;;  %2571 = vmatmul.f32.gmra.mxu3 %v4167_v41 }
 0x267   :  { %v1211_v23 = vld [vmem:[%s10278_s1 + $0x23a8] sm:$0xff]  ;;  %2600 = vmatpush.msra.mxu1 %v1147_v22  ;;  %v4170_v22 = vld [vmem:[%s10279_s0 + $0x80] sm:$0xff] }
 0x268   :  { %v1275_v24 = vld [vmem:[%s10278_s1 + $0x25a8] sm:$0xff]  ;;  %2623 = vmatpush.msra.mxu2 %v1211_v23 }
 0x269   :  { %v1047_v25 = vld [vmem:[%s10278_s1 + $0x1e88] sm:$0xff]  ;;  %2646 = vmatpush.msra.mxu3 %v1275_v24  ;;  %2548 = vmatmul.f32.gmra.mxu2 %v4166_v35 }
 0x26a   :  { %v1143_v26 = vld [vmem:[%s10278_s1 + $0x2188] sm:$0xff]  ;;  %2586 = vmatpush.msra.mxu0 %v1047_v25 }
 0x26b   :  { %v1207_v27 = vld [vmem:[%s10278_s1 + $0x2388] sm:$0xff]  ;;  %2601 = vmatpush.msra.mxu1 %v1143_v26 }
 0x26c   :  { %v1271_v28 = vld [vmem:[%s10278_s1 + $0x2588] sm:$0xff]  ;;  %2624 = vmatpush.msra.mxu2 %v1207_v27 }
 0x26d   :  { %v1043_v29 = vld [vmem:[%s10278_s1 + $0x1e68] sm:$0xff]  ;;  %2647 = vmatpush.msra.mxu3 %v1271_v28 }
 0x26e   :  { %v1139_v30 = vld [vmem:[%s10278_s1 + $0x2168] sm:$0xff]  ;;  %2587 = vmatpush.msra.mxu0 %v1043_v29  ;;  %v4172_v29 = vld [vmem:[%s10279_s0 + $0x90] sm:$0xff] }
 0x26f   :  { %v1203_v31 = vld [vmem:[%s10278_s1 + $0x2368] sm:$0xff]  ;;  %2602 = vmatpush.msra.mxu1 %v1139_v30 }
 0x270   :  { %v4165_v32 = vld [vmem:[%s10279_s0 + $0x128] sm:$0xff]  ;;  %2625 = vmatpush.msra.mxu2 %v1203_v31 }
 0x271   :  { %2525 = vmatmul.f32.gmra.mxu1 %v4165_v32  ;;  %v1267_v33 = vld [vmem:[%s10278_s1 + $0x2568] sm:$0xff] }
 0x272   :  { %v1039_v34 = vld [vmem:[%s10278_s1 + $0x1e48] sm:$0xff]  ;;  %2648 = vmatpush.msra.mxu3 %v1267_v33 }
 0x273   :  { %v1135_v36 = vld [vmem:[%s10278_s1 + $0x2148] sm:$0xff]  ;;  %2588 = vmatpush.msra.mxu0 %v1039_v34 }
 0x274   :  { %v1199_v37 = vld [vmem:[%s10278_s1 + $0x2348] sm:$0xff]  ;;  %2603 = vmatpush.msra.mxu1 %v1135_v36 }
 0x275   :  { %v1263_v38 = vld [vmem:[%s10278_s1 + $0x2548] sm:$0xff]  ;;  %2626 = vmatpush.msra.mxu2 %v1199_v37 }
 0x276   :  { %v1035_v39 = vld [vmem:[%s10278_s1 + $0x1e28] sm:$0xff]  ;;  %2649 = vmatpush.msra.mxu3 %v1263_v38 }
 0x277   :  { %v1131_v40 = vld [vmem:[%s10278_s1 + $0x2128] sm:$0xff]  ;;  %2589 = vmatpush.msra.mxu0 %v1035_v39 }
 0x278   :  { %v1195_v42 = vld [vmem:[%s10278_s1 + $0x2328] sm:$0xff]  ;;  %2604 = vmatpush.msra.mxu1 %v1131_v40 }
 0x279   :  { %v1259_v43 = vld [vmem:[%s10278_s1 + $0x2528] sm:$0xff]  ;;  %2627 = vmatpush.msra.mxu2 %v1195_v42 }
 0x27a   :  { %v1031_v44 = vld [vmem:[%s10278_s1 + $0x1e08] sm:$0xff]  ;;  %2650 = vmatpush.msra.mxu3 %v1259_v43  ;;  %v4174_v43 = vld [vmem:[%s10279_s0 + $0x150] sm:$0xff] }
 0x27b   :  { %v1127_v45 = vld [vmem:[%s10278_s1 + $0x2108] sm:$0xff]  ;;  %2590 = vmatpush.msra.mxu0 %v1031_v44 }
 0x27c   :  { %v1191_v46 = vld [vmem:[%s10278_s1 + $0x2308] sm:$0xff]  ;;  %2605 = vmatpush.msra.mxu1 %v1127_v45  ;;  %2591 = vmatmul.f32.vlgmr.msra.gmra.mxu0 %v4168_v53 }
 0x27d   :  { %v1255_v47 = vld [vmem:[%s10278_s1 + $0x2508] sm:$0xff]  ;;  %2628 = vmatpush.msra.mxu2 %v1191_v46 }
 0x27e   :  { %v1123_v48 = vld [vmem:[%s10278_s1 + $0x20e8] sm:$0xff]  ;;  %2651 = vmatpush.msra.mxu3 %v1255_v47 }
 0x27f   :  { %v1347_v49 = vld [vmem:[%s10278_s1 + $0x27e8] sm:$0xff]  ;;  %2606 = vmatpush.msra.mxu1 %v1123_v48 }
 0x280   :  { %v1187_v50 = vld [vmem:[%s10278_s1 + $0x22e8] sm:$0xff]  ;;  %2667 = vmatpush.msrb.mxu0 %v1347_v49  ;;  %v4175_v49 = vld [vmem:[%s10279_s0 + $0x158] sm:$0xff] }
 0x281   :  { %v1251_v51 = vld [vmem:[%s10278_s1 + $0x24e8] sm:$0xff]  ;;  %2629 = vmatpush.msra.mxu2 %v1187_v50 }
 0x282   :  { %v1119_v52 = vld [vmem:[%s10278_s1 + $0x20c8] sm:$0xff]  ;;  %2652 = vmatpush.msra.mxu3 %v1251_v51 }
 0x283   :  { %v1343_v54 = vld [vmem:[%s10278_s1 + $0x27c8] sm:$0xff]  ;;  %2607 = vmatpush.msra.mxu1 %v1119_v52 }
 0x284   :  { %v1183_v55 = vld [vmem:[%s10278_s1 + $0x22c8] sm:$0xff]  ;;  %2668 = vmatpush.msrb.mxu0 %v1343_v54 }
 0x285   :  { %v1247_v56 = vld [vmem:[%s10278_s1 + $0x24c8] sm:$0xff]  ;;  %2630 = vmatpush.msra.mxu2 %v1183_v55  ;;  %2594 = vmatmul.f32.gmra.mxu0 %v4169_v5 }
 0x286   :  { %v1115_v57 = vld [vmem:[%s10278_s1 + $0x20a8] sm:$0xff]  ;;  %2653 = vmatpush.msra.mxu3 %v1247_v56 }
 0x287   :  { %v1339_v58 = vld [vmem:[%s10278_s1 + $0x27a8] sm:$0xff]  ;;  %2608 = vmatpush.msra.mxu1 %v1115_v57 }
 0x288   :  { %v1179_v59 = vld [vmem:[%s10278_s1 + $0x22a8] sm:$0xff]  ;;  %2669 = vmatpush.msrb.mxu0 %v1339_v58 }
 0x289   :  { %v1243_v60 = vld [vmem:[%s10278_s1 + $0x24a8] sm:$0xff]  ;;  %2631 = vmatpush.msra.mxu2 %v1179_v59 }
 0x28a   :  { %v1111_v61 = vld [vmem:[%s10278_s1 + $0x2088] sm:$0xff]  ;;  %2654 = vmatpush.msra.mxu3 %v1243_v60 }
 0x28b   :  { %v1335_v62 = vld [vmem:[%s10278_s1 + $0x2788] sm:$0xff]  ;;  %2609 = vmatpush.msra.mxu1 %v1111_v61  ;;  %v4176_v61 = vld [vmem:[%s10279_s0 + $0x98] sm:$0xff] }
 0x28c   :  { %v1175_v63 = vld [vmem:[%s10278_s1 + $0x2288] sm:$0xff]  ;;  %2670 = vmatpush.msrb.mxu0 %v1335_v62 }
 0x28d   :  { %v1239_v0 = vld [vmem:[%s10278_s1 + $0x2488] sm:$0xff]  ;;  %2632 = vmatpush.msra.mxu2 %v1175_v63 }
 0x28e   :  { %v1331_v1 = vld [vmem:[%s10278_s1 + $0x2768] sm:$0xff]  ;;  %2655 = vmatpush.msra.mxu3 %v1239_v0 }
 0x28f   :  { %v1107_v2 = vld [vmem:[%s10278_s1 + $0x2068] sm:$0xff]  ;;  %2671 = vmatpush.msrb.mxu0 %v1331_v1 }
 0x290   :  { %v1171_v3 = vld [vmem:[%s10278_s1 + $0x2268] sm:$0xff]  ;;  %2610 = vmatpush.msra.mxu1 %v1107_v2 }
 0x291   :  { %v1235_v4 = vld [vmem:[%s10278_s1 + $0x2468] sm:$0xff]  ;;  %2633 = vmatpush.msra.mxu2 %v1171_v3 }
 0x292   :  { %v1327_v6 = vld [vmem:[%s10278_s1 + $0x2748] sm:$0xff]  ;;  %2656 = vmatpush.msra.mxu3 %v1235_v4 }
 0x293   :  { %v1103_v7 = vld [vmem:[%s10278_s1 + $0x2048] sm:$0xff]  ;;  %2672 = vmatpush.msrb.mxu0 %v1327_v6 }
 0x294   :  { %v1167_v8 = vld [vmem:[%s10278_s1 + $0x2248] sm:$0xff]  ;;  %2611 = vmatpush.msra.mxu1 %v1103_v7 }
 0x295   :  { %v1231_v9 = vld [vmem:[%s10278_s1 + $0x2448] sm:$0xff]  ;;  %2634 = vmatpush.msra.mxu2 %v1167_v8 }
 0x296   :  { %v1323_v10 = vld [vmem:[%s10278_s1 + $0x2728] sm:$0xff]  ;;  %2657 = vmatpush.msra.mxu3 %v1231_v9 }
 0x297   :  { %v1099_v11 = vld [vmem:[%s10278_s1 + $0x2028] sm:$0xff]  ;;  %2673 = vmatpush.msrb.mxu0 %v1323_v10 }
 0x298   :  { %v1163_v12 = vld [vmem:[%s10278_s1 + $0x2228] sm:$0xff]  ;;  %2612 = vmatpush.msra.mxu1 %v1099_v11 }
 0x299   :  { %v1227_v13 = vld [vmem:[%s10278_s1 + $0x2428] sm:$0xff]  ;;  %2635 = vmatpush.msra.mxu2 %v1163_v12 }
 0x29a   :  { %v1319_v14 = vld [vmem:[%s10278_s1 + $0x2708] sm:$0xff]  ;;  %2658 = vmatpush.msra.mxu3 %v1227_v13  ;;  %v4177_v13 = vld [vmem:[%s10279_s0 + $0x160] sm:$0xff] }
 0x29b   :  { %v1095_v15 = vld [vmem:[%s10278_s1 + $0x2008] sm:$0xff]  ;;  %2674 = vmatpush.msrb.mxu0 %v1319_v14 }
 0x29c   :  { %v1159_v16 = vld [vmem:[%s10278_s1 + $0x2208] sm:$0xff]  ;;  %2613 = vmatpush.msra.mxu1 %v1095_v15 }
 0x29d   :  { %v1223_v17 = vld [vmem:[%s10278_s1 + $0x2408] sm:$0xff]  ;;  %2636 = vmatpush.msra.mxu2 %v1159_v16  ;;  %2614 = vmatmul.f32.vlgmr.msra.gmra.mxu1 %v4170_v22 }
 0x29e   :  { %v1315_v18 = vld [vmem:[%s10278_s1 + $0x26e8] sm:$0xff]  ;;  %2659 = vmatpush.msra.mxu3 %v1223_v17 }
 0x29f   :  { %v1411_v19 = vld [vmem:[%s10278_s1 + $0x29e8] sm:$0xff]  ;;  %2675 = vmatpush.msrb.mxu0 %v1315_v18  ;;  %2660 = vmatmul.f32.vlgmr.msra.gmra.mxu3 %v4172_v29  ;;  %v196_v29 = vld [vmem:[%s10278_s1 + $0x3f0] sm:$0xff] }
 0x2a0   :  { %v1475_v20 = vld [vmem:[%s10278_s1 + $0x2be8] sm:$0xff]  ;;  %2690 = vmatpush.msrb.mxu1 %v1411_v19 }
 0x2a1   :  { %v1539_v21 = vld [vmem:[%s10278_s1 + $0x2de8] sm:$0xff]  ;;  %2713 = vmatpush.msrb.mxu2 %v1475_v20 }
 0x2a2   :  { %v4171_v23 = vld [vmem:[%s10279_s0 + $0x88] sm:$0xff]  ;;  %2736 = vmatpush.msrb.mxu3 %v1539_v21 }
 0x2a3   :  { %2637 = vmatmul.f32.vlgmr.msra.gmra.mxu2 %v4171_v23  ;;  %v1311_v24 = vld [vmem:[%s10278_s1 + $0x26c8] sm:$0xff] }
 0x2a4   :  { %v1407_v25 = vld [vmem:[%s10278_s1 + $0x29c8] sm:$0xff]  ;;  %2676 = vmatpush.msrb.mxu0 %v1311_v24 }
 0x2a5   :  { %v1471_v26 = vld [vmem:[%s10278_s1 + $0x2bc8] sm:$0xff]  ;;  %2691 = vmatpush.msrb.mxu1 %v1407_v25 }
 0x2a6   :  { %v1535_v27 = vld [vmem:[%s10278_s1 + $0x2dc8] sm:$0xff]  ;;  %2714 = vmatpush.msrb.mxu2 %v1471_v26 }
 0x2a7   :  { %v1307_v28 = vld [vmem:[%s10278_s1 + $0x26a8] sm:$0xff]  ;;  %2737 = vmatpush.msrb.mxu3 %v1535_v27 }
 0x2a8   :  { %v1403_v30 = vld [vmem:[%s10278_s1 + $0x29a8] sm:$0xff]  ;;  %2677 = vmatpush.msrb.mxu0 %v1307_v28  ;;  %2663 = vmatmul.f32.gmra.mxu3 %v4175_v49  ;;  %v132_v28 = vld [vmem:[%s10278_s1 + $0x1f0] sm:$0xff] }
 0x2a9   :  { %v1467_v31 = vld [vmem:[%s10278_s1 + $0x2ba8] sm:$0xff]  ;;  %2692 = vmatpush.msrb.mxu1 %v1403_v30  ;;  %v4178_v30 = vld [vmem:[%s10279_s0 + $0xa0] sm:$0xff]  ;;  %v180_v49 = vld [vmem:[%s10278_s1 + $0x370] sm:$0xff] }
 0x2aa   :  { %v1531_v32 = vld [vmem:[%s10278_s1 + $0x2da8] sm:$0xff]  ;;  %2715 = vmatpush.msrb.mxu2 %v1467_v31 }
 0x2ab   :  { %v1303_v33 = vld [vmem:[%s10278_s1 + $0x2688] sm:$0xff]  ;;  %2738 = vmatpush.msrb.mxu3 %v1531_v32  ;;  %2640 = vmatmul.f32.gmra.mxu2 %v4174_v43  ;;  %v120_v43 = vld [vmem:[%s10278_s1 + $0x190] sm:$0xff] }
 0x2ac   :  { %v1399_v34 = vld [vmem:[%s10278_s1 + $0x2988] sm:$0xff]  ;;  %2678 = vmatpush.msrb.mxu0 %v1303_v33 }
 0x2ad   :  { %v1463_v35 = vld [vmem:[%s10278_s1 + $0x2b88] sm:$0xff]  ;;  %2693 = vmatpush.msrb.mxu1 %v1399_v34  ;;  %v128_v34 = vld [vmem:[%s10278_s1 + $0x1d0] sm:$0xff] }
 0x2ae   :  { %v1527_v36 = vld [vmem:[%s10278_s1 + $0x2d88] sm:$0xff]  ;;  %2716 = vmatpush.msrb.mxu2 %v1463_v35  ;;  %v192_v35 = vld [vmem:[%s10278_s1 + $0x3d0] sm:$0xff] }
 0x2af   :  { %v1299_v37 = vld [vmem:[%s10278_s1 + $0x2668] sm:$0xff]  ;;  %2739 = vmatpush.msrb.mxu3 %v1527_v36 }
 0x2b0   :  { %v1395_v38 = vld [vmem:[%s10278_s1 + $0x2968] sm:$0xff]  ;;  %2679 = vmatpush.msrb.mxu0 %v1299_v37  ;;  %v4180_v37 = vld [vmem:[%s10279_s0 + $0xb0] sm:$0xff] }
 0x2b1   :  { %v1459_v39 = vld [vmem:[%s10278_s1 + $0x2b68] sm:$0xff]  ;;  %2694 = vmatpush.msrb.mxu1 %v1395_v38 }
 0x2b2   :  { %v4173_v40 = vld [vmem:[%s10279_s0 + $0x148] sm:$0xff]  ;;  %2717 = vmatpush.msrb.mxu2 %v1459_v39  ;;  %v124_v39 = vld [vmem:[%s10278_s1 + $0x1b0] sm:$0xff] }
 0x2b3   :  { %2617 = vmatmul.f32.gmra.mxu1 %v4173_v40  ;;  %v1523_v41 = vld [vmem:[%s10278_s1 + $0x2d68] sm:$0xff]  ;;  %v188_v40 = vld [vmem:[%s10278_s1 + $0x3b0] sm:$0xff] }
 0x2b4   :  { %v1295_v42 = vld [vmem:[%s10278_s1 + $0x2648] sm:$0xff]  ;;  %2740 = vmatpush.msrb.mxu3 %v1523_v41 }
 0x2b5   :  { %v1391_v44 = vld [vmem:[%s10278_s1 + $0x2948] sm:$0xff]  ;;  %2680 = vmatpush.msrb.mxu0 %v1295_v42 }
 0x2b6   :  { %v1455_v45 = vld [vmem:[%s10278_s1 + $0x2b48] sm:$0xff]  ;;  %2695 = vmatpush.msrb.mxu1 %v1391_v44  ;;  %v184_v44 = vld [vmem:[%s10278_s1 + $0x390] sm:$0xff] }
 0x2b7   :  { %v1519_v46 = vld [vmem:[%s10278_s1 + $0x2d48] sm:$0xff]  ;;  %2718 = vmatpush.msrb.mxu2 %v1455_v45 }
 0x2b8   :  { %v1291_v47 = vld [vmem:[%s10278_s1 + $0x2628] sm:$0xff]  ;;  %2741 = vmatpush.msrb.mxu3 %v1519_v46 }
 0x2b9   :  { %v1387_v48 = vld [vmem:[%s10278_s1 + $0x2928] sm:$0xff]  ;;  %2681 = vmatpush.msrb.mxu0 %v1291_v47  ;;  %v116_v47 = vld [vmem:[%s10278_s1 + $0x170] sm:$0xff] }
 0x2ba   :  { %v1451_v50 = vld [vmem:[%s10278_s1 + $0x2b28] sm:$0xff]  ;;  %2696 = vmatpush.msrb.mxu1 %v1387_v48 }
 0x2bb   :  { %v1515_v51 = vld [vmem:[%s10278_s1 + $0x2d28] sm:$0xff]  ;;  %2719 = vmatpush.msrb.mxu2 %v1451_v50 }
 0x2bc   :  { %v1287_v52 = vld [vmem:[%s10278_s1 + $0x2608] sm:$0xff]  ;;  %2742 = vmatpush.msrb.mxu3 %v1515_v51  ;;  %v4182_v51 = vld [vmem:[%s10279_s0 + $0x170] sm:$0xff] }
 0x2bd   :  { %v1383_v53 = vld [vmem:[%s10278_s1 + $0x2908] sm:$0xff]  ;;  %2682 = vmatpush.msrb.mxu0 %v1287_v52 }
 0x2be   :  { %v1447_v54 = vld [vmem:[%s10278_s1 + $0x2b08] sm:$0xff]  ;;  %2697 = vmatpush.msrb.mxu1 %v1383_v53  ;;  %2683 = vmatmul.f32.vlgmr.msrb.gmra.mxu0 %v4176_v61  ;;  %v112_v53 = vld [vmem:[%s10278_s1 + $0x150] sm:$0xff] }
 0x2bf   :  { %v1511_v55 = vld [vmem:[%s10278_s1 + $0x2d08] sm:$0xff]  ;;  %2720 = vmatpush.msrb.mxu2 %v1447_v54  ;;  %v176_v54 = vld [vmem:[%s10278_s1 + $0x350] sm:$0xff] }
 0x2c0   :  { %v1379_v56 = vld [vmem:[%s10278_s1 + $0x28e8] sm:$0xff]  ;;  %2743 = vmatpush.msrb.mxu3 %v1511_v55 }
 0x2c1   :  { %v1603_v57 = vld [vmem:[%s10278_s1 + $0x2fe8] sm:$0xff]  ;;  %2698 = vmatpush.msrb.mxu1 %v1379_v56 }
 0x2c2   :  { %v1443_v58 = vld [vmem:[%s10278_s1 + $0x2ae8] sm:$0xff]  ;;  %2759 = vmatpush.msra.mxu0 %v1603_v57  ;;  %v4183_v57 = vld [vmem:[%s10279_s0 + $0x178] sm:$0xff] }
 0x2c3   :  { %v1507_v59 = vld [vmem:[%s10278_s1 + $0x2ce8] sm:$0xff]  ;;  %2721 = vmatpush.msrb.mxu2 %v1443_v58  ;;  %v108_v58 = vld [vmem:[%s10278_s1 + $0x130] sm:$0xff] }
 0x2c4   :  { %v1375_v60 = vld [vmem:[%s10278_s1 + $0x28c8] sm:$0xff]  ;;  %2744 = vmatpush.msrb.mxu3 %v1507_v59  ;;  %v172_v59 = vld [vmem:[%s10278_s1 + $0x330] sm:$0xff] }
 0x2c5   :  { %v1599_v62 = vld [vmem:[%s10278_s1 + $0x2fc8] sm:$0xff]  ;;  %2699 = vmatpush.msrb.mxu1 %v1375_v60 }
 0x2c6   :  { %v1439_v63 = vld [vmem:[%s10278_s1 + $0x2ac8] sm:$0xff]  ;;  %2760 = vmatpush.msra.mxu0 %v1599_v62  ;;  %v104_v62 = vld [vmem:[%s10278_s1 + $0x110] sm:$0xff] }
 0x2c7   :  { %v1503_v0 = vld [vmem:[%s10278_s1 + $0x2cc8] sm:$0xff]  ;;  %2722 = vmatpush.msrb.mxu2 %v1439_v63  ;;  %2686 = vmatmul.f32.gmra.mxu0 %v4177_v13  ;;  %v168_v63 = vld [vmem:[%s10278_s1 + $0x310] sm:$0xff] }
 0x2c8   :  { %v1371_v1 = vld [vmem:[%s10278_s1 + $0x28a8] sm:$0xff]  ;;  %2745 = vmatpush.msrb.mxu3 %v1503_v0  ;;  %v324_v0 = vld [vmem:[%s10278_s1 + $0x7f0] sm:$0xff] }
 0x2c9   :  { %v1595_v2 = vld [vmem:[%s10278_s1 + $0x2fa8] sm:$0xff]  ;;  %2700 = vmatpush.msrb.mxu1 %v1371_v1  ;;  %v260_v1 = vld [vmem:[%s10278_s1 + $0x5f0] sm:$0xff] }
 0x2ca   :  { %v1435_v3 = vld [vmem:[%s10278_s1 + $0x2aa8] sm:$0xff]  ;;  %2761 = vmatpush.msra.mxu0 %v1595_v2  ;;  %v100_v2 = vld [vmem:[%s10278_s1 + $0xf0] sm:$0xff] }
 0x2cb   :  { %v1499_v4 = vld [vmem:[%s10278_s1 + $0x2ca8] sm:$0xff]  ;;  %2723 = vmatpush.msrb.mxu2 %v1435_v3  ;;  %v7018_v3 = vpop.f32.mrf.mxu0  ;;  %v316_v13 = vld [vmem:[%s10278_s1 + $0x7b0] sm:$0xff] }
 0x2cc   :  { %v1367_v5 = vld [vmem:[%s10278_s1 + $0x2888] sm:$0xff]  ;;  %2746 = vmatpush.msrb.mxu3 %v1499_v4  ;;  %v164_v4 = vld [vmem:[%s10278_s1 + $0x2f0] sm:$0xff] }
 0x2cd   :  { %v1591_v6 = vld [vmem:[%s10278_s1 + $0x2f88] sm:$0xff]  ;;  %2701 = vmatpush.msrb.mxu1 %v1367_v5  ;;  %v4184_v5 = vld [vmem:[%s10279_s0 + $0xb8] sm:$0xff] }
 0x2ce   :  { %v1431_v7 = vld [vmem:[%s10278_s1 + $0x2a88] sm:$0xff]  ;;  %2762 = vmatpush.msra.mxu0 %v1591_v6  ;;  %v256_v6 = vld [vmem:[%s10278_s1 + $0x5d0] sm:$0xff] }
 0x2cf   :  { %v1495_v8 = vld [vmem:[%s10278_s1 + $0x2c88] sm:$0xff]  ;;  %2724 = vmatpush.msrb.mxu2 %v1431_v7  ;;  %v320_v7 = vld [vmem:[%s10278_s1 + $0x7d0] sm:$0xff] }
 0x2d0   :  { %v1587_v9 = vld [vmem:[%s10278_s1 + $0x2f68] sm:$0xff]  ;;  %2747 = vmatpush.msrb.mxu3 %v1495_v8  ;;  %v7032_v8 = vpop.f32.mrf.mxu1 }
 0x2d1   :  { %v1363_v10 = vld [vmem:[%s10278_s1 + $0x2868] sm:$0xff]  ;;  %2763 = vmatpush.msra.mxu0 %v1587_v9  ;;  %v96_v9 = vld [vmem:[%s10278_s1 + $0xd0] sm:$0xff] }
 0x2d2   :  { %v1427_v11 = vld [vmem:[%s10278_s1 + $0x2a68] sm:$0xff]  ;;  %2702 = vmatpush.msrb.mxu1 %v1363_v10  ;;  %v160_v10 = vld [vmem:[%s10278_s1 + $0x2d0] sm:$0xff] }
 0x2d3   :  { %v1491_v12 = vld [vmem:[%s10278_s1 + $0x2c68] sm:$0xff]  ;;  %2725 = vmatpush.msrb.mxu2 %v1427_v11  ;;  %v4185_v11 = vld [vmem:[%s10279_s0 + $0xc0] sm:$0xff] }
 0x2d4   :  { %v1583_v14 = vld [vmem:[%s10278_s1 + $0x2f48] sm:$0xff]  ;;  %2748 = vmatpush.msrb.mxu3 %v1491_v12  ;;  %v252_v12 = vld [vmem:[%s10278_s1 + $0x5b0] sm:$0xff] }
 0x2d5   :  { %v1359_v15 = vld [vmem:[%s10278_s1 + $0x2848] sm:$0xff]  ;;  %2764 = vmatpush.msra.mxu0 %v1583_v14  ;;  %v92_v14 = vld [vmem:[%s10278_s1 + $0xb0] sm:$0xff] }
 0x2d6   :  { %v1423_v16 = vld [vmem:[%s10278_s1 + $0x2a48] sm:$0xff]  ;;  %2703 = vmatpush.msrb.mxu1 %v1359_v15  ;;  %v156_v15 = vld [vmem:[%s10278_s1 + $0x2b0] sm:$0xff] }
 0x2d7   :  { %v1487_v17 = vld [vmem:[%s10278_s1 + $0x2c48] sm:$0xff]  ;;  %2726 = vmatpush.msrb.mxu2 %v1423_v16  ;;  %v248_v16 = vld [vmem:[%s10278_s1 + $0x590] sm:$0xff] }
 0x2d8   :  { %v1579_v18 = vld [vmem:[%s10278_s1 + $0x2f28] sm:$0xff]  ;;  %2749 = vmatpush.msrb.mxu3 %v1487_v17  ;;  %v312_v17 = vld [vmem:[%s10278_s1 + $0x790] sm:$0xff] }
 0x2d9   :  { %v1355_v19 = vld [vmem:[%s10278_s1 + $0x2828] sm:$0xff]  ;;  %2765 = vmatpush.msra.mxu0 %v1579_v18  ;;  %v88_v18 = vld [vmem:[%s10278_s1 + $0x90] sm:$0xff] }
 0x2da   :  { %v1419_v20 = vld [vmem:[%s10278_s1 + $0x2a28] sm:$0xff]  ;;  %2704 = vmatpush.msrb.mxu1 %v1355_v19  ;;  %v152_v19 = vld [vmem:[%s10278_s1 + $0x290] sm:$0xff] }
 0x2db   :  { %v1483_v21 = vld [vmem:[%s10278_s1 + $0x2c28] sm:$0xff]  ;;  %2727 = vmatpush.msrb.mxu2 %v1419_v20  ;;  %v308_v20 = vld [vmem:[%s10278_s1 + $0x770] sm:$0xff] }
 0x2dc   :  { %v1575_v22 = vld [vmem:[%s10278_s1 + $0x2f08] sm:$0xff]  ;;  %2750 = vmatpush.msrb.mxu3 %v1483_v21  ;;  %v244_v21 = vld [vmem:[%s10278_s1 + $0x570] sm:$0xff] }
 0x2dd   :  { %v1351_v23 = vld [vmem:[%s10278_s1 + $0x2808] sm:$0xff]  ;;  %2766 = vmatpush.msra.mxu0 %v1575_v22  ;;  %v84_v22 = vld [vmem:[%s10278_s1 + $0x70] sm:$0xff] }
 0x2de   :  { %v1415_v24 = vld [vmem:[%s10278_s1 + $0x2a08] sm:$0xff]  ;;  %2705 = vmatpush.msrb.mxu1 %v1351_v23  ;;  %v148_v23 = vld [vmem:[%s10278_s1 + $0x270] sm:$0xff] }
 0x2df   :  { %v1479_v25 = vld [vmem:[%s10278_s1 + $0x2c08] sm:$0xff]  ;;  %2728 = vmatpush.msrb.mxu2 %v1415_v24  ;;  %2706 = vmatmul.f32.vlgmr.msrb.gmra.mxu1 %v4178_v30  ;;  %v7080_v24 = vpop.f32.mrf.mxu0  ;;  %v7097_v30 = vpop.f32.mrf.mxu1 }
 0x2e0   :  { %v1571_v26 = vld [vmem:[%s10278_s1 + $0x2ee8] sm:$0xff]  ;;  %2751 = vmatpush.msrb.mxu3 %v1479_v25  ;;  %v4186_v25 = vld [vmem:[%s10279_s0 + $0x180] sm:$0xff] }
 0x2e1   :  { %v1635_v27 = vld [vmem:[%s10278_s1 + $0x30e8] sm:$0xff]  ;;  %2767 = vmatpush.msra.mxu0 %v1571_v26  ;;  %2805 = vmatpush.msra.mxu2 %v132_v28  ;;  %v240_v26 = vld [vmem:[%s10278_s1 + $0x550] sm:$0xff] }
 0x2e2   :  { %v4179_v31 = vld [vmem:[%s10279_s0 + $0xa8] sm:$0xff]  ;;  %2790 = vmatpush.msra.mxu1 %v1635_v27  ;;  %2828 = vmatpush.msra.mxu3 %v196_v29  ;;  %v304_v27 = vld [vmem:[%s10278_s1 + $0x750] sm:$0xff] }
 0x2e3   :  { %2729 = vmatmul.f32.vlgmr.msrb.gmra.mxu2 %v4179_v31  ;;  %v1567_v32 = vld [vmem:[%s10278_s1 + $0x2ec8] sm:$0xff]  ;;  %2752 = vmatmul.f32.vlgmr.msrb.gmra.mxu3 %v4180_v37  ;;  %v80_v28 = vld [vmem:[%s10278_s1 + $0x50] sm:$0xff] }
 0x2e4   :  { %v1631_v33 = vld [vmem:[%s10278_s1 + $0x30c8] sm:$0xff]  ;;  %2768 = vmatpush.msra.mxu0 %v1567_v32  ;;  %2806 = vmatpush.msra.mxu2 %v128_v34  ;;  %v144_v29 = vld [vmem:[%s10278_s1 + $0x250] sm:$0xff] }
 0x2e5   :  { %v1563_v36 = vld [vmem:[%s10278_s1 + $0x2ea8] sm:$0xff]  ;;  %2791 = vmatpush.msra.mxu1 %v1631_v33  ;;  %2829 = vmatpush.msra.mxu3 %v192_v35  ;;  %v236_v32 = vld [vmem:[%s10278_s1 + $0x530] sm:$0xff] }
 0x2e6   :  { %v1627_v38 = vld [vmem:[%s10278_s1 + $0x30a8] sm:$0xff]  ;;  %2769 = vmatpush.msra.mxu0 %v1563_v36  ;;  %2807 = vmatpush.msra.mxu2 %v124_v39  ;;  %v300_v33 = vld [vmem:[%s10278_s1 + $0x730] sm:$0xff] }
 0x2e7   :  { %v1559_v41 = vld [vmem:[%s10278_s1 + $0x2e88] sm:$0xff]  ;;  %2792 = vmatpush.msra.mxu1 %v1627_v38  ;;  %2830 = vmatpush.msra.mxu3 %v188_v40  ;;  %v76_v34 = vld [vmem:[%s10278_s1 + $0x30] sm:$0xff] }
 0x2e8   :  { %v1623_v42 = vld [vmem:[%s10278_s1 + $0x3088] sm:$0xff]  ;;  %2770 = vmatpush.msra.mxu0 %v1559_v41  ;;  %2808 = vmatpush.msra.mxu2 %v120_v43  ;;  %v140_v35 = vld [vmem:[%s10278_s1 + $0x230] sm:$0xff] }
 0x2e9   :  { %v1555_v45 = vld [vmem:[%s10278_s1 + $0x2e68] sm:$0xff]  ;;  %2793 = vmatpush.msra.mxu1 %v1623_v42  ;;  %2831 = vmatpush.msra.mxu3 %v184_v44  ;;  %v232_v36 = vld [vmem:[%s10278_s1 + $0x510] sm:$0xff] }
 0x2ea   :  { %v1619_v46 = vld [vmem:[%s10278_s1 + $0x3068] sm:$0xff]  ;;  %2771 = vmatpush.msra.mxu0 %v1555_v45  ;;  %2809 = vmatpush.msra.mxu2 %v116_v47  ;;  %v296_v37 = vld [vmem:[%s10278_s1 + $0x710] sm:$0xff] }
 0x2eb   :  { %v4181_v48 = vld [vmem:[%s10279_s0 + $0x168] sm:$0xff]  ;;  %2732 = vmatmul.f32.gmra.mxu2 %v4182_v51  ;;  %2794 = vmatpush.msra.mxu1 %v1619_v46  ;;  %v72_v38 = vld [vmem:[%s10278_s1 + $0x10] sm:$0xff] }
 0x2ec   :  { %2709 = vmatmul.f32.gmra.mxu1 %v4181_v48  ;;  %v1551_v50 = vld [vmem:[%s10278_s1 + $0x2e48] sm:$0xff]  ;;  %2832 = vmatpush.msra.mxu3 %v180_v49  ;;  %v136_v39 = vld [vmem:[%s10278_s1 + $0x210] sm:$0xff] }
 0x2ed   :  { %v1615_v52 = vld [vmem:[%s10278_s1 + $0x3048] sm:$0xff]  ;;  %2772 = vmatpush.msra.mxu0 %v1551_v50  ;;  %2755 = vmatmul.f32.gmra.mxu3 %v4183_v57  ;;  %v228_v40 = vld [vmem:[%s10278_s1 + $0x4f0] sm:$0xff] }
 0x2ee   :  { %v1547_v55 = vld [vmem:[%s10278_s1 + $0x2e28] sm:$0xff]  ;;  %2795 = vmatpush.msra.mxu1 %v1615_v52  ;;  %2810 = vmatpush.msra.mxu2 %v112_v53  ;;  %v292_v41 = vld [vmem:[%s10278_s1 + $0x6f0] sm:$0xff] }
 0x2ef   :  { %v1611_v56 = vld [vmem:[%s10278_s1 + $0x3028] sm:$0xff]  ;;  %2833 = vmatpush.msra.mxu3 %v176_v54  ;;  %2773 = vmatpush.msra.mxu0 %v1547_v55  ;;  %v388_v42 = vld [vmem:[%s10278_s1 + $0x9f0] sm:$0xff] }
 0x2f0   :  { %v1543_v60 = vld [vmem:[%s10278_s1 + $0x2e08] sm:$0xff]  ;;  %2796 = vmatpush.msra.mxu1 %v1611_v56  ;;  %2811 = vmatpush.msra.mxu2 %v108_v58  ;;  %v452_v43 = vld [vmem:[%s10278_s1 + $0xbf0] sm:$0xff] }
 0x2f1   :  { %v1607_v61 = vld [vmem:[%s10278_s1 + $0x3008] sm:$0xff]  ;;  %2834 = vmatpush.msra.mxu3 %v172_v59  ;;  %2774 = vmatpush.msra.mxu0 %v1543_v60  ;;  %v224_v44 = vld [vmem:[%s10278_s1 + $0x4d0] sm:$0xff] }
 0x2f2   :  { %2797 = vmatpush.msra.mxu1 %v1607_v61  ;;  %2812 = vmatpush.msra.mxu2 %v104_v62  ;;  %v4187_v31 = vld [vmem:[%s10279_s0 + $0x188] sm:$0xff]  ;;  %v288_v45 = vld [vmem:[%s10278_s1 + $0x6d0] sm:$0xff] }
 0x2f3   :  { %2835 = vmatpush.msra.mxu3 %v168_v63  ;;  %2775 = vmatmul.f32.vlgmr.msra.gmra.mxu0 %v4184_v5  ;;  %v384_v46 = vld [vmem:[%s10278_s1 + $0x9d0] sm:$0xff] }
 0x2f4   :  { %2874 = vmatpush.msrb.mxu1 %v324_v0  ;;  %2851 = vmatpush.msrb.mxu0 %v260_v1  ;;  %v448_v47 = vld [vmem:[%s10278_s1 + $0xbd0] sm:$0xff] }
 0x2f5   :  { %2813 = vmatpush.msra.mxu2 %v100_v2  ;;  %2836 = vmatpush.msra.mxu3 %v164_v4  ;;  %v220_v48 = vld [vmem:[%s10278_s1 + $0x4b0] sm:$0xff] }
 0x2f6   :  { %4131 = vmatmul.msk.f32.vlgmr.msra.gmra.mxu1 %vm1648_vm0, %v4185_v11  ;;  %2852 = vmatpush.msrb.mxu0 %v256_v6  ;;  %v284_v49 = vld [vmem:[%s10278_s1 + $0x6b0] sm:$0xff] }
 0x2f7   :  { %2875 = vmatpush.msrb.mxu1 %v320_v7  ;;  %2814 = vmatpush.msra.mxu2 %v96_v9  ;;  %v380_v50 = vld [vmem:[%s10278_s1 + $0x9b0] sm:$0xff] }
 0x2f8   :  { %2837 = vmatpush.msra.mxu3 %v160_v10  ;;  %2853 = vmatpush.msrb.mxu0 %v252_v12  ;;  %v444_v51 = vld [vmem:[%s10278_s1 + $0xbb0] sm:$0xff] }
 0x2f9   :  { %2876 = vmatpush.msrb.mxu1 %v316_v13  ;;  %2815 = vmatpush.msra.mxu2 %v92_v14  ;;  %v216_v52 = vld [vmem:[%s10278_s1 + $0x490] sm:$0xff] }
 0x2fa   :  { %2838 = vmatpush.msra.mxu3 %v156_v15  ;;  %2854 = vmatpush.msrb.mxu0 %v248_v16  ;;  %v280_v53 = vld [vmem:[%s10278_s1 + $0x690] sm:$0xff] }
 0x2fb   :  { %2877 = vmatpush.msrb.mxu1 %v312_v17  ;;  %2816 = vmatpush.msra.mxu2 %v88_v18  ;;  %v376_v54 = vld [vmem:[%s10278_s1 + $0x990] sm:$0xff] }
 0x2fc   :  { %2839 = vmatpush.msra.mxu3 %v152_v19  ;;  %2778 = vmatmul.f32.gmra.mxu0 %v4186_v25  ;;  %v440_v55 = vld [vmem:[%s10278_s1 + $0xb90] sm:$0xff] }
 0x2fd   :  { %2878 = vmatpush.msrb.mxu1 %v308_v20  ;;  %2855 = vmatpush.msrb.mxu0 %v244_v21  ;;  %v212_v56 = vld [vmem:[%s10278_s1 + $0x470] sm:$0xff] }
 0x2fe   :  { %2817 = vmatpush.msra.mxu2 %v84_v22  ;;  %2840 = vmatpush.msra.mxu3 %v148_v23  ;;  %v276_v57 = vld [vmem:[%s10278_s1 + $0x670] sm:$0xff] }
 0x2ff   :  { %4132 = vmatmul.msk.f32.gmra.mxu1 %vm1648_vm0, %v4187_v31  ;;  %2856 = vmatpush.msrb.mxu0 %v240_v26  ;;  %v372_v58 = vld [vmem:[%s10278_s1 + $0x970] sm:$0xff]  ;;  %v4188_v31 = vld [vmem:[%s10279_s0] sm:$0xff] }
 0x300   :  { %2879 = vmatpush.msrb.mxu1 %v304_v27  ;;  %2818 = vmatpush.msra.mxu2 %v80_v28  ;;  %v436_v59 = vld [vmem:[%s10278_s1 + $0xb70] sm:$0xff]  ;;  %v7274_v28 = vpop.f32.mrf.mxu2 }
 0x301   :  { %2841 = vmatpush.msra.mxu3 %v144_v29  ;;  %2857 = vmatpush.msrb.mxu0 %v236_v32  ;;  %v208_v60 = vld [vmem:[%s10278_s1 + $0x450] sm:$0xff] }
 0x302   :  { %2880 = vmatpush.msrb.mxu1 %v300_v33  ;;  %2819 = vmatpush.msra.mxu2 %v76_v34  ;;  %v272_v61 = vld [vmem:[%s10278_s1 + $0x650] sm:$0xff] }
 0x303   :  { %2842 = vmatpush.msra.mxu3 %v140_v35  ;;  %2858 = vmatpush.msrb.mxu0 %v232_v36  ;;  %v368_v62 = vld [vmem:[%s10278_s1 + $0x950] sm:$0xff]  ;;  %v7294_v36 = vpop.f32.mrf.mxu3 }
 0x304   :  { %2881 = vmatpush.msrb.mxu1 %v296_v37  ;;  %2820 = vmatpush.msra.mxu2 %v72_v38  ;;  %v432_v63 = vld [vmem:[%s10278_s1 + $0xb50] sm:$0xff]  ;;  %v4189_v37 = vld [vmem:[%s10279_s0 + $0x8] sm:$0xff] }
 0x305   :  { %2843 = vmatpush.msra.mxu3 %v136_v39  ;;  %2859 = vmatpush.msrb.mxu0 %v228_v40  ;;  %v204_v0 = vld [vmem:[%s10278_s1 + $0x430] sm:$0xff] }
 0x306   :  { %2882 = vmatpush.msrb.mxu1 %v292_v41  ;;  %2897 = vmatpush.msrb.mxu2 %v388_v42  ;;  %v268_v1 = vld [vmem:[%s10278_s1 + $0x630] sm:$0xff] }
 0x307   :  { %2920 = vmatpush.msrb.mxu3 %v452_v43  ;;  %2860 = vmatpush.msrb.mxu0 %v224_v44  ;;  %v364_v2 = vld [vmem:[%s10278_s1 + $0x930] sm:$0xff] }
 0x308   :  { %2883 = vmatpush.msrb.mxu1 %v288_v45  ;;  %2898 = vmatpush.msrb.mxu2 %v384_v46  ;;  %v428_v4 = vld [vmem:[%s10278_s1 + $0xb30] sm:$0xff] }
 0x309   :  { %2921 = vmatpush.msrb.mxu3 %v448_v47  ;;  %2861 = vmatpush.msrb.mxu0 %v220_v48  ;;  %v200_v5 = vld [vmem:[%s10278_s1 + $0x410] sm:$0xff] }
 0x30a   :  { %2884 = vmatpush.msrb.mxu1 %v284_v49  ;;  %2899 = vmatpush.msrb.mxu2 %v380_v50  ;;  %v264_v6 = vld [vmem:[%s10278_s1 + $0x610] sm:$0xff] }
 0x30b   :  { %2922 = vmatpush.msrb.mxu3 %v444_v51  ;;  %2862 = vmatpush.msrb.mxu0 %v216_v52  ;;  %v360_v7 = vld [vmem:[%s10278_s1 + $0x910] sm:$0xff]  ;;  %v7338_v51 = vpop.f32.mrf.mxu2  ;;  %v4190_v52 = vld [vmem:[%s10279_s0 + $0xc8] sm:$0xff] }
 0x30c   :  { %2885 = vmatpush.msrb.mxu1 %v280_v53  ;;  %2900 = vmatpush.msrb.mxu2 %v376_v54  ;;  %v424_v9 = vld [vmem:[%s10278_s1 + $0xb10] sm:$0xff] }
 0x30d   :  { %2923 = vmatpush.msrb.mxu3 %v440_v55  ;;  %2863 = vmatpush.msrb.mxu0 %v212_v56  ;;  %v516_v10 = vld [vmem:[%s10278_s1 + $0xdf0] sm:$0xff] }
 0x30e   :  { %2886 = vmatpush.msrb.mxu1 %v276_v57  ;;  %2901 = vmatpush.msrb.mxu2 %v372_v58  ;;  %v580_v11 = vld [vmem:[%s10278_s1 + $0xff0] sm:$0xff]  ;;  %v7355_v57 = vpop.f32.mrf.mxu0 }
 0x30f   :  { %2924 = vmatpush.msrb.mxu3 %v436_v59  ;;  %2864 = vmatpush.msrb.mxu0 %v208_v60  ;;  %v356_v12 = vld [vmem:[%s10278_s1 + $0x8f0] sm:$0xff]  ;;  %v7363_v60 = vpop.f32.mrf.mxu3 }
 0x310   :  { %2887 = vmatpush.msrb.mxu1 %v272_v61  ;;  %2902 = vmatpush.msrb.mxu2 %v368_v62  ;;  %v420_v13 = vld [vmem:[%s10278_s1 + $0xaf0] sm:$0xff] }
 0x311   :  { %2925 = vmatpush.msrb.mxu3 %v432_v63  ;;  %2865 = vmatpush.msrb.mxu0 %v204_v0  ;;  %v512_v14 = vld [vmem:[%s10278_s1 + $0xdd0] sm:$0xff] }
 0x312   :  { %2888 = vmatpush.msrb.mxu1 %v268_v1  ;;  %2903 = vmatpush.msrb.mxu2 %v364_v2  ;;  %v576_v15 = vld [vmem:[%s10278_s1 + $0xfd0] sm:$0xff]  ;;  %v7380_v2 = vpop.f32.mrf.mxu1 }
 0x313   :  { %2926 = vmatpush.msrb.mxu3 %v428_v4  ;;  %2866 = vmatpush.msrb.mxu0 %v200_v5  ;;  %v352_v16 = vld [vmem:[%s10278_s1 + $0x8d0] sm:$0xff]  ;;  %v4193_v4 = vld [vmem:[%s10279_s0 + $0x18] sm:$0xff] }
 0x314   :  { %2889 = vmatpush.msrb.mxu1 %v264_v6  ;;  %2904 = vmatpush.msrb.mxu2 %v360_v7  ;;  %v416_v17 = vld [vmem:[%s10278_s1 + $0xad0] sm:$0xff] }
 0x315   :  { %2927 = vmatpush.msrb.mxu3 %v424_v9  ;;  %2943 = vmatpush.msra.mxu0 %v516_v10  ;;  %v508_v18 = vld [vmem:[%s10278_s1 + $0xdb0] sm:$0xff] }
 0x316   :  { %2966 = vmatpush.msra.mxu1 %v580_v11  ;;  %2905 = vmatpush.msrb.mxu2 %v356_v12  ;;  %v572_v19 = vld [vmem:[%s10278_s1 + $0xfb0] sm:$0xff] }
 0x317   :  { %2928 = vmatpush.msrb.mxu3 %v420_v13  ;;  %2944 = vmatpush.msra.mxu0 %v512_v14  ;;  %v348_v20 = vld [vmem:[%s10278_s1 + $0x8b0] sm:$0xff]  ;;  %v7409_v14 = vpop.f32.mrf.mxu2 }
 0x318   :  { %2967 = vmatpush.msra.mxu1 %v576_v15  ;;  %v412_v21 = vld [vmem:[%s10278_s1 + $0xab0] sm:$0xff]  ;;  %2906 = vmatpush.msrb.mxu2 %v352_v16  ;;  %v4194_v15 = vld [vmem:[%s10279_s0 + $0x20] sm:$0xff] }
 0x319   :  { %2929 = vmatpush.msrb.mxu3 %v416_v17  ;;  %v504_v22 = vld [vmem:[%s10278_s1 + $0xd90] sm:$0xff]  ;;  %2945 = vmatpush.msra.mxu0 %v508_v18 }
 0x31a   :  { %v568_v23 = vld [vmem:[%s10278_s1 + $0xf90] sm:$0xff]  ;;  %2968 = vmatpush.msra.mxu1 %v572_v19  ;;  %2907 = vmatpush.msrb.mxu2 %v348_v20  ;;  %v7423_v19 = vpop.f32.mrf.mxu0  ;;  %v4195_v20 = vld [vmem:[%s10279_s0 + $0xd8] sm:$0xff] }
 0x31b   :  { %v408_v25 = vld [vmem:[%s10278_s1 + $0xa90] sm:$0xff]  ;;  %2930 = vmatpush.msrb.mxu3 %v412_v21  ;;  %2946 = vmatpush.msra.mxu0 %v504_v22  ;;  %v7431_v22 = vpop.f32.mrf.mxu3 }
 0x31c   :  { %v344_v26 = vld [vmem:[%s10278_s1 + $0x890] sm:$0xff]  ;;  %2969 = vmatpush.msra.mxu1 %v568_v23  ;;  %2821 = vmatmul.f32.vlgmr.msra.gmra.mxu2 %v4188_v31  ;;  %v4196_v23 = vld [vmem:[%s10279_s0 + $0x28] sm:$0xff] }
 0x31d   :  { %v500_v27 = vld [vmem:[%s10278_s1 + $0xd70] sm:$0xff]  ;;  %2931 = vmatpush.msrb.mxu3 %v408_v25  ;;  %2908 = vmatpush.msrb.mxu2 %v344_v26 }
 0x31e   :  { %v564_v29 = vld [vmem:[%s10278_s1 + $0xf70] sm:$0xff]  ;;  %2947 = vmatpush.msra.mxu0 %v500_v27  ;;  %2844 = vmatmul.f32.vlgmr.msra.gmra.mxu3 %v4189_v37  ;;  %v7442_v27 = vpop.f32.mrf.mxu1 }
 0x31f   :  { %v340_v32 = vld [vmem:[%s10278_s1 + $0x870] sm:$0xff]  ;;  %2970 = vmatpush.msra.mxu1 %v564_v29 }
 0x320   :  { %v404_v33 = vld [vmem:[%s10278_s1 + $0xa70] sm:$0xff]  ;;  %2909 = vmatpush.msrb.mxu2 %v340_v32  ;;  %2890 = vmatmul.f32.vlgmr.msrb.gmra.mxu1 %v4193_v4  ;;  %v4197_v32 = vld [vmem:[%s10279_s0 + $0xe0] sm:$0xff] }
 0x321   :  { %v496_v34 = vld [vmem:[%s10278_s1 + $0xd50] sm:$0xff]  ;;  %2932 = vmatpush.msrb.mxu3 %v404_v33 }
 0x322   :  { %v560_v35 = vld [vmem:[%s10278_s1 + $0xf50] sm:$0xff]  ;;  %2948 = vmatpush.msra.mxu0 %v496_v34 }
 0x323   :  { %v336_v38 = vld [vmem:[%s10278_s1 + $0x850] sm:$0xff]  ;;  %2971 = vmatpush.msra.mxu1 %v560_v35 }
 0x324   :  { %v400_v39 = vld [vmem:[%s10278_s1 + $0xa50] sm:$0xff]  ;;  %2910 = vmatpush.msrb.mxu2 %v336_v38 }
 0x325   :  { %v492_v40 = vld [vmem:[%s10278_s1 + $0xd30] sm:$0xff]  ;;  %2933 = vmatpush.msrb.mxu3 %v400_v39  ;;  %2824 = vmatmul.f32.gmra.mxu2 %v4190_v52 }
 0x326   :  { %v556_v41 = vld [vmem:[%s10278_s1 + $0xf30] sm:$0xff]  ;;  %2949 = vmatpush.msra.mxu0 %v492_v40 }
 0x327   :  { %v332_v42 = vld [vmem:[%s10278_s1 + $0x830] sm:$0xff]  ;;  %2972 = vmatpush.msra.mxu1 %v556_v41 }
 0x328   :  { %v396_v43 = vld [vmem:[%s10278_s1 + $0xa30] sm:$0xff]  ;;  %2911 = vmatpush.msrb.mxu2 %v332_v42  ;;  %2893 = vmatmul.f32.gmra.mxu1 %v4197_v32 }
 0x329   :  { %v488_v44 = vld [vmem:[%s10278_s1 + $0xd10] sm:$0xff]  ;;  %2934 = vmatpush.msrb.mxu3 %v396_v43 }
 0x32a   :  { %v552_v45 = vld [vmem:[%s10278_s1 + $0xf10] sm:$0xff]  ;;  %2950 = vmatpush.msra.mxu0 %v488_v44 }
 0x32b   :  { %v392_v46 = vld [vmem:[%s10278_s1 + $0xa10] sm:$0xff]  ;;  %2973 = vmatpush.msra.mxu1 %v552_v45 }
 0x32c   :  { %v328_v47 = vld [vmem:[%s10278_s1 + $0x810] sm:$0xff]  ;;  %2935 = vmatpush.msrb.mxu3 %v392_v46  ;;  %v7489_v46 = vpop.f32.mrf.mxu0 }
 0x32d   :  { %v484_v48 = vld [vmem:[%s10278_s1 + $0xcf0] sm:$0xff]  ;;  %2912 = vmatpush.msrb.mxu2 %v328_v47 }
 0x32e   :  { %v548_v49 = vld [vmem:[%s10278_s1 + $0xef0] sm:$0xff]  ;;  %2951 = vmatpush.msra.mxu0 %v484_v48  ;;  %2913 = vmatmul.f32.vlgmr.msrb.gmra.mxu2 %v4194_v15 }
 0x32f   :  { %v644_v50 = vld [vmem:[%s10278_s1 + $0x11f0] sm:$0xff]  ;;  %2974 = vmatpush.msra.mxu1 %v548_v49 }
 0x330   :  { %v708_v53 = vld [vmem:[%s10278_s1 + $0x13f0] sm:$0xff]  ;;  %2989 = vmatpush.msra.mxu2 %v644_v50 }
 0x331   :  { %v480_v54 = vld [vmem:[%s10278_s1 + $0xcd0] sm:$0xff]  ;;  %3012 = vmatpush.msra.mxu3 %v708_v53  ;;  %v7506_v53 = vpop.f32.mrf.mxu1 }
 0x332   :  { %v544_v55 = vld [vmem:[%s10278_s1 + $0xed0] sm:$0xff]  ;;  %2952 = vmatpush.msra.mxu0 %v480_v54  ;;  %v4199_v54 = vld [vmem:[%s10279_s0 + $0x38] sm:$0xff] }
 0x333   :  { %v640_v56 = vld [vmem:[%s10278_s1 + $0x11d0] sm:$0xff]  ;;  %2975 = vmatpush.msra.mxu1 %v544_v55 }
 0x334   :  { %v4191_v58 = vld [vmem:[%s10279_s0 + $0x10] sm:$0xff]  ;;  %2990 = vmatpush.msra.mxu2 %v640_v56 }
 0x335   :  { %2867 = vmatmul.f32.vlgmr.msrb.gmra.mxu0 %v4191_v58  ;;  %v704_v59 = vld [vmem:[%s10278_s1 + $0x13d0] sm:$0xff] }
 0x336   :  { %v4192_v61 = vld [vmem:[%s10279_s0 + $0xd0] sm:$0xff]  ;;  %3013 = vmatpush.msra.mxu3 %v704_v59 }
 0x337   :  { %2847 = vmatmul.f32.gmra.mxu3 %v4192_v61  ;;  %v476_v62 = vld [vmem:[%s10278_s1 + $0xcb0] sm:$0xff] }
 0x338   :  { %v540_v63 = vld [vmem:[%s10278_s1 + $0xeb0] sm:$0xff]  ;;  %2953 = vmatpush.msra.mxu0 %v476_v62  ;;  %v7526_v62 = vpop.f32.mrf.mxu2 }
 0x339   :  { %v636_v0 = vld [vmem:[%s10278_s1 + $0x11b0] sm:$0xff]  ;;  %2976 = vmatpush.msra.mxu1 %v540_v63 }
 0x33a   :  { %v700_v1 = vld [vmem:[%s10278_s1 + $0x13b0] sm:$0xff]  ;;  %2991 = vmatpush.msra.mxu2 %v636_v0 }
 0x33b   :  { %v472_v5 = vld [vmem:[%s10278_s1 + $0xc90] sm:$0xff]  ;;  %3014 = vmatpush.msra.mxu3 %v700_v1 }
 0x33c   :  { %v536_v6 = vld [vmem:[%s10278_s1 + $0xe90] sm:$0xff]  ;;  %2954 = vmatpush.msra.mxu0 %v472_v5  ;;  %v4200_v5 = vld [vmem:[%s10279_s0 + $0xe8] sm:$0xff] }
 0x33d   :  { %v632_v7 = vld [vmem:[%s10278_s1 + $0x1190] sm:$0xff]  ;;  %2977 = vmatpush.msra.mxu1 %v536_v6  ;;  %2870 = vmatmul.f32.gmra.mxu0 %v4195_v20 }
 0x33e   :  { %v696_v9 = vld [vmem:[%s10278_s1 + $0x1390] sm:$0xff]  ;;  %2992 = vmatpush.msra.mxu2 %v632_v7  ;;  %v7546_v7 = vpop.f32.mrf.mxu3 }
 0x33f   :  { %v468_v10 = vld [vmem:[%s10278_s1 + $0xc70] sm:$0xff]  ;;  %3015 = vmatpush.msra.mxu3 %v696_v9  ;;  %2916 = vmatmul.f32.gmra.mxu2 %v4200_v5 }
 0x340   :  { %v532_v11 = vld [vmem:[%s10278_s1 + $0xe70] sm:$0xff]  ;;  %2955 = vmatpush.msra.mxu0 %v468_v10  ;;  %2936 = vmatmul.f32.vlgmr.msrb.gmra.mxu3 %v4196_v23 }
 0x341   :  { %v628_v12 = vld [vmem:[%s10278_s1 + $0x1170] sm:$0xff]  ;;  %2978 = vmatpush.msra.mxu1 %v532_v11 }
 0x342   :  { %v692_v13 = vld [vmem:[%s10278_s1 + $0x1370] sm:$0xff]  ;;  %2993 = vmatpush.msra.mxu2 %v628_v12 }
 0x343   :  { %v464_v16 = vld [vmem:[%s10278_s1 + $0xc50] sm:$0xff]  ;;  %3016 = vmatpush.msra.mxu3 %v692_v13 }
 0x344   :  { %v528_v17 = vld [vmem:[%s10278_s1 + $0xe50] sm:$0xff]  ;;  %2956 = vmatpush.msra.mxu0 %v464_v16 }
 0x345   :  { %v624_v18 = vld [vmem:[%s10278_s1 + $0x1150] sm:$0xff]  ;;  %2979 = vmatpush.msra.mxu1 %v528_v17 }
 0x346   :  { %v688_v21 = vld [vmem:[%s10278_s1 + $0x1350] sm:$0xff]  ;;  %2994 = vmatpush.msra.mxu2 %v624_v18 }
 0x347   :  { %v460_v25 = vld [vmem:[%s10278_s1 + $0xc30] sm:$0xff]  ;;  %3017 = vmatpush.msra.mxu3 %v688_v21 }
 0x348   :  { %v524_v26 = vld [vmem:[%s10278_s1 + $0xe30] sm:$0xff]  ;;  %2957 = vmatpush.msra.mxu0 %v460_v25 }
 0x349   :  { %v620_v29 = vld [vmem:[%s10278_s1 + $0x1130] sm:$0xff]  ;;  %2980 = vmatpush.msra.mxu1 %v524_v26 }
 0x34a   :  { %v684_v31 = vld [vmem:[%s10278_s1 + $0x1330] sm:$0xff]  ;;  %2995 = vmatpush.msra.mxu2 %v620_v29  ;;  %v7590_v29 = vpop.f32.mrf.mxu2 }
 0x34b   :  { %v456_v33 = vld [vmem:[%s10278_s1 + $0xc10] sm:$0xff]  ;;  %3018 = vmatpush.msra.mxu3 %v684_v31  ;;  %10284 = vst [vmem:[#allocation2_spill] sm:$0xff] %v7590_v29 }
 0x34c   :  { %v520_v34 = vld [vmem:[%s10278_s1 + $0xe10] sm:$0xff]  ;;  %2958 = vmatpush.msra.mxu0 %v456_v33  ;;  %v4202_v33 = vld [vmem:[%s10279_s0 + $0x40] sm:$0xff] }
 0x34d   :  { %v616_v35 = vld [vmem:[%s10278_s1 + $0x1110] sm:$0xff]  ;;  %2981 = vmatpush.msra.mxu1 %v520_v34 }
 0x34e   :  { %v680_v37 = vld [vmem:[%s10278_s1 + $0x1310] sm:$0xff]  ;;  %2996 = vmatpush.msra.mxu2 %v616_v35  ;;  %2982 = vmatmul.f32.vlgmr.msra.gmra.mxu1 %v4199_v54 }
 0x34f   :  { %v772_v38 = vld [vmem:[%s10278_s1 + $0x15f0] sm:$0xff]  ;;  %3019 = vmatpush.msra.mxu3 %v680_v37 }
 0x350   :  { %v836_v39 = vld [vmem:[%s10278_s1 + $0x17f0] sm:$0xff]  ;;  %3035 = vmatpush.msrb.mxu0 %v772_v38  ;;  %v7610_v38 = vpop.f32.mrf.mxu3 }
 0x351   :  { %v612_v40 = vld [vmem:[%s10278_s1 + $0x10f0] sm:$0xff]  ;;  %3058 = vmatpush.msrb.mxu1 %v836_v39  ;;  %10285 = vst [vmem:[#allocation3_spill] sm:$0xff] %v7610_v38 }
 0x352   :  { %v676_v41 = vld [vmem:[%s10278_s1 + $0x12f0] sm:$0xff]  ;;  %2997 = vmatpush.msra.mxu2 %v612_v40 }
 0x353   :  { %v832_v42 = vld [vmem:[%s10278_s1 + $0x17d0] sm:$0xff]  ;;  %3020 = vmatpush.msra.mxu3 %v676_v41  ;;  %v4203_v41 = vld [vmem:[%s10279_s0 + $0x48] sm:$0xff] }
 0x354   :  { %v768_v43 = vld [vmem:[%s10278_s1 + $0x15d0] sm:$0xff]  ;;  %3059 = vmatpush.msrb.mxu1 %v832_v42 }
 0x355   :  { %v608_v44 = vld [vmem:[%s10278_s1 + $0x10d0] sm:$0xff]  ;;  %3036 = vmatpush.msrb.mxu0 %v768_v43 }
 0x356   :  { %v672_v45 = vld [vmem:[%s10278_s1 + $0x12d0] sm:$0xff]  ;;  %2998 = vmatpush.msra.mxu2 %v608_v44 }
 0x357   :  { %v4198_v47 = vld [vmem:[%s10279_s0 + $0x30] sm:$0xff]  ;;  %3021 = vmatpush.msra.mxu3 %v672_v45 }
 0x358   :  { %2959 = vmatmul.f32.vlgmr.msra.gmra.mxu0 %v4198_v47  ;;  %v764_v48 = vld [vmem:[%s10278_s1 + $0x15b0] sm:$0xff]  ;;  %v7675_v5 = vpop.f32.mrf.mxu3 }
 0x359   :  { %v828_v49 = vld [vmem:[%s10278_s1 + $0x17b0] sm:$0xff]  ;;  %3037 = vmatpush.msrb.mxu0 %v764_v48  ;;  %10288 = vst [vmem:[#allocation6_spill] sm:$0xff] %v7675_v5  ;;  %v1213_v5 = vld [vmem:[%s10278_s1 + $0x23b8] sm:$0xff] }
 0x35a   :  { %v604_v50 = vld [vmem:[%s10278_s1 + $0x10b0] sm:$0xff]  ;;  %3060 = vmatpush.msrb.mxu1 %v828_v49 }
 0x35b   :  { %v668_v52 = vld [vmem:[%s10278_s1 + $0x12b0] sm:$0xff]  ;;  %2999 = vmatpush.msra.mxu2 %v604_v50 }
 0x35c   :  { %v760_v55 = vld [vmem:[%s10278_s1 + $0x1590] sm:$0xff]  ;;  %3022 = vmatpush.msra.mxu3 %v668_v52 }
 0x35d   :  { %v824_v56 = vld [vmem:[%s10278_s1 + $0x1790] sm:$0xff]  ;;  %3038 = vmatpush.msrb.mxu0 %v760_v55  ;;  %v7651_v55 = vpop.f32.mrf.mxu0 }
 0x35e   :  { %v600_v58 = vld [vmem:[%s10278_s1 + $0x1090] sm:$0xff]  ;;  %3061 = vmatpush.msrb.mxu1 %v824_v56  ;;  %v7653_v56 = vpop.f32.mrf.mxu2 }
 0x35f   :  { %v664_v59 = vld [vmem:[%s10278_s1 + $0x1290] sm:$0xff]  ;;  %3000 = vmatpush.msra.mxu2 %v600_v58  ;;  %10286 = vst [vmem:[#allocation4_spill] sm:$0xff] %v7653_v56  ;;  %v4204_v58 = vld [vmem:[%s10279_s0 + $0xf8] sm:$0xff] }
 0x360   :  { %v756_v61 = vld [vmem:[%s10278_s1 + $0x1570] sm:$0xff]  ;;  %3023 = vmatpush.msra.mxu3 %v664_v59  ;;  %2962 = vmatmul.f32.gmra.mxu0 %v4204_v58  ;;  %v4205_v59 = vld [vmem:[%s10279_s0 + $0x108] sm:$0xff]  ;;  %v1325_v56 = vld [vmem:[%s10278_s1 + $0x2738] sm:$0xff] }
 0x361   :  { %v820_v63 = vld [vmem:[%s10278_s1 + $0x1770] sm:$0xff]  ;;  %3039 = vmatpush.msrb.mxu0 %v756_v61 }
 0x362   :  { %v596_v0 = vld [vmem:[%s10278_s1 + $0x1070] sm:$0xff]  ;;  %3062 = vmatpush.msrb.mxu1 %v820_v63 }
 0x363   :  { %v660_v1 = vld [vmem:[%s10278_s1 + $0x1270] sm:$0xff]  ;;  %3001 = vmatpush.msra.mxu2 %v596_v0 }
 0x364   :  { %v752_v4 = vld [vmem:[%s10278_s1 + $0x1550] sm:$0xff]  ;;  %3024 = vmatpush.msra.mxu3 %v660_v1 }
 0x365   :  { %v816_v6 = vld [vmem:[%s10278_s1 + $0x1750] sm:$0xff]  ;;  %3040 = vmatpush.msrb.mxu0 %v752_v4  ;;  %v7673_v4 = vpop.f32.mrf.mxu1 }
 0x366   :  { %v592_v9 = vld [vmem:[%s10278_s1 + $0x1050] sm:$0xff]  ;;  %3063 = vmatpush.msrb.mxu1 %v816_v6  ;;  %10287 = vst [vmem:[#allocation5_spill] sm:$0xff] %v7673_v4  ;;  %v4206_v6 = vld [vmem:[%s10279_s0 + $0x100] sm:$0xff] }
 0x367   :  { %v656_v10 = vld [vmem:[%s10278_s1 + $0x1250] sm:$0xff]  ;;  %3002 = vmatpush.msra.mxu2 %v592_v9  ;;  %2985 = vmatmul.f32.gmra.mxu1 %v4206_v6  ;;  %v4270_v4 = vld [vmem:[%s10279_s0 + $0x80] sm:$0xff] }
 0x368   :  { %v748_v11 = vld [vmem:[%s10278_s1 + $0x1530] sm:$0xff]  ;;  %3025 = vmatpush.msra.mxu3 %v656_v10 }
 0x369   :  { %v812_v12 = vld [vmem:[%s10278_s1 + $0x1730] sm:$0xff]  ;;  %3041 = vmatpush.msrb.mxu0 %v748_v11 }
 0x36a   :  { %v4201_v13 = vld [vmem:[%s10279_s0 + $0xf0] sm:$0xff]  ;;  %3064 = vmatpush.msrb.mxu1 %v812_v12 }
 0x36b   :  { %2939 = vmatmul.f32.gmra.mxu3 %v4201_v13  ;;  %v588_v15 = vld [vmem:[%s10278_s1 + $0x1030] sm:$0xff] }
 0x36c   :  { %v652_v16 = vld [vmem:[%s10278_s1 + $0x1230] sm:$0xff]  ;;  %3003 = vmatpush.msra.mxu2 %v588_v15 }
 0x36d   :  { %v744_v17 = vld [vmem:[%s10278_s1 + $0x1510] sm:$0xff]  ;;  %3026 = vmatpush.msra.mxu3 %v652_v16 }
 0x36e   :  { %v808_v18 = vld [vmem:[%s10278_s1 + $0x1710] sm:$0xff]  ;;  %3042 = vmatpush.msrb.mxu0 %v744_v17 }
 0x36f   :  { %v584_v20 = vld [vmem:[%s10278_s1 + $0x1010] sm:$0xff]  ;;  %3065 = vmatpush.msrb.mxu1 %v808_v18 }
 0x370   :  { %v648_v21 = vld [vmem:[%s10278_s1 + $0x1210] sm:$0xff]  ;;  %3004 = vmatpush.msra.mxu2 %v584_v20 }
 0x371   :  { %v740_v23 = vld [vmem:[%s10278_s1 + $0x14f0] sm:$0xff]  ;;  %3027 = vmatpush.msra.mxu3 %v648_v21  ;;  %3005 = vmatmul.f32.vlgmr.msra.gmra.mxu2 %v4202_v33 }
 0x372   :  { %v804_v25 = vld [vmem:[%s10278_s1 + $0x16f0] sm:$0xff]  ;;  %3043 = vmatpush.msrb.mxu0 %v740_v23 }
 0x373   :  { %v900_v26 = vld [vmem:[%s10278_s1 + $0x19f0] sm:$0xff]  ;;  %3066 = vmatpush.msrb.mxu1 %v804_v25  ;;  %3028 = vmatmul.f32.vlgmr.msra.gmra.mxu3 %v4203_v41  ;;  %v7716_v25 = vpop.f32.mrf.mxu0 }
 0x374   :  { %v964_v31 = vld [vmem:[%s10278_s1 + $0x1bf0] sm:$0xff]  ;;  %3081 = vmatpush.msrb.mxu2 %v900_v26  ;;  %10289 = vst [vmem:[#allocation7_spill] sm:$0xff] %v7716_v25 }
 0x375   :  { %v736_v32 = vld [vmem:[%s10278_s1 + $0x14d0] sm:$0xff]  ;;  %3104 = vmatpush.msrb.mxu3 %v964_v31 }
 0x376   :  { %v800_v34 = vld [vmem:[%s10278_s1 + $0x16d0] sm:$0xff]  ;;  %3044 = vmatpush.msrb.mxu0 %v736_v32 }
 0x377   :  { %v896_v35 = vld [vmem:[%s10278_s1 + $0x19d0] sm:$0xff]  ;;  %3067 = vmatpush.msrb.mxu1 %v800_v34  ;;  %v7730_v34 = vpop.f32.mrf.mxu1 }
 0x378   :  { %v960_v37 = vld [vmem:[%s10278_s1 + $0x1bd0] sm:$0xff]  ;;  %3082 = vmatpush.msrb.mxu2 %v896_v35  ;;  %10290 = vst [vmem:[#allocation8_spill] sm:$0xff] %v7730_v34  ;;  %v1337_v34 = vld [vmem:[%s10278_s1 + $0x2798] sm:$0xff] }
 0x379   :  { %v732_v39 = vld [vmem:[%s10278_s1 + $0x14b0] sm:$0xff]  ;;  %3105 = vmatpush.msrb.mxu3 %v960_v37  ;;  %3008 = vmatmul.f32.gmra.mxu2 %v4205_v59  ;;  %v4210_v59 = vld [vmem:[%s10279_s0 + $0x118] sm:$0xff] }
 0x37a   :  { %v796_v40 = vld [vmem:[%s10278_s1 + $0x16b0] sm:$0xff]  ;;  %3045 = vmatpush.msrb.mxu0 %v732_v39  ;;  %v4209_v39 = vld [vmem:[%s10279_s0 + $0x58] sm:$0xff] }
 0x37b   :  { %v892_v42 = vld [vmem:[%s10278_s1 + $0x19b0] sm:$0xff]  ;;  %3068 = vmatpush.msrb.mxu1 %v796_v40  ;;  %v7777_v58 = vpop.f32.mrf.mxu0 }
 0x37c   :  { %v956_v43 = vld [vmem:[%s10278_s1 + $0x1bb0] sm:$0xff]  ;;  %3083 = vmatpush.msrb.mxu2 %v892_v42  ;;  %10291 = vst [vmem:[#allocation9_spill] sm:$0xff] %v7777_v58 }
 0x37d   :  { %v728_v44 = vld [vmem:[%s10278_s1 + $0x1490] sm:$0xff]  ;;  %3106 = vmatpush.msrb.mxu3 %v956_v43 }
 0x37e   :  { %v792_v45 = vld [vmem:[%s10278_s1 + $0x1690] sm:$0xff]  ;;  %3046 = vmatpush.msrb.mxu0 %v728_v44 }
 0x37f   :  { %v888_v47 = vld [vmem:[%s10278_s1 + $0x1990] sm:$0xff]  ;;  %3069 = vmatpush.msrb.mxu1 %v792_v45  ;;  %v7794_v6 = vpop.f32.mrf.mxu1 }
 0x380   :  { %v952_v48 = vld [vmem:[%s10278_s1 + $0x1b90] sm:$0xff]  ;;  %3084 = vmatpush.msrb.mxu2 %v888_v47  ;;  %10292 = vst [vmem:[#allocation10_spill] sm:$0xff] %v7794_v6  ;;  %v605_v6 = vld [vmem:[%s10278_s1 + $0x10b8] sm:$0xff] }
 0x381   :  { %v724_v49 = vld [vmem:[%s10278_s1 + $0x1470] sm:$0xff]  ;;  %3107 = vmatpush.msrb.mxu3 %v952_v48 }
 0x382   :  { %v788_v50 = vld [vmem:[%s10278_s1 + $0x1670] sm:$0xff]  ;;  %3047 = vmatpush.msrb.mxu0 %v724_v49 }
 0x383   :  { %v884_v52 = vld [vmem:[%s10278_s1 + $0x1970] sm:$0xff]  ;;  %3070 = vmatpush.msrb.mxu1 %v788_v50 }
 0x384   :  { %v948_v54 = vld [vmem:[%s10278_s1 + $0x1b70] sm:$0xff]  ;;  %3085 = vmatpush.msrb.mxu2 %v884_v52 }
 0x385   :  { %v720_v61 = vld [vmem:[%s10278_s1 + $0x1450] sm:$0xff]  ;;  %3108 = vmatpush.msrb.mxu3 %v948_v54 }
 0x386   :  { %v784_v63 = vld [vmem:[%s10278_s1 + $0x1650] sm:$0xff]  ;;  %3048 = vmatpush.msrb.mxu0 %v720_v61 }
 0x387   :  { %v880_v0 = vld [vmem:[%s10278_s1 + $0x1950] sm:$0xff]  ;;  %3071 = vmatpush.msrb.mxu1 %v784_v63 }
 0x388   :  { %v944_v1 = vld [vmem:[%s10278_s1 + $0x1b50] sm:$0xff]  ;;  %3086 = vmatpush.msrb.mxu2 %v880_v0 }
 0x389   :  { %v4207_v9 = vld [vmem:[%s10279_s0 + $0x110] sm:$0xff]  ;;  %3109 = vmatpush.msrb.mxu3 %v944_v1 }
 0x38a   :  { %3031 = vmatmul.f32.gmra.mxu3 %v4207_v9  ;;  %v716_v10 = vld [vmem:[%s10278_s1 + $0x1430] sm:$0xff]  ;;  %v4211_v9 = vld [vmem:[%s10279_s0 + $0x120] sm:$0xff] }
 0x38b   :  { %v780_v11 = vld [vmem:[%s10278_s1 + $0x1630] sm:$0xff]  ;;  %3049 = vmatpush.msrb.mxu0 %v716_v10 }
 0x38c   :  { %v876_v12 = vld [vmem:[%s10278_s1 + $0x1930] sm:$0xff]  ;;  %3072 = vmatpush.msrb.mxu1 %v780_v11 }
 0x38d   :  { %v940_v13 = vld [vmem:[%s10278_s1 + $0x1b30] sm:$0xff]  ;;  %3087 = vmatpush.msrb.mxu2 %v876_v12 }
 0x38e   :  { %v712_v15 = vld [vmem:[%s10278_s1 + $0x1410] sm:$0xff]  ;;  %3110 = vmatpush.msrb.mxu3 %v940_v13 }
 0x38f   :  { %v776_v16 = vld [vmem:[%s10278_s1 + $0x1610] sm:$0xff]  ;;  %3050 = vmatpush.msrb.mxu0 %v712_v15 }
 0x390   :  { %v872_v17 = vld [vmem:[%s10278_s1 + $0x1910] sm:$0xff]  ;;  %3073 = vmatpush.msrb.mxu1 %v776_v16 }
 0x391   :  { %v936_v18 = vld [vmem:[%s10278_s1 + $0x1b10] sm:$0xff]  ;;  %3088 = vmatpush.msrb.mxu2 %v872_v17  ;;  %3074 = vmatmul.f32.vlgmr.msrb.gmra.mxu1 %v4209_v39 }
 0x392   :  { %v1092_v20 = vld [vmem:[%s10278_s1 + $0x1ff0] sm:$0xff]  ;;  %3111 = vmatpush.msrb.mxu3 %v936_v18 }
 0x393   :  { %v1028_v21 = vld [vmem:[%s10278_s1 + $0x1df0] sm:$0xff]  ;;  %3150 = vmatpush.msra.mxu1 %v1092_v20 }
 0x394   :  { %v868_v23 = vld [vmem:[%s10278_s1 + $0x18f0] sm:$0xff]  ;;  %3127 = vmatpush.msra.mxu0 %v1028_v21 }
 0x395   :  { %v932_v26 = vld [vmem:[%s10278_s1 + $0x1af0] sm:$0xff]  ;;  %3089 = vmatpush.msrb.mxu2 %v868_v23 }
 0x396   :  { %v4208_v31 = vld [vmem:[%s10279_s0 + $0x50] sm:$0xff]  ;;  %3112 = vmatpush.msrb.mxu3 %v932_v26  ;;  %v7832_v26 = vpop.f32.mrf.mxu2 }
 0x397   :  { %3051 = vmatmul.f32.vlgmr.msrb.gmra.mxu0 %v4208_v31  ;;  %v1024_v32 = vld [vmem:[%s10278_s1 + $0x1dd0] sm:$0xff]  ;;  %10293 = vst [vmem:[#allocation11_spill] sm:$0xff] %v7832_v26  ;;  %v969_v26 = vld [vmem:[%s10278_s1 + $0x1c18] sm:$0xff] }
 0x398   :  { %v1088_v33 = vld [vmem:[%s10278_s1 + $0x1fd0] sm:$0xff]  ;;  %3128 = vmatpush.msra.mxu0 %v1024_v32 }
 0x399   :  { %v864_v35 = vld [vmem:[%s10278_s1 + $0x18d0] sm:$0xff]  ;;  %3151 = vmatpush.msra.mxu1 %v1088_v33  ;;  %v4212_v33 = vld [vmem:[%s10279_s0 + $0x60] sm:$0xff] }
 0x39a   :  { %v928_v37 = vld [vmem:[%s10278_s1 + $0x1ad0] sm:$0xff]  ;;  %3090 = vmatpush.msrb.mxu2 %v864_v35  ;;  %3077 = vmatmul.f32.gmra.mxu1 %v4211_v9 }
 0x39b   :  { %v1020_v40 = vld [vmem:[%s10278_s1 + $0x1db0] sm:$0xff]  ;;  %3113 = vmatpush.msrb.mxu3 %v928_v37 }
 0x39c   :  { %v1084_v41 = vld [vmem:[%s10278_s1 + $0x1fb0] sm:$0xff]  ;;  %3129 = vmatpush.msra.mxu0 %v1020_v40  ;;  %v7852_v40 = vpop.f32.mrf.mxu3 }
 0x39d   :  { %v860_v42 = vld [vmem:[%s10278_s1 + $0x18b0] sm:$0xff]  ;;  %3152 = vmatpush.msra.mxu1 %v1084_v41  ;;  %10294 = vst [vmem:[#allocation12_spill] sm:$0xff] %v7852_v40  ;;  %v589_v40 = vld [vmem:[%s10278_s1 + $0x1038] sm:$0xff] }
 0x39e   :  { %v924_v43 = vld [vmem:[%s10278_s1 + $0x1ab0] sm:$0xff]  ;;  %3091 = vmatpush.msrb.mxu2 %v860_v42 }
 0x39f   :  { %v1016_v44 = vld [vmem:[%s10278_s1 + $0x1d90] sm:$0xff]  ;;  %3114 = vmatpush.msrb.mxu3 %v924_v43  ;;  %3054 = vmatmul.f32.gmra.mxu0 %v4210_v59  ;;  %v4213_v43 = vld [vmem:[%s10279_s0 + $0x68] sm:$0xff] }
 0x3a0   :  { %v1080_v45 = vld [vmem:[%s10278_s1 + $0x1f90] sm:$0xff]  ;;  %3130 = vmatpush.msra.mxu0 %v1016_v44 }
 0x3a1   :  { %v856_v47 = vld [vmem:[%s10278_s1 + $0x1890] sm:$0xff]  ;;  %3153 = vmatpush.msra.mxu1 %v1080_v45 }
 0x3a2   :  { %v920_v48 = vld [vmem:[%s10278_s1 + $0x1a90] sm:$0xff]  ;;  %3092 = vmatpush.msrb.mxu2 %v856_v47 }
 0x3a3   :  { %v1076_v49 = vld [vmem:[%s10278_s1 + $0x1f70] sm:$0xff]  ;;  %3115 = vmatpush.msrb.mxu3 %v920_v48 }
 0x3a4   :  { %v1012_v50 = vld [vmem:[%s10278_s1 + $0x1d70] sm:$0xff]  ;;  %3154 = vmatpush.msra.mxu1 %v1076_v49 }
 0x3a5   :  { %v852_v52 = vld [vmem:[%s10278_s1 + $0x1870] sm:$0xff]  ;;  %3131 = vmatpush.msra.mxu0 %v1012_v50 }
 0x3a6   :  { %v916_v54 = vld [vmem:[%s10278_s1 + $0x1a70] sm:$0xff]  ;;  %3093 = vmatpush.msrb.mxu2 %v852_v52 }
 0x3a7   :  { %v1008_v61 = vld [vmem:[%s10278_s1 + $0x1d50] sm:$0xff]  ;;  %3116 = vmatpush.msrb.mxu3 %v916_v54 }
 0x3a8   :  { %v1072_v63 = vld [vmem:[%s10278_s1 + $0x1f50] sm:$0xff]  ;;  %3132 = vmatpush.msra.mxu0 %v1008_v61 }
 0x3a9   :  { %v848_v0 = vld [vmem:[%s10278_s1 + $0x1850] sm:$0xff]  ;;  %3155 = vmatpush.msra.mxu1 %v1072_v63 }
 0x3aa   :  { %v912_v1 = vld [vmem:[%s10278_s1 + $0x1a50] sm:$0xff]  ;;  %3094 = vmatpush.msrb.mxu2 %v848_v0  ;;  %v7896_v0 = vpop.f32.mrf.mxu2 }
 0x3ab   :  { %v1004_v10 = vld [vmem:[%s10278_s1 + $0x1d30] sm:$0xff]  ;;  %3117 = vmatpush.msrb.mxu3 %v912_v1  ;;  %10295 = vst [vmem:[#allocation13_spill] sm:$0xff] %v7896_v0  ;;  %v4214_v1 = vld [vmem:[%s10279_s0 + $0x128] sm:$0xff]  ;;  %v617_v0 = vld [vmem:[%s10278_s1 + $0x1118] sm:$0xff] }
 0x3ac   :  { %v1068_v11 = vld [vmem:[%s10278_s1 + $0x1f30] sm:$0xff]  ;;  %3133 = vmatpush.msra.mxu0 %v1004_v10 }
 0x3ad   :  { %v844_v12 = vld [vmem:[%s10278_s1 + $0x1830] sm:$0xff]  ;;  %3156 = vmatpush.msra.mxu1 %v1068_v11 }
 0x3ae   :  { %v908_v13 = vld [vmem:[%s10278_s1 + $0x1a30] sm:$0xff]  ;;  %3095 = vmatpush.msrb.mxu2 %v844_v12 }
 0x3af   :  { %v1000_v15 = vld [vmem:[%s10278_s1 + $0x1d10] sm:$0xff]  ;;  %3118 = vmatpush.msrb.mxu3 %v908_v13 }
 0x3b0   :  { %v1064_v16 = vld [vmem:[%s10278_s1 + $0x1f10] sm:$0xff]  ;;  %3134 = vmatpush.msra.mxu0 %v1000_v15  ;;  %v7916_v15 = vpop.f32.mrf.mxu3 }
 0x3b1   :  { %v840_v17 = vld [vmem:[%s10278_s1 + $0x1810] sm:$0xff]  ;;  %3157 = vmatpush.msra.mxu1 %v1064_v16  ;;  %10296 = vst [vmem:[#allocation14_spill] sm:$0xff] %v7916_v15 }
 0x3b2   :  { %v904_v18 = vld [vmem:[%s10278_s1 + $0x1a10] sm:$0xff]  ;;  %3096 = vmatpush.msrb.mxu2 %v840_v17 }
 0x3b3   :  { %v996_v20 = vld [vmem:[%s10278_s1 + $0x1cf0] sm:$0xff]  ;;  %3119 = vmatpush.msrb.mxu3 %v904_v18  ;;  %3097 = vmatmul.f32.vlgmr.msrb.gmra.mxu2 %v4212_v33 }
 0x3b4   :  { %v1060_v21 = vld [vmem:[%s10278_s1 + $0x1ef0] sm:$0xff]  ;;  %3135 = vmatpush.msra.mxu0 %v996_v20  ;;  %3120 = vmatmul.f32.vlgmr.msrb.gmra.mxu3 %v4213_v43 }
 0x3b5   :  { %v1156_v23 = vld [vmem:[%s10278_s1 + $0x21f0] sm:$0xff]  ;;  %3158 = vmatpush.msra.mxu1 %v1060_v21 }
 0x3b6   :  { %v1220_v31 = vld [vmem:[%s10278_s1 + $0x23f0] sm:$0xff]  ;;  %3173 = vmatpush.msra.mxu2 %v1156_v23 }
 0x3b7   :  { %v992_v32 = vld [vmem:[%s10278_s1 + $0x1cd0] sm:$0xff]  ;;  %3196 = vmatpush.msra.mxu3 %v1220_v31 }
 0x3b8   :  { %v1056_v35 = vld [vmem:[%s10278_s1 + $0x1ed0] sm:$0xff]  ;;  %3136 = vmatpush.msra.mxu0 %v992_v32 }
 0x3b9   :  { %v1152_v37 = vld [vmem:[%s10278_s1 + $0x21d0] sm:$0xff]  ;;  %3159 = vmatpush.msra.mxu1 %v1056_v35 }
 0x3ba   :  { %v1216_v39 = vld [vmem:[%s10278_s1 + $0x23d0] sm:$0xff]  ;;  %3174 = vmatpush.msra.mxu2 %v1152_v37  ;;  %v7948_v37 = vpop.f32.mrf.mxu0 }
 0x3bb   :  { %v988_v41 = vld [vmem:[%s10278_s1 + $0x1cb0] sm:$0xff]  ;;  %3197 = vmatpush.msra.mxu3 %v1216_v39  ;;  %3100 = vmatmul.f32.gmra.mxu2 %v4214_v1  ;;  %10297 = vst [vmem:[#allocation15_spill] sm:$0xff] %v7948_v37  ;;  %v833_v37 = vld [vmem:[%s10278_s1 + $0x17d8] sm:$0xff] }
 0x3bc   :  { %v1052_v42 = vld [vmem:[%s10278_s1 + $0x1eb0] sm:$0xff]  ;;  %3137 = vmatpush.msra.mxu0 %v988_v41 }
 0x3bd   :  { %v1148_v44 = vld [vmem:[%s10278_s1 + $0x21b0] sm:$0xff]  ;;  %3160 = vmatpush.msra.mxu1 %v1052_v42 }
 0x3be   :  { %v1212_v45 = vld [vmem:[%s10278_s1 + $0x23b0] sm:$0xff]  ;;  %3175 = vmatpush.msra.mxu2 %v1148_v44  ;;  %v7962_v44 = vpop.f32.mrf.mxu1 }
 0x3bf   :  { %v984_v47 = vld [vmem:[%s10278_s1 + $0x1c90] sm:$0xff]  ;;  %3198 = vmatpush.msra.mxu3 %v1212_v45  ;;  %10298 = vst [vmem:[#allocation16_spill] sm:$0xff] %v7962_v44  ;;  %v4246_v44 = vld [vmem:[%s10279_s0 + $0xd8] sm:$0xff] }
 0x3c0   :  { %v1048_v48 = vld [vmem:[%s10278_s1 + $0x1e90] sm:$0xff]  ;;  %3138 = vmatpush.msra.mxu0 %v984_v47 }
 0x3c1   :  { %v1144_v49 = vld [vmem:[%s10278_s1 + $0x2190] sm:$0xff]  ;;  %3161 = vmatpush.msra.mxu1 %v1048_v48  ;;  %v4217_v48 = vld [vmem:[%s10279_s0 + $0x78] sm:$0xff] }
 0x3c2   :  { %v1208_v50 = vld [vmem:[%s10278_s1 + $0x2390] sm:$0xff]  ;;  %3176 = vmatpush.msra.mxu2 %v1144_v49 }
 0x3c3   :  { %v980_v52 = vld [vmem:[%s10278_s1 + $0x1c70] sm:$0xff]  ;;  %3199 = vmatpush.msra.mxu3 %v1208_v50 }
 0x3c4   :  { %v1044_v54 = vld [vmem:[%s10278_s1 + $0x1e70] sm:$0xff]  ;;  %3139 = vmatpush.msra.mxu0 %v980_v52 }
 0x3c5   :  { %v1140_v59 = vld [vmem:[%s10278_s1 + $0x2170] sm:$0xff]  ;;  %3162 = vmatpush.msra.mxu1 %v1044_v54 }
 0x3c6   :  { %v1204_v61 = vld [vmem:[%s10278_s1 + $0x2370] sm:$0xff]  ;;  %3177 = vmatpush.msra.mxu2 %v1140_v59 }
 0x3c7   :  { %v976_v63 = vld [vmem:[%s10278_s1 + $0x1c50] sm:$0xff]  ;;  %3200 = vmatpush.msra.mxu3 %v1204_v61 }
 0x3c8   :  { %v1040_v9 = vld [vmem:[%s10278_s1 + $0x1e50] sm:$0xff]  ;;  %3140 = vmatpush.msra.mxu0 %v976_v63 }
 0x3c9   :  { %v1136_v10 = vld [vmem:[%s10278_s1 + $0x2150] sm:$0xff]  ;;  %3163 = vmatpush.msra.mxu1 %v1040_v9 }
 0x3ca   :  { %v1200_v11 = vld [vmem:[%s10278_s1 + $0x2350] sm:$0xff]  ;;  %3178 = vmatpush.msra.mxu2 %v1136_v10 }
 0x3cb   :  { %v972_v12 = vld [vmem:[%s10278_s1 + $0x1c30] sm:$0xff]  ;;  %3201 = vmatpush.msra.mxu3 %v1200_v11 }
 0x3cc   :  { %v1036_v13 = vld [vmem:[%s10278_s1 + $0x1e30] sm:$0xff]  ;;  %3141 = vmatpush.msra.mxu0 %v972_v12 }
 0x3cd   :  { %v4215_v16 = vld [vmem:[%s10279_s0 + $0x130] sm:$0xff]  ;;  %3164 = vmatpush.msra.mxu1 %v1036_v13  ;;  %v8009_v13 = vpop.f32.mrf.mxu0 }
 0x3ce   :  { %3123 = vmatmul.f32.gmra.mxu3 %v4215_v16  ;;  %v1132_v17 = vld [vmem:[%s10278_s1 + $0x2130] sm:$0xff]  ;;  %10299 = vst [vmem:[#allocation17_spill] sm:$0xff] %v8009_v13  ;;  %v4218_v16 = vld [vmem:[%s10279_s0 + $0x138] sm:$0xff] }
 0x3cf   :  { %v1196_v18 = vld [vmem:[%s10278_s1 + $0x2330] sm:$0xff]  ;;  %3179 = vmatpush.msra.mxu2 %v1132_v17 }
 0x3d0   :  { %v968_v20 = vld [vmem:[%s10278_s1 + $0x1c10] sm:$0xff]  ;;  %3202 = vmatpush.msra.mxu3 %v1196_v18 }
 0x3d1   :  { %v1032_v21 = vld [vmem:[%s10278_s1 + $0x1e10] sm:$0xff]  ;;  %3142 = vmatpush.msra.mxu0 %v968_v20 }
 0x3d2   :  { %v1128_v23 = vld [vmem:[%s10278_s1 + $0x2110] sm:$0xff]  ;;  %3165 = vmatpush.msra.mxu1 %v1032_v21 }
 0x3d3   :  { %v1192_v31 = vld [vmem:[%s10278_s1 + $0x2310] sm:$0xff]  ;;  %3180 = vmatpush.msra.mxu2 %v1128_v23  ;;  %3166 = vmatmul.f32.vlgmr.msra.gmra.mxu1 %v4217_v48  ;;  %v8026_v23 = vpop.f32.mrf.mxu1 }
 0x3d4   :  { %v1348_v32 = vld [vmem:[%s10278_s1 + $0x27f0] sm:$0xff]  ;;  %3203 = vmatpush.msra.mxu3 %v1192_v31  ;;  %10300 = vst [vmem:[#allocation18_spill] sm:$0xff] %v8026_v23  ;;  %v4219_v31 = vld [vmem:[%s10279_s0 + $0x140] sm:$0xff] }
 0x3d5   :  { %v1284_v33 = vld [vmem:[%s10278_s1 + $0x25f0] sm:$0xff]  ;;  %3242 = vmatpush.msrb.mxu1 %v1348_v32 }
 0x3d6   :  { %v1124_v35 = vld [vmem:[%s10278_s1 + $0x20f0] sm:$0xff]  ;;  %3219 = vmatpush.msrb.mxu0 %v1284_v33 }
 0x3d7   :  { %v1188_v39 = vld [vmem:[%s10278_s1 + $0x22f0] sm:$0xff]  ;;  %3181 = vmatpush.msra.mxu2 %v1124_v35 }
 0x3d8   :  { %v4216_v41 = vld [vmem:[%s10279_s0 + $0x70] sm:$0xff]  ;;  %3204 = vmatpush.msra.mxu3 %v1188_v39 }
 0x3d9   :  { %3143 = vmatmul.f32.vlgmr.msra.gmra.mxu0 %v4216_v41  ;;  %v1280_v42 = vld [vmem:[%s10278_s1 + $0x25d0] sm:$0xff] }
 0x3da   :  { %v1344_v43 = vld [vmem:[%s10278_s1 + $0x27d0] sm:$0xff]  ;;  %3220 = vmatpush.msrb.mxu0 %v1280_v42 }
 0x3db   :  { %v1120_v45 = vld [vmem:[%s10278_s1 + $0x20d0] sm:$0xff]  ;;  %3243 = vmatpush.msrb.mxu1 %v1344_v43 }
 0x3dc   :  { %v1184_v47 = vld [vmem:[%s10278_s1 + $0x22d0] sm:$0xff]  ;;  %3182 = vmatpush.msra.mxu2 %v1120_v45  ;;  %3169 = vmatmul.f32.gmra.mxu1 %v4219_v31 }
 0x3dd   :  { %v1276_v49 = vld [vmem:[%s10278_s1 + $0x25b0] sm:$0xff]  ;;  %3205 = vmatpush.msra.mxu3 %v1184_v47 }
 0x3de   :  { %v1340_v50 = vld [vmem:[%s10278_s1 + $0x27b0] sm:$0xff]  ;;  %3221 = vmatpush.msrb.mxu0 %v1276_v49 }
 0x3df   :  { %v1116_v52 = vld [vmem:[%s10278_s1 + $0x20b0] sm:$0xff]  ;;  %3244 = vmatpush.msrb.mxu1 %v1340_v50  ;;  %v8064_v50 = vpop.f32.mrf.mxu2 }
 0x3e0   :  { %v1180_v54 = vld [vmem:[%s10278_s1 + $0x22b0] sm:$0xff]  ;;  %3183 = vmatpush.msra.mxu2 %v1116_v52  ;;  %10301 = vst [vmem:[#allocation19_spill] sm:$0xff] %v8064_v50  ;;  %v525_v50 = vld [vmem:[%s10278_s1 + $0xe38] sm:$0xff] }
 0x3e1   :  { %v1272_v59 = vld [vmem:[%s10278_s1 + $0x2590] sm:$0xff]  ;;  %3206 = vmatpush.msra.mxu3 %v1180_v54  ;;  %3146 = vmatmul.f32.gmra.mxu0 %v4218_v16 }
 0x3e2   :  { %v1336_v61 = vld [vmem:[%s10278_s1 + $0x2790] sm:$0xff]  ;;  %3222 = vmatpush.msrb.mxu0 %v1272_v59  ;;  %v4220_v59 = vld [vmem:[%s10279_s0 + $0x80] sm:$0xff] }
 0x3e3   :  { %v1112_v63 = vld [vmem:[%s10278_s1 + $0x2090] sm:$0xff]  ;;  %3245 = vmatpush.msrb.mxu1 %v1336_v61 }
 0x3e4   :  { %v1176_v1 = vld [vmem:[%s10278_s1 + $0x2290] sm:$0xff]  ;;  %3184 = vmatpush.msra.mxu2 %v1112_v63 }
 0x3e5   :  { %v1332_v9 = vld [vmem:[%s10278_s1 + $0x2770] sm:$0xff]  ;;  %3207 = vmatpush.msra.mxu3 %v1176_v1 }
 0x3e6   :  { %v1268_v10 = vld [vmem:[%s10278_s1 + $0x2570] sm:$0xff]  ;;  %3246 = vmatpush.msrb.mxu1 %v1332_v9  ;;  %v8084_v9 = vpop.f32.mrf.mxu3 }
 0x3e7   :  { %v1108_v11 = vld [vmem:[%s10278_s1 + $0x2070] sm:$0xff]  ;;  %3223 = vmatpush.msrb.mxu0 %v1268_v10  ;;  %10302 = vst [vmem:[#allocation20_spill] sm:$0xff] %v8084_v9  ;;  %v473_v9 = vld [vmem:[%s10278_s1 + $0xc98] sm:$0xff] }
 0x3e8   :  { %v1172_v12 = vld [vmem:[%s10278_s1 + $0x2270] sm:$0xff]  ;;  %3185 = vmatpush.msra.mxu2 %v1108_v11 }
 0x3e9   :  { %v1264_v17 = vld [vmem:[%s10278_s1 + $0x2550] sm:$0xff]  ;;  %3208 = vmatpush.msra.mxu3 %v1172_v12  ;;  %v4221_v12 = vld [vmem:[%s10279_s0 + $0x88] sm:$0xff] }
 0x3ea   :  { %v1328_v18 = vld [vmem:[%s10278_s1 + $0x2750] sm:$0xff]  ;;  %3224 = vmatpush.msrb.mxu0 %v1264_v17 }
 0x3eb   :  { %v1104_v20 = vld [vmem:[%s10278_s1 + $0x2050] sm:$0xff]  ;;  %3247 = vmatpush.msrb.mxu1 %v1328_v18 }
 0x3ec   :  { %v1168_v21 = vld [vmem:[%s10278_s1 + $0x2250] sm:$0xff]  ;;  %3186 = vmatpush.msra.mxu2 %v1104_v20 }
 0x3ed   :  { %v1260_v32 = vld [vmem:[%s10278_s1 + $0x2530] sm:$0xff]  ;;  %3209 = vmatpush.msra.mxu3 %v1168_v21 }
 0x3ee   :  { %v1324_v33 = vld [vmem:[%s10278_s1 + $0x2730] sm:$0xff]  ;;  %3225 = vmatpush.msrb.mxu0 %v1260_v32 }
 0x3ef   :  { %v1100_v35 = vld [vmem:[%s10278_s1 + $0x2030] sm:$0xff]  ;;  %3248 = vmatpush.msrb.mxu1 %v1324_v33 }
 0x3f0   :  { %v1164_v39 = vld [vmem:[%s10278_s1 + $0x2230] sm:$0xff]  ;;  %3187 = vmatpush.msra.mxu2 %v1100_v35 }
 0x3f1   :  { %v1256_v41 = vld [vmem:[%s10278_s1 + $0x2510] sm:$0xff]  ;;  %3210 = vmatpush.msra.mxu3 %v1164_v39 }
 0x3f2   :  { %v1320_v42 = vld [vmem:[%s10278_s1 + $0x2710] sm:$0xff]  ;;  %3226 = vmatpush.msrb.mxu0 %v1256_v41 }
 0x3f3   :  { %v1096_v43 = vld [vmem:[%s10278_s1 + $0x2010] sm:$0xff]  ;;  %3249 = vmatpush.msrb.mxu1 %v1320_v42  ;;  %v8128_v42 = vpop.f32.mrf.mxu2 }
 0x3f4   :  { %v1160_v45 = vld [vmem:[%s10278_s1 + $0x2210] sm:$0xff]  ;;  %3188 = vmatpush.msra.mxu2 %v1096_v43  ;;  %10303 = vst [vmem:[#allocation21_spill] sm:$0xff] %v8128_v42  ;;  %v4222_v43 = vld [vmem:[%s10279_s0 + $0x148] sm:$0xff] }
 0x3f5   :  { %v1252_v47 = vld [vmem:[%s10278_s1 + $0x24f0] sm:$0xff]  ;;  %3211 = vmatpush.msra.mxu3 %v1160_v45  ;;  %3189 = vmatmul.f32.vlgmr.msra.gmra.mxu2 %v4220_v59 }
 0x3f6   :  { %v1316_v48 = vld [vmem:[%s10278_s1 + $0x26f0] sm:$0xff]  ;;  %3227 = vmatpush.msrb.mxu0 %v1252_v47  ;;  %3212 = vmatmul.f32.vlgmr.msra.gmra.mxu3 %v4221_v12 }
 0x3f7   :  { %v1412_v49 = vld [vmem:[%s10278_s1 + $0x29f0] sm:$0xff]  ;;  %3250 = vmatpush.msrb.mxu1 %v1316_v48 }
 0x3f8   :  { %v1476_v52 = vld [vmem:[%s10278_s1 + $0x2bf0] sm:$0xff]  ;;  %3265 = vmatpush.msrb.mxu2 %v1412_v49 }
 0x3f9   :  { %v1248_v54 = vld [vmem:[%s10278_s1 + $0x24d0] sm:$0xff]  ;;  %3288 = vmatpush.msrb.mxu3 %v1476_v52 }
 0x3fa   :  { %v1312_v61 = vld [vmem:[%s10278_s1 + $0x26d0] sm:$0xff]  ;;  %3228 = vmatpush.msrb.mxu0 %v1248_v54  ;;  %v8148_v54 = vpop.f32.mrf.mxu3 }
 0x3fb   :  { %v1408_v63 = vld [vmem:[%s10278_s1 + $0x29d0] sm:$0xff]  ;;  %3251 = vmatpush.msrb.mxu1 %v1312_v61  ;;  %10304 = vst [vmem:[#allocation22_spill] sm:$0xff] %v8148_v54 }
 0x3fc   :  { %v1472_v1 = vld [vmem:[%s10278_s1 + $0x2bd0] sm:$0xff]  ;;  %3266 = vmatpush.msrb.mxu2 %v1408_v63 }
 0x3fd   :  { %v1244_v10 = vld [vmem:[%s10278_s1 + $0x24b0] sm:$0xff]  ;;  %3289 = vmatpush.msrb.mxu3 %v1472_v1  ;;  %3192 = vmatmul.f32.gmra.mxu2 %v4222_v43  ;;  %v4225_v43 = vld [vmem:[%s10279_s0 + $0x98] sm:$0xff] }
 0x3fe   :  { %v1308_v11 = vld [vmem:[%s10278_s1 + $0x26b0] sm:$0xff]  ;;  %3229 = vmatpush.msrb.mxu0 %v1244_v10 }
 0x3ff   :  { %v1404_v16 = vld [vmem:[%s10278_s1 + $0x29b0] sm:$0xff]  ;;  %3252 = vmatpush.msrb.mxu1 %v1308_v11 }
 0x400   :  { %v1468_v17 = vld [vmem:[%s10278_s1 + $0x2bb0] sm:$0xff]  ;;  %3267 = vmatpush.msrb.mxu2 %v1404_v16 }
 0x401   :  { %v1240_v18 = vld [vmem:[%s10278_s1 + $0x2490] sm:$0xff]  ;;  %3290 = vmatpush.msrb.mxu3 %v1468_v17 }
 0x402   :  { %v1304_v20 = vld [vmem:[%s10278_s1 + $0x2690] sm:$0xff]  ;;  %3230 = vmatpush.msrb.mxu0 %v1240_v18 }
 0x403   :  { %v1400_v21 = vld [vmem:[%s10278_s1 + $0x2990] sm:$0xff]  ;;  %3253 = vmatpush.msrb.mxu1 %v1304_v20  ;;  %v8180_v20 = vpop.f32.mrf.mxu0 }
 0x404   :  { %v1464_v31 = vld [vmem:[%s10278_s1 + $0x2b90] sm:$0xff]  ;;  %3268 = vmatpush.msrb.mxu2 %v1400_v21  ;;  %10305 = vst [vmem:[#allocation23_spill] sm:$0xff] %v8180_v20  ;;  %v545_v20 = vld [vmem:[%s10278_s1 + $0xed8] sm:$0xff] }
 0x405   :  { %v1236_v32 = vld [vmem:[%s10278_s1 + $0x2470] sm:$0xff]  ;;  %3291 = vmatpush.msrb.mxu3 %v1464_v31 }
 0x406   :  { %v1300_v33 = vld [vmem:[%s10278_s1 + $0x2670] sm:$0xff]  ;;  %3231 = vmatpush.msrb.mxu0 %v1236_v32 }
 0x407   :  { %v1396_v35 = vld [vmem:[%s10278_s1 + $0x2970] sm:$0xff]  ;;  %3254 = vmatpush.msrb.mxu1 %v1300_v33 }
 0x408   :  { %v1460_v39 = vld [vmem:[%s10278_s1 + $0x2b70] sm:$0xff]  ;;  %3269 = vmatpush.msrb.mxu2 %v1396_v35  ;;  %v8194_v35 = vpop.f32.mrf.mxu1 }
 0x409   :  { %v1232_v41 = vld [vmem:[%s10278_s1 + $0x2450] sm:$0xff]  ;;  %3292 = vmatpush.msrb.mxu3 %v1460_v39  ;;  %10306 = vst [vmem:[#allocation24_spill] sm:$0xff] %v8194_v35  ;;  %v553_v35 = vld [vmem:[%s10278_s1 + $0xf18] sm:$0xff] }
 0x40a   :  { %v1296_v45 = vld [vmem:[%s10278_s1 + $0x2650] sm:$0xff]  ;;  %3232 = vmatpush.msrb.mxu0 %v1232_v41 }
 0x40b   :  { %v1392_v47 = vld [vmem:[%s10278_s1 + $0x2950] sm:$0xff]  ;;  %3255 = vmatpush.msrb.mxu1 %v1296_v45 }
 0x40c   :  { %v1456_v48 = vld [vmem:[%s10278_s1 + $0x2b50] sm:$0xff]  ;;  %3270 = vmatpush.msrb.mxu2 %v1392_v47 }
 0x40d   :  { %v1228_v49 = vld [vmem:[%s10278_s1 + $0x2430] sm:$0xff]  ;;  %3293 = vmatpush.msrb.mxu3 %v1456_v48 }
 0x40e   :  { %v1292_v52 = vld [vmem:[%s10278_s1 + $0x2630] sm:$0xff]  ;;  %3233 = vmatpush.msrb.mxu0 %v1228_v49 }
 0x40f   :  { %v4223_v59 = vld [vmem:[%s10279_s0 + $0x150] sm:$0xff]  ;;  %3256 = vmatpush.msrb.mxu1 %v1292_v52 }
 0x410   :  { %3215 = vmatmul.f32.gmra.mxu3 %v4223_v59  ;;  %v1388_v61 = vld [vmem:[%s10278_s1 + $0x2930] sm:$0xff] }
 0x411   :  { %v1452_v63 = vld [vmem:[%s10278_s1 + $0x2b30] sm:$0xff]  ;;  %3271 = vmatpush.msrb.mxu2 %v1388_v61 }
 0x412   :  { %v1224_v1 = vld [vmem:[%s10278_s1 + $0x2410] sm:$0xff]  ;;  %3294 = vmatpush.msrb.mxu3 %v1452_v63 }
 0x413   :  { %v1288_v10 = vld [vmem:[%s10278_s1 + $0x2610] sm:$0xff]  ;;  %3234 = vmatpush.msrb.mxu0 %v1224_v1 }
 0x414   :  { %v1384_v11 = vld [vmem:[%s10278_s1 + $0x2910] sm:$0xff]  ;;  %3257 = vmatpush.msrb.mxu1 %v1288_v10 }
 0x415   :  { %v1448_v12 = vld [vmem:[%s10278_s1 + $0x2b10] sm:$0xff]  ;;  %3272 = vmatpush.msrb.mxu2 %v1384_v11  ;;  %3258 = vmatmul.f32.vlgmr.msrb.gmra.mxu1 %v4225_v43 }
 0x416   :  { %v1604_v16 = vld [vmem:[%s10278_s1 + $0x2ff0] sm:$0xff]  ;;  %3295 = vmatpush.msrb.mxu3 %v1448_v12 }
 0x417   :  { %v1540_v17 = vld [vmem:[%s10278_s1 + $0x2df0] sm:$0xff]  ;;  %3334 = vmatpush.msra.mxu1 %v1604_v16  ;;  %v8241_v16 = vpop.f32.mrf.mxu0 }
 0x418   :  { %v1380_v18 = vld [vmem:[%s10278_s1 + $0x28f0] sm:$0xff]  ;;  %3311 = vmatpush.msra.mxu0 %v1540_v17  ;;  %10307 = vst [vmem:[#allocation25_spill] sm:$0xff] %v8241_v16  ;;  %v4226_v17 = vld [vmem:[%s10279_s0 + $0x158] sm:$0xff] }
 0x419   :  { %v1444_v21 = vld [vmem:[%s10278_s1 + $0x2af0] sm:$0xff]  ;;  %3273 = vmatpush.msrb.mxu2 %v1380_v18  ;;  %v345_v16 = vld [vmem:[%s10278_s1 + $0x898] sm:$0xff] }
 0x41a   :  { %v4224_v31 = vld [vmem:[%s10279_s0 + $0x90] sm:$0xff]  ;;  %3296 = vmatpush.msrb.mxu3 %v1444_v21 }
 0x41b   :  { %3235 = vmatmul.f32.vlgmr.msrb.gmra.mxu0 %v4224_v31  ;;  %v1536_v32 = vld [vmem:[%s10278_s1 + $0x2dd0] sm:$0xff] }
 0x41c   :  { %v1600_v33 = vld [vmem:[%s10278_s1 + $0x2fd0] sm:$0xff]  ;;  %3312 = vmatpush.msra.mxu0 %v1536_v32 }
 0x41d   :  { %v1376_v39 = vld [vmem:[%s10278_s1 + $0x28d0] sm:$0xff]  ;;  %3335 = vmatpush.msra.mxu1 %v1600_v33  ;;  %v8258_v33 = vpop.f32.mrf.mxu1 }
 0x41e   :  { %v1440_v41 = vld [vmem:[%s10278_s1 + $0x2ad0] sm:$0xff]  ;;  %3274 = vmatpush.msrb.mxu2 %v1376_v39  ;;  %10308 = vst [vmem:[#allocation26_spill] sm:$0xff] %v8258_v33  ;;  %v4227_v39 = vld [vmem:[%s10279_s0 + $0x160] sm:$0xff]  ;;  %v509_v33 = vld [vmem:[%s10278_s1 + $0xdb8] sm:$0xff] }
 0x41f   :  { %v1532_v45 = vld [vmem:[%s10278_s1 + $0x2db0] sm:$0xff]  ;;  %3297 = vmatpush.msrb.mxu3 %v1440_v41  ;;  %3261 = vmatmul.f32.gmra.mxu1 %v4227_v39 }
 0x420   :  { %v1596_v47 = vld [vmem:[%s10278_s1 + $0x2fb0] sm:$0xff]  ;;  %3313 = vmatpush.msra.mxu0 %v1532_v45 }
 0x421   :  { %v1372_v48 = vld [vmem:[%s10278_s1 + $0x28b0] sm:$0xff]  ;;  %3336 = vmatpush.msra.mxu1 %v1596_v47 }
 0x422   :  { %v1436_v49 = vld [vmem:[%s10278_s1 + $0x2ab0] sm:$0xff]  ;;  %3275 = vmatpush.msrb.mxu2 %v1372_v48 }
 0x423   :  { %v1528_v52 = vld [vmem:[%s10278_s1 + $0x2d90] sm:$0xff]  ;;  %3298 = vmatpush.msrb.mxu3 %v1436_v49  ;;  %3238 = vmatmul.f32.gmra.mxu0 %v4226_v17  ;;  %v4228_v17 = vld [vmem:[%s10279_s0 + $0xa0] sm:$0xff] }
 0x424   :  { %v1592_v59 = vld [vmem:[%s10278_s1 + $0x2f90] sm:$0xff]  ;;  %3314 = vmatpush.msra.mxu0 %v1528_v52 }
 0x425   :  { %v1368_v61 = vld [vmem:[%s10278_s1 + $0x2890] sm:$0xff]  ;;  %3337 = vmatpush.msra.mxu1 %v1592_v59 }
 0x426   :  { %v1432_v63 = vld [vmem:[%s10278_s1 + $0x2a90] sm:$0xff]  ;;  %3276 = vmatpush.msrb.mxu2 %v1368_v61 }
 0x427   :  { %v1588_v1 = vld [vmem:[%s10278_s1 + $0x2f70] sm:$0xff]  ;;  %3299 = vmatpush.msrb.mxu3 %v1432_v63 }
 0x428   :  { %v1524_v10 = vld [vmem:[%s10278_s1 + $0x2d70] sm:$0xff]  ;;  %3338 = vmatpush.msra.mxu1 %v1588_v1 }
 0x429   :  { %v1364_v11 = vld [vmem:[%s10278_s1 + $0x2870] sm:$0xff]  ;;  %3315 = vmatpush.msra.mxu0 %v1524_v10  ;;  %v8296_v10 = vpop.f32.mrf.mxu2 }
 0x42a   :  { %v1428_v12 = vld [vmem:[%s10278_s1 + $0x2a70] sm:$0xff]  ;;  %3277 = vmatpush.msrb.mxu2 %v1364_v11  ;;  %10309 = vst [vmem:[#allocation27_spill] sm:$0xff] %v8296_v10  ;;  %v133_v11 = vld [vmem:[%s10278_s1 + $0x1f8] sm:$0xff] }
 0x42b   :  { %v1520_v18 = vld [vmem:[%s10278_s1 + $0x2d50] sm:$0xff]  ;;  %3300 = vmatpush.msrb.mxu3 %v1428_v12 }
 0x42c   :  { %v1584_v21 = vld [vmem:[%s10278_s1 + $0x2f50] sm:$0xff]  ;;  %3316 = vmatpush.msra.mxu0 %v1520_v18 }
 0x42d   :  { %v1360_v31 = vld [vmem:[%s10278_s1 + $0x2850] sm:$0xff]  ;;  %3339 = vmatpush.msra.mxu1 %v1584_v21 }
 0x42e   :  { %v1424_v32 = vld [vmem:[%s10278_s1 + $0x2a50] sm:$0xff]  ;;  %3278 = vmatpush.msrb.mxu2 %v1360_v31  ;;  %v129_v31 = vld [vmem:[%s10278_s1 + $0x1d8] sm:$0xff] }
 0x42f   :  { %v1516_v41 = vld [vmem:[%s10278_s1 + $0x2d30] sm:$0xff]  ;;  %3301 = vmatpush.msrb.mxu3 %v1424_v32  ;;  %v8316_v32 = vpop.f32.mrf.mxu3 }
 0x430   :  { %v1580_v43 = vld [vmem:[%s10278_s1 + $0x2f30] sm:$0xff]  ;;  %3317 = vmatpush.msra.mxu0 %v1516_v41  ;;  %10310 = vst [vmem:[#allocation28_spill] sm:$0xff] %v8316_v32  ;;  %v441_v32 = vld [vmem:[%s10278_s1 + $0xb98] sm:$0xff] }
 0x431   :  { %v1356_v45 = vld [vmem:[%s10278_s1 + $0x2830] sm:$0xff]  ;;  %3340 = vmatpush.msra.mxu1 %v1580_v43  ;;  %v4229_v43 = vld [vmem:[%s10279_s0 + $0xa8] sm:$0xff] }
 0x432   :  { %v1420_v47 = vld [vmem:[%s10278_s1 + $0x2a30] sm:$0xff]  ;;  %3279 = vmatpush.msrb.mxu2 %v1356_v45 }
 0x433   :  { %v1512_v48 = vld [vmem:[%s10278_s1 + $0x2d10] sm:$0xff]  ;;  %3302 = vmatpush.msrb.mxu3 %v1420_v47  ;;  %v125_v47 = vld [vmem:[%s10278_s1 + $0x1b8] sm:$0xff] }
 0x434   :  { %v1576_v49 = vld [vmem:[%s10278_s1 + $0x2f10] sm:$0xff]  ;;  %3318 = vmatpush.msra.mxu0 %v1512_v48 }
 0x435   :  { %v1352_v52 = vld [vmem:[%s10278_s1 + $0x2810] sm:$0xff]  ;;  %3341 = vmatpush.msra.mxu1 %v1576_v49 }
 0x436   :  { %v1416_v59 = vld [vmem:[%s10278_s1 + $0x2a10] sm:$0xff]  ;;  %3280 = vmatpush.msrb.mxu2 %v1352_v52 }
 0x437   :  { %v1508_v61 = vld [vmem:[%s10278_s1 + $0x2cf0] sm:$0xff]  ;;  %3303 = vmatpush.msrb.mxu3 %v1416_v59  ;;  %3281 = vmatmul.f32.vlgmr.msrb.gmra.mxu2 %v4228_v17  ;;  %v121_v59 = vld [vmem:[%s10278_s1 + $0x198] sm:$0xff]  ;;  %v8360_v17 = vpop.f32.mrf.mxu2 }
 0x438   :  { %v1572_v63 = vld [vmem:[%s10278_s1 + $0x2ef0] sm:$0xff]  ;;  %3319 = vmatpush.msra.mxu0 %v1508_v61  ;;  %3304 = vmatmul.f32.vlgmr.msrb.gmra.mxu3 %v4229_v43  ;;  %10311 = vst [vmem:[#allocation29_spill] sm:$0xff] %v8360_v17  ;;  %v365_v17 = vld [vmem:[%s10278_s1 + $0x938] sm:$0xff] }
 0x439   :  { %v1636_v1 = vld [vmem:[%s10278_s1 + $0x30f0] sm:$0xff]  ;;  %3342 = vmatpush.msra.mxu1 %v1572_v63  ;;  %3380 = vmatpush.msra.mxu3 %v133_v11  ;;  %v117_v11 = vld [vmem:[%s10278_s1 + $0x178] sm:$0xff] }
 0x43a   :  { %v1504_v12 = vld [vmem:[%s10278_s1 + $0x2cd0] sm:$0xff]  ;;  %3365 = vmatpush.msra.mxu2 %v1636_v1 }
 0x43b   :  { %v1568_v18 = vld [vmem:[%s10278_s1 + $0x2ed0] sm:$0xff]  ;;  %3320 = vmatpush.msra.mxu0 %v1504_v12  ;;  %3381 = vmatpush.msra.mxu3 %v129_v31 }
 0x43c   :  { %v1632_v21 = vld [vmem:[%s10278_s1 + $0x30d0] sm:$0xff]  ;;  %3343 = vmatpush.msra.mxu1 %v1568_v18  ;;  %v4230_v18 = vld [vmem:[%s10279_s0 + $0x168] sm:$0xff] }
 0x43d   :  { %v1500_v39 = vld [vmem:[%s10278_s1 + $0x2cb0] sm:$0xff]  ;;  %3366 = vmatpush.msra.mxu2 %v1632_v21  ;;  %3382 = vmatpush.msra.mxu3 %v125_v47 }
 0x43e   :  { %v1564_v41 = vld [vmem:[%s10278_s1 + $0x2eb0] sm:$0xff]  ;;  %3321 = vmatpush.msra.mxu0 %v1500_v39  ;;  %v113_v39 = vld [vmem:[%s10278_s1 + $0x158] sm:$0xff] }
 0x43f   :  { %v1628_v45 = vld [vmem:[%s10278_s1 + $0x30b0] sm:$0xff]  ;;  %3344 = vmatpush.msra.mxu1 %v1564_v41  ;;  %3383 = vmatpush.msra.mxu3 %v121_v59 }
 0x440   :  { %v1496_v48 = vld [vmem:[%s10278_s1 + $0x2c90] sm:$0xff]  ;;  %3367 = vmatpush.msra.mxu2 %v1628_v45  ;;  %v8380_v45 = vpop.f32.mrf.mxu3 }
 0x441   :  { %v1560_v49 = vld [vmem:[%s10278_s1 + $0x2e90] sm:$0xff]  ;;  %3322 = vmatpush.msra.mxu0 %v1496_v48  ;;  %3284 = vmatmul.f32.gmra.mxu2 %v4230_v18  ;;  %10312 = vst [vmem:[#allocation30_spill] sm:$0xff] %v8380_v45  ;;  %v8412_v18 = vpop.f32.mrf.mxu0  ;;  %v141_v45 = vld [vmem:[%s10278_s1 + $0x238] sm:$0xff] }
 0x442   :  { %v1624_v52 = vld [vmem:[%s10278_s1 + $0x3090] sm:$0xff]  ;;  %3345 = vmatpush.msra.mxu1 %v1560_v49  ;;  %3384 = vmatpush.msra.mxu3 %v117_v11  ;;  %v109_v49 = vld [vmem:[%s10278_s1 + $0x138] sm:$0xff]  ;;  %10313 = vst [vmem:[#allocation31_spill] sm:$0xff] %v8412_v18 }
 0x443   :  { %v1492_v61 = vld [vmem:[%s10278_s1 + $0x2c70] sm:$0xff]  ;;  %3368 = vmatpush.msra.mxu2 %v1624_v52  ;;  %v197_v11 = vld [vmem:[%s10278_s1 + $0x3f8] sm:$0xff] }
 0x444   :  { %v1556_v63 = vld [vmem:[%s10278_s1 + $0x2e70] sm:$0xff]  ;;  %3323 = vmatpush.msra.mxu0 %v1492_v61  ;;  %3385 = vmatpush.msra.mxu3 %v113_v39  ;;  %v193_v39 = vld [vmem:[%s10278_s1 + $0x3d8] sm:$0xff] }
 0x445   :  { %v1620_v1 = vld [vmem:[%s10278_s1 + $0x3070] sm:$0xff]  ;;  %3346 = vmatpush.msra.mxu1 %v1556_v63  ;;  %v105_v63 = vld [vmem:[%s10278_s1 + $0x118] sm:$0xff] }
 0x446   :  { %v1488_v12 = vld [vmem:[%s10278_s1 + $0x2c50] sm:$0xff]  ;;  %3369 = vmatpush.msra.mxu2 %v1620_v1  ;;  %3386 = vmatpush.msra.mxu3 %v109_v49  ;;  %v261_v1 = vld [vmem:[%s10278_s1 + $0x5f8] sm:$0xff]  ;;  %v4233_v49 = vld [vmem:[%s10279_s0 + $0xc0] sm:$0xff] }
 0x447   :  { %v1552_v21 = vld [vmem:[%s10278_s1 + $0x2e50] sm:$0xff]  ;;  %3324 = vmatpush.msra.mxu0 %v1488_v12  ;;  %v325_v12 = vld [vmem:[%s10278_s1 + $0x7f8] sm:$0xff] }
 0x448   :  { %v1616_v31 = vld [vmem:[%s10278_s1 + $0x3050] sm:$0xff]  ;;  %3347 = vmatpush.msra.mxu1 %v1552_v21  ;;  %3387 = vmatpush.msra.mxu3 %v105_v63  ;;  %v101_v21 = vld [vmem:[%s10278_s1 + $0xf8] sm:$0xff] }
 0x449   :  { %v1484_v41 = vld [vmem:[%s10278_s1 + $0x2c30] sm:$0xff]  ;;  %3370 = vmatpush.msra.mxu2 %v1616_v31  ;;  %v253_v63 = vld [vmem:[%s10278_s1 + $0x5b8] sm:$0xff] }
 0x44a   :  { %v1548_v43 = vld [vmem:[%s10278_s1 + $0x2e30] sm:$0xff]  ;;  %3325 = vmatpush.msra.mxu0 %v1484_v41  ;;  %v257_v41 = vld [vmem:[%s10278_s1 + $0x5d8] sm:$0xff]  ;;  %3388 = vmatpush.msra.mxu3 %v101_v21 }
 0x44b   :  { %v4231_v47 = vld [vmem:[%s10279_s0 + $0x170] sm:$0xff]  ;;  %3348 = vmatpush.msra.mxu1 %v1548_v43  ;;  %v321_v43 = vld [vmem:[%s10278_s1 + $0x7d8] sm:$0xff] }
 0x44c   :  { %3307 = vmatmul.f32.gmra.mxu3 %v4231_v47  ;;  %v1612_v48 = vld [vmem:[%s10278_s1 + $0x3030] sm:$0xff]  ;;  %v8429_v47 = vpop.f32.mrf.mxu1  ;;  %v249_v21 = vld [vmem:[%s10278_s1 + $0x598] sm:$0xff] }
 0x44d   :  { %v1480_v52 = vld [vmem:[%s10278_s1 + $0x2c10] sm:$0xff]  ;;  %3371 = vmatpush.msra.mxu2 %v1612_v48  ;;  %v8431_v48 = vpop.f32.mrf.mxu2  ;;  %v513_v18 = vld [vmem:[%s10278_s1 + $0xdd8] sm:$0xff] }
 0x44e   :  { %v1544_v59 = vld [vmem:[%s10278_s1 + $0x2e10] sm:$0xff]  ;;  %3326 = vmatpush.msra.mxu0 %v1480_v52  ;;  %v97_v52 = vld [vmem:[%s10278_s1 + $0xd8] sm:$0xff] }
 0x44f   :  { %v1608_v61 = vld [vmem:[%s10278_s1 + $0x3010] sm:$0xff]  ;;  %3349 = vmatpush.msra.mxu1 %v1544_v59  ;;  %v189_v59 = vld [vmem:[%s10278_s1 + $0x3b8] sm:$0xff]  ;;  %3389 = vmatpush.msra.mxu3 %v97_v52 }
 0x450   :  { %3372 = vmatpush.msra.mxu2 %v1608_v61  ;;  %v4232_v31 = vld [vmem:[%s10279_s0 + $0xb0] sm:$0xff]  ;;  %3403 = vmatpush.msrb.mxu0 %v197_v11  ;;  %v4234_v61 = vld [vmem:[%s10279_s0 + $0xb8] sm:$0xff] }
 0x451   :  { %3327 = vmatmul.f32.vlgmr.msra.gmra.mxu0 %v4232_v31  ;;  %3426 = vmatpush.msrb.mxu1 %v261_v1  ;;  %v317_v1 = vld [vmem:[%s10278_s1 + $0x7b8] sm:$0xff] }
 0x452   :  { %3449 = vmatpush.msrb.mxu2 %v325_v12  ;;  %3350 = vmatmul.f32.vlgmr.msra.gmra.mxu1 %v4234_v61  ;;  %v93_v11 = vld [vmem:[%s10278_s1 + $0xb8] sm:$0xff] }
 0x453   :  { %4133 = vmatmul.msk.f32.vlgmr.msra.gmra.mxu2 %vm1648_vm0, %v4233_v49  ;;  %3404 = vmatpush.msrb.mxu0 %v193_v39  ;;  %v185_v12 = vld [vmem:[%s10278_s1 + $0x398] sm:$0xff] }
 0x454   :  { %3427 = vmatpush.msrb.mxu1 %v257_v41  ;;  %3450 = vmatpush.msrb.mxu2 %v321_v43  ;;  %v313_v31 = vld [vmem:[%s10278_s1 + $0x798] sm:$0xff] }
 0x455   :  { %3405 = vmatpush.msrb.mxu0 %v189_v59  ;;  %v89_v39 = vld [vmem:[%s10278_s1 + $0x98] sm:$0xff]  ;;  %3390 = vmatpush.msra.mxu3 %v93_v11  ;;  %v8479_v59 = vpop.f32.mrf.mxu0 }
 0x456   :  { %3428 = vmatpush.msrb.mxu1 %v253_v63  ;;  %3451 = vmatpush.msrb.mxu2 %v317_v1  ;;  %v181_v41 = vld [vmem:[%s10278_s1 + $0x378] sm:$0xff]  ;;  %10314 = vst [vmem:[#allocation32_spill] sm:$0xff] %v8479_v59 }
 0x457   :  { %3406 = vmatpush.msrb.mxu0 %v185_v12  ;;  %v245_v43 = vld [vmem:[%s10278_s1 + $0x578] sm:$0xff]  ;;  %3391 = vmatpush.msra.mxu3 %v89_v39  ;;  %v4236_v39 = vld [vmem:[%s10279_s0 + $0x188] sm:$0xff] }
 0x458   :  { %3429 = vmatpush.msrb.mxu1 %v249_v21  ;;  %3452 = vmatpush.msrb.mxu2 %v313_v31  ;;  %v309_v49 = vld [vmem:[%s10278_s1 + $0x778] sm:$0xff]  ;;  %v8496_v21 = vpop.f32.mrf.mxu1  ;;  %v8498_v31 = vpop.f32.mrf.mxu2 }
 0x459   :  { %v85_v52 = vld [vmem:[%s10278_s1 + $0x78] sm:$0xff]  ;;  %3407 = vmatpush.msrb.mxu0 %v181_v41  ;;  %v4237_v41 = vld [vmem:[%s10279_s0 + $0x180] sm:$0xff] }
 0x45a   :  { %v4235_v61 = vld [vmem:[%s10279_s0 + $0x178] sm:$0xff]  ;;  %3430 = vmatpush.msrb.mxu1 %v245_v43  ;;  %3453 = vmatpush.msrb.mxu2 %v309_v49 }
 0x45b   :  { %3330 = vmatmul.f32.gmra.mxu0 %v4235_v61  ;;  %v177_v63 = vld [vmem:[%s10278_s1 + $0x358] sm:$0xff]  ;;  %3392 = vmatpush.msra.mxu3 %v85_v52 }
 0x45c   :  { %v241_v1 = vld [vmem:[%s10278_s1 + $0x558] sm:$0xff]  ;;  %4134 = vmatmul.msk.f32.gmra.mxu2 %vm1648_vm0, %v4236_v39  ;;  %3353 = vmatmul.f32.gmra.mxu1 %v4237_v41 }
 0x45d   :  { %v305_v11 = vld [vmem:[%s10278_s1 + $0x758] sm:$0xff]  ;;  %3408 = vmatpush.msrb.mxu0 %v177_v63  ;;  %3431 = vmatpush.msrb.mxu1 %v241_v1 }
 0x45e   :  { %v81_v12 = vld [vmem:[%s10278_s1 + $0x58] sm:$0xff]  ;;  %3454 = vmatpush.msrb.mxu2 %v305_v11 }
 0x45f   :  { %v173_v43 = vld [vmem:[%s10278_s1 + $0x338] sm:$0xff]  ;;  %3393 = vmatpush.msra.mxu3 %v81_v12 }
 0x460   :  { %v237_v49 = vld [vmem:[%s10278_s1 + $0x538] sm:$0xff]  ;;  %3409 = vmatpush.msrb.mxu0 %v173_v43 }
 0x461   :  { %v301_v52 = vld [vmem:[%s10278_s1 + $0x738] sm:$0xff]  ;;  %3432 = vmatpush.msrb.mxu1 %v237_v49 }
 0x462   :  { %v77_v61 = vld [vmem:[%s10278_s1 + $0x38] sm:$0xff]  ;;  %3455 = vmatpush.msrb.mxu2 %v301_v52  ;;  %v8543_v52 = vpop.f32.mrf.mxu3 }
 0x463   :  { %v169_v39 = vld [vmem:[%s10278_s1 + $0x318] sm:$0xff]  ;;  %3394 = vmatpush.msra.mxu3 %v77_v61 }
 0x464   :  { %v233_v41 = vld [vmem:[%s10278_s1 + $0x518] sm:$0xff]  ;;  %3410 = vmatpush.msrb.mxu0 %v169_v39 }
 0x465   :  { %v297_v63 = vld [vmem:[%s10278_s1 + $0x718] sm:$0xff]  ;;  %3433 = vmatpush.msrb.mxu1 %v233_v41 }
 0x466   :  { %v73_v1 = vld [vmem:[%s10278_s1 + $0x18] sm:$0xff]  ;;  %3456 = vmatpush.msrb.mxu2 %v297_v63 }
 0x467   :  { %v165_v11 = vld [vmem:[%s10278_s1 + $0x2f8] sm:$0xff]  ;;  %3395 = vmatpush.msra.mxu3 %v73_v1 }
 0x468   :  { %v229_v12 = vld [vmem:[%s10278_s1 + $0x4f8] sm:$0xff]  ;;  %3411 = vmatpush.msrb.mxu0 %v165_v11 }
 0x469   :  { %v293_v43 = vld [vmem:[%s10278_s1 + $0x6f8] sm:$0xff]  ;;  %3434 = vmatpush.msrb.mxu1 %v229_v12 }
 0x46a   :  { %v389_v49 = vld [vmem:[%s10278_s1 + $0x9f8] sm:$0xff]  ;;  %3457 = vmatpush.msrb.mxu2 %v293_v43 }
 0x46b   :  { %v161_v61 = vld [vmem:[%s10278_s1 + $0x2d8] sm:$0xff]  ;;  %3472 = vmatpush.msrb.mxu3 %v389_v49 }
 0x46c   :  { %v225_v39 = vld [vmem:[%s10278_s1 + $0x4d8] sm:$0xff]  ;;  %3412 = vmatpush.msrb.mxu0 %v161_v61 }
 0x46d   :  { %v289_v41 = vld [vmem:[%s10278_s1 + $0x6d8] sm:$0xff]  ;;  %3435 = vmatpush.msrb.mxu1 %v225_v39 }
 0x46e   :  { %v385_v59 = vld [vmem:[%s10278_s1 + $0x9d8] sm:$0xff]  ;;  %3458 = vmatpush.msrb.mxu2 %v289_v41 }
 0x46f   :  { %v157_v63 = vld [vmem:[%s10278_s1 + $0x2b8] sm:$0xff]  ;;  %3473 = vmatpush.msrb.mxu3 %v385_v59 }
 0x470   :  { %v221_v1 = vld [vmem:[%s10278_s1 + $0x4b8] sm:$0xff]  ;;  %3413 = vmatpush.msrb.mxu0 %v157_v63 }
 0x471   :  { %v285_v11 = vld [vmem:[%s10278_s1 + $0x6b8] sm:$0xff]  ;;  %3436 = vmatpush.msrb.mxu1 %v221_v1 }
 0x472   :  { %v381_v12 = vld [vmem:[%s10278_s1 + $0x9b8] sm:$0xff]  ;;  %3459 = vmatpush.msrb.mxu2 %v285_v11 }
 0x473   :  { %v153_v43 = vld [vmem:[%s10278_s1 + $0x298] sm:$0xff]  ;;  %3474 = vmatpush.msrb.mxu3 %v381_v12 }
 0x474   :  { %v217_v49 = vld [vmem:[%s10278_s1 + $0x498] sm:$0xff]  ;;  %3414 = vmatpush.msrb.mxu0 %v153_v43 }
 0x475   :  { %v281_v61 = vld [vmem:[%s10278_s1 + $0x698] sm:$0xff]  ;;  %3437 = vmatpush.msrb.mxu1 %v217_v49 }
 0x476   :  { %v377_v39 = vld [vmem:[%s10278_s1 + $0x998] sm:$0xff]  ;;  %3460 = vmatpush.msrb.mxu2 %v281_v61  ;;  %v8605_v61 = vpop.f32.mrf.mxu0 }
 0x477   :  { %v149_v59 = vld [vmem:[%s10278_s1 + $0x278] sm:$0xff]  ;;  %3475 = vmatpush.msrb.mxu3 %v377_v39  ;;  %v8607_v39 = vpop.f32.mrf.mxu3 }
 0x478   :  { %v213_v41 = vld [vmem:[%s10278_s1 + $0x478] sm:$0xff]  ;;  %3415 = vmatpush.msrb.mxu0 %v149_v59 }
 0x479   :  { %v277_v63 = vld [vmem:[%s10278_s1 + $0x678] sm:$0xff]  ;;  %3438 = vmatpush.msrb.mxu1 %v213_v41 }
 0x47a   :  { %v373_v1 = vld [vmem:[%s10278_s1 + $0x978] sm:$0xff]  ;;  %3461 = vmatpush.msrb.mxu2 %v277_v63 }
 0x47b   :  { %v145_v11 = vld [vmem:[%s10278_s1 + $0x258] sm:$0xff]  ;;  %3476 = vmatpush.msrb.mxu3 %v373_v1 }
 0x47c   :  { %v209_v12 = vld [vmem:[%s10278_s1 + $0x458] sm:$0xff]  ;;  %3416 = vmatpush.msrb.mxu0 %v145_v11 }
 0x47d   :  { %v273_v43 = vld [vmem:[%s10278_s1 + $0x658] sm:$0xff]  ;;  %3439 = vmatpush.msrb.mxu1 %v209_v12 }
 0x47e   :  { %v369_v49 = vld [vmem:[%s10278_s1 + $0x958] sm:$0xff]  ;;  %3462 = vmatpush.msrb.mxu2 %v273_v43  ;;  %3417 = vmatpush.msrb.mxu0 %v141_v45  ;;  %v8639_v45 = vpop.f32.mrf.mxu1 }
 0x47f   :  { %v205_v59 = vld [vmem:[%s10278_s1 + $0x438] sm:$0xff]  ;;  %3477 = vmatpush.msrb.mxu3 %v369_v49 }
 0x480   :  { %v269_v41 = vld [vmem:[%s10278_s1 + $0x638] sm:$0xff]  ;;  %3440 = vmatpush.msrb.mxu1 %v205_v59 }
 0x481   :  { %v137_v63 = vld [vmem:[%s10278_s1 + $0x218] sm:$0xff]  ;;  %3463 = vmatpush.msrb.mxu2 %v269_v41  ;;  %3478 = vmatpush.msrb.mxu3 %v365_v17 }
 0x482   :  { %v201_v1 = vld [vmem:[%s10278_s1 + $0x418] sm:$0xff]  ;;  %3418 = vmatpush.msrb.mxu0 %v137_v63  ;;  %v8653_v63 = vpop.f32.mrf.mxu2 }
 0x483   :  { %v265_v11 = vld [vmem:[%s10278_s1 + $0x618] sm:$0xff]  ;;  %3441 = vmatpush.msrb.mxu1 %v201_v1 }
 0x484   :  { %v361_v12 = vld [vmem:[%s10278_s1 + $0x918] sm:$0xff]  ;;  %3464 = vmatpush.msrb.mxu2 %v265_v11 }
 0x485   :  { %v453_v43 = vld [vmem:[%s10278_s1 + $0xbf8] sm:$0xff]  ;;  %3479 = vmatpush.msrb.mxu3 %v361_v12 }
 0x486   :  { %v517_v49 = vld [vmem:[%s10278_s1 + $0xdf8] sm:$0xff]  ;;  %3495 = vmatpush.msra.mxu0 %v453_v43 }
 0x487   :  { %v581_v59 = vld [vmem:[%s10278_s1 + $0xff8] sm:$0xff]  ;;  %3518 = vmatpush.msra.mxu1 %v517_v49 }
 0x488   :  { %v357_v17 = vld [vmem:[%s10278_s1 + $0x8f8] sm:$0xff]  ;;  %3541 = vmatpush.msra.mxu2 %v581_v59  ;;  %v8673_v59 = vpop.f32.mrf.mxu0 }
 0x489   :  { %v449_v41 = vld [vmem:[%s10278_s1 + $0xbd8] sm:$0xff]  ;;  %3480 = vmatpush.msrb.mxu3 %v357_v17  ;;  %3519 = vmatpush.msra.mxu1 %v513_v18  ;;  %v8675_v17 = vpop.f32.mrf.mxu3 }
 0x48a   :  { %v577_v1 = vld [vmem:[%s10278_s1 + $0xfd8] sm:$0xff]  ;;  %3496 = vmatpush.msra.mxu0 %v449_v41  ;;  %v8706_v10 = vpop.f32.mrf.mxu2 }
 0x48b   :  { %v353_v11 = vld [vmem:[%s10278_s1 + $0x8d8] sm:$0xff]  ;;  %3542 = vmatpush.msra.mxu2 %v577_v1  ;;  %3520 = vmatpush.msra.mxu1 %v509_v33 }
 0x48c   :  { %v445_v12 = vld [vmem:[%s10278_s1 + $0xbb8] sm:$0xff]  ;;  %3481 = vmatpush.msrb.mxu3 %v353_v11 }
 0x48d   :  { %v573_v43 = vld [vmem:[%s10278_s1 + $0xfb8] sm:$0xff]  ;;  %3497 = vmatpush.msra.mxu0 %v445_v12  ;;  %v8695_v12 = vpop.f32.mrf.mxu1 }
 0x48e   :  { %v349_v49 = vld [vmem:[%s10278_s1 + $0x8b8] sm:$0xff]  ;;  %3543 = vmatpush.msra.mxu2 %v573_v43 }
 0x48f   :  { %v505_v18 = vld [vmem:[%s10278_s1 + $0xd98] sm:$0xff]  ;;  %3482 = vmatpush.msrb.mxu3 %v349_v49  ;;  %3498 = vmatpush.msra.mxu0 %v441_v32 }
 0x490   :  { %v569_v41 = vld [vmem:[%s10278_s1 + $0xf98] sm:$0xff]  ;;  %3521 = vmatpush.msra.mxu1 %v505_v18  ;;  %v4238_v18 = vld [vmem:[%s10279_s0] sm:$0xff] }
 0x491   :  { %v437_v1 = vld [vmem:[%s10278_s1 + $0xb78] sm:$0xff]  ;;  %3544 = vmatpush.msra.mxu2 %v569_v41  ;;  %3483 = vmatpush.msrb.mxu3 %v345_v16  ;;  %v8729_v54 = vpop.f32.mrf.mxu3 }
 0x492   :  { %v501_v11 = vld [vmem:[%s10278_s1 + $0xd78] sm:$0xff]  ;;  %3499 = vmatpush.msra.mxu0 %v437_v1  ;;  %3396 = vmatmul.f32.vlgmr.msra.gmra.mxu3 %v4238_v18  ;;  %v8771_v42 = vpop.f32.mrf.mxu2 }
 0x493   :  { %v565_v33 = vld [vmem:[%s10278_s1 + $0xf78] sm:$0xff]  ;;  %3522 = vmatpush.msra.mxu1 %v501_v11  ;;  %10316 = vst [vmem:[#allocation34_spill] sm:$0xff] %v8771_v42 }
 0x494   :  { %v341_v43 = vld [vmem:[%s10278_s1 + $0x878] sm:$0xff]  ;;  %3545 = vmatpush.msra.mxu2 %v565_v33 }
 0x495   :  { %v433_v49 = vld [vmem:[%s10278_s1 + $0xb58] sm:$0xff]  ;;  %3484 = vmatpush.msrb.mxu3 %v341_v43 }
 0x496   :  { %v497_v32 = vld [vmem:[%s10278_s1 + $0xd58] sm:$0xff]  ;;  %3500 = vmatpush.msra.mxu0 %v433_v49 }
 0x497   :  { %v561_v16 = vld [vmem:[%s10278_s1 + $0xf58] sm:$0xff]  ;;  %3523 = vmatpush.msra.mxu1 %v497_v32  ;;  %v8743_v32 = vpop.f32.mrf.mxu0 }
 0x498   :  { %v337_v41 = vld [vmem:[%s10278_s1 + $0x858] sm:$0xff]  ;;  %3546 = vmatpush.msra.mxu2 %v561_v16 }
 0x499   :  { %v429_v1 = vld [vmem:[%s10278_s1 + $0xb38] sm:$0xff]  ;;  %3485 = vmatpush.msrb.mxu3 %v337_v41  ;;  %v8796_v23 = vpop.f32.mrf.mxu3 }
 0x49a   :  { %v493_v11 = vld [vmem:[%s10278_s1 + $0xd38] sm:$0xff]  ;;  %3501 = vmatpush.msra.mxu0 %v429_v1  ;;  %10318 = vst [vmem:[#allocation36_spill] sm:$0xff] %v8796_v23 }
 0x49b   :  { %v557_v33 = vld [vmem:[%s10278_s1 + $0xf38] sm:$0xff]  ;;  %3524 = vmatpush.msra.mxu1 %v493_v11 }
 0x49c   :  { %v333_v18 = vld [vmem:[%s10278_s1 + $0x838] sm:$0xff]  ;;  %3547 = vmatpush.msra.mxu2 %v557_v33 }
 0x49d   :  { %v425_v43 = vld [vmem:[%s10278_s1 + $0xb18] sm:$0xff]  ;;  %3486 = vmatpush.msrb.mxu3 %v333_v18  ;;  %v8760_v18 = vpop.f32.mrf.mxu1 }
 0x49e   :  { %v489_v49 = vld [vmem:[%s10278_s1 + $0xd18] sm:$0xff]  ;;  %3502 = vmatpush.msra.mxu0 %v425_v43  ;;  %3548 = vmatpush.msra.mxu2 %v553_v35  ;;  %10315 = vst [vmem:[#allocation33_spill] sm:$0xff] %v8760_v18 }
 0x49f   :  { %v329_v16 = vld [vmem:[%s10278_s1 + $0x818] sm:$0xff]  ;;  %3525 = vmatpush.msra.mxu1 %v489_v49 }
 0x4a0   :  { %v421_v41 = vld [vmem:[%s10278_s1 + $0xaf8] sm:$0xff]  ;;  %3487 = vmatpush.msrb.mxu3 %v329_v16 }
 0x4a1   :  { %v485_v1 = vld [vmem:[%s10278_s1 + $0xcf8] sm:$0xff]  ;;  %3503 = vmatpush.msra.mxu0 %v421_v41  ;;  %v4240_v41 = vld [vmem:[%s10279_s0 + $0xc8] sm:$0xff]  ;;  %v8864_v15 = vpop.f32.mrf.mxu3 }
 0x4a2   :  { %v549_v11 = vld [vmem:[%s10278_s1 + $0xef8] sm:$0xff]  ;;  %3526 = vmatpush.msra.mxu1 %v485_v1  ;;  %3399 = vmatmul.f32.gmra.mxu3 %v4240_v41  ;;  %v4241_v1 = vld [vmem:[%s10279_s0 + $0x8] sm:$0xff]  ;;  %v8794_v41 = vpop.f32.mrf.mxu0  ;;  %10322 = vst [vmem:[#allocation40_spill] sm:$0xff] %v8864_v15 }
 0x4a3   :  { %v645_v33 = vld [vmem:[%s10278_s1 + $0x11f8] sm:$0xff]  ;;  %3549 = vmatpush.msra.mxu2 %v549_v11  ;;  %3419 = vmatmul.f32.vlgmr.msrb.gmra.mxu0 %v4241_v1  ;;  %10317 = vst [vmem:[#allocation35_spill] sm:$0xff] %v8794_v41 }
 0x4a4   :  { %v4239_v43 = vld [vmem:[%s10279_s0 + $0x18] sm:$0xff]  ;;  %3564 = vmatpush.msra.mxu3 %v645_v33 }
 0x4a5   :  { %3465 = vmatmul.f32.vlgmr.msrb.gmra.mxu2 %v4239_v43  ;;  %v417_v35 = vld [vmem:[%s10278_s1 + $0xad8] sm:$0xff]  ;;  %v8816_v13 = vpop.f32.mrf.mxu1 }
 0x4a6   :  { %v481_v49 = vld [vmem:[%s10278_s1 + $0xcd8] sm:$0xff]  ;;  %3504 = vmatpush.msra.mxu0 %v417_v35  ;;  %3550 = vmatpush.msra.mxu2 %v545_v20  ;;  %10319 = vst [vmem:[#allocation37_spill] sm:$0xff] %v8816_v13 }
 0x4a7   :  { %v641_v16 = vld [vmem:[%s10278_s1 + $0x11d8] sm:$0xff]  ;;  %3527 = vmatpush.msra.mxu1 %v481_v49  ;;  %v4242_v49 = vld [vmem:[%s10279_s0 + $0x10] sm:$0xff] }
 0x4a8   :  { %v413_v11 = vld [vmem:[%s10278_s1 + $0xab8] sm:$0xff]  ;;  %3565 = vmatpush.msra.mxu3 %v641_v16  ;;  %3442 = vmatmul.f32.vlgmr.msrb.gmra.mxu1 %v4242_v49 }
 0x4a9   :  { %v477_v33 = vld [vmem:[%s10278_s1 + $0xcb8] sm:$0xff]  ;;  %3505 = vmatpush.msra.mxu0 %v413_v11 }
 0x4aa   :  { %v541_v43 = vld [vmem:[%s10278_s1 + $0xeb8] sm:$0xff]  ;;  %3528 = vmatpush.msra.mxu1 %v477_v33 }
 0x4ab   :  { %v637_v1 = vld [vmem:[%s10278_s1 + $0x11b8] sm:$0xff]  ;;  %3551 = vmatpush.msra.mxu2 %v541_v43 }
 0x4ac   :  { %v409_v35 = vld [vmem:[%s10278_s1 + $0xa98] sm:$0xff]  ;;  %3566 = vmatpush.msra.mxu3 %v637_v1  ;;  %3529 = vmatpush.msra.mxu1 %v473_v9  ;;  %v4243_v1 = vld [vmem:[%s10279_s0 + $0xe0] sm:$0xff] }
 0x4ad   :  { %v537_v20 = vld [vmem:[%s10278_s1 + $0xe98] sm:$0xff]  ;;  %3506 = vmatpush.msra.mxu0 %v409_v35  ;;  %3468 = vmatmul.f32.gmra.mxu2 %v4243_v1  ;;  %v4245_v1 = vld [vmem:[%s10279_s0 + $0x20] sm:$0xff] }
 0x4ae   :  { %v633_v16 = vld [vmem:[%s10278_s1 + $0x1198] sm:$0xff]  ;;  %3552 = vmatpush.msra.mxu2 %v537_v20  ;;  %v8839_v20 = vpop.f32.mrf.mxu2  ;;  %3488 = vmatmul.f32.vlgmr.msrb.gmra.mxu3 %v4245_v1 }
 0x4af   :  { %v405_v11 = vld [vmem:[%s10278_s1 + $0xa78] sm:$0xff]  ;;  %3567 = vmatpush.msra.mxu3 %v633_v16  ;;  %10320 = vst [vmem:[#allocation38_spill] sm:$0xff] %v8839_v20 }
 0x4b0   :  { %v469_v49 = vld [vmem:[%s10278_s1 + $0xc78] sm:$0xff]  ;;  %3507 = vmatpush.msra.mxu0 %v405_v11  ;;  %3445 = vmatmul.f32.gmra.mxu1 %v4246_v44 }
 0x4b1   :  { %v533_v33 = vld [vmem:[%s10278_s1 + $0xe78] sm:$0xff]  ;;  %3530 = vmatpush.msra.mxu1 %v469_v49  ;;  %v4244_v49 = vld [vmem:[%s10279_s0 + $0xd0] sm:$0xff] }
 0x4b2   :  { %v629_v43 = vld [vmem:[%s10278_s1 + $0x1178] sm:$0xff]  ;;  %3553 = vmatpush.msra.mxu2 %v533_v33  ;;  %3422 = vmatmul.f32.gmra.mxu0 %v4244_v49  ;;  %v8862_v49 = vpop.f32.mrf.mxu0 }
 0x4b3   :  { %v401_v9 = vld [vmem:[%s10278_s1 + $0xa58] sm:$0xff]  ;;  %3568 = vmatpush.msra.mxu3 %v629_v43  ;;  %10321 = vst [vmem:[#allocation39_spill] sm:$0xff] %v8862_v49 }
 0x4b4   :  { %v465_v35 = vld [vmem:[%s10278_s1 + $0xc58] sm:$0xff]  ;;  %3508 = vmatpush.msra.mxu0 %v401_v9 }
 0x4b5   :  { %v529_v16 = vld [vmem:[%s10278_s1 + $0xe58] sm:$0xff]  ;;  %3531 = vmatpush.msra.mxu1 %v465_v35  ;;  %v8872_v35 = vpop.f32.mrf.mxu1 }
 0x4b6   :  { %v625_v11 = vld [vmem:[%s10278_s1 + $0x1158] sm:$0xff]  ;;  %3554 = vmatpush.msra.mxu2 %v529_v16  ;;  %10323 = vst [vmem:[#allocation41_spill] sm:$0xff] %v8872_v35 }
 0x4b7   :  { %v397_v33 = vld [vmem:[%s10278_s1 + $0xa38] sm:$0xff]  ;;  %3569 = vmatpush.msra.mxu3 %v625_v11 }
 0x4b8   :  { %v461_v43 = vld [vmem:[%s10278_s1 + $0xc38] sm:$0xff]  ;;  %3509 = vmatpush.msra.mxu0 %v397_v33  ;;  %3555 = vmatpush.msra.mxu2 %v525_v50 }
 0x4b9   :  { %v621_v1 = vld [vmem:[%s10278_s1 + $0x1138] sm:$0xff]  ;;  %3532 = vmatpush.msra.mxu1 %v461_v43 }
 0x4ba   :  { %v393_v9 = vld [vmem:[%s10278_s1 + $0xa18] sm:$0xff]  ;;  %3570 = vmatpush.msra.mxu3 %v621_v1  ;;  %v8898_v1 = vpop.f32.mrf.mxu2 }
 0x4bb   :  { %v457_v16 = vld [vmem:[%s10278_s1 + $0xc18] sm:$0xff]  ;;  %3510 = vmatpush.msra.mxu0 %v393_v9  ;;  %10324 = vst [vmem:[#allocation42_spill] sm:$0xff] %v8898_v1 }
 0x4bc   :  { %v521_v11 = vld [vmem:[%s10278_s1 + $0xe18] sm:$0xff]  ;;  %3533 = vmatpush.msra.mxu1 %v457_v16  ;;  %3571 = vmatpush.msra.mxu3 %v617_v0 }
 0x4bd   :  { %v709_v44 = vld [vmem:[%s10278_s1 + $0x13f8] sm:$0xff]  ;;  %3556 = vmatpush.msra.mxu2 %v521_v11 }
 0x4be   :  { %v773_v33 = vld [vmem:[%s10278_s1 + $0x15f8] sm:$0xff]  ;;  %3587 = vmatpush.msrb.mxu0 %v709_v44  ;;  %v4248_v44 = vld [vmem:[%s10279_s0 + $0x28] sm:$0xff] }
 0x4bf   :  { %v837_v50 = vld [vmem:[%s10278_s1 + $0x17f8] sm:$0xff]  ;;  %3610 = vmatpush.msrb.mxu1 %v773_v33  ;;  %3511 = vmatmul.f32.vlgmr.msra.gmra.mxu0 %v4248_v44  ;;  %v8932_v44 = vpop.f32.mrf.mxu0 }
 0x4c0   :  { %v613_v43 = vld [vmem:[%s10278_s1 + $0x10f8] sm:$0xff]  ;;  %3633 = vmatpush.msrb.mxu2 %v837_v50  ;;  %10326 = vst [vmem:[#allocation44_spill] sm:$0xff] %v8932_v44 }
 0x4c1   :  { %v4247_v9 = vld [vmem:[%s10279_s0 + $0x38] sm:$0xff]  ;;  %3572 = vmatpush.msra.mxu3 %v613_v43 }
 0x4c2   :  { %3557 = vmatmul.f32.vlgmr.msra.gmra.mxu2 %v4247_v9  ;;  %v769_v16 = vld [vmem:[%s10278_s1 + $0x15d8] sm:$0xff]  ;;  %v8915_v9 = vpop.f32.mrf.mxu3 }
 0x4c3   :  { %v705_v11 = vld [vmem:[%s10278_s1 + $0x13d8] sm:$0xff]  ;;  %10325 = vst [vmem:[#allocation43_spill] sm:$0xff] %v8915_v9  ;;  %3611 = vmatpush.msrb.mxu1 %v769_v16  ;;  %3634 = vmatpush.msrb.mxu2 %v833_v37  ;;  %v4249_v16 = vld [vmem:[%s10279_s0 + $0x30] sm:$0xff]  ;;  %v8943_v9 = vpop.f32.mrf.mxu1 }
 0x4c4   :  { %v609_v0 = vld [vmem:[%s10278_s1 + $0x10d8] sm:$0xff]  ;;  %3588 = vmatpush.msrb.mxu0 %v705_v11  ;;  %3534 = vmatmul.f32.vlgmr.msra.gmra.mxu1 %v4249_v16  ;;  %10327 = vst [vmem:[#allocation45_spill] sm:$0xff] %v8943_v9 }
 0x4c5   :  { %v701_v33 = vld [vmem:[%s10278_s1 + $0x13b8] sm:$0xff]  ;;  %3573 = vmatpush.msra.mxu3 %v609_v0 }
 0x4c6   :  { %v765_v50 = vld [vmem:[%s10278_s1 + $0x15b8] sm:$0xff]  ;;  %3589 = vmatpush.msrb.mxu0 %v701_v33 }
 0x4c7   :  { %v829_v43 = vld [vmem:[%s10278_s1 + $0x17b8] sm:$0xff]  ;;  %3612 = vmatpush.msrb.mxu1 %v765_v50  ;;  %3574 = vmatpush.msra.mxu3 %v605_v6 }
 0x4c8   :  { %v697_v37 = vld [vmem:[%s10278_s1 + $0x1398] sm:$0xff]  ;;  %3635 = vmatpush.msrb.mxu2 %v829_v43 }
 0x4c9   :  { %v761_v11 = vld [vmem:[%s10278_s1 + $0x1598] sm:$0xff]  ;;  %3590 = vmatpush.msrb.mxu0 %v697_v37  ;;  %v8966_v37 = vpop.f32.mrf.mxu2 }
 0x4ca   :  { %v825_v0 = vld [vmem:[%s10278_s1 + $0x1798] sm:$0xff]  ;;  %3613 = vmatpush.msrb.mxu1 %v761_v11  ;;  %10328 = vst [vmem:[#allocation46_spill] sm:$0xff] %v8966_v37  ;;  %v4250_v11 = vld [vmem:[%s10279_s0 + $0xe8] sm:$0xff] }
 0x4cb   :  { %v601_v16 = vld [vmem:[%s10278_s1 + $0x1098] sm:$0xff]  ;;  %3636 = vmatpush.msrb.mxu2 %v825_v0  ;;  %3491 = vmatmul.f32.gmra.mxu3 %v4250_v11 }
 0x4cc   :  { %v693_v44 = vld [vmem:[%s10278_s1 + $0x1378] sm:$0xff]  ;;  %3575 = vmatpush.msra.mxu3 %v601_v16 }
 0x4cd   :  { %v757_v33 = vld [vmem:[%s10278_s1 + $0x1578] sm:$0xff]  ;;  %3591 = vmatpush.msrb.mxu0 %v693_v44 }
 0x4ce   :  { %v821_v50 = vld [vmem:[%s10278_s1 + $0x1778] sm:$0xff]  ;;  %3614 = vmatpush.msrb.mxu1 %v757_v33  ;;  %v8989_v33 = vpop.f32.mrf.mxu0 }
 0x4cf   :  { %v597_v6 = vld [vmem:[%s10278_s1 + $0x1078] sm:$0xff]  ;;  %3637 = vmatpush.msrb.mxu2 %v821_v50  ;;  %10329 = vst [vmem:[#allocation47_spill] sm:$0xff] %v8989_v33  ;;  %v8991_v50 = vpop.f32.mrf.mxu3 }
 0x4d0   :  { %v689_v43 = vld [vmem:[%s10278_s1 + $0x1358] sm:$0xff]  ;;  %3576 = vmatpush.msra.mxu3 %v597_v6  ;;  %10330 = vst [vmem:[#allocation48_spill] sm:$0xff] %v8991_v50 }
 0x4d1   :  { %v753_v0 = vld [vmem:[%s10278_s1 + $0x1558] sm:$0xff]  ;;  %3592 = vmatpush.msrb.mxu0 %v689_v43  ;;  %v8999_v43 = vpop.f32.mrf.mxu1 }
 0x4d2   :  { %v817_v16 = vld [vmem:[%s10278_s1 + $0x1758] sm:$0xff]  ;;  %3615 = vmatpush.msrb.mxu1 %v753_v0  ;;  %10331 = vst [vmem:[#allocation49_spill] sm:$0xff] %v8999_v43 }
 0x4d3   :  { %v593_v37 = vld [vmem:[%s10278_s1 + $0x1058] sm:$0xff]  ;;  %3638 = vmatpush.msrb.mxu2 %v817_v16 }
 0x4d4   :  { %v685_v9 = vld [vmem:[%s10278_s1 + $0x1338] sm:$0xff]  ;;  %3577 = vmatpush.msra.mxu3 %v593_v37 }
 0x4d5   :  { %v749_v44 = vld [vmem:[%s10278_s1 + $0x1538] sm:$0xff]  ;;  %3593 = vmatpush.msrb.mxu0 %v685_v9 }
 0x4d6   :  { %v813_v11 = vld [vmem:[%s10278_s1 + $0x1738] sm:$0xff]  ;;  %3616 = vmatpush.msrb.mxu1 %v749_v44  ;;  %3578 = vmatpush.msra.mxu3 %v589_v40 }
 0x4d7   :  { %v681_v6 = vld [vmem:[%s10278_s1 + $0x1318] sm:$0xff]  ;;  %3639 = vmatpush.msrb.mxu2 %v813_v11  ;;  %v9022_v11 = vpop.f32.mrf.mxu2 }
 0x4d8   :  { %v745_v33 = vld [vmem:[%s10278_s1 + $0x1518] sm:$0xff]  ;;  %3594 = vmatpush.msrb.mxu0 %v681_v6  ;;  %10332 = vst [vmem:[#allocation50_spill] sm:$0xff] %v9022_v11  ;;  %v4251_v6 = vld [vmem:[%s10279_s0 + $0x40] sm:$0xff] }
 0x4d9   :  { %v809_v0 = vld [vmem:[%s10278_s1 + $0x1718] sm:$0xff]  ;;  %3617 = vmatpush.msrb.mxu1 %v745_v33 }
 0x4da   :  { %v585_v16 = vld [vmem:[%s10278_s1 + $0x1018] sm:$0xff]  ;;  %3640 = vmatpush.msrb.mxu2 %v809_v0 }
 0x4db   :  { %v677_v50 = vld [vmem:[%s10278_s1 + $0x12f8] sm:$0xff]  ;;  %3579 = vmatpush.msra.mxu3 %v585_v16 }
 0x4dc   :  { %v741_v9 = vld [vmem:[%s10278_s1 + $0x14f8] sm:$0xff]  ;;  %3595 = vmatpush.msrb.mxu0 %v677_v50  ;;  %3580 = vmatmul.f32.vlgmr.msra.gmra.mxu3 %v4251_v6  ;;  %v9045_v6 = vpop.f32.mrf.mxu3 }
 0x4dd   :  { %v805_v37 = vld [vmem:[%s10278_s1 + $0x16f8] sm:$0xff]  ;;  %3618 = vmatpush.msrb.mxu1 %v741_v9  ;;  %10333 = vst [vmem:[#allocation51_spill] sm:$0xff] %v9045_v6 }
 0x4de   :  { %v901_v44 = vld [vmem:[%s10278_s1 + $0x19f8] sm:$0xff]  ;;  %3641 = vmatpush.msrb.mxu2 %v805_v37 }
 0x4df   :  { %v673_v40 = vld [vmem:[%s10278_s1 + $0x12d8] sm:$0xff]  ;;  %3656 = vmatpush.msrb.mxu3 %v901_v44 }
 0x4e0   :  { %v737_v33 = vld [vmem:[%s10278_s1 + $0x14d8] sm:$0xff]  ;;  %3596 = vmatpush.msrb.mxu0 %v673_v40  ;;  %v9059_v40 = vpop.f32.mrf.mxu0 }
 0x4e1   :  { %v801_v0 = vld [vmem:[%s10278_s1 + $0x16d8] sm:$0xff]  ;;  %3619 = vmatpush.msrb.mxu1 %v737_v33  ;;  %10334 = vst [vmem:[#allocation52_spill] sm:$0xff] %v9059_v40 }
 0x4e2   :  { %v897_v50 = vld [vmem:[%s10278_s1 + $0x19d8] sm:$0xff]  ;;  %3642 = vmatpush.msrb.mxu2 %v801_v0 }
 0x4e3   :  { %v669_v16 = vld [vmem:[%s10278_s1 + $0x12b8] sm:$0xff]  ;;  %3657 = vmatpush.msrb.mxu3 %v897_v50  ;;  %v9067_v50 = vpop.f32.mrf.mxu1 }
 0x4e4   :  { %v733_v11 = vld [vmem:[%s10278_s1 + $0x14b8] sm:$0xff]  ;;  %3597 = vmatpush.msrb.mxu0 %v669_v16  ;;  %10335 = vst [vmem:[#allocation53_spill] sm:$0xff] %v9067_v50  ;;  %v9115_v50 = vpop.f32.mrf.mxu3 }
 0x4e5   :  { %v797_v9 = vld [vmem:[%s10278_s1 + $0x16b8] sm:$0xff]  ;;  %3620 = vmatpush.msrb.mxu1 %v733_v11  ;;  %10338 = vst [vmem:[#allocation56_spill] sm:$0xff] %v9115_v50 }
 0x4e6   :  { %v893_v37 = vld [vmem:[%s10278_s1 + $0x19b8] sm:$0xff]  ;;  %3643 = vmatpush.msrb.mxu2 %v797_v9 }
 0x4e7   :  { %v665_v44 = vld [vmem:[%s10278_s1 + $0x1298] sm:$0xff]  ;;  %3658 = vmatpush.msrb.mxu3 %v893_v37  ;;  %v4253_v37 = vld [vmem:[%s10279_s0 + $0x100] sm:$0xff] }
 0x4e8   :  { %v729_v6 = vld [vmem:[%s10278_s1 + $0x1498] sm:$0xff]  ;;  %3598 = vmatpush.msrb.mxu0 %v665_v44  ;;  %3560 = vmatmul.f32.gmra.mxu2 %v4253_v37  ;;  %v9087_v44 = vpop.f32.mrf.mxu2 }
 0x4e9   :  { %v793_v33 = vld [vmem:[%s10278_s1 + $0x1698] sm:$0xff]  ;;  %3621 = vmatpush.msrb.mxu1 %v729_v6  ;;  %v4252_v6 = vld [vmem:[%s10279_s0 + $0xf0] sm:$0xff]  ;;  %10336 = vst [vmem:[#allocation54_spill] sm:$0xff] %v9087_v44  ;;  %v9113_v44 = vpop.f32.mrf.mxu0 }
 0x4ea   :  { %v889_v0 = vld [vmem:[%s10278_s1 + $0x1998] sm:$0xff]  ;;  %3644 = vmatpush.msrb.mxu2 %v793_v33  ;;  %3514 = vmatmul.f32.gmra.mxu0 %v4252_v6  ;;  %10337 = vst [vmem:[#allocation55_spill] sm:$0xff] %v9113_v44 }
 0x4eb   :  { %v661_v40 = vld [vmem:[%s10278_s1 + $0x1278] sm:$0xff]  ;;  %3659 = vmatpush.msrb.mxu3 %v889_v0  ;;  %v9123_v43 = vpop.f32.mrf.mxu1 }
 0x4ec   :  { %v725_v11 = vld [vmem:[%s10278_s1 + $0x1478] sm:$0xff]  ;;  %3599 = vmatpush.msrb.mxu0 %v661_v40  ;;  %10339 = vst [vmem:[#allocation57_spill] sm:$0xff] %v9123_v43 }
 0x4ed   :  { %v789_v16 = vld [vmem:[%s10278_s1 + $0x1678] sm:$0xff]  ;;  %3622 = vmatpush.msrb.mxu1 %v725_v11  ;;  %v4255_v11 = vld [vmem:[%s10279_s0 + $0x108] sm:$0xff] }
 0x4ee   :  { %v885_v9 = vld [vmem:[%s10278_s1 + $0x1978] sm:$0xff]  ;;  %3645 = vmatpush.msrb.mxu2 %v789_v16  ;;  %3583 = vmatmul.f32.gmra.mxu3 %v4255_v11 }
 0x4ef   :  { %v657_v33 = vld [vmem:[%s10278_s1 + $0x1258] sm:$0xff]  ;;  %3660 = vmatpush.msrb.mxu3 %v885_v9 }
 0x4f0   :  { %v721_v0 = vld [vmem:[%s10278_s1 + $0x1458] sm:$0xff]  ;;  %3600 = vmatpush.msrb.mxu0 %v657_v33 }
 0x4f1   :  { %v785_v6 = vld [vmem:[%s10278_s1 + $0x1658] sm:$0xff]  ;;  %3623 = vmatpush.msrb.mxu1 %v721_v0 }
 0x4f2   :  { %v881_v37 = vld [vmem:[%s10278_s1 + $0x1958] sm:$0xff]  ;;  %3646 = vmatpush.msrb.mxu2 %v785_v6 }
 0x4f3   :  { %v4254_v40 = vld [vmem:[%s10279_s0 + $0xf8] sm:$0xff]  ;;  %3661 = vmatpush.msrb.mxu3 %v881_v37 }
 0x4f4   :  { %3537 = vmatmul.f32.gmra.mxu1 %v4254_v40  ;;  %v653_v16 = vld [vmem:[%s10278_s1 + $0x1238] sm:$0xff] }
 0x4f5   :  { %v717_v9 = vld [vmem:[%s10278_s1 + $0x1438] sm:$0xff]  ;;  %3601 = vmatpush.msrb.mxu0 %v653_v16  ;;  %v9143_v16 = vpop.f32.mrf.mxu2 }
 0x4f6   :  { %v781_v40 = vld [vmem:[%s10278_s1 + $0x1638] sm:$0xff]  ;;  %3624 = vmatpush.msrb.mxu1 %v717_v9  ;;  %10340 = vst [vmem:[#allocation58_spill] sm:$0xff] %v9143_v16 }
 0x4f7   :  { %v877_v11 = vld [vmem:[%s10278_s1 + $0x1938] sm:$0xff]  ;;  %3647 = vmatpush.msrb.mxu2 %v781_v40  ;;  %v4256_v40 = vld [vmem:[%s10279_s0 + $0x48] sm:$0xff] }
 0x4f8   :  { %v649_v44 = vld [vmem:[%s10278_s1 + $0x1218] sm:$0xff]  ;;  %3662 = vmatpush.msrb.mxu3 %v877_v11 }
 0x4f9   :  { %v713_v33 = vld [vmem:[%s10278_s1 + $0x1418] sm:$0xff]  ;;  %3602 = vmatpush.msrb.mxu0 %v649_v44 }
 0x4fa   :  { %v777_v0 = vld [vmem:[%s10278_s1 + $0x1618] sm:$0xff]  ;;  %3625 = vmatpush.msrb.mxu1 %v713_v33  ;;  %3603 = vmatmul.f32.vlgmr.msrb.gmra.mxu0 %v4256_v40  ;;  %v9166_v40 = vpop.f32.mrf.mxu3 }
 0x4fb   :  { %v873_v50 = vld [vmem:[%s10278_s1 + $0x1918] sm:$0xff]  ;;  %3648 = vmatpush.msrb.mxu2 %v777_v0  ;;  %10341 = vst [vmem:[#allocation59_spill] sm:$0xff] %v9166_v40 }
 0x4fc   :  { %v965_v6 = vld [vmem:[%s10278_s1 + $0x1bf8] sm:$0xff]  ;;  %3663 = vmatpush.msrb.mxu3 %v873_v50 }
 0x4fd   :  { %v1029_v37 = vld [vmem:[%s10278_s1 + $0x1df8] sm:$0xff]  ;;  %3679 = vmatpush.msra.mxu0 %v965_v6 }
 0x4fe   :  { %v1093_v9 = vld [vmem:[%s10278_s1 + $0x1ff8] sm:$0xff]  ;;  %3702 = vmatpush.msra.mxu1 %v1029_v37  ;;  %v4258_v37 = vld [vmem:[%s10279_s0 + $0x50] sm:$0xff] }
 0x4ff   :  { %v869_v44 = vld [vmem:[%s10278_s1 + $0x18f8] sm:$0xff]  ;;  %3725 = vmatpush.msra.mxu2 %v1093_v9  ;;  %3626 = vmatmul.f32.vlgmr.msrb.gmra.mxu1 %v4258_v37  ;;  %v9191_v37 = vpop.f32.mrf.mxu1 }
 0x500   :  { %v4257_v11 = vld [vmem:[%s10279_s0 + $0x58] sm:$0xff]  ;;  %3664 = vmatpush.msrb.mxu3 %v869_v44  ;;  %v9183_v44 = vpop.f32.mrf.mxu0  ;;  %10343 = vst [vmem:[#allocation61_spill] sm:$0xff] %v9191_v37 }
 0x501   :  { %3649 = vmatmul.f32.vlgmr.msrb.gmra.mxu2 %v4257_v11  ;;  %v961_v50 = vld [vmem:[%s10278_s1 + $0x1bd8] sm:$0xff]  ;;  %10342 = vst [vmem:[#allocation60_spill] sm:$0xff] %v9183_v44 }
 0x502   :  { %v1025_v33 = vld [vmem:[%s10278_s1 + $0x1dd8] sm:$0xff]  ;;  %3680 = vmatpush.msra.mxu0 %v961_v50 }
 0x503   :  { %v1089_v0 = vld [vmem:[%s10278_s1 + $0x1fd8] sm:$0xff]  ;;  %3703 = vmatpush.msra.mxu1 %v1025_v33 }
 0x504   :  { %v865_v11 = vld [vmem:[%s10278_s1 + $0x18d8] sm:$0xff]  ;;  %3726 = vmatpush.msra.mxu2 %v1089_v0 }
 0x505   :  { %v957_v6 = vld [vmem:[%s10278_s1 + $0x1bb8] sm:$0xff]  ;;  %3665 = vmatpush.msrb.mxu3 %v865_v11 }
 0x506   :  { %v1021_v40 = vld [vmem:[%s10278_s1 + $0x1db8] sm:$0xff]  ;;  %3681 = vmatpush.msra.mxu0 %v957_v6 }
 0x507   :  { %v1085_v9 = vld [vmem:[%s10278_s1 + $0x1fb8] sm:$0xff]  ;;  %3704 = vmatpush.msra.mxu1 %v1021_v40 }
 0x508   :  { %v861_v16 = vld [vmem:[%s10278_s1 + $0x18b8] sm:$0xff]  ;;  %3727 = vmatpush.msra.mxu2 %v1085_v9  ;;  %v9211_v9 = vpop.f32.mrf.mxu2 }
 0x509   :  { %v953_v50 = vld [vmem:[%s10278_s1 + $0x1b98] sm:$0xff]  ;;  %3666 = vmatpush.msrb.mxu3 %v861_v16  ;;  %10344 = vst [vmem:[#allocation62_spill] sm:$0xff] %v9211_v9  ;;  %v4259_v16 = vld [vmem:[%s10279_s0 + $0x110] sm:$0xff] }
 0x50a   :  { %v1017_v43 = vld [vmem:[%s10278_s1 + $0x1d98] sm:$0xff]  ;;  %3682 = vmatpush.msra.mxu0 %v953_v50  ;;  %v4260_v50 = vld [vmem:[%s10279_s0 + $0x120] sm:$0xff] }
 0x50b   :  { %v1081_v33 = vld [vmem:[%s10278_s1 + $0x1f98] sm:$0xff]  ;;  %3705 = vmatpush.msra.mxu1 %v1017_v43  ;;  %3606 = vmatmul.f32.gmra.mxu0 %v4259_v16 }
 0x50c   :  { %v857_v0 = vld [vmem:[%s10278_s1 + $0x1898] sm:$0xff]  ;;  %3728 = vmatpush.msra.mxu2 %v1081_v33 }
 0x50d   :  { %v949_v11 = vld [vmem:[%s10278_s1 + $0x1b78] sm:$0xff]  ;;  %3667 = vmatpush.msrb.mxu3 %v857_v0  ;;  %3652 = vmatmul.f32.gmra.mxu2 %v4260_v50  ;;  %v9234_v50 = vpop.f32.mrf.mxu0 }
 0x50e   :  { %v1013_v6 = vld [vmem:[%s10278_s1 + $0x1d78] sm:$0xff]  ;;  %3683 = vmatpush.msra.mxu0 %v949_v11  ;;  %10345 = vst [vmem:[#allocation63_spill] sm:$0xff] %v9234_v50  ;;  %v9236_v11 = vpop.f32.mrf.mxu3 }
 0x50f   :  { %v1077_v40 = vld [vmem:[%s10278_s1 + $0x1f78] sm:$0xff]  ;;  %3706 = vmatpush.msra.mxu1 %v1013_v6  ;;  %10346 = vst [vmem:[#allocation64_spill] sm:$0xff] %v9236_v11 }
 0x510   :  { %v853_v43 = vld [vmem:[%s10278_s1 + $0x1878] sm:$0xff]  ;;  %3729 = vmatpush.msra.mxu2 %v1077_v40  ;;  %v9270_v44 = vpop.f32.mrf.mxu2 }
 0x511   :  { %v945_v33 = vld [vmem:[%s10278_s1 + $0x1b58] sm:$0xff]  ;;  %3668 = vmatpush.msrb.mxu3 %v853_v43 }
 0x512   :  { %v1009_v0 = vld [vmem:[%s10278_s1 + $0x1d58] sm:$0xff]  ;;  %3684 = vmatpush.msra.mxu0 %v945_v33  ;;  %v9259_v33 = vpop.f32.mrf.mxu1 }
 0x513   :  { %v1073_v16 = vld [vmem:[%s10278_s1 + $0x1f58] sm:$0xff]  ;;  %3707 = vmatpush.msra.mxu1 %v1009_v0  ;;  %10347 = vst [vmem:[#allocation65_spill] sm:$0xff] %v9259_v33 }
 0x514   :  { %v849_v9 = vld [vmem:[%s10278_s1 + $0x1858] sm:$0xff]  ;;  %3730 = vmatpush.msra.mxu2 %v1073_v16 }
 0x515   :  { %v4261_v37 = vld [vmem:[%s10279_s0 + $0x118] sm:$0xff]  ;;  %3669 = vmatpush.msrb.mxu3 %v849_v9 }
 0x516   :  { %3629 = vmatmul.f32.gmra.mxu1 %v4261_v37  ;;  %v941_v6 = vld [vmem:[%s10278_s1 + $0x1b38] sm:$0xff] }
 0x517   :  { %v1005_v40 = vld [vmem:[%s10278_s1 + $0x1d38] sm:$0xff]  ;;  %3685 = vmatpush.msra.mxu0 %v941_v6 }
 0x518   :  { %v1069_v11 = vld [vmem:[%s10278_s1 + $0x1f38] sm:$0xff]  ;;  %3708 = vmatpush.msra.mxu1 %v1005_v40  ;;  %v9338_v58 = vpop.f32.mrf.mxu2 }
 0x519   :  { %v845_v43 = vld [vmem:[%s10278_s1 + $0x1838] sm:$0xff]  ;;  %3731 = vmatpush.msra.mxu2 %v1069_v11 }
 0x51a   :  { %v937_v37 = vld [vmem:[%s10278_s1 + $0x1b18] sm:$0xff]  ;;  %3670 = vmatpush.msrb.mxu3 %v845_v43 }
 0x51b   :  { %v1001_v50 = vld [vmem:[%s10278_s1 + $0x1d18] sm:$0xff]  ;;  %3686 = vmatpush.msra.mxu0 %v937_v37 }
 0x51c   :  { %v1065_v0 = vld [vmem:[%s10278_s1 + $0x1f18] sm:$0xff]  ;;  %3709 = vmatpush.msra.mxu1 %v1001_v50  ;;  %v4262_v50 = vld [vmem:[%s10279_s0 + $0x60] sm:$0xff] }
 0x51d   :  { %v841_v9 = vld [vmem:[%s10278_s1 + $0x1818] sm:$0xff]  ;;  %3732 = vmatpush.msra.mxu2 %v1065_v0 }
 0x51e   :  { %v933_v16 = vld [vmem:[%s10278_s1 + $0x1af8] sm:$0xff]  ;;  %3671 = vmatpush.msrb.mxu3 %v841_v9  ;;  %v9293_v9 = vpop.f32.mrf.mxu3 }
 0x51f   :  { %v997_v6 = vld [vmem:[%s10278_s1 + $0x1cf8] sm:$0xff]  ;;  %3672 = vmatmul.f32.vlgmr.msrb.gmra.mxu3 %v4262_v50  ;;  %3687 = vmatpush.msra.mxu0 %v933_v16 }
 0x520   :  { %v1061_v40 = vld [vmem:[%s10278_s1 + $0x1ef8] sm:$0xff]  ;;  %3710 = vmatpush.msra.mxu1 %v997_v6  ;;  %v9307_v6 = vpop.f32.mrf.mxu0 }
 0x521   :  { %v1157_v11 = vld [vmem:[%s10278_s1 + $0x21f8] sm:$0xff]  ;;  %3733 = vmatpush.msra.mxu2 %v1061_v40  ;;  %10348 = vst [vmem:[#allocation66_spill] sm:$0xff] %v9307_v6 }
 0x522   :  { %v929_v43 = vld [vmem:[%s10278_s1 + $0x1ad8] sm:$0xff]  ;;  %3748 = vmatpush.msra.mxu3 %v1157_v11 }
 0x523   :  { %v993_v37 = vld [vmem:[%s10278_s1 + $0x1cd8] sm:$0xff]  ;;  %3688 = vmatpush.msra.mxu0 %v929_v43 }
 0x524   :  { %v1057_v0 = vld [vmem:[%s10278_s1 + $0x1ed8] sm:$0xff]  ;;  %3711 = vmatpush.msra.mxu1 %v993_v37 }
 0x525   :  { %v1153_v33 = vld [vmem:[%s10278_s1 + $0x21d8] sm:$0xff]  ;;  %3734 = vmatpush.msra.mxu2 %v1057_v0 }
 0x526   :  { %v925_v16 = vld [vmem:[%s10278_s1 + $0x1ab8] sm:$0xff]  ;;  %3749 = vmatpush.msra.mxu3 %v1153_v33  ;;  %v9327_v33 = vpop.f32.mrf.mxu1 }
 0x527   :  { %v989_v50 = vld [vmem:[%s10278_s1 + $0x1cb8] sm:$0xff]  ;;  %3689 = vmatpush.msra.mxu0 %v925_v16  ;;  %10349 = vst [vmem:[#allocation67_spill] sm:$0xff] %v9327_v33 }
 0x528   :  { %v1053_v15 = vld [vmem:[%s10278_s1 + $0x1eb8] sm:$0xff]  ;;  %3712 = vmatpush.msra.mxu1 %v989_v50 }
 0x529   :  { %v1149_v40 = vld [vmem:[%s10278_s1 + $0x21b8] sm:$0xff]  ;;  %3735 = vmatpush.msra.mxu2 %v1053_v15 }
 0x52a   :  { %v921_v11 = vld [vmem:[%s10278_s1 + $0x1a98] sm:$0xff]  ;;  %3750 = vmatpush.msra.mxu3 %v1149_v40 }
 0x52b   :  { %v985_v43 = vld [vmem:[%s10278_s1 + $0x1c98] sm:$0xff]  ;;  %3690 = vmatpush.msra.mxu0 %v921_v11  ;;  %v4263_v11 = vld [vmem:[%s10279_s0 + $0x128] sm:$0xff] }
 0x52c   :  { %v1049_v6 = vld [vmem:[%s10278_s1 + $0x1e98] sm:$0xff]  ;;  %3713 = vmatpush.msra.mxu1 %v985_v43  ;;  %3675 = vmatmul.f32.gmra.mxu3 %v4263_v11  ;;  %v9361_v11 = vpop.f32.mrf.mxu0 }
 0x52d   :  { %v1145_v37 = vld [vmem:[%s10278_s1 + $0x2198] sm:$0xff]  ;;  %3736 = vmatpush.msra.mxu2 %v1049_v6 }
 0x52e   :  { %v917_v0 = vld [vmem:[%s10278_s1 + $0x1a78] sm:$0xff]  ;;  %3751 = vmatpush.msra.mxu3 %v1145_v37 }
 0x52f   :  { %v981_v16 = vld [vmem:[%s10278_s1 + $0x1c78] sm:$0xff]  ;;  %3691 = vmatpush.msra.mxu0 %v917_v0 }
 0x530   :  { %v1045_v15 = vld [vmem:[%s10278_s1 + $0x1e78] sm:$0xff]  ;;  %3714 = vmatpush.msra.mxu1 %v981_v16  ;;  %v9363_v16 = vpop.f32.mrf.mxu3 }
 0x531   :  { %v1141_v50 = vld [vmem:[%s10278_s1 + $0x2178] sm:$0xff]  ;;  %3737 = vmatpush.msra.mxu2 %v1045_v15 }
 0x532   :  { %v913_v40 = vld [vmem:[%s10278_s1 + $0x1a58] sm:$0xff]  ;;  %3752 = vmatpush.msra.mxu3 %v1141_v50 }
 0x533   :  { %v977_v6 = vld [vmem:[%s10278_s1 + $0x1c58] sm:$0xff]  ;;  %3692 = vmatpush.msra.mxu0 %v913_v40 }
 0x534   :  { %v1041_v43 = vld [vmem:[%s10278_s1 + $0x1e58] sm:$0xff]  ;;  %3715 = vmatpush.msra.mxu1 %v977_v6 }
 0x535   :  { %v1137_v37 = vld [vmem:[%s10278_s1 + $0x2158] sm:$0xff]  ;;  %3738 = vmatpush.msra.mxu2 %v1041_v43  ;;  %v9383_v43 = vpop.f32.mrf.mxu1 }
 0x536   :  { %v909_v0 = vld [vmem:[%s10278_s1 + $0x1a38] sm:$0xff]  ;;  %3753 = vmatpush.msra.mxu3 %v1137_v37 }
 0x537   :  { %v973_v33 = vld [vmem:[%s10278_s1 + $0x1c38] sm:$0xff]  ;;  %3693 = vmatpush.msra.mxu0 %v909_v0 }
 0x538   :  { %v1037_v1 = vld [vmem:[%s10278_s1 + $0x1e38] sm:$0xff]  ;;  %3716 = vmatpush.msra.mxu1 %v973_v33  ;;  %v9431_v35 = vpop.f32.mrf.mxu3 }
 0x539   :  { %v1133_v15 = vld [vmem:[%s10278_s1 + $0x2138] sm:$0xff]  ;;  %3739 = vmatpush.msra.mxu2 %v1037_v1 }
 0x53a   :  { %v905_v50 = vld [vmem:[%s10278_s1 + $0x1a18] sm:$0xff]  ;;  %3754 = vmatpush.msra.mxu3 %v1133_v15  ;;  %3717 = vmatpush.msra.mxu1 %v969_v26  ;;  %v4264_v26 = vld [vmem:[%s10279_s0 + $0x68] sm:$0xff] }
 0x53b   :  { %v1033_v40 = vld [vmem:[%s10278_s1 + $0x1e18] sm:$0xff]  ;;  %3694 = vmatpush.msra.mxu0 %v905_v50 }
 0x53c   :  { %v1129_v6 = vld [vmem:[%s10278_s1 + $0x2118] sm:$0xff]  ;;  %3740 = vmatpush.msra.mxu2 %v1033_v40  ;;  %3695 = vmatmul.f32.vlgmr.msra.gmra.mxu0 %v4264_v26  ;;  %v9406_v40 = vpop.f32.mrf.mxu2 }
 0x53d   :  { %v1221_v37 = vld [vmem:[%s10278_s1 + $0x23f8] sm:$0xff]  ;;  %3755 = vmatpush.msra.mxu3 %v1129_v6 }
 0x53e   :  { %v1285_v33 = vld [vmem:[%s10278_s1 + $0x25f8] sm:$0xff]  ;;  %3771 = vmatpush.msrb.mxu0 %v1221_v37  ;;  %v4266_v37 = vld [vmem:[%s10279_s0 + $0x70] sm:$0xff] }
 0x53f   :  { %v1349_v0 = vld [vmem:[%s10278_s1 + $0x27f8] sm:$0xff]  ;;  %3794 = vmatpush.msrb.mxu1 %v1285_v33 }
 0x540   :  { %v1125_v1 = vld [vmem:[%s10278_s1 + $0x20f8] sm:$0xff]  ;;  %3817 = vmatpush.msrb.mxu2 %v1349_v0  ;;  %3718 = vmatmul.f32.vlgmr.msra.gmra.mxu1 %v4266_v37 }
 0x541   :  { %v4265_v15 = vld [vmem:[%s10279_s0 + $0x78] sm:$0xff]  ;;  %3756 = vmatpush.msra.mxu3 %v1125_v1  ;;  %v9429_v1 = vpop.f32.mrf.mxu0 }
 0x542   :  { %3741 = vmatmul.f32.vlgmr.msra.gmra.mxu2 %v4265_v15  ;;  %v1217_v50 = vld [vmem:[%s10278_s1 + $0x23d8] sm:$0xff] }
 0x543   :  { %v1281_v6 = vld [vmem:[%s10278_s1 + $0x25d8] sm:$0xff]  ;;  %3772 = vmatpush.msrb.mxu0 %v1217_v50 }
 0x544   :  { %v1345_v26 = vld [vmem:[%s10278_s1 + $0x27d8] sm:$0xff]  ;;  %3795 = vmatpush.msrb.mxu1 %v1281_v6 }
 0x545   :  { %v1121_v15 = vld [vmem:[%s10278_s1 + $0x20d8] sm:$0xff]  ;;  %3818 = vmatpush.msrb.mxu2 %v1345_v26  ;;  %3773 = vmatpush.msrb.mxu0 %v1213_v5  ;;  %v9448_v26 = vpop.f32.mrf.mxu1 }
 0x546   :  { %v1277_v33 = vld [vmem:[%s10278_s1 + $0x25b8] sm:$0xff]  ;;  %3757 = vmatpush.msra.mxu3 %v1121_v15 }
 0x547   :  { %v1341_v0 = vld [vmem:[%s10278_s1 + $0x27b8] sm:$0xff]  ;;  %3796 = vmatpush.msrb.mxu1 %v1277_v33 }
 0x548   :  { %v1117_v20 = vld [vmem:[%s10278_s1 + $0x20b8] sm:$0xff]  ;;  %3819 = vmatpush.msrb.mxu2 %v1341_v0  ;;  %v9459_v0 = vpop.f32.mrf.mxu2 }
 0x549   :  { %v1209_v50 = vld [vmem:[%s10278_s1 + $0x2398] sm:$0xff]  ;;  %3758 = vmatpush.msra.mxu3 %v1117_v20  ;;  %v4267_v20 = vld [vmem:[%s10279_s0 + $0x130] sm:$0xff]  ;;  %v9499_v13 = vpop.f32.mrf.mxu0 }
 0x54a   :  { %v1273_v37 = vld [vmem:[%s10278_s1 + $0x2598] sm:$0xff]  ;;  %3774 = vmatpush.msrb.mxu0 %v1209_v50  ;;  %3820 = vmatpush.msrb.mxu2 %v1337_v34  ;;  %v4268_v50 = vld [vmem:[%s10279_s0 + $0x140] sm:$0xff] }
 0x54b   :  { %v1113_v6 = vld [vmem:[%s10278_s1 + $0x2098] sm:$0xff]  ;;  %3797 = vmatpush.msrb.mxu1 %v1273_v37  ;;  %3698 = vmatmul.f32.gmra.mxu0 %v4267_v20 }
 0x54c   :  { %v1205_v5 = vld [vmem:[%s10278_s1 + $0x2378] sm:$0xff]  ;;  %3759 = vmatpush.msra.mxu3 %v1113_v6  ;;  %3744 = vmatmul.f32.gmra.mxu2 %v4268_v50  ;;  %v9482_v50 = vpop.f32.mrf.mxu3 }
 0x54d   :  { %v1269_v15 = vld [vmem:[%s10278_s1 + $0x2578] sm:$0xff]  ;;  %3775 = vmatpush.msrb.mxu0 %v1205_v5  ;;  %v9521_v25 = vpop.f32.mrf.mxu1 }
 0x54e   :  { %v1333_v33 = vld [vmem:[%s10278_s1 + $0x2778] sm:$0xff]  ;;  %3798 = vmatpush.msrb.mxu1 %v1269_v15 }
 0x54f   :  { %v1109_v34 = vld [vmem:[%s10278_s1 + $0x2078] sm:$0xff]  ;;  %3821 = vmatpush.msrb.mxu2 %v1333_v33 }
 0x550   :  { %v1201_v37 = vld [vmem:[%s10278_s1 + $0x2358] sm:$0xff]  ;;  %3760 = vmatpush.msra.mxu3 %v1109_v34 }
 0x551   :  { %v1265_v6 = vld [vmem:[%s10278_s1 + $0x2558] sm:$0xff]  ;;  %3776 = vmatpush.msrb.mxu0 %v1201_v37 }
 0x552   :  { %v1329_v20 = vld [vmem:[%s10278_s1 + $0x2758] sm:$0xff]  ;;  %3799 = vmatpush.msrb.mxu1 %v1265_v6  ;;  %v9510_v6 = vld [vmem:[%s10280_s2] sm:$0xf] }
 0x553   :  { %v1105_v49 = vld [vmem:[%s10278_s1 + $0x2058] sm:$0xff]  ;;  %3822 = vmatpush.msrb.mxu2 %v1329_v20  ;;  %v1640_v38 = vperm.slane %v9510_v6, 0 }
 0x554   :  { %v4269_v5 = vld [vmem:[%s10279_s0 + $0x138] sm:$0xff]  ;;  %3761 = vmatpush.msra.mxu3 %v1105_v49  ;;  %v9563_v18 = vpop.f32.mrf.mxu3 }
 0x555   :  { %3721 = vmatmul.f32.gmra.mxu1 %v4269_v5  ;;  %v1197_v15 = vld [vmem:[%s10278_s1 + $0x2338] sm:$0xff]  ;;  %3823 = vmatpush.msrb.mxu2 %v1325_v56  ;;  %10350 = vst [vmem:[#allocation68_spill] sm:$0xff] %v9563_v18 }
 0x556   :  { %v1261_v33 = vld [vmem:[%s10278_s1 + $0x2538] sm:$0xff]  ;;  %3777 = vmatpush.msrb.mxu0 %v1197_v15 }
 0x557   :  { %v1101_v34 = vld [vmem:[%s10278_s1 + $0x2038] sm:$0xff]  ;;  %3800 = vmatpush.msrb.mxu1 %v1261_v33 }
 0x558   :  { %v1193_v5 = vld [vmem:[%s10278_s1 + $0x2318] sm:$0xff]  ;;  %3762 = vmatpush.msra.mxu3 %v1101_v34 }
 0x559   :  { %v1257_v37 = vld [vmem:[%s10278_s1 + $0x2518] sm:$0xff]  ;;  %3778 = vmatpush.msrb.mxu0 %v1193_v5  ;;  %v1642_v5 = vperm.slane %v9510_v6, 2 }
 0x55a   :  { %v1321_v20 = vld [vmem:[%s10278_s1 + $0x2718] sm:$0xff]  ;;  %3801 = vmatpush.msrb.mxu1 %v1257_v37  ;;  %v9537_v37 = vpop.f32.mrf.mxu2 }
 0x55b   :  { %v1097_v49 = vld [vmem:[%s10278_s1 + $0x2018] sm:$0xff]  ;;  %3824 = vmatpush.msrb.mxu2 %v1321_v20  ;;  %v2823_v29 = vadd.f32 %v9270_v44, %v1642_v5  ;;  %v9586_v44 = vpop.f32.mrf.mxu1 }
 0x55c   :  { %v1189_v23 = vld [vmem:[%s10278_s1 + $0x22f8] sm:$0xff]  ;;  %3763 = vmatpush.msra.mxu3 %v1097_v49 }
 0x55d   :  { %v1253_v15 = vld [vmem:[%s10278_s1 + $0x24f8] sm:$0xff]  ;;  %3764 = vmatmul.f32.vlgmr.msra.gmra.mxu3 %v4270_v4  ;;  %3779 = vmatpush.msrb.mxu0 %v1189_v23 }
 0x55e   :  { %v1317_v33 = vld [vmem:[%s10278_s1 + $0x26f8] sm:$0xff]  ;;  %3802 = vmatpush.msrb.mxu1 %v1253_v15  ;;  %v1673_v15 = vadd.f32 %v7018_v3, %v1640_v38 }
 0x55f   :  { %v1413_v56 = vld [vmem:[%s10278_s1 + $0x29f8] sm:$0xff]  ;;  %3825 = vmatpush.msrb.mxu2 %v1317_v33  ;;  %v9561_v33 = vpop.f32.mrf.mxu0 }
 0x560   :  { %v1185_v34 = vld [vmem:[%s10278_s1 + $0x22d8] sm:$0xff]  ;;  %3840 = vmatpush.msrb.mxu3 %v1413_v56 }
 0x561   :  { %v1249_v20 = vld [vmem:[%s10278_s1 + $0x24d8] sm:$0xff]  ;;  %3780 = vmatpush.msrb.mxu0 %v1185_v34 }
 0x562   :  { %v1313_v49 = vld [vmem:[%s10278_s1 + $0x26d8] sm:$0xff]  ;;  %3803 = vmatpush.msrb.mxu1 %v1249_v20 }
 0x563   :  { %v1409_v41 = vld [vmem:[%s10278_s1 + $0x29d8] sm:$0xff]  ;;  %3826 = vmatpush.msrb.mxu2 %v1313_v49  ;;  %v1641_v49 = vperm.slane %v9510_v6, 1 }
 0x564   :  { %v1181_v42 = vld [vmem:[%s10278_s1 + $0x22b8] sm:$0xff]  ;;  %3841 = vmatpush.msrb.mxu3 %v1409_v41  ;;  %v1676_v41 = vadd.f32 %v7080_v24, %v1640_v38  ;;  %v2846_v38 = vadd.f32 %v9293_v9, %v2823_v29 }
 0x565   :  { %v1245_v4 = vld [vmem:[%s10278_s1 + $0x24b8] sm:$0xff]  ;;  %3781 = vmatpush.msrb.mxu0 %v1181_v42 }
 0x566   :  { %v1309_v23 = vld [vmem:[%s10278_s1 + $0x26b8] sm:$0xff]  ;;  %3804 = vmatpush.msrb.mxu1 %v1245_v4  ;;  %v1696_v4 = vadd.f32 %v7032_v8, %v1673_v15  ;;  %v2248_v15 = vadd.f32 %v8429_v47, %v1641_v49  ;;  %v1699_v9 = vadd.f32 %v7097_v30, %v1676_v41 }
 0x567   :  { %v1405_v56 = vld [vmem:[%s10278_s1 + $0x29b8] sm:$0xff]  ;;  %3827 = vmatpush.msrb.mxu2 %v1309_v23 }
 0x568   :  { %v1177_v34 = vld [vmem:[%s10278_s1 + $0x2298] sm:$0xff]  ;;  %3842 = vmatpush.msrb.mxu3 %v1405_v56 }
 0x569   :  { %v1241_v3 = vld [vmem:[%s10278_s1 + $0x2498] sm:$0xff]  ;;  %3782 = vmatpush.msrb.mxu0 %v1177_v34  ;;  %v4271_v34 = vld [vmem:[%s10279_s0 + $0x148] sm:$0xff] }
 0x56a   :  { %v1305_v20 = vld [vmem:[%s10278_s1 + $0x2698] sm:$0xff]  ;;  %3805 = vmatpush.msrb.mxu1 %v1241_v3  ;;  %3767 = vmatmul.f32.gmra.mxu3 %v4271_v34  ;;  %v2826_v3 = vadd.f32 %v9338_v58, %v1642_v5  ;;  %v2869_v5 = vadd.f32 %v9361_v11, %v2846_v38 }
 0x56b   :  { %v1401_v18 = vld [vmem:[%s10278_s1 + $0x2998] sm:$0xff]  ;;  %3828 = vmatpush.msrb.mxu2 %v1305_v20  ;;  %v9617_v20 = vpop.f32.mrf.mxu2 }
 0x56c   :  { %v1173_v42 = vld [vmem:[%s10278_s1 + $0x2278] sm:$0xff]  ;;  %3843 = vmatpush.msrb.mxu3 %v1401_v18  ;;  %v2892_v34 = vadd.f32 %v9383_v43, %v2869_v5  ;;  %v4272_v43 = vld [vmem:[%s10279_s0 + $0x88] sm:$0xff]  ;;  %v4274_v5 = vld [vmem:[%s10279_s0 + $0x90] sm:$0xff] }
 0x56d   :  { %v1237_v6 = vld [vmem:[%s10278_s1 + $0x2478] sm:$0xff]  ;;  %3783 = vmatpush.msrb.mxu0 %v1173_v42 }
 0x56e   :  { %v1301_v23 = vld [vmem:[%s10278_s1 + $0x2678] sm:$0xff]  ;;  %3806 = vmatpush.msrb.mxu1 %v1237_v6  ;;  %v1719_v6 = vadd.f32 %v7274_v28, %v1696_v4  ;;  %v2271_v4 = vadd.f32 %v8431_v48, %v2248_v15  ;;  %v2849_v48 = vadd.f32 %v9363_v16, %v2826_v3 }
 0x56f   :  { %v1397_v24 = vld [vmem:[%s10278_s1 + $0x2978] sm:$0xff]  ;;  %3829 = vmatpush.msrb.mxu2 %v1301_v23  ;;  %v2251_v23 = vadd.f32 %v8496_v21, %v1641_v49 }
 0x570   :  { %v1169_v56 = vld [vmem:[%s10278_s1 + $0x2258] sm:$0xff]  ;;  %3844 = vmatpush.msrb.mxu3 %v1397_v24  ;;  %v9641_v24 = vpop.f32.mrf.mxu0  ;;  %v1742_v21 = vadd.f32 %v7294_v36, %v1719_v6  ;;  %v2294_v16 = vadd.f32 %v8543_v52, %v2271_v4  ;;  %v2872_v52 = vadd.f32 %v9429_v1, %v2849_v48 }
 0x571   :  { %v1233_v8 = vld [vmem:[%s10278_s1 + $0x2458] sm:$0xff]  ;;  %3784 = vmatpush.msrb.mxu0 %v1169_v56  ;;  %v9643_v56 = vpop.f32.mrf.mxu3 }
 0x572   :  { %v1297_v29 = vld [vmem:[%s10278_s1 + $0x2658] sm:$0xff]  ;;  %3807 = vmatpush.msrb.mxu1 %v1233_v8  ;;  %v1722_v8 = vadd.f32 %v7338_v51, %v1699_v9 }
 0x573   :  { %v1393_v18 = vld [vmem:[%s10278_s1 + $0x2958] sm:$0xff]  ;;  %3830 = vmatpush.msrb.mxu2 %v1297_v29  ;;  %v9661_v29 = vpop.f32.mrf.mxu1 }
 0x574   :  { %v1165_v47 = vld [vmem:[%s10278_s1 + $0x2238] sm:$0xff]  ;;  %3845 = vmatpush.msrb.mxu3 %v1393_v18  ;;  %v2274_v18 = vadd.f32 %v8498_v31, %v2251_v23 }
 0x575   :  { %v1229_v42 = vld [vmem:[%s10278_s1 + $0x2438] sm:$0xff]  ;;  %3785 = vmatpush.msrb.mxu0 %v1165_v47  ;;  %v1745_v47 = vadd.f32 %v7363_v60, %v1722_v8  ;;  %v2895_v8 = vadd.f32 %v9448_v26, %v2872_v52 }
 0x576   :  { %v1293_v30 = vld [vmem:[%s10278_s1 + $0x2638] sm:$0xff]  ;;  %3808 = vmatpush.msrb.mxu1 %v1229_v42  ;;  %v9682_v42 = vpop.f32.mrf.mxu2  ;;  %v2297_v4 = vadd.f32 %v8607_v39, %v2274_v18 }
 0x577   :  { %v1389_v58 = vld [vmem:[%s10278_s1 + $0x2938] sm:$0xff]  ;;  %3831 = vmatpush.msrb.mxu2 %v1293_v30  ;;  %v1765_v30 = vadd.f32 %v7355_v57, %v1742_v21 }
 0x578   :  { %v1161_v41 = vld [vmem:[%s10278_s1 + $0x2218] sm:$0xff]  ;;  %3846 = vmatpush.msrb.mxu3 %v1389_v58  ;;  %v2915_v58 = vadd.f32 %v9406_v40, %v2892_v34  ;;  %v9726_v21 = vpop.f32.mrf.mxu0 }
 0x579   :  { %v1225_v28 = vld [vmem:[%s10278_s1 + $0x2418] sm:$0xff]  ;;  %3786 = vmatpush.msrb.mxu0 %v1161_v41  ;;  %v9709_v23 = vpop.f32.mrf.mxu3  ;;  %v1788_v48 = vadd.f32 %v7380_v2, %v1765_v30 }
 0x57a   :  { %v1289_v11 = vld [vmem:[%s10278_s1 + $0x2618] sm:$0xff]  ;;  %3809 = vmatpush.msrb.mxu1 %v1225_v28  ;;  %3787 = vmatmul.f32.vlgmr.msrb.gmra.mxu0 %v4272_v43  ;;  %v2317_v28 = vadd.f32 %v8605_v61, %v2294_v16  ;;  %v2938_v26 = vadd.f32 %v9431_v35, %v2915_v58 }
 0x57b   :  { %v1385_v38 = vld [vmem:[%s10278_s1 + $0x2918] sm:$0xff]  ;;  %3832 = vmatpush.msrb.mxu2 %v1289_v11  ;;  %3810 = vmatmul.f32.vlgmr.msrb.gmra.mxu1 %v4274_v5  ;;  %v9745_v16 = vpop.f32.mrf.mxu1  ;;  %v1811_v18 = vadd.f32 %v7409_v14, %v1788_v48 }
 0x57c   :  { %v1477_v49 = vld [vmem:[%s10278_s1 + $0x2bf8] sm:$0xff]  ;;  %3847 = vmatpush.msrb.mxu3 %v1385_v38  ;;  %v1768_v38 = vadd.f32 %v7423_v19, %v1745_v47  ;;  %v2340_v2 = vadd.f32 %v8639_v45, %v2317_v28  ;;  %v4275_v45 = vld [vmem:[%s10279_s0 + $0x150] sm:$0xff] }
 0x57d   :  { %v1541_v15 = vld [vmem:[%s10278_s1 + $0x2df8] sm:$0xff]  ;;  %3863 = vmatpush.msra.mxu0 %v1477_v49  ;;  %v1834_v58 = vadd.f32 %v7431_v22, %v1811_v18 }
 0x57e   :  { %v1605_v36 = vld [vmem:[%s10278_s1 + $0x2ff8] sm:$0xff]  ;;  %3886 = vmatpush.msra.mxu1 %v1541_v15  ;;  %v2320_v15 = vadd.f32 %v8673_v59, %v2297_v4  ;;  %v2363_v52 = vadd.f32 %v8653_v63, %v2340_v2 }
 0x57f   :  { %v1381_v51 = vld [vmem:[%s10278_s1 + $0x28f8] sm:$0xff]  ;;  %3909 = vmatpush.msra.mxu2 %v1605_v36  ;;  %v1791_v36 = vadd.f32 %v7442_v27, %v1768_v38  ;;  %v4276_v27 = vld [vmem:[%s10279_s0 + $0x160] sm:$0xff]  ;;  %v1857_v4 = vadd.f32 %v7489_v46, %v1834_v58  ;;  %v10357_v58 = vld [vmem:[#allocation3_spill] sm:$0xff] }
 0x580   :  { %v4273_v9 = vld [vmem:[%s10279_s0 + $0x98] sm:$0xff]  ;;  %3848 = vmatpush.msrb.mxu3 %v1381_v51  ;;  %v2918_v51 = vadd.f32 %v9459_v0, %v2895_v8  ;;  %v9792_v5 = vpop.f32.mrf.mxu0 }
 0x581   :  { %3833 = vmatmul.f32.vlgmr.msrb.gmra.mxu2 %v4273_v9  ;;  %v1473_v3 = vld [vmem:[%s10278_s1 + $0x2bd8] sm:$0xff]  ;;  %v2961_v9 = vadd.f32 %v9499_v13, %v2938_v26  ;;  %v1880_v26 = vadd.f32 %v7506_v53, %v1857_v4 }
 0x582   :  { %v1537_v31 = vld [vmem:[%s10278_s1 + $0x2dd8] sm:$0xff]  ;;  %3864 = vmatpush.msra.mxu0 %v1473_v3  ;;  %v9764_v3 = vpop.f32.mrf.mxu2  ;;  %v2941_v63 = vadd.f32 %v9482_v50, %v2918_v51 }
 0x583   :  { %v1601_v6 = vld [vmem:[%s10278_s1 + $0x2fd8] sm:$0xff]  ;;  %3887 = vmatpush.msra.mxu1 %v1537_v31  ;;  %3790 = vmatmul.f32.gmra.mxu0 %v4275_v45  ;;  %v2343_v31 = vadd.f32 %v8695_v12, %v2320_v15  ;;  %v10352_v45 = vld [vmem:[#allocation2_spill] sm:$0xff] }
 0x584   :  { %v1377_v60 = vld [vmem:[%s10278_s1 + $0x28d8] sm:$0xff]  ;;  %3910 = vmatpush.msra.mxu2 %v1601_v6 }
 0x585   :  { %v1469_v1 = vld [vmem:[%s10278_s1 + $0x2bb8] sm:$0xff]  ;;  %3849 = vmatpush.msrb.mxu3 %v1377_v60  ;;  %v1814_v60 = vadd.f32 %v7526_v62, %v1791_v36  ;;  %v10351_v36 = vld [vmem:[#allocation68_spill] sm:$0xff] }
 0x586   :  { %v1533_v57 = vld [vmem:[%s10278_s1 + $0x2db8] sm:$0xff]  ;;  %3865 = vmatpush.msra.mxu0 %v1469_v1 }
 0x587   :  { %v1597_v41 = vld [vmem:[%s10278_s1 + $0x2fb8] sm:$0xff]  ;;  %3888 = vmatpush.msra.mxu1 %v1533_v57  ;;  %v9794_v57 = vpop.f32.mrf.mxu3  ;;  %v1837_v38 = vadd.f32 %v7546_v7, %v1814_v60 }
 0x588   :  { %v1373_v40 = vld [vmem:[%s10278_s1 + $0x28b8] sm:$0xff]  ;;  %3911 = vmatpush.msra.mxu2 %v1597_v41  ;;  %v2984_v41 = vadd.f32 %v9521_v25, %v2961_v9 }
 0x589   :  { %v1465_v11 = vld [vmem:[%s10278_s1 + $0x2b98] sm:$0xff]  ;;  %3850 = vmatpush.msrb.mxu3 %v1373_v40  ;;  %3836 = vmatmul.f32.gmra.mxu2 %v4276_v27  ;;  %v2386_v40 = vadd.f32 %v8675_v17, %v2363_v52 }
 0x58a   :  { %v1529_v61 = vld [vmem:[%s10278_s1 + $0x2d98] sm:$0xff]  ;;  %3866 = vmatpush.msra.mxu0 %v1465_v11  ;;  %v2366_v11 = vadd.f32 %v8706_v10, %v2343_v31  ;;  %v3007_v8 = vadd.f32 %v9537_v37, %v2984_v41  ;;  %v9832_v37 = vpop.f32.mrf.mxu2  ;;  %v10355_v31 = vld [vmem:[#allocation35_spill] sm:$0xff] }
 0x58b   :  { %v1593_v39 = vld [vmem:[%s10278_s1 + $0x2f98] sm:$0xff]  ;;  %3889 = vmatpush.msra.mxu1 %v1529_v61  ;;  %v2964_v61 = vadd.f32 %v9561_v33, %v2941_v63  ;;  %v4278_v33 = vld [vmem:[%s10279_s0 + $0xa0] sm:$0xff] }
 0x58c   :  { %v1369_v19 = vld [vmem:[%s10278_s1 + $0x2898] sm:$0xff]  ;;  %3912 = vmatpush.msra.mxu2 %v1593_v39  ;;  %v9818_v39 = vpop.f32.mrf.mxu1  ;;  %v2389_v15 = vadd.f32 %v8729_v54, %v2366_v11  ;;  %v3030_v51 = vadd.f32 %v10351_v36, %v3007_v8 }
 0x58d   :  { %v1461_v49 = vld [vmem:[%s10278_s1 + $0x2b78] sm:$0xff]  ;;  %3851 = vmatpush.msrb.mxu3 %v1369_v19  ;;  %v2987_v53 = vadd.f32 %v9586_v44, %v2964_v61 }
 0x58e   :  { %v1525_v34 = vld [vmem:[%s10278_s1 + $0x2d78] sm:$0xff]  ;;  %3867 = vmatpush.msra.mxu0 %v1461_v49  ;;  %v2409_v49 = vadd.f32 %v8743_v32, %v2386_v40  ;;  %v10358_v40 = vld [vmem:[#allocation7_spill] sm:$0xff] }
 0x58f   :  { %v1589_v35 = vld [vmem:[%s10278_s1 + $0x2f78] sm:$0xff]  ;;  %3890 = vmatpush.msra.mxu1 %v1525_v34 }
 0x590   :  { %v1365_v59 = vld [vmem:[%s10278_s1 + $0x2878] sm:$0xff]  ;;  %3913 = vmatpush.msra.mxu2 %v1589_v35  ;;  %v1860_v35 = vadd.f32 %v7651_v55, %v1837_v38 }
 0x591   :  { %v1457_v0 = vld [vmem:[%s10278_s1 + $0x2b58] sm:$0xff]  ;;  %3852 = vmatpush.msrb.mxu3 %v1365_v59  ;;  %v1903_v59 = vadd.f32 %v10352_v45, %v1880_v26 }
 0x592   :  { %v1521_v43 = vld [vmem:[%s10278_s1 + $0x2d58] sm:$0xff]  ;;  %3868 = vmatpush.msra.mxu0 %v1457_v0  ;;  %v9863_v0 = vpop.f32.mrf.mxu3 }
 0x593   :  { %v1585_v14 = vld [vmem:[%s10278_s1 + $0x2f58] sm:$0xff]  ;;  %3891 = vmatpush.msra.mxu1 %v1521_v43  ;;  %v3053_v43 = vadd.f32 %v9641_v24, %v3030_v51  ;;  %v10363_v51 = vld [vmem:[#allocation8_spill] sm:$0xff] }
 0x594   :  { %v1361_v47 = vld [vmem:[%s10278_s1 + $0x2858] sm:$0xff]  ;;  %3914 = vmatpush.msra.mxu2 %v1585_v14 }
 0x595   :  { %v4277_v13 = vld [vmem:[%s10279_s0 + $0x158] sm:$0xff]  ;;  %3853 = vmatpush.msrb.mxu3 %v1361_v47  ;;  %v10354_v47 = vld [vmem:[#allocation34_spill] sm:$0xff] }
 0x596   :  { %3813 = vmatmul.f32.gmra.mxu1 %v4277_v13  ;;  %v1453_v6 = vld [vmem:[%s10278_s1 + $0x2b38] sm:$0xff]  ;;  %v2412_v13 = vadd.f32 %v10355_v31, %v2389_v15  ;;  %v10362_v15 = vld [vmem:[#allocation39_spill] sm:$0xff] }
 0x597   :  { %v1517_v30 = vld [vmem:[%s10278_s1 + $0x2d38] sm:$0xff]  ;;  %3869 = vmatpush.msra.mxu0 %v1453_v6  ;;  %v9880_v6 = vpop.f32.mrf.mxu0 }
 0x598   :  { %v1581_v12 = vld [vmem:[%s10278_s1 + $0x2f38] sm:$0xff]  ;;  %3892 = vmatpush.msra.mxu1 %v1517_v30 }
 0x599   :  { %v1357_v1 = vld [vmem:[%s10278_s1 + $0x2838] sm:$0xff]  ;;  %3915 = vmatpush.msra.mxu2 %v1581_v12  ;;  %v3010_v12 = vadd.f32 %v9617_v20, %v2987_v53  ;;  %v3076_v20 = vadd.f32 %v9661_v29, %v3053_v43  ;;  %v4279_v29 = vld [vmem:[%s10279_s0 + $0x168] sm:$0xff] }
 0x59a   :  { %v1449_v62 = vld [vmem:[%s10278_s1 + $0x2b18] sm:$0xff]  ;;  %3854 = vmatpush.msrb.mxu3 %v1357_v1 }
 0x59b   :  { %v1513_v50 = vld [vmem:[%s10278_s1 + $0x2d18] sm:$0xff]  ;;  %3870 = vmatpush.msra.mxu0 %v1449_v62  ;;  %v1926_v62 = vadd.f32 %v10357_v58, %v1903_v59 }
 0x59c   :  { %v1577_v22 = vld [vmem:[%s10278_s1 + $0x2f18] sm:$0xff]  ;;  %3893 = vmatpush.msra.mxu1 %v1513_v50 }
 0x59d   :  { %v1353_v28 = vld [vmem:[%s10278_s1 + $0x2818] sm:$0xff]  ;;  %3916 = vmatpush.msra.mxu2 %v1577_v22  ;;  %v9901_v22 = vpop.f32.mrf.mxu1  ;;  %v1949_v11 = vadd.f32 %v10358_v40, %v1926_v62  ;;  %v10370_v62 = vld [vmem:[#allocation40_spill] sm:$0xff] }
 0x59e   :  { %v1445_v25 = vld [vmem:[%s10278_s1 + $0x2af8] sm:$0xff]  ;;  %3855 = vmatpush.msrb.mxu3 %v1353_v28  ;;  %v10371_v40 = vld [vmem:[#allocation12_spill] sm:$0xff] }
 0x59f   :  { %v1509_v46 = vld [vmem:[%s10278_s1 + $0x2cf8] sm:$0xff]  ;;  %3856 = vmatmul.f32.vlgmr.msrb.gmra.mxu3 %v4278_v33  ;;  %3871 = vmatpush.msra.mxu0 %v1445_v25  ;;  %v10359_v25 = vld [vmem:[#allocation36_spill] sm:$0xff]  ;;  %v3033_v33 = vadd.f32 %v9643_v56, %v3010_v12  ;;  %v1972_v53 = vadd.f32 %v10363_v51, %v1949_v11  ;;  %v3991_v51 = vld [vmem:[%s10281_s3 + $0xe0] sm:$0xff] }
 0x5a0   :  { %v1573_v10 = vld [vmem:[%s10278_s1 + $0x2ef8] sm:$0xff]  ;;  %3894 = vmatpush.msra.mxu1 %v1509_v46 }
 0x5a1   :  { %v1637_v7 = vld [vmem:[%s10278_s1 + $0x30f8] sm:$0xff]  ;;  %3917 = vmatpush.msra.mxu2 %v1573_v10 }
 0x5a2   :  { %v1441_v17 = vld [vmem:[%s10278_s1 + $0x2ad8] sm:$0xff]  ;;  %3940 = vmatpush.msra.mxu3 %v1637_v7  ;;  %v10361_v7 = vld [vmem:[#allocation4_spill] sm:$0xff] }
 0x5a3   :  { %v1505_v48 = vld [vmem:[%s10278_s1 + $0x2cd8] sm:$0xff]  ;;  %3872 = vmatpush.msra.mxu0 %v1441_v17 }
 0x5a4   :  { %v1569_v19 = vld [vmem:[%s10278_s1 + $0x2ed8] sm:$0xff]  ;;  %3895 = vmatpush.msra.mxu1 %v1505_v48  ;;  %v3099_v48 = vadd.f32 %v9682_v42, %v3076_v20 }
 0x5a5   :  { %v1633_v2 = vld [vmem:[%s10278_s1 + $0x30d8] sm:$0xff]  ;;  %3918 = vmatpush.msra.mxu2 %v1569_v19  ;;  %v9924_v19 = vpop.f32.mrf.mxu2  ;;  %v9972_v12 = vpop.f32.mrf.mxu1 }
 0x5a6   :  { %v1437_v34 = vld [vmem:[%s10278_s1 + $0x2ab8] sm:$0xff]  ;;  %3941 = vmatpush.msra.mxu3 %v1633_v2  ;;  %v3122_v43 = vadd.f32 %v9709_v23, %v3099_v48  ;;  %v4008_v48 = vld [vmem:[%s10281_s3 + $0x168] sm:$0xff] }
 0x5a7   :  { %v1501_v54 = vld [vmem:[%s10278_s1 + $0x2cb8] sm:$0xff]  ;;  %3873 = vmatpush.msra.mxu0 %v1437_v34  ;;  %3859 = vmatmul.f32.gmra.mxu3 %v4279_v29  ;;  %v3056_v34 = vadd.f32 %v9726_v21, %v3033_v33  ;;  %v3976_v29 = vld [vmem:[%s10281_s3 + $0x68] sm:$0xff] }
 0x5a8   :  { %v1565_v32 = vld [vmem:[%s10278_s1 + $0x2eb8] sm:$0xff]  ;;  %3896 = vmatpush.msra.mxu1 %v1501_v54  ;;  %v10364_v54 = vld [vmem:[#allocation38_spill] sm:$0xff]  ;;  %v3992_v33 = vld [vmem:[%s10281_s3 + $0xe8] sm:$0xff] }
 0x5a9   :  { %v10353_v18 = vld [vmem:[#allocation33_spill] sm:$0xff]  ;;  %3919 = vmatpush.msra.mxu2 %v1565_v32 }
 0x5aa   :  { %v2432_v27 = vadd.f32 %v10353_v18, %v2409_v49  ;;  %v1629_v55 = vld [vmem:[%s10278_s1 + $0x30b8] sm:$0xff]  ;;  %v9949_v18 = vpop.f32.mrf.mxu0 }
 0x5ab   :  { %v1433_v44 = vld [vmem:[%s10278_s1 + $0x2a98] sm:$0xff]  ;;  %3942 = vmatpush.msra.mxu3 %v1629_v55  ;;  %v10366_v55 = vld [vmem:[#allocation6_spill] sm:$0xff] }
 0x5ac   :  { %v1497_v9 = vld [vmem:[%s10278_s1 + $0x2c98] sm:$0xff]  ;;  %v2455_v52 = vadd.f32 %v10354_v47, %v2432_v27  ;;  %3874 = vmatpush.msra.mxu0 %v1433_v44  ;;  %v9951_v27 = vpop.f32.mrf.mxu3 }
 0x5ad   :  { %v1561_v14 = vld [vmem:[%s10278_s1 + $0x2e98] sm:$0xff]  ;;  %3897 = vmatpush.msra.mxu1 %v1497_v9  ;;  %v9988_v20 = vpop.f32.mrf.mxu2 }
 0x5ae   :  { %v1625_v24 = vld [vmem:[%s10278_s1 + $0x3098] sm:$0xff]  ;;  %3920 = vmatpush.msra.mxu2 %v1561_v14  ;;  %v2478_v38 = vadd.f32 %v10359_v25, %v2455_v52  ;;  %v10367_v14 = vld [vmem:[#allocation11_spill] sm:$0xff]  ;;  %v10368_v52 = vld [vmem:[#allocation42_spill] sm:$0xff] }
 0x5af   :  { %v1429_v30 = vld [vmem:[%s10278_s1 + $0x2a78] sm:$0xff]  ;;  %3943 = vmatpush.msra.mxu3 %v1625_v24  ;;  %v1995_v47 = vadd.f32 %v10367_v14, %v1972_v53  ;;  %v10372_v25 = vld [vmem:[#allocation44_spill] sm:$0xff]  ;;  %v4007_v53 = vld [vmem:[%s10281_s3 + $0x160] sm:$0xff] }
 0x5b0   :  { %v10356_v60 = vld [vmem:[#allocation5_spill] sm:$0xff]  ;;  %3875 = vmatpush.msra.mxu0 %v1429_v30  ;;  %v2501_v2 = vadd.f32 %v10362_v15, %v2478_v38 }
 0x5b1   :  { %v1883_v63 = vadd.f32 %v10356_v60, %v1860_v35  ;;  %v1493_v1 = vld [vmem:[%s10278_s1 + $0x2c78] sm:$0xff]  ;;  %v3079_v60 = vadd.f32 %v9745_v16, %v3056_v34  ;;  %v2018_v11 = vadd.f32 %v10371_v40, %v1995_v47  ;;  %v3975_v34 = vld [vmem:[%s10281_s3 + $0x60] sm:$0xff]  ;;  %v3972_v40 = vld [vmem:[%s10281_s3 + $0x48] sm:$0xff] }
 0x5b2   :  { %v1557_v50 = vld [vmem:[%s10278_s1 + $0x2e78] sm:$0xff]  ;;  %3898 = vmatpush.msra.mxu1 %v1493_v1  ;;  %v4280_v1 = vld [vmem:[%s10279_s0 + $0xa8] sm:$0xff]  ;;  %v10382_v47 = vld [vmem:[#allocation50_spill] sm:$0xff] }
 0x5b3   :  { %v1621_v41 = vld [vmem:[%s10278_s1 + $0x3078] sm:$0xff]  ;;  %v1906_v17 = vadd.f32 %v10361_v7, %v1883_v63  ;;  %3921 = vmatpush.msra.mxu2 %v1557_v50  ;;  %v3145_v63 = vadd.f32 %v9792_v5, %v3122_v43  ;;  %v3977_v5 = vld [vmem:[%s10281_s3 + $0x70] sm:$0xff] }
 0x5b4   :  { %v1425_v28 = vld [vmem:[%s10278_s1 + $0x2a58] sm:$0xff]  ;;  %3944 = vmatpush.msra.mxu3 %v1621_v41  ;;  %v3102_v41 = vadd.f32 %v9764_v3, %v3079_v60  ;;  %v4282_v3 = vld [vmem:[%s10279_s0 + $0xb0] sm:$0xff]  ;;  %v10383_v60 = vld [vmem:[#allocation14_spill] sm:$0xff] }
 0x5b5   :  { %v1489_v4 = vld [vmem:[%s10278_s1 + $0x2c58] sm:$0xff]  ;;  %3876 = vmatpush.msra.mxu0 %v1425_v28  ;;  %v1929_v44 = vadd.f32 %v10366_v55, %v1906_v17  ;;  %v3993_v28 = vld [vmem:[%s10281_s3 + $0xf0] sm:$0xff]  ;;  %v3168_v7 = vadd.f32 %v9818_v39, %v3145_v63  ;;  %v4283_v17 = vld [vmem:[%s10279_s0 + $0xc0] sm:$0xff] }
 0x5b6   :  { %v10360_v8 = vld [vmem:[#allocation37_spill] sm:$0xff]  ;;  %3899 = vmatpush.msra.mxu1 %v1489_v4  ;;  %v4009_v4 = vld [vmem:[%s10281_s3 + $0x170] sm:$0xff]  ;;  %v10377_v39 = vld [vmem:[#allocation47_spill] sm:$0xff] }
 0x5b7   :  { %v2435_v61 = vadd.f32 %v10360_v8, %v2412_v13  ;;  %v1553_v46 = vld [vmem:[%s10278_s1 + $0x2e58] sm:$0xff]  ;;  %v10373_v8 = vld [vmem:[#allocation43_spill] sm:$0xff] }
 0x5b8   :  { %v1617_v10 = vld [vmem:[%s10278_s1 + $0x3058] sm:$0xff]  ;;  %3922 = vmatpush.msra.mxu2 %v1553_v46  ;;  %v10374_v46 = vld [vmem:[#allocation10_spill] sm:$0xff] }
 0x5b9   :  { %v1421_v26 = vld [vmem:[%s10278_s1 + $0x2a38] sm:$0xff]  ;;  %3945 = vmatpush.msra.mxu3 %v1617_v10  ;;  %v2458_v32 = vadd.f32 %v10364_v54, %v2435_v61 }
 0x5ba   :  { %v1485_v49 = vld [vmem:[%s10278_s1 + $0x2c38] sm:$0xff]  ;;  %3877 = vmatpush.msra.mxu0 %v1421_v26  ;;  %v10375_v26 = vld [vmem:[#allocation15_spill] sm:$0xff] }
 0x5bb   :  { %v1549_v56 = vld [vmem:[%s10278_s1 + $0x2e38] sm:$0xff]  ;;  %3900 = vmatpush.msra.mxu1 %v1485_v49  ;;  %v2481_v50 = vadd.f32 %v10370_v62, %v2458_v32  ;;  %v2041_v49 = vadd.f32 %v10375_v26, %v2018_v11  ;;  %v10391_v26 = vld [vmem:[#allocation55_spill] sm:$0xff] }
 0x5bc   :  { %v1613_v42 = vld [vmem:[%s10278_s1 + $0x3038] sm:$0xff]  ;;  %3923 = vmatpush.msra.mxu2 %v1549_v56 }
 0x5bd   :  { %v1417_v35 = vld [vmem:[%s10278_s1 + $0x2a18] sm:$0xff]  ;;  %3946 = vmatpush.msra.mxu3 %v1613_v42  ;;  %v2504_v38 = vadd.f32 %v10372_v25, %v2481_v50  ;;  %v10020_v42 = vpop.f32.mrf.mxu3  ;;  %v3989_v50 = vld [vmem:[%s10281_s3 + $0xd0] sm:$0xff] }
 0x5be   :  { %v1481_v36 = vld [vmem:[%s10278_s1 + $0x2c18] sm:$0xff]  ;;  %3878 = vmatpush.msra.mxu0 %v1417_v35  ;;  %v3125_v35 = vadd.f32 %v9794_v57, %v3102_v41 }
 0x5bf   :  { %v10365_v45 = vld [vmem:[#allocation41_spill] sm:$0xff]  ;;  %3901 = vmatpush.msra.mxu1 %v1481_v36  ;;  %3879 = vmatmul.f32.vlgmr.msra.gmra.mxu0 %v4280_v1  ;;  %v3191_v36 = vadd.f32 %v9832_v37, %v3168_v7  ;;  %v10384_v1 = vld [vmem:[#allocation19_spill] sm:$0xff]  ;;  %v10389_v7 = vld [vmem:[#allocation20_spill] sm:$0xff] }
 0x5c0   :  { %v2524_v59 = vadd.f32 %v10365_v45, %v2501_v2  ;;  %v1545_v21 = vld [vmem:[%s10278_s1 + $0x2e18] sm:$0xff]  ;;  %3902 = vmatmul.f32.vlgmr.msra.gmra.mxu1 %v4282_v3  ;;  %v10379_v45 = vld [vmem:[#allocation46_spill] sm:$0xff]  ;;  %v3148_v57 = vadd.f32 %v9880_v6, %v3125_v35  ;;  %v3988_v3 = vld [vmem:[%s10281_s3 + $0xc8] sm:$0xff] }
 0x5c1   :  { %v1609_v9 = vld [vmem:[%s10278_s1 + $0x3018] sm:$0xff]  ;;  %3924 = vmatpush.msra.mxu2 %v1545_v21  ;;  %v3214_v6 = vadd.f32 %v9863_v0, %v3191_v36  ;;  %v10392_v35 = vld [vmem:[#allocation18_spill] sm:$0xff] }
 0x5c2   :  { %v2547_v31 = vadd.f32 %v10368_v52, %v2524_v59  ;;  %v3978_v13 = vld [vmem:[%s10281_s3 + $0x78] sm:$0xff]  ;;  %3947 = vmatpush.msra.mxu3 %v1609_v9  ;;  %v10381_v9 = vld [vmem:[#allocation16_spill] sm:$0xff] }
 0x5c3   :  { %v3994_v23 = vld [vmem:[%s10281_s3 + $0xf8] sm:$0xff]  ;;  %4031 = vmatpush.msrb.mxu0 %v3978_v13  ;;  %4135 = vmatmul.msk.f32.vlgmr.msra.gmra.mxu3 %vm1648_vm0, %v4283_v17  ;;  %v2064_v14 = vadd.f32 %v10381_v9, %v2041_v49  ;;  %v10051_v13 = vpop.f32.mrf.mxu1  ;;  %v3237_v41 = vadd.f32 %v9949_v18, %v3214_v6  ;;  %v4287_v18 = vld [vmem:[%s10279_s0 + $0x188] sm:$0xff] }
 0x5c4   :  { %v10369_v24 = vld [vmem:[#allocation9_spill] sm:$0xff]  ;;  %4054 = vmatpush.msrb.mxu1 %v3994_v23  ;;  %v2570_v61 = vadd.f32 %v10373_v8, %v2547_v31  ;;  %v4284_v23 = vld [vmem:[%s10279_s0 + $0x170] sm:$0xff]  ;;  %v3968_v6 = vld [vmem:[%s10281_s3 + $0x28] sm:$0xff] }
 0x5c5   :  { %v1952_v30 = vadd.f32 %v10369_v24, %v1929_v44  ;;  %v4010_v58 = vld [vmem:[%s10281_s3 + $0x178] sm:$0xff]  ;;  %4032 = vmatpush.msrb.mxu0 %v3977_v5  ;;  %v10036_v44 = vpop.f32.mrf.mxu0  ;;  %v4285_v24 = vld [vmem:[%s10279_s0 + $0x180] sm:$0xff]  ;;  %v2087_v0 = vadd.f32 %v10384_v1, %v2064_v14  ;;  %v3171_v5 = vadd.f32 %v9901_v22, %v3148_v57  ;;  %v4000_v1 = vld [vmem:[%s10281_s3 + $0x128] sm:$0xff] }
 0x5c6   :  { %v4281_v16 = vld [vmem:[%s10279_s0 + $0xb8] sm:$0xff]  ;;  %4077 = vmatpush.msrb.mxu2 %v4010_v58  ;;  %v2593_v56 = vadd.f32 %v10377_v39, %v2570_v61  ;;  %4055 = vmatpush.msrb.mxu1 %v3993_v28  ;;  %v10385_v58 = vld [vmem:[#allocation48_spill] sm:$0xff]  ;;  %v10073_v28 = vpop.f32.mrf.mxu2  ;;  %v10388_v61 = vld [vmem:[#allocation51_spill] sm:$0xff] }
 0x5c7   :  { %3925 = vmatmul.f32.vlgmr.msra.gmra.mxu2 %v4281_v16  ;;  %v1975_v10 = vadd.f32 %v10374_v46, %v1952_v30  ;;  %v10376_v15 = vld [vmem:[#allocation45_spill] sm:$0xff]  ;;  %4033 = vmatpush.msrb.mxu0 %v3976_v29  ;;  %v3973_v30 = vld [vmem:[%s10281_s3 + $0x50] sm:$0xff]  ;;  %v4004_v29 = vld [vmem:[%s10281_s3 + $0x148] sm:$0xff]  ;;  %v3194_v46 = vadd.f32 %v9924_v19, %v3171_v5  ;;  %v2110_v17 = vadd.f32 %v10389_v7, %v2087_v0 }
 0x5c8   :  { %v2527_v2 = vadd.f32 %v10376_v15, %v2504_v38  ;;  %4078 = vmatpush.msrb.mxu2 %v4009_v4  ;;  %v10378_v54 = vld [vmem:[#allocation13_spill] sm:$0xff]  ;;  %4056 = vmatpush.msrb.mxu1 %v3992_v33  ;;  %v4005_v16 = vld [vmem:[%s10281_s3 + $0x150] sm:$0xff]  ;;  %v3987_v19 = vld [vmem:[%s10281_s3 + $0xc0] sm:$0xff] }
 0x5c9   :  { %v1998_v32 = vadd.f32 %v10378_v54, %v1975_v10  ;;  %v10380_v21 = vld [vmem:[#allocation49_spill] sm:$0xff]  ;;  %4034 = vmatpush.msrb.mxu0 %v3975_v34  ;;  %v10387_v38 = vld [vmem:[#allocation52_spill] sm:$0xff]  ;;  %v3971_v10 = vld [vmem:[%s10281_s3 + $0x40] sm:$0xff] }
 0x5ca   :  { %v2550_v59 = vadd.f32 %v10379_v45, %v2527_v2  ;;  %v2616_v55 = vadd.f32 %v10380_v21, %v2593_v56  ;;  %4079 = vmatpush.msrb.mxu2 %v4008_v48  ;;  %v3974_v37 = vld [vmem:[%s10281_s3 + $0x58] sm:$0xff]  ;;  %4057 = vmatpush.msrb.mxu1 %v3991_v51  ;;  %v10101_v2 = vpop.f32.mrf.mxu3  ;;  %v4003_v39 = vld [vmem:[%s10281_s3 + $0x140] sm:$0xff]  ;;  %v3260_v56 = vadd.f32 %v9972_v12, %v3237_v41  ;;  %v10393_v51 = vld [vmem:[#allocation23_spill] sm:$0xff] }
 0x5cb   :  { %v3990_v43 = vld [vmem:[%s10281_s3 + $0xd8] sm:$0xff]  ;;  %3882 = vmatmul.f32.gmra.mxu0 %v4284_v23  ;;  %v2021_v63 = vadd.f32 %v10383_v60, %v1998_v32  ;;  %4136 = vmatmul.msk.f32.gmra.mxu3 %vm1648_vm0, %v4287_v18  ;;  %v10394_v54 = vld [vmem:[#allocation54_spill] sm:$0xff]  ;;  %v10398_v23 = vld [vmem:[#allocation24_spill] sm:$0xff] }
 0x5cc   :  { %v2639_v52 = vadd.f32 %v10382_v47, %v2616_v55  ;;  %4080 = vmatpush.msrb.mxu2 %v4007_v53  ;;  %v4006_v31 = vld [vmem:[%s10281_s3 + $0x158] sm:$0xff]  ;;  %v2573_v62 = vadd.f32 %v10385_v58, %v2550_v59  ;;  %4035 = vmatpush.msrb.mxu0 %v3974_v37  ;;  %v2133_v53 = vadd.f32 %v10393_v51, %v2110_v17  ;;  %v3351_v37 = vpop.f32.mrf.mxu1  ;;  %v10397_v47 = vld [vmem:[#allocation58_spill] sm:$0xff]  ;;  %v10402_v41 = vld [vmem:[#allocation60_spill] sm:$0xff] }
 0x5cd   :  { %4058 = vmatpush.msrb.mxu1 %v3990_v43  ;;  %v4286_v4 = vld [vmem:[%s10279_s0 + $0x178] sm:$0xff]  ;;  %v3328_v15 = vpop.f32.mrf.mxu0  ;;  %v3217_v55 = vadd.f32 %v9951_v27, %v3194_v46  ;;  %v3283_v57 = vadd.f32 %v9988_v20, %v3260_v56  ;;  %v3969_v43 = vld [vmem:[%s10281_s3 + $0x30] sm:$0xff]  ;;  %v3967_v58 = vld [vmem:[%s10281_s3 + $0x20] sm:$0xff] }
 0x5ce   :  { %4081 = vmatpush.msrb.mxu2 %v4006_v31  ;;  %3905 = vmatmul.f32.gmra.mxu1 %v4286_v4  ;;  %v10386_v11 = vld [vmem:[#allocation17_spill] sm:$0xff]  ;;  %v2596_v8 = vadd.f32 %v10387_v38, %v2573_v62  ;;  %v2662_v22 = vadd.f32 %v10388_v61, %v2639_v52  ;;  %v3985_v31 = vld [vmem:[%s10281_s3 + $0xb0] sm:$0xff]  ;;  %v3374_v0 = vpop.f32.mrf.mxu2  ;;  %v10400_v62 = vld [vmem:[#allocation22_spill] sm:$0xff] }
 0x5cf   :  { %3928 = vmatmul.f32.gmra.mxu2 %v4285_v24  ;;  %v2044_v25 = vadd.f32 %v10386_v11, %v2021_v63  ;;  %4036 = vmatpush.msrb.mxu0 %v3973_v30  ;;  %v10390_v33 = vld [vmem:[#allocation53_spill] sm:$0xff]  ;;  %v4001_v27 = vld [vmem:[%s10281_s3 + $0x130] sm:$0xff]  ;;  %v3240_v20 = vadd.f32 %v10036_v44, %v3217_v55  ;;  %v2156_v24 = vadd.f32 %v10398_v23, %v2133_v53  ;;  %v3984_v63 = vld [vmem:[%s10281_s3 + $0xa8] sm:$0xff] }
 0x5d0   :  { %4059 = vmatpush.msrb.mxu1 %v3989_v50  ;;  %4082 = vmatpush.msrb.mxu2 %v4005_v16  ;;  %v2619_v48 = vadd.f32 %v10390_v33, %v2596_v8  ;;  %v2685_v49 = vadd.f32 %v10391_v26, %v2662_v22  ;;  %v3970_v34 = vld [vmem:[%s10281_s3 + $0x38] sm:$0xff]  ;;  %v10399_v30 = vld [vmem:[#allocation56_spill] sm:$0xff]  ;;  %v3306_v44 = vadd.f32 %v10020_v42, %v3283_v57  ;;  %v10401_v16 = vld [vmem:[#allocation27_spill] sm:$0xff] }
 0x5d1   :  { %4037 = vmatpush.msrb.mxu0 %v3972_v40  ;;  %v2067_v36 = vadd.f32 %v10392_v35, %v2044_v25  ;;  %v10395_v45 = vld [vmem:[#allocation57_spill] sm:$0xff]  ;;  %v2179_v5 = vadd.f32 %v10401_v16, %v2156_v24  ;;  %v10403_v40 = vld [vmem:[#allocation59_spill] sm:$0xff]  ;;  %v3983_v42 = vld [vmem:[%s10281_s3 + $0xa0] sm:$0xff]  ;;  %v3263_v8 = vadd.f32 %v10051_v13, %v3240_v20 }
 0x5d2   :  { %4060 = vmatpush.msrb.mxu1 %v3988_v3  ;;  %4083 = vmatpush.msrb.mxu2 %v4004_v29  ;;  %v2642_v32 = vadd.f32 %v10394_v54, %v2619_v48  ;;  %v2708_v59 = vadd.f32 %v10395_v45, %v2685_v49  ;;  %v3986_v21 = vld [vmem:[%s10281_s3 + $0xb8] sm:$0xff]  ;;  %v10156_v25 = vpop.f32.mrf.mxu3  ;;  %v3999_v38 = vld [vmem:[%s10281_s3 + $0x120] sm:$0xff]  ;;  %v3329_v61 = vadd.f32 %v3328_v15, %v3306_v44  ;;  %v3965_v26 = vld [vmem:[%s10281_s3 + $0x10] sm:$0xff] }
 0x5d3   :  { %4038 = vmatpush.msrb.mxu0 %v3971_v10  ;;  %v4002_v12 = vld [vmem:[%s10281_s3 + $0x138] sm:$0xff]  ;;  %v10406_v10 = vld [vmem:[#allocation63_spill] sm:$0xff]  ;;  %v3286_v48 = vadd.f32 %v10073_v28, %v3263_v8  ;;  %v10407_v49 = vld [vmem:[#allocation28_spill] sm:$0xff] }
 0x5d4   :  { %4061 = vmatpush.msrb.mxu1 %v3987_v19  ;;  %4084 = vmatpush.msrb.mxu2 %v4003_v39  ;;  %v10396_v9 = vld [vmem:[#allocation21_spill] sm:$0xff]  ;;  %v2731_v52 = vadd.f32 %v10397_v47, %v2708_v59  ;;  %v2665_v60 = vadd.f32 %v10399_v30, %v2642_v32  ;;  %v2202_v15 = vadd.f32 %v10407_v49, %v2179_v5  ;;  %v10408_v19 = vld [vmem:[#allocation62_spill] sm:$0xff]  ;;  %v3981_v56 = vld [vmem:[%s10281_s3 + $0x90] sm:$0xff]  ;;  %v3354_v35 = vpop.f32.mrf.mxu1 }
 0x5d5   :  { %v2090_v14 = vadd.f32 %v10396_v9, %v2067_v36  ;;  %4039 = vmatpush.msrb.mxu0 %v3970_v34  ;;  %v3966_v22 = vld [vmem:[%s10281_s3 + $0x18] sm:$0xff]  ;;  %v3331_v17 = vpop.f32.mrf.mxu0  ;;  %v3997_v34 = vld [vmem:[%s10281_s3 + $0x110] sm:$0xff]  ;;  %v3352_v28 = vadd.f32 %v3351_v37, %v3329_v61  ;;  %v3964_v36 = vld [vmem:[%s10281_s3 + $0x8] sm:$0xff]  ;;  %v3309_v55 = vadd.f32 %v10101_v2, %v3286_v48 }
 0x5d6   :  { %4062 = vmatpush.msrb.mxu1 %v3986_v21  ;;  %4085 = vmatpush.msrb.mxu2 %v4002_v12  ;;  %v2688_v4 = vadd.f32 %v10402_v41, %v2665_v60  ;;  %v2754_v11 = vadd.f32 %v10403_v40, %v2731_v52  ;;  %v10404_v18 = vld [vmem:[#allocation25_spill] sm:$0xff]  ;;  %v10409_v51 = vld [vmem:[#allocation26_spill] sm:$0xff]  ;;  %v10410_v54 = vld [vmem:[#allocation31_spill] sm:$0xff] }
 0x5d7   :  { %4040 = vmatpush.msrb.mxu0 %v3969_v43  ;;  %v2113_v50 = vadd.f32 %v10400_v62, %v2090_v14  ;;  %v10405_v29 = vld [vmem:[#allocation61_spill] sm:$0xff]  ;;  %v2225_v32 = vadd.f32 %v10410_v54, %v2202_v15  ;;  %v3980_v21 = vld [vmem:[%s10281_s3 + $0x88] sm:$0xff]  ;;  %v3375_v57 = vadd.f32 %v3374_v0, %v3352_v28  ;;  %v3963_v37 = vld [vmem:[%s10281_s3] sm:$0xff] }
 0x5d8   :  { %4063 = vmatpush.msrb.mxu1 %v3985_v31  ;;  %4086 = vmatpush.msrb.mxu2 %v4001_v27  ;;  %v2711_v46 = vadd.f32 %v10405_v29, %v2688_v4  ;;  %v2777_v7 = vadd.f32 %v10406_v10, %v2754_v11  ;;  %v3982_v33 = vld [vmem:[%s10281_s3 + $0x98] sm:$0xff]  ;;  %v3996_v12 = vld [vmem:[%s10281_s3 + $0x108] sm:$0xff]  ;;  %v10413_v14 = vld [vmem:[#allocation64_spill] sm:$0xff]  ;;  %v3332_v31 = vadd.f32 %v3331_v17, %v3309_v55  ;;  %v3377_v27 = vpop.f32.mrf.mxu2 }
 0x5d9   :  { %4041 = vmatpush.msrb.mxu0 %v3968_v6  ;;  %v2136_v3 = vadd.f32 %v10404_v18, %v2113_v50  ;;  %v3998_v13 = vld [vmem:[%s10281_s3 + $0x118] sm:$0xff]  ;;  %v3979_v52 = vld [vmem:[%s10281_s3 + $0x80] sm:$0xff]  ;;  %v3955_v20 = vmax.f32 %v2225_v32, 0.0  ;;  %v10416_v62 = vld [vmem:[#allocation32_spill] sm:$0xff] }
 0x5da   :  { %4064 = vmatpush.msrb.mxu1 %v3984_v63  ;;  %4087 = vmatpush.msrb.mxu2 %v4000_v1  ;;  %v2734_v39 = vadd.f32 %v10408_v19, %v2711_v46  ;;  %v10411_v45 = vld [vmem:[#allocation65_spill] sm:$0xff]  ;;  %v3995_v2 = vld [vmem:[%s10281_s3 + $0x100] sm:$0xff]  ;;  %v3400_v60 = vpop.f32.mrf.mxu3  ;;  %v3957_v63 = vmax.f32 %v3375_v57, 0.0  ;;  %v3355_v0 = vadd.f32 %v3354_v35, %v3332_v31  ;;  %v10417_v16 = vld [vmem:[#allocation67_spill] sm:$0xff] }
 0x5db   :  { %4042 = vmatpush.msrb.mxu0 %v3967_v58  ;;  %v2159_v53 = vadd.f32 %v10409_v51, %v2136_v3  ;;  %v2800_v59 = vadd.f32 %v10411_v45, %v2777_v7  ;;  %v10412_v43 = vld [vmem:[#allocation29_spill] sm:$0xff]  ;;  %v10414_v23 = vld [vmem:[#allocation66_spill] sm:$0xff]  ;;  %v4025_v35 = vld [vmem:[%s10281_s3 + $0x1f0] sm:$0xff] }
 0x5dc   :  { %4065 = vmatpush.msrb.mxu1 %v3983_v42  ;;  %4088 = vmatpush.msrb.mxu2 %v3999_v38  ;;  %v2757_v47 = vadd.f32 %v10413_v14, %v2734_v39  ;;  %v10415_v1 = vld [vmem:[#allocation30_spill] sm:$0xff]  ;;  %v3443_v58 = vpop.f32.mrf.mxu1  ;;  %v3378_v41 = vadd.f32 %v3377_v27, %v3355_v0  ;;  %v4026_v39 = vld [vmem:[%s10281_s3 + $0x1f8] sm:$0xff] }
 0x5dd   :  { %4043 = vmatpush.msrb.mxu0 %v3966_v22  ;;  %v2182_v9 = vadd.f32 %v10412_v43, %v2159_v53  ;;  %v3956_v6 = vmax.f32 %v2800_v59, 0.0  ;;  %v3420_v30 = vpop.f32.mrf.mxu0  ;;  %v4288_v10 = vld [vmem:[%s10280_s2] sm:$0xf]  ;;  %4100 = vmatpush.msrb.mxu3 %v4026_v39  ;;  %v4022_v45 = vld [vmem:[%s10281_s3 + $0x1d8] sm:$0xff]  ;;  %v4020_v43 = vld [vmem:[%s10281_s3 + $0x1c8] sm:$0xff] }
 0x5de   :  { %4066 = vmatpush.msrb.mxu1 %v3982_v33  ;;  %4089 = vmatpush.msrb.mxu2 %v3998_v13  ;;  %v2780_v24 = vadd.f32 %v10414_v23, %v2757_v47  ;;  %v3961_v42 = vmax.f32 %v3378_v41, 0.0  ;;  %v1643_v7 = vperm.slane %v4288_v10, 3  ;;  %v4023_v53 = vld [vmem:[%s10281_s3 + $0x1e0] sm:$0xff]  ;;  %v4014_v41 = vld [vmem:[%s10281_s3 + $0x198] sm:$0xff] }
 0x5df   :  { %4044 = vmatpush.msrb.mxu0 %v3965_v26  ;;  %v2205_v44 = vadd.f32 %v10415_v1, %v2182_v9  ;;  %4101 = vmatpush.msrb.mxu3 %v4025_v35  ;;  %v4019_v14 = vld [vmem:[%s10281_s3 + $0x1c0] sm:$0xff] }
 0x5e0   :  { %4067 = vmatpush.msrb.mxu1 %v3981_v56  ;;  %4090 = vmatpush.msrb.mxu2 %v3997_v34  ;;  %v2803_v5 = vadd.f32 %v10417_v16, %v2780_v24  ;;  %v3466_v4 = vpop.f32.mrf.mxu2  ;;  %v3398_v48 = vadd.f32 %v10156_v25, %v1643_v7  ;;  %v3401_v56 = vadd.f32 %v3400_v60, %v1643_v7  ;;  %v4024_v25 = vld [vmem:[%s10281_s3 + $0x1e8] sm:$0xff] }
 0x5e1   :  { %4045 = vmatpush.msrb.mxu0 %v3964_v36  ;;  %v2228_v50 = vadd.f32 %v10416_v62, %v2205_v44  ;;  %4102 = vmatpush.msrb.mxu3 %v4024_v25  ;;  %v4015_v62 = vld [vmem:[%s10281_s3 + $0x1a0] sm:$0xff] }
 0x5e2   :  { %4068 = vmatpush.msrb.mxu1 %v3980_v21  ;;  %4091 = vmatpush.msrb.mxu2 %v3996_v12  ;;  %v3960_v11 = vmax.f32 %v2803_v5, 0.0  ;;  %v3489_v8 = vpop.f32.mrf.mxu3  ;;  %v3421_v49 = vadd.f32 %v3420_v30, %v3398_v48  ;;  %v4017_v30 = vld [vmem:[%s10281_s3 + $0x1b0] sm:$0xff] }
 0x5e3   :  { %4046 = vmatpush.msrb.mxu0 %v3963_v37  ;;  %v3959_v40 = vmax.f32 %v2228_v50, 0.0  ;;  %4103 = vmatpush.msrb.mxu3 %v4023_v53  ;;  %v4021_v37 = vld [vmem:[%s10281_s3 + $0x1d0] sm:$0xff] }
 0x5e4   :  { %4069 = vmatpush.msrb.mxu1 %v3979_v52  ;;  %4092 = vmatpush.msrb.mxu2 %v3995_v2  ;;  %v3446_v61 = vpop.f32.mrf.mxu1  ;;  %v3444_v34 = vadd.f32 %v3443_v58, %v3421_v49  ;;  %v4018_v2 = vld [vmem:[%s10281_s3 + $0x1b8] sm:$0xff]  ;;  %v4016_v58 = vld [vmem:[%s10281_s3 + $0x1a8] sm:$0xff] }
 0x5e5   :  { %4047 = vmatmul.f32.vlgmr.msrb.gmra.mxu0 %v3955_v20  ;;  %4070 = vmatmul.f32.vlgmr.msrb.gmra.mxu1 %v3956_v6  ;;  %v3423_v38 = vpop.f32.mrf.mxu0 }
 0x5e6   :  { %4093 = vmatmul.f32.vlgmr.msrb.gmra.mxu2 %v3957_v63  ;;  %v3424_v36 = vadd.f32 %v3423_v38, %v3401_v56  ;;  %v3467_v51 = vadd.f32 %v3466_v4, %v3444_v34  ;;  %4104 = vmatpush.msrb.mxu3 %v4022_v45  ;;  %v4013_v38 = vld [vmem:[%s10281_s3 + $0x190] sm:$0xff] }
 0x5e8   :  { %v3469_v22 = vpop.f32.mrf.mxu2  ;;  %v3447_v59 = vadd.f32 %v3446_v61, %v3424_v36  ;;  %v3490_v21 = vadd.f32 %v3489_v8, %v3467_v51  ;;  %4105 = vmatpush.msrb.mxu3 %v4021_v37 }
 0x5ea   :  { %v3492_v18 = vpop.f32.mrf.mxu3  ;;  %v3470_v55 = vadd.f32 %v3469_v22, %v3447_v59  ;;  %4106 = vmatpush.msrb.mxu3 %v4020_v43  ;;  %v4012_v22 = vld [vmem:[%s10281_s3 + $0x188] sm:$0xff] }
 0x5ec   :  { %v3535_v29 = vpop.f32.mrf.mxu1  ;;  %v3493_v47 = vadd.f32 %v3492_v18, %v3470_v55  ;;  %4107 = vmatpush.msrb.mxu3 %v4019_v14 }
 0x5ed   :  { %4050 = vmatmul.f32.gmra.mxu0 %v3959_v40  ;;  %4073 = vmatmul.f32.gmra.mxu1 %v3960_v11  ;;  %v3512_v3 = vpop.f32.mrf.mxu0 }
 0x5ee   :  { %4096 = vmatmul.f32.gmra.mxu2 %v3961_v42  ;;  %v3513_v9 = vadd.f32 %v3512_v3, %v3490_v21  ;;  %4108 = vmatpush.msrb.mxu3 %v4018_v2 }
 0x5f0   :  { %v3558_v46 = vpop.f32.mrf.mxu2  ;;  %v3536_v31 = vadd.f32 %v3535_v29, %v3513_v9  ;;  %4109 = vmatpush.msrb.mxu3 %v4017_v30 }
 0x5f2   :  { %v3581_v17 = vpop.f32.mrf.mxu3  ;;  %v3559_v24 = vadd.f32 %v3558_v46, %v3536_v31  ;;  %4110 = vmatpush.msrb.mxu3 %v4016_v58  ;;  %v4011_v46 = vld [vmem:[%s10281_s3 + $0x180] sm:$0xff] }
 0x5f4   :  { %v3538_v13 = vpop.f32.mrf.mxu1  ;;  %v3582_v60 = vadd.f32 %v3581_v17, %v3559_v24  ;;  %4111 = vmatpush.msrb.mxu3 %v4015_v62 }
 0x5f5   :  { %v3515_v33 = vpop.f32.mrf.mxu0 }
 0x5f6   :  { %v3516_v6 = vadd.f32 %v3515_v33, %v3493_v47  ;;  %4112 = vmatpush.msrb.mxu3 %v4014_v41 }
 0x5f8   :  { %v3561_v26 = vpop.f32.mrf.mxu2  ;;  %v3539_v63 = vadd.f32 %v3538_v13, %v3516_v6  ;;  %4113 = vmatpush.msrb.mxu3 %v4013_v38 }
 0x5fa   :  { %v3584_v15 = vpop.f32.mrf.mxu3  ;;  %v3562_v16 = vadd.f32 %v3561_v26, %v3539_v63  ;;  %4114 = vmatpush.msrb.mxu3 %v4012_v22 }
 0x5fc   :  { %v3627_v28 = vpop.f32.mrf.mxu1  ;;  %v3585_v11 = vadd.f32 %v3584_v15, %v3562_v16  ;;  %4115 = vmatpush.msrb.mxu3 %v4011_v46 }
 0x5fd   :  { %v3604_v19 = vpop.f32.mrf.mxu0 }
 0x5fe   :  { %v3605_v44 = vadd.f32 %v3604_v19, %v3582_v60 }
 0x600   :  { %v3650_v54 = vpop.f32.mrf.mxu2  ;;  %v3628_v5 = vadd.f32 %v3627_v28, %v3605_v44 }
 0x602   :  { %v3673_v32 = vpop.f32.mrf.mxu3  ;;  %v3651_v40 = vadd.f32 %v3650_v54, %v3628_v5 }
 0x604   :  { %v3630_v57 = vpop.f32.mrf.mxu1  ;;  %v3674_v42 = vadd.f32 %v3673_v32, %v3651_v40 }
 0x605   :  { %v3607_v12 = vpop.f32.mrf.mxu0 }
 0x606   :  { %v3608_v8 = vadd.f32 %v3607_v12, %v3585_v11 }
 0x608   :  { %v3653_v52 = vpop.f32.mrf.mxu2  ;;  %v3631_v10 = vadd.f32 %v3630_v57, %v3608_v8 }
 0x60a   :  { %v3676_v27 = vpop.f32.mrf.mxu3  ;;  %v3654_v33 = vadd.f32 %v3653_v52, %v3631_v10 }
 0x60c   :  { %v3719_v23 = vpop.f32.mrf.mxu1  ;;  %v3677_v48 = vadd.f32 %v3676_v27, %v3654_v33 }
 0x60d   :  { %v3696_v20 = vpop.f32.mrf.mxu0 }
 0x60e   :  { %v3697_v18 = vadd.f32 %v3696_v20, %v3674_v42 }
 0x610   :  { %v3742_v1 = vpop.f32.mrf.mxu2  ;;  %v3720_v17 = vadd.f32 %v3719_v23, %v3697_v18 }
 0x612   :  { %v3765_v0 = vpop.f32.mrf.mxu3  ;;  %v3743_v13 = vadd.f32 %v3742_v1, %v3720_v17  ;;  %v4137_v1 = vld [vmem:[%s10282_s4] ss:$0 sm:$0xff] }
 0x614   :  { %v3722_v4 = vpop.f32.mrf.mxu1  ;;  %v3766_v49 = vadd.f32 %v3765_v0, %v3743_v13 }
 0x615   :  { %v3699_v50 = vpop.f32.mrf.mxu0 }
 0x616   :  { %v3700_v19 = vadd.f32 %v3699_v50, %v3677_v48 }
 0x618   :  { %v3745_v61 = vpop.f32.mrf.mxu2  ;;  %v3723_v34 = vadd.f32 %v3722_v4, %v3700_v19 }
 0x61a   :  { %v3768_v3 = vpop.f32.mrf.mxu3  ;;  %v3746_v25 = vadd.f32 %v3745_v61, %v3723_v34 }
 0x61c   :  { %v3811_v7 = vpop.f32.mrf.mxu1  ;;  %v3769_v51 = vadd.f32 %v3768_v3, %v3746_v25 }
 0x61d   :  { %v3788_v29 = vpop.f32.mrf.mxu0 }
 0x61e   :  { %v3789_v39 = vadd.f32 %v3788_v29, %v3766_v49 }
 0x620   :  { %v3834_v26 = vpop.f32.mrf.mxu2  ;;  %v3812_v35 = vadd.f32 %v3811_v7, %v3789_v39 }
 0x622   :  { %v3857_v15 = vpop.f32.mrf.mxu3  ;;  %v3835_v36 = vadd.f32 %v3834_v26, %v3812_v35 }
 0x624   :  { %v3814_v28 = vpop.f32.mrf.mxu1  ;;  %v3858_v54 = vadd.f32 %v3857_v15, %v3835_v36 }
 0x625   :  { %v3791_v56 = vpop.f32.mrf.mxu0 }
 0x626   :  { %v3792_v59 = vadd.f32 %v3791_v56, %v3769_v51 }
 0x628   :  { %v3837_v53 = vpop.f32.mrf.mxu2  ;;  %v3815_v55 = vadd.f32 %v3814_v28, %v3792_v59 }
 0x62a   :  { %v3860_v32 = vpop.f32.mrf.mxu3  ;;  %v3838_v37 = vadd.f32 %v3837_v53, %v3815_v55 }
 0x62c   :  { %v3861_v14 = vadd.f32 %v3860_v32, %v3838_v37 }
 0x63c   :  { %v3880_v45 = vpop.f32.mrf.mxu0 }
 0x63d   :  { %v3881_v21 = vadd.f32 %v3880_v45, %v3858_v54  ;;  %v3903_v12 = vpop.f32.mrf.mxu1 }
 0x63f   :  { %v3904_v57 = vadd.f32 %v3903_v12, %v3881_v21 }
 0x646   :  { %v3949_v52 = vpop.f32.mrf.mxu3 }
 0x648   :  { %v3883_v47 = vpop.f32.mrf.mxu0 }
 0x649   :  { %v3884_v2 = vadd.f32 %v3883_v47, %v3861_v14 }
 0x64a   :  { %v3926_v43 = vpop.f32.mrf.mxu2 }
 0x64b   :  { %v3927_v9 = vadd.f32 %v3926_v43, %v3904_v57  ;;  %v3906_v27 = vpop.f32.mrf.mxu1 }
 0x64c   :  { %v3907_v6 = vadd.f32 %v3906_v27, %v3884_v2 }
 0x64d   :  { %v3950_v31 = vadd.f32 %v3949_v52, %v3927_v9 }
 0x64e   :  { %v3952_v30 = vpop.f32.mrf.mxu3 }
 0x64f   :  { %v3958_v20 = vmax.f32 %v3950_v31, 0.0 }
 0x651   :  { %4116 = vmatmul.f32.vlgmr.msrb.gmra.mxu3 %v3958_v20 }
 0x652   :  { %v3929_v23 = vpop.f32.mrf.mxu2 }
 0x653   :  { %v3930_v24 = vadd.f32 %v3929_v23, %v3907_v6 }
 0x655   :  { %v3953_v60 = vadd.f32 %v3952_v30, %v3930_v24 }
 0x657   :  { %v3962_v63 = vmax.f32 %v3953_v60, 0.0 }
 0x659   :  { %4119 = vmatmul.f32.gmra.mxu3 %v3962_v63 }
 0x662   :  { %v4048_v44 = vpop.f32.mrf.mxu0  ;;  %v4071_v58 = vpop.f32.mrf.mxu1 }
 0x663   :  { %v4049_v0 = vadd.f32 %v4137_v1, %v4048_v44 }
 0x665   :  { %v4072_v50 = vadd.f32 %v4071_v58, %v4049_v0 }
 0x669   :  { %v4094_v62 = vpop.f32.mrf.mxu2 }
 0x66a   :  { %v4095_v16 = vadd.f32 %v4094_v62, %v4072_v50  ;;  %v4051_v5 = vpop.f32.mrf.mxu0  ;;  %v4074_v11 = vpop.f32.mrf.mxu1 }
 0x66b   :  { %v4052_v40 = vadd.f32 %v4137_v1, %v4051_v5 }
 0x66d   :  { %v4075_v38 = vadd.f32 %v4074_v11, %v4052_v40 }
 0x671   :  { %v4097_v42 = vpop.f32.mrf.mxu2 }
 0x672   :  { %v4098_v8 = vadd.f32 %v4097_v42, %v4075_v38 }
 0x6d4   :  { %v4117_v41 = vpop.f32.mrf.mxu3 }
 0x6d5   :  { %v4118_v4 = vadd.f32 %v4117_v41, %v4095_v16 }
 0x6d7   :  { %4123 = vst [vmem:[%s10283_s5] sm:$0xff] %v4118_v4 }
 0x6dc   :  { %v4120_v61 = vpop.f32.mrf.mxu3 }
 0x6dd   :  { %v4121_v22 = vadd.f32 %v4120_v61, %v4098_v8 }
 0x6df   :  { %4124 = vst [vmem:[%s10283_s5 + $0x8] sm:$0xff] %v4121_v22 }

</bundles_post_ra>
